<compile_context>
chip_gen: v7x
topology: tpu7x:2x2x1
jax: 0.10.0
libtpu: 0.0.40
codegen_flags: <defaults>
</compile_context>

<pallas_src>
import functools
import math

import jax
import jax.numpy as jnp
from jax import lax
from jax.experimental import pallas as pl
from jax.experimental.pallas import tpu as pltpu


# ----------------------------------------------------------------------------
# Tiling helpers.
# ----------------------------------------------------------------------------

_TM, _TN, _TK = 256, 512, 512
_VMEM_LIMIT = 64 * 1024 * 1024


def _round_up(x, m):
    return ((x + m - 1) // m) * m


def _row_tiling(m, target=_TM):
    """Row-tile size (multiple of 8) and padded row count."""
    tm = min(target, _round_up(m, 8))
    return tm, _round_up(m, tm)


def _pad_rows(a, mp):
    m = a.shape[0]
    if mp == m:
        return a
    return jnp.pad(a, ((0, mp - m), (0, 0)))


def _tile_minor(dim, target):
    """Tile for a minor (lane) dim: multiple of 128 dividing dim, or full."""
    if dim <= target or dim % 128 != 0:
        return dim
    t = (min(target, dim) // 128) * 128
    while t >= 128:
        if dim % t == 0:
            return t
        t -= 128
    return dim


def _cparams(*sem):
    return pltpu.CompilerParams(dimension_semantics=sem,
                                vmem_limit_bytes=_VMEM_LIMIT)


# ----------------------------------------------------------------------------
# Generic tiled matmul: bf16 MXU inputs, fp32 accumulation, fused
# bias / activation / residual epilogue.
# ----------------------------------------------------------------------------

def _matmul_kernel(x_ref, w_ref, b_ref, *refs, act, out_scale, nsteps, has_res):
    if has_res:
        r_ref, o_ref, acc_ref = refs
    else:
        r_ref = None
        o_ref, acc_ref = refs

    k = pl.program_id(2)

    @pl.when(k == 0)
    def _():
        acc_ref[...] = jnp.zeros_like(acc_ref)

    acc_ref[...] += jnp.dot(x_ref[...], w_ref[...],
                            preferred_element_type=jnp.float32)

    @pl.when(k == nsteps - 1)
    def _():
        y = acc_ref[...] + b_ref[...]
        if act == "swish":
            y = y * jax.nn.sigmoid(y)
        elif act == "relu":
            y = jnp.maximum(y, 0.0)
        if has_res:
            y = r_ref[...] + out_scale * y
        elif out_scale != 1.0:
            y = out_scale * y
        o_ref[...] = y.astype(o_ref.dtype)


def matmul(x, w, b, *, act="none", residual=None, out_scale=1.0,
           out_dtype=jnp.float32):
    """x:(M,K) @ w:(K,N) + b, fused act / residual, bf16 inputs, fp32 acc."""
    M, K = x.shape
    N = w.shape[1]
    x = x.astype(jnp.bfloat16)
    w = w.astype(jnp.bfloat16)
    tm, Mp = _row_tiling(M)
    x = _pad_rows(x, Mp)
    tn = _tile_minor(N, _TN)
    tk = _tile_minor(K, _TK)
    grid = (Mp // tm, N // tn, K // tk)

    in_specs = [pl.BlockSpec((tm, tk), lambda i, j, k: (i, k)),
                pl.BlockSpec((tk, tn), lambda i, j, k: (k, j)),
                pl.BlockSpec((1, tn), lambda i, j, k: (0, j))]
    args = [x, w, b.reshape(1, N).astype(jnp.float32)]
    if residual is not None:
        in_specs.append(pl.BlockSpec((tm, tn), lambda i, j, k: (i, j)))
        args.append(_pad_rows(residual.astype(jnp.float32), Mp))

    out = pl.pallas_call(
        functools.partial(_matmul_kernel, act=act, out_scale=out_scale,
                          nsteps=grid[2], has_res=residual is not None),
        grid=grid,
        in_specs=in_specs,
        out_specs=pl.BlockSpec((tm, tn), lambda i, j, k: (i, j)),
        out_shape=jax.ShapeDtypeStruct((Mp, N), out_dtype),
        scratch_shapes=[pltpu.VMEM((tm, tn), jnp.float32)],
        compiler_params=_cparams("parallel", "parallel", "arbitrary"),
    )(*args)
    return out[:M] if Mp != M else out


# ----------------------------------------------------------------------------
# Fused LayerNorm -> GEMM kernels (LN computed once per row tile).
# ----------------------------------------------------------------------------

def _ln_normalize(x, g, be):
    mu = jnp.mean(x, axis=-1, keepdims=True)
    var = jnp.mean(jnp.square(x - mu), axis=-1, keepdims=True)
    return ((x - mu) * lax.rsqrt(var + 1e-5) * g + be).astype(jnp.bfloat16)


def _ffn_kernel(x_ref, g_ref, be_ref, w1_ref, b1_ref, w2_ref, b2_ref, o_ref,
                *, factor):
    x = x_ref[...]                                         # (tm, D) fp32 residual
    xn = _ln_normalize(x, g_ref[...], be_ref[...])         # (tm, D) bf16
    h = jnp.dot(xn, w1_ref[...], preferred_element_type=jnp.float32) + b1_ref[...]
    h = h * jax.nn.sigmoid(h)                              # Swish, stays in VMEM
    y = jnp.dot(h.astype(jnp.bfloat16), w2_ref[...],
                preferred_element_type=jnp.float32) + b2_ref[...]
    o_ref[...] = x + factor * y


def ffn_block(x, p, factor):
    """Residual + half-step FFN: LN -> W1 -> Swish -> W2, fully fused."""
    B, T, D = x.shape
    H = p["w1"].shape[1]
    x2 = x.reshape(B * T, D)
    M = B * T
    tm, Mp = _row_tiling(M)
    xp = _pad_rows(x2, Mp)
    out = pl.pallas_call(
        functools.partial(_ffn_kernel, factor=factor),
        grid=(Mp // tm,),
        in_specs=[pl.BlockSpec((tm, D), lambda i: (i, 0)),
                  pl.BlockSpec((1, D), lambda i: (0, 0)),
                  pl.BlockSpec((1, D), lambda i: (0, 0)),
                  pl.BlockSpec((D, H), lambda i: (0, 0)),
                  pl.BlockSpec((1, H), lambda i: (0, 0)),
                  pl.BlockSpec((H, D), lambda i: (0, 0)),
                  pl.BlockSpec((1, D), lambda i: (0, 0))],
        out_specs=pl.BlockSpec((tm, D), lambda i: (i, 0)),
        out_shape=jax.ShapeDtypeStruct((Mp, D), jnp.float32),
        compiler_params=_cparams("parallel"),
    )(xp, p["ln_g"].reshape(1, D), p["ln_b"].reshape(1, D),
      p["w1"].astype(jnp.bfloat16), p["b1"].reshape(1, H).astype(jnp.float32),
      p["w2"].astype(jnp.bfloat16), p["b2"].reshape(1, D).astype(jnp.float32))
    out = out[:M] if Mp != M else out
    return out.reshape(B, T, D)


def _ln_matmul_kernel(x_ref, g_ref, be_ref, w_ref, b_ref, o_ref):
    xn = _ln_normalize(x_ref[...], g_ref[...], be_ref[...])
    y = jnp.dot(xn, w_ref[...], preferred_element_type=jnp.float32) + b_ref[...]
    o_ref[...] = y.astype(o_ref.dtype)


def ln_matmul(x, gamma, beta, w, b, *, out_dtype=jnp.bfloat16):
    """LayerNorm(x) @ w + b.  Grid over rows only (full-N weight block)."""
    M, D = x.shape
    N = w.shape[1]
    tm, Mp = _row_tiling(M)
    xp = _pad_rows(x, Mp)
    out = pl.pallas_call(
        _ln_matmul_kernel,
        grid=(Mp // tm,),
        in_specs=[pl.BlockSpec((tm, D), lambda i: (i, 0)),
                  pl.BlockSpec((1, D), lambda i: (0, 0)),
                  pl.BlockSpec((1, D), lambda i: (0, 0)),
                  pl.BlockSpec((D, N), lambda i: (0, 0)),
                  pl.BlockSpec((1, N), lambda i: (0, 0))],
        out_specs=pl.BlockSpec((tm, N), lambda i: (i, 0)),
        out_shape=jax.ShapeDtypeStruct((Mp, N), out_dtype),
        compiler_params=_cparams("parallel"),
    )(xp, gamma.reshape(1, D), beta.reshape(1, D),
      w.astype(jnp.bfloat16), b.reshape(1, N).astype(jnp.float32))
    return out[:M] if Mp != M else out


def _ln_glu_kernel(x_ref, g_ref, be_ref, wa_ref, ba_ref, wb_ref, bb_ref, o_ref):
    xn = _ln_normalize(x_ref[...], g_ref[...], be_ref[...])
    ya = jnp.dot(xn, wa_ref[...], preferred_element_type=jnp.float32) + ba_ref[...]
    yb = jnp.dot(xn, wb_ref[...], preferred_element_type=jnp.float32) + bb_ref[...]
    o_ref[...] = (ya * jax.nn.sigmoid(yb)).astype(o_ref.dtype)


def ln_matmul_glu(x, gamma, beta, wa, ba, wb, bb):
    """LayerNorm -> pointwise conv (split-weight halves) -> GLU, bf16 output."""
    M, D = x.shape
    N = wa.shape[1]
    tm, Mp = _row_tiling(M)
    xp = _pad_rows(x, Mp)
    out = pl.pallas_call(
        _ln_glu_kernel,
        grid=(Mp // tm,),
        in_specs=[pl.BlockSpec((tm, D), lambda i: (i, 0)),
                  pl.BlockSpec((1, D), lambda i: (0, 0)),
                  pl.BlockSpec((1, D), lambda i: (0, 0)),
                  pl.BlockSpec((D, N), lambda i: (0, 0)),
                  pl.BlockSpec((1, N), lambda i: (0, 0)),
                  pl.BlockSpec((D, N), lambda i: (0, 0)),
                  pl.BlockSpec((1, N), lambda i: (0, 0))],
        out_specs=pl.BlockSpec((tm, N), lambda i: (i, 0)),
        out_shape=jax.ShapeDtypeStruct((Mp, N), jnp.bfloat16),
        compiler_params=_cparams("parallel"),
    )(xp, gamma.reshape(1, D), beta.reshape(1, D),
      wa.astype(jnp.bfloat16), ba.reshape(1, N).astype(jnp.float32),
      wb.astype(jnp.bfloat16), bb.reshape(1, N).astype(jnp.float32))
    return out[:M] if Mp != M else out


# ----------------------------------------------------------------------------
# Standalone row-tiled LayerNorm (final norm of each block).
# ----------------------------------------------------------------------------

def _layernorm_kernel(x_ref, g_ref, b_ref, o_ref):
    x = x_ref[...]
    mu = jnp.mean(x, axis=-1, keepdims=True)
    var = jnp.mean(jnp.square(x - mu), axis=-1, keepdims=True)
    o_ref[...] = (x - mu) * lax.rsqrt(var + 1e-5) * g_ref[...] + b_ref[...]


def layernorm(x, gamma, beta):
    shp = x.shape
    D = shp[-1]
    x2 = x.reshape(-1, D)
    M = x2.shape[0]
    tm, Mp = _row_tiling(M)
    xp = _pad_rows(x2, Mp)
    y = pl.pallas_call(
        _layernorm_kernel,
        grid=(Mp // tm,),
        in_specs=[pl.BlockSpec((tm, D), lambda i: (i, 0)),
                  pl.BlockSpec((1, D), lambda i: (0, 0)),
                  pl.BlockSpec((1, D), lambda i: (0, 0))],
        out_specs=pl.BlockSpec((tm, D), lambda i: (i, 0)),
        out_shape=jax.ShapeDtypeStruct((Mp, D), jnp.float32),
        compiler_params=_cparams("parallel"),
    )(xp, gamma.reshape(1, D), beta.reshape(1, D))
    y = y[:M] if Mp != M else y
    return y.reshape(shp)


# ----------------------------------------------------------------------------
# Relative-position multi-head attention: one fused kernel per batch element.
# ----------------------------------------------------------------------------

def _rel_shift(a):
    """Exact Transformer-XL relative shift of a (T, T) score matrix, in VMEM.

    Equivalent to: pad a zero column on the left, view as (T+1, T), drop the
    first row, view back to (T, T).  Implemented as a per-row circular left
    shift (shear) of E = [0 | a | 0 | a_up] by (T - i), using a log2(T)
    barrel shifter built only from static slices, concats and selects."""
    T = a.shape[0]
    W = 2 * T + 2
    a_up = jnp.concatenate([a[1:, :], a[:1, :]], axis=0)    # row i -> a[i+1]
    zcol = jnp.zeros((T, 1), a.dtype)
    e = jnp.concatenate([zcol, a, zcol, a_up], axis=1)      # (T, 2T+2)
    rows = lax.broadcasted_iota(jnp.int32, (T, W), 0)
    shift = T - rows                                        # left shift per row
    for bit in range(max(1, T.bit_length())):
        k = 1 << bit
        rolled = jnp.concatenate([e[:, k:], e[:, :k]], axis=1)  # rotate left k
        e = jnp.where((shift & k) != 0, rolled, e)
    return e[:, :T]


def _attention_kernel(qkv_ref, pos_ref, u_ref, v_ref, wo_ref, bo_ref, res_ref,
                      o_ref, *, num_heads, head_dim, inv_sqrt_d):
    D = num_heads * head_dim
    qkv = qkv_ref[0]                    # (T, 3D) bf16 — heads sliced statically
    pos = pos_ref[...]                  # (T, D)  bf16

    dn = (((1,), (1,)), ((), ()))       # contract on dh (no k^T materialized)
    ctx_parts = []
    for h in range(num_heads):
        lo, hi = h * head_dim, (h + 1) * head_dim
        q = qkv[:, lo:hi].astype(jnp.float32)               # (T, dh)
        k = qkv[:, D + lo:D + hi]                            # (T, dh) bf16
        v = qkv[:, 2 * D + lo:2 * D + hi]                    # (T, dh) bf16
        p_h = pos[:, lo:hi]                                  # (T, dh) bf16
        qc = (q + u_ref[h:h + 1, :]).astype(jnp.bfloat16)
        qp = (q + v_ref[h:h + 1, :]).astype(jnp.bfloat16)

        content = lax.dot_general(qc, k, dn, preferred_element_type=jnp.float32)
        pos_sc = lax.dot_general(qp, p_h, dn, preferred_element_type=jnp.float32)

        scores = (content + _rel_shift(pos_sc)) * inv_sqrt_d
        scores = scores - jnp.max(scores, axis=-1, keepdims=True)
        p = jnp.exp(scores)
        p = p / jnp.sum(p, axis=-1, keepdims=True)           # exact softmax

        ctx = jnp.dot(p.astype(jnp.bfloat16), v,
                      preferred_element_type=jnp.float32)     # (T, dh)
        ctx_parts.append(ctx.astype(jnp.bfloat16))

    ctx_all = jnp.concatenate(ctx_parts, axis=1)              # (T, D) bf16
    out = jnp.dot(ctx_all, wo_ref[...], preferred_element_type=jnp.float32)
    o_ref[0] = out + bo_ref[...] + res_ref[0]                 # + MHSA residual


def attention(qkv, pos, u_bias, v_bias, wo, bo, residual, d_model, num_heads):
    """Fused relative-position MHSA per batch element.  No (B,H,T,T) HBM
    intermediates, single full-K output-projection GEMM, lane-dense output."""
    # TODO(synk): add query/KV tiling (flash-style) for very long T on v7x.
    B, T, _ = qkv.shape
    D = d_model
    dh = D // num_heads
    return pl.pallas_call(
        functools.partial(_attention_kernel, num_heads=num_heads,
                          head_dim=dh, inv_sqrt_d=1.0 / math.sqrt(D)),
        grid=(B,),
        in_specs=[pl.BlockSpec((1, T, 3 * D), lambda b: (b, 0, 0)),
                  pl.BlockSpec((T, D), lambda b: (0, 0)),
                  pl.BlockSpec((num_heads, dh), lambda b: (0, 0)),
                  pl.BlockSpec((num_heads, dh), lambda b: (0, 0)),
                  pl.BlockSpec((D, D), lambda b: (0, 0)),
                  pl.BlockSpec((1, D), lambda b: (0, 0)),
                  pl.BlockSpec((1, T, D), lambda b: (b, 0, 0))],
        out_specs=pl.BlockSpec((1, T, D), lambda b: (b, 0, 0)),
        out_shape=jax.ShapeDtypeStruct((B, T, D), jnp.float32),
        compiler_params=_cparams("parallel"),
    )(qkv, pos, u_bias.astype(jnp.float32), v_bias.astype(jnp.float32),
      wo.astype(jnp.bfloat16), bo.reshape(1, D).astype(jnp.float32), residual)


# ----------------------------------------------------------------------------
# Depthwise conv + BatchNorm(eval) + Swish kernel.
# ----------------------------------------------------------------------------

def _dwconv_bn_swish_kernel(x_ref, w_ref, scale_ref, shift_ref, o_ref, *, K):
    T = o_ref.shape[1]
    acc = x_ref[0, 0:T, :] * w_ref[0:1, :]                  # bf16 * f32 -> f32
    for k in range(1, K):
        acc = acc + x_ref[0, k:k + T, :] * w_ref[k:k + 1, :]
    y = acc * scale_ref[...] + shift_ref[...]               # eval-mode BatchNorm1d
    o_ref[0] = (y * jax.nn.sigmoid(y)).astype(o_ref.dtype)  # Swish


def depthwise_conv_bn_swish(x, w, bn_scale, bn_shift):
    """x:(B,T,C) bf16, per-channel kernel w:(K,C), 'same' padding along T."""
    B, T, C = x.shape
    K = w.shape[0]
    pad = (K - 1) // 2
    x_pad = jnp.pad(x, ((0, 0), (pad, pad), (0, 0)))
    Tp = T + 2 * pad
    # TODO(synk): for very long T add a time-tiled grid with halo + pltpu.roll.
    return pl.pallas_call(
        functools.partial(_dwconv_bn_swish_kernel, K=K),
        grid=(B,),
        in_specs=[pl.BlockSpec((1, Tp, C), lambda b: (b, 0, 0)),
                  pl.BlockSpec((K, C), lambda b: (0, 0)),
                  pl.BlockSpec((1, C), lambda b: (0, 0)),
                  pl.BlockSpec((1, C), lambda b: (0, 0))],
        out_specs=pl.BlockSpec((1, T, C), lambda b: (b, 0, 0)),
        out_shape=jax.ShapeDtypeStruct((B, T, C), jnp.bfloat16),
        compiler_params=_cparams("parallel"),
    )(x_pad, w.astype(jnp.float32), bn_scale.reshape(1, C).astype(jnp.float32),
      bn_shift.reshape(1, C).astype(jnp.float32))


# ----------------------------------------------------------------------------
# Glue: positional encoding, im2col subsampler.
# ----------------------------------------------------------------------------

def sinusoidal_pe(length, d_model):
    position = jnp.arange(length, dtype=jnp.float32)[:, None]
    div_term = jnp.exp(jnp.arange(0, d_model, 2, dtype=jnp.float32)
                       * (-math.log(10000.0) / d_model))
    pe = jnp.zeros((length, d_model), jnp.float32)
    pe = pe.at[:, 0::2].set(jnp.sin(position * div_term))
    pe = pe.at[:, 1::2].set(jnp.cos(position * div_term))
    return pe


def _im2col(x, ksize, stride):
    B, C, H, W = x.shape
    OH = (H - ksize) // stride + 1
    OW = (W - ksize) // stride + 1
    cols = []
    for i in range(ksize):
        for j in range(ksize):
            cols.append(x[:, :, i:i + stride * OH:stride, j:j + stride * OW:stride])
    patches = jnp.stack(cols, axis=2)                       # (B, C, k*k, OH, OW)
    patches = patches.transpose(0, 3, 4, 1, 2).reshape(B, OH * OW, C * ksize * ksize)
    return patches, OH, OW


def conv2d_relu(x, w, b, stride=2):
    """NCHW conv via im2col (bf16 patches) + tiled Pallas matmul."""
    # TODO(synk): replace XLA-level im2col with an in-kernel patch gather.
    Cout, Cin, kh, kw = w.shape
    B = x.shape[0]
    patches, OH, OW = _im2col(x.astype(jnp.bfloat16), kh, stride)
    wmat = w.reshape(Cout, Cin * kh * kw).T
    y = matmul(patches.reshape(B * OH * OW, Cin * kh * kw), wmat, b,
               act="relu", out_dtype=jnp.bfloat16)
    return y.reshape(B, OH, OW, Cout).transpose(0, 3, 1, 2)


# ----------------------------------------------------------------------------
# Conformer modules (eval-mode semantics; dropout = identity).
# ----------------------------------------------------------------------------

def mhsa_block(x, p, num_heads):
    B, T, D = x.shape
    x2 = x.reshape(B * T, D)
    # LayerNorm fused into the combined QKV projection (bf16 stream to attention).
    qkv = ln_matmul(x2, p["ln_g"], p["ln_b"], p["w_qkv"], p["b_qkv"])
    qkv = qkv.reshape(B, T, 3 * D)
    pe = sinusoidal_pe(T, D)
    pos = matmul(pe, p["wp"], jnp.zeros((D,), jnp.float32),
                 out_dtype=jnp.bfloat16)                    # pos_proj, no bias
    return attention(qkv, pos, p["u_bias"], p["v_bias"], p["wo"], p["bo"],
                     x, D, num_heads)


def conv_block(x, p):
    B, T, D = x.shape
    x2 = x.reshape(B * T, D)
    g = ln_matmul_glu(x2, p["ln_g"], p["ln_b"],
                      p["w_pw1a"], p["b_pw1a"], p["w_pw1b"], p["b_pw1b"])
    g = g.reshape(B, T, D)
    c = depthwise_conv_bn_swish(g, p["w_dw"], p["bn_scale"], p["bn_shift"])
    y = matmul(c.reshape(B * T, D), p["w_pw2"], p["b_pw2"], residual=x2)
    return y.reshape(B, T, D)


def conformer_block(x, p, num_heads):
    x = ffn_block(x, p["ffn1"], 0.5)        # half-step residual FFN (fused)
    x = mhsa_block(x, p["mhsa"], num_heads)
    x = conv_block(x, p["conv"])
    x = ffn_block(x, p["ffn2"], 0.5)
    # TODO(synk): 'MLN' norm source not provided; single-input path approximated with LayerNorm.
    x = layernorm(x, p["final_ln_g"], p["final_ln_b"])
    return x


def conv_subsampling(x, lengths, p):
    # x: (B, T, F) -> NCHW (B,1,T,F) -> 2x (conv3x3 stride2 + ReLU) -> (B, T', C*F')
    h = x[:, None]
    h = conv2d_relu(h, p["w1"], p["b1"], stride=2)
    h = conv2d_relu(h, p["w2"], p["b2"], stride=2)
    B, C, Tp, Fp = h.shape
    out = h.transpose(0, 2, 1, 3).reshape(B, Tp, C * Fp)
    out_lengths = ((lengths - 1) // 2 - 1) // 2
    return out, out_lengths


def conformer_encoder(inputs, input_lengths, params, num_heads):
    x, out_lengths = conv_subsampling(inputs, input_lengths, params["subsample"])
    B, T, Din = x.shape
    x = matmul(x.reshape(B * T, Din), params["proj_w"], params["proj_b"])
    x = x.reshape(B, T, -1)
    for blk in params["blocks"]:
        x = conformer_block(x, blk, num_heads)
    return x, out_lengths


# ----------------------------------------------------------------------------
# Deterministic parameter initialization.
# ----------------------------------------------------------------------------

def init_params(key, input_dim, encoder_dim, num_layers, num_heads,
                ff_exp, conv_exp, conv_kernel):
    D = encoder_dim
    dh = D // num_heads
    f_sub = ((input_dim - 1) // 2 - 1) // 2
    keys = iter(jax.random.split(key, 4096))

    def rnd(shape, scale=0.05):
        return (scale * jax.random.normal(next(keys), shape)).astype(jnp.float32)

    def ffn():
        return dict(ln_g=jnp.ones((D,), jnp.float32), ln_b=jnp.zeros((D,), jnp.float32),
                    w1=rnd((D, D * ff_exp)), b1=jnp.zeros((D * ff_exp,), jnp.float32),
                    w2=rnd((D * ff_exp, D)), b2=jnp.zeros((D,), jnp.float32))

    def mhsa_p():
        return dict(ln_g=jnp.ones((D,), jnp.float32), ln_b=jnp.zeros((D,), jnp.float32),
                    w_qkv=rnd((D, 3 * D)), b_qkv=jnp.zeros((3 * D,), jnp.float32),
                    wp=rnd((D, D)),
                    wo=rnd((D, D)), bo=jnp.zeros((D,), jnp.float32),
                    u_bias=rnd((num_heads, dh)), v_bias=rnd((num_heads, dh)))

    def conv_p():
        bn_eps = 1e-5
        half = (D * conv_exp) // 2
        return dict(ln_g=jnp.ones((D,), jnp.float32), ln_b=jnp.zeros((D,), jnp.float32),
                    w_pw1a=rnd((D, half)), b_pw1a=jnp.zeros((half,), jnp.float32),
                    w_pw1b=rnd((D, half)), b_pw1b=jnp.zeros((half,), jnp.float32),
                    w_dw=rnd((conv_kernel, D)),
                    bn_scale=jnp.full((D,), 1.0 / math.sqrt(1.0 + bn_eps), jnp.float32),
                    bn_shift=jnp.zeros((D,), jnp.float32),
                    w_pw2=rnd((D, D)), b_pw2=jnp.zeros((D,), jnp.float32))

    blocks = [dict(ffn1=ffn(), mhsa=mhsa_p(), conv=conv_p(), ffn2=ffn(),
                   final_ln_g=jnp.ones((D,), jnp.float32),
                   final_ln_b=jnp.zeros((D,), jnp.float32))
              for _ in range(num_layers)]

    return dict(
        subsample=dict(w1=rnd((D, 1, 3, 3)), b1=jnp.zeros((D,), jnp.float32),
                       w2=rnd((D, D, 3, 3)), b2=jnp.zeros((D,), jnp.float32)),
        proj_w=rnd((D * f_sub, D)), proj_b=jnp.zeros((D,), jnp.float32),
        blocks=blocks,
    )


# ----------------------------------------------------------------------------

if __name__ == "__main__":
    B, T, input_dim = 2, 32, 16
    encoder_dim = 32
    num_layers = 2
    num_heads = 4          # head_dim = 8
    ff_exp = 4
    conv_exp = 2
    conv_kernel = 7        # odd, 'same' padding like PyTorch (k-1)//2

    key = jax.random.PRNGKey(0)
    k_in, k_par = jax.random.split(key)
    inputs = jax.random.normal(k_in, (B, T, input_dim), jnp.float32)
    input_lengths = jnp.array([32, 24], dtype=jnp.int32)

    params = init_params(k_par, input_dim, encoder_dim, num_layers, num_heads,
                         ff_exp, conv_exp, conv_kernel)

    fwd = jax.jit(conformer_encoder, static_argnames=("num_heads",))
    outputs, output_lengths = fwd(inputs, input_lengths, params,
                                  num_heads=num_heads)
    jax.block_until_ready(outputs)
    jax.block_until_ready(output_lengths)
    assert outputs.shape == (B, 7, encoder_dim), outputs.shape
    assert output_lengths.shape == (B,)
    print("KERNEL_OK")
</pallas_src>

<mosaic_0001>
module attributes {stable_mosaic.version = 11 : i64} {
  func.func @_matmul_kernel(%arg0: i32, %arg1: i32, %arg2: i32, %arg3: memref<216x9xbf16, #tpu.memory_space<vmem>>, %arg4: memref<9x32xbf16, #tpu.memory_space<vmem>>, %arg5: memref<1x32xf32, #tpu.memory_space<vmem>>, %arg6: memref<216x32xbf16, #tpu.memory_space<vmem>>, %arg7: memref<216x32xf32, #tpu.memory_space<vmem>>) attributes {dimension_semantics = [#tpu.dimension_semantics<parallel>, #tpu.dimension_semantics<parallel>, #tpu.dimension_semantics<arbitrary>], iteration_bounds = array<i64: 1, 1, 1>, scalar_prefetch = 0 : i64, scratch_operands = 1 : i64, tpu.core_type = #tpu.core_type<tc>, window_params = [{transform_indices = @transform_0, window_bounds = array<i64: 216, 9>}, {transform_indices = @transform_1, window_bounds = array<i64: 9, 32>}, {transform_indices = @transform_2, window_bounds = array<i64: 1, 32>}, {transform_indices = @transform_3, window_bounds = array<i64: 216, 32>}]} {
    %c0_i32 = arith.constant 0 : i32
    %0 = arith.cmpi eq, %arg2, %c0_i32 : i32
    %1 = arith.extui %0 : i1 to i32
    %c0_i32_0 = arith.constant 0 : i32
    %2 = arith.cmpi ne, %1, %c0_i32_0 : i32
    scf.if %2 {
      %cst_10 = arith.constant 0.000000e+00 : f32
      %12 = vector.broadcast %cst_10 : f32 to vector<216x32xf32>
      %c0_11 = arith.constant 0 : index
      %c0_12 = arith.constant 0 : index
      %13 = vector.load %arg7[%c0_11, %c0_12] : memref<216x32xf32, #tpu.memory_space<vmem>>, vector<216x32xf32>
      tpu.vector_store %arg7[%c0_11, %c0_12], %12 {strides = array<i32>} : memref<216x32xf32, #tpu.memory_space<vmem>>, vector<216x32xf32>,
    } else {
    }
    %c0 = arith.constant 0 : index
    %c0_1 = arith.constant 0 : index
    %3 = vector.load %arg7[%c0, %c0_1] : memref<216x32xf32, #tpu.memory_space<vmem>>, vector<216x32xf32>
    %c0_2 = arith.constant 0 : index
    %c0_3 = arith.constant 0 : index
    %4 = vector.load %arg3[%c0_2, %c0_3] : memref<216x9xbf16, #tpu.memory_space<vmem>>, vector<216x9xbf16>
    %c0_4 = arith.constant 0 : index
    %c0_5 = arith.constant 0 : index
    %5 = vector.load %arg4[%c0_4, %c0_5] : memref<9x32xbf16, #tpu.memory_space<vmem>>, vector<9x32xbf16>
    %cst = arith.constant dense<0.000000e+00> : vector<216x32xf32>
    %6 = tpu.matmul %4, %5, %cst {dimension_numbers = #tpu.dot_dimension_numbers<[1], [0], [0], [1], [0, 0, 1, 1], [], []>} : vector<216x9xbf16>, vector<9x32xbf16>, vector<216x32xf32> -> vector<216x32xf32>
    %7 = arith.addf %3, %6 : vector<216x32xf32>
    %c0_6 = arith.constant 0 : index
    %c0_7 = arith.constant 0 : index
    %8 = vector.load %arg7[%c0_6, %c0_7] : memref<216x32xf32, #tpu.memory_space<vmem>>, vector<216x32xf32>
    tpu.vector_store %arg7[%c0_6, %c0_7], %7 {strides = array<i32>} : memref<216x32xf32, #tpu.memory_space<vmem>>, vector<216x32xf32>,
    %c0_i32_8 = arith.constant 0 : i32
    %9 = arith.cmpi eq, %arg2, %c0_i32_8 : i32
    %10 = arith.extui %9 : i1 to i32
    %c0_i32_9 = arith.constant 0 : i32
    %11 = arith.cmpi ne, %10, %c0_i32_9 : i32
    scf.if %11 {
      %c0_10 = arith.constant 0 : index
      %c0_11 = arith.constant 0 : index
      %12 = vector.load %arg7[%c0_10, %c0_11] : memref<216x32xf32, #tpu.memory_space<vmem>>, vector<216x32xf32>
      %c0_12 = arith.constant 0 : index
      %c0_13 = arith.constant 0 : index
      %13 = vector.load %arg5[%c0_12, %c0_13] : memref<1x32xf32, #tpu.memory_space<vmem>>, vector<1x32xf32>
      %14 = vector.broadcast %13 : vector<1x32xf32> to vector<216x32xf32>
      %15 = arith.addf %12, %14 : vector<216x32xf32>
      %cst_14 = arith.constant 0.000000e+00 : f32
      %16 = vector.broadcast %cst_14 : f32 to vector<216x32xf32>
      %17 = arith.maximumf %15, %16 : vector<216x32xf32>
      %18 = arith.truncf %17 : vector<216x32xf32> to vector<216x32xbf16>
      %c0_15 = arith.constant 0 : index
      %c0_16 = arith.constant 0 : index
      %19 = vector.load %arg6[%c0_15, %c0_16] : memref<216x32xbf16, #tpu.memory_space<vmem>>, vector<216x32xbf16>
      tpu.vector_store %arg6[%c0_15, %c0_16], %18 {strides = array<i32>} : memref<216x32xbf16, #tpu.memory_space<vmem>>, vector<216x32xbf16>,
    } else {
    }
    return
  }
  func.func @transform_0(%arg0: i32, %arg1: i32, %arg2: i32) -> (i32, i32) {
    %c0_i32 = arith.constant 0 : i32
    return %arg0, %arg2 : i32, i32
  }
  func.func @transform_1(%arg0: i32, %arg1: i32, %arg2: i32) -> (i32, i32) {
    %c0_i32 = arith.constant 0 : i32
    return %arg2, %arg1 : i32, i32
  }
  func.func @transform_2(%arg0: i32, %arg1: i32, %arg2: i32) -> (i32, i32) {
    %c0_i32 = arith.constant 0 : i32
    %c0_i32_0 = arith.constant 0 : i32
    return %c0_i32, %arg1 : i32, i32
  }
  func.func @transform_3(%arg0: i32, %arg1: i32, %arg2: i32) -> (i32, i32) {
    %c0_i32 = arith.constant 0 : i32
    return %arg0, %arg1 : i32, i32
  }
}

module attributes {stable_mosaic.version = 11 : i64} {
  func.func @_matmul_kernel(%arg0: i32, %arg1: i32, %arg2: i32, %arg3: memref<48x288xbf16, #tpu.memory_space<vmem>>, %arg4: memref<288x32xbf16, #tpu.memory_space<vmem>>, %arg5: memref<1x32xf32, #tpu.memory_space<vmem>>, %arg6: memref<48x32xbf16, #tpu.memory_space<vmem>>, %arg7: memref<48x32xf32, #tpu.memory_space<vmem>>) attributes {dimension_semantics = [#tpu.dimension_semantics<parallel>, #tpu.dimension_semantics<parallel>, #tpu.dimension_semantics<arbitrary>], iteration_bounds = array<i64: 1, 1, 1>, scalar_prefetch = 0 : i64, scratch_operands = 1 : i64, tpu.core_type = #tpu.core_type<tc>, window_params = [{transform_indices = @transform_0, window_bounds = array<i64: 48, 288>}, {transform_indices = @transform_1, window_bounds = array<i64: 288, 32>}, {transform_indices = @transform_2, window_bounds = array<i64: 1, 32>}, {transform_indices = @transform_3, window_bounds = array<i64: 48, 32>}]} {
    %c0_i32 = arith.constant 0 : i32
    %0 = arith.cmpi eq, %arg2, %c0_i32 : i32
    %1 = arith.extui %0 : i1 to i32
    %c0_i32_0 = arith.constant 0 : i32
    %2 = arith.cmpi ne, %1, %c0_i32_0 : i32
    scf.if %2 {
      %cst_10 = arith.constant 0.000000e+00 : f32
      %12 = vector.broadcast %cst_10 : f32 to vector<48x32xf32>
      %c0_11 = arith.constant 0 : index
      %c0_12 = arith.constant 0 : index
      %13 = vector.load %arg7[%c0_11, %c0_12] : memref<48x32xf32, #tpu.memory_space<vmem>>, vector<48x32xf32>
      tpu.vector_store %arg7[%c0_11, %c0_12], %12 {strides = array<i32>} : memref<48x32xf32, #tpu.memory_space<vmem>>, vector<48x32xf32>,
    } else {
    }
    %c0 = arith.constant 0 : index
    %c0_1 = arith.constant 0 : index
    %3 = vector.load %arg7[%c0, %c0_1] : memref<48x32xf32, #tpu.memory_space<vmem>>, vector<48x32xf32>
    %c0_2 = arith.constant 0 : index
    %c0_3 = arith.constant 0 : index
    %4 = vector.load %arg3[%c0_2, %c0_3] : memref<48x288xbf16, #tpu.memory_space<vmem>>, vector<48x288xbf16>
    %c0_4 = arith.constant 0 : index
    %c0_5 = arith.constant 0 : index
    %5 = vector.load %arg4[%c0_4, %c0_5] : memref<288x32xbf16, #tpu.memory_space<vmem>>, vector<288x32xbf16>
    %cst = arith.constant dense<0.000000e+00> : vector<48x32xf32>
    %6 = tpu.matmul %4, %5, %cst {dimension_numbers = #tpu.dot_dimension_numbers<[1], [0], [0], [1], [0, 0, 1, 1], [], []>} : vector<48x288xbf16>, vector<288x32xbf16>, vector<48x32xf32> -> vector<48x32xf32>
    %7 = arith.addf %3, %6 : vector<48x32xf32>
    %c0_6 = arith.constant 0 : index
    %c0_7 = arith.constant 0 : index
    %8 = vector.load %arg7[%c0_6, %c0_7] : memref<48x32xf32, #tpu.memory_space<vmem>>, vector<48x32xf32>
    tpu.vector_store %arg7[%c0_6, %c0_7], %7 {strides = array<i32>} : memref<48x32xf32, #tpu.memory_space<vmem>>, vector<48x32xf32>,
    %c0_i32_8 = arith.constant 0 : i32
    %9 = arith.cmpi eq, %arg2, %c0_i32_8 : i32
    %10 = arith.extui %9 : i1 to i32
    %c0_i32_9 = arith.constant 0 : i32
    %11 = arith.cmpi ne, %10, %c0_i32_9 : i32
    scf.if %11 {
      %c0_10 = arith.constant 0 : index
      %c0_11 = arith.constant 0 : index
      %12 = vector.load %arg7[%c0_10, %c0_11] : memref<48x32xf32, #tpu.memory_space<vmem>>, vector<48x32xf32>
      %c0_12 = arith.constant 0 : index
      %c0_13 = arith.constant 0 : index
      %13 = vector.load %arg5[%c0_12, %c0_13] : memref<1x32xf32, #tpu.memory_space<vmem>>, vector<1x32xf32>
      %14 = vector.broadcast %13 : vector<1x32xf32> to vector<48x32xf32>
      %15 = arith.addf %12, %14 : vector<48x32xf32>
      %cst_14 = arith.constant 0.000000e+00 : f32
      %16 = vector.broadcast %cst_14 : f32 to vector<48x32xf32>
      %17 = arith.maximumf %15, %16 : vector<48x32xf32>
      %18 = arith.truncf %17 : vector<48x32xf32> to vector<48x32xbf16>
      %c0_15 = arith.constant 0 : index
      %c0_16 = arith.constant 0 : index
      %19 = vector.load %arg6[%c0_15, %c0_16] : memref<48x32xbf16, #tpu.memory_space<vmem>>, vector<48x32xbf16>
      tpu.vector_store %arg6[%c0_15, %c0_16], %18 {strides = array<i32>} : memref<48x32xbf16, #tpu.memory_space<vmem>>, vector<48x32xbf16>,
    } else {
    }
    return
  }
  func.func @transform_0(%arg0: i32, %arg1: i32, %arg2: i32) -> (i32, i32) {
    %c0_i32 = arith.constant 0 : i32
    return %arg0, %arg2 : i32, i32
  }
  func.func @transform_1(%arg0: i32, %arg1: i32, %arg2: i32) -> (i32, i32) {
    %c0_i32 = arith.constant 0 : i32
    return %arg2, %arg1 : i32, i32
  }
  func.func @transform_2(%arg0: i32, %arg1: i32, %arg2: i32) -> (i32, i32) {
    %c0_i32 = arith.constant 0 : i32
    %c0_i32_0 = arith.constant 0 : i32
    return %c0_i32, %arg1 : i32, i32
  }
  func.func @transform_3(%arg0: i32, %arg1: i32, %arg2: i32) -> (i32, i32) {
    %c0_i32 = arith.constant 0 : i32
    return %arg0, %arg1 : i32, i32
  }
}

module attributes {stable_mosaic.version = 11 : i64} {
  func.func @_matmul_kernel(%arg0: i32, %arg1: i32, %arg2: i32, %arg3: memref<16x96xbf16, #tpu.memory_space<vmem>>, %arg4: memref<96x32xbf16, #tpu.memory_space<vmem>>, %arg5: memref<1x32xf32, #tpu.memory_space<vmem>>, %arg6: memref<16x32xf32, #tpu.memory_space<vmem>>, %arg7: memref<16x32xf32, #tpu.memory_space<vmem>>) attributes {dimension_semantics = [#tpu.dimension_semantics<parallel>, #tpu.dimension_semantics<parallel>, #tpu.dimension_semantics<arbitrary>], iteration_bounds = array<i64: 1, 1, 1>, scalar_prefetch = 0 : i64, scratch_operands = 1 : i64, tpu.core_type = #tpu.core_type<tc>, window_params = [{transform_indices = @transform_0, window_bounds = array<i64: 16, 96>}, {transform_indices = @transform_1, window_bounds = array<i64: 96, 32>}, {transform_indices = @transform_2, window_bounds = array<i64: 1, 32>}, {transform_indices = @transform_3, window_bounds = array<i64: 16, 32>}]} {
    %c0_i32 = arith.constant 0 : i32
    %0 = arith.cmpi eq, %arg2, %c0_i32 : i32
    %1 = arith.extui %0 : i1 to i32
    %c0_i32_0 = arith.constant 0 : i32
    %2 = arith.cmpi ne, %1, %c0_i32_0 : i32
    scf.if %2 {
      %cst_10 = arith.constant 0.000000e+00 : f32
      %12 = vector.broadcast %cst_10 : f32 to vector<16x32xf32>
      %c0_11 = arith.constant 0 : index
      %c0_12 = arith.constant 0 : index
      %13 = vector.load %arg7[%c0_11, %c0_12] : memref<16x32xf32, #tpu.memory_space<vmem>>, vector<16x32xf32>
      tpu.vector_store %arg7[%c0_11, %c0_12], %12 {strides = array<i32>} : memref<16x32xf32, #tpu.memory_space<vmem>>, vector<16x32xf32>,
    } else {
    }
    %c0 = arith.constant 0 : index
    %c0_1 = arith.constant 0 : index
    %3 = vector.load %arg7[%c0, %c0_1] : memref<16x32xf32, #tpu.memory_space<vmem>>, vector<16x32xf32>
    %c0_2 = arith.constant 0 : index
    %c0_3 = arith.constant 0 : index
    %4 = vector.load %arg3[%c0_2, %c0_3] : memref<16x96xbf16, #tpu.memory_space<vmem>>, vector<16x96xbf16>
    %c0_4 = arith.constant 0 : index
    %c0_5 = arith.constant 0 : index
    %5 = vector.load %arg4[%c0_4, %c0_5] : memref<96x32xbf16, #tpu.memory_space<vmem>>, vector<96x32xbf16>
    %cst = arith.constant dense<0.000000e+00> : vector<16x32xf32>
    %6 = tpu.matmul %4, %5, %cst {dimension_numbers = #tpu.dot_dimension_numbers<[1], [0], [0], [1], [0, 0, 1, 1], [], []>} : vector<16x96xbf16>, vector<96x32xbf16>, vector<16x32xf32> -> vector<16x32xf32>
    %7 = arith.addf %3, %6 : vector<16x32xf32>
    %c0_6 = arith.constant 0 : index
    %c0_7 = arith.constant 0 : index
    %8 = vector.load %arg7[%c0_6, %c0_7] : memref<16x32xf32, #tpu.memory_space<vmem>>, vector<16x32xf32>
    tpu.vector_store %arg7[%c0_6, %c0_7], %7 {strides = array<i32>} : memref<16x32xf32, #tpu.memory_space<vmem>>, vector<16x32xf32>,
    %c0_i32_8 = arith.constant 0 : i32
    %9 = arith.cmpi eq, %arg2, %c0_i32_8 : i32
    %10 = arith.extui %9 : i1 to i32
    %c0_i32_9 = arith.constant 0 : i32
    %11 = arith.cmpi ne, %10, %c0_i32_9 : i32
    scf.if %11 {
      %c0_10 = arith.constant 0 : index
      %c0_11 = arith.constant 0 : index
      %12 = vector.load %arg7[%c0_10, %c0_11] : memref<16x32xf32, #tpu.memory_space<vmem>>, vector<16x32xf32>
      %c0_12 = arith.constant 0 : index
      %c0_13 = arith.constant 0 : index
      %13 = vector.load %arg5[%c0_12, %c0_13] : memref<1x32xf32, #tpu.memory_space<vmem>>, vector<1x32xf32>
      %14 = vector.broadcast %13 : vector<1x32xf32> to vector<16x32xf32>
      %15 = arith.addf %12, %14 : vector<16x32xf32>
      %c0_14 = arith.constant 0 : index
      %c0_15 = arith.constant 0 : index
      %16 = vector.load %arg6[%c0_14, %c0_15] : memref<16x32xf32, #tpu.memory_space<vmem>>, vector<16x32xf32>
      tpu.vector_store %arg6[%c0_14, %c0_15], %15 {strides = array<i32>} : memref<16x32xf32, #tpu.memory_space<vmem>>, vector<16x32xf32>,
    } else {
    }
    return
  }
  func.func @transform_0(%arg0: i32, %arg1: i32, %arg2: i32) -> (i32, i32) {
    %c0_i32 = arith.constant 0 : i32
    return %arg0, %arg2 : i32, i32
  }
  func.func @transform_1(%arg0: i32, %arg1: i32, %arg2: i32) -> (i32, i32) {
    %c0_i32 = arith.constant 0 : i32
    return %arg2, %arg1 : i32, i32
  }
  func.func @transform_2(%arg0: i32, %arg1: i32, %arg2: i32) -> (i32, i32) {
    %c0_i32 = arith.constant 0 : i32
    %c0_i32_0 = arith.constant 0 : i32
    return %c0_i32, %arg1 : i32, i32
  }
  func.func @transform_3(%arg0: i32, %arg1: i32, %arg2: i32) -> (i32, i32) {
    %c0_i32 = arith.constant 0 : i32
    return %arg0, %arg1 : i32, i32
  }
}

module attributes {stable_mosaic.version = 11 : i64} {
  func.func @_ln_matmul_kernel(%arg0: i32, %arg1: memref<16x32xf32, #tpu.memory_space<vmem>>, %arg2: memref<1x32xf32, #tpu.memory_space<vmem>>, %arg3: memref<1x32xf32, #tpu.memory_space<vmem>>, %arg4: memref<32x96xbf16, #tpu.memory_space<vmem>>, %arg5: memref<1x96xf32, #tpu.memory_space<vmem>>, %arg6: memref<16x96xbf16, #tpu.memory_space<vmem>>) attributes {dimension_semantics = [#tpu.dimension_semantics<parallel>], iteration_bounds = array<i64: 1>, scalar_prefetch = 0 : i64, scratch_operands = 0 : i64, tpu.core_type = #tpu.core_type<tc>, window_params = [{transform_indices = @transform_0, window_bounds = array<i64: 16, 32>}, {pipeline_mode = #tpu.pipeline_mode<synchronous>, transform_indices = @transform_1, window_bounds = array<i64: 1, 32>}, {pipeline_mode = #tpu.pipeline_mode<synchronous>, transform_indices = @transform_2, window_bounds = array<i64: 1, 32>}, {pipeline_mode = #tpu.pipeline_mode<synchronous>, transform_indices = @transform_3, window_bounds = array<i64: 32, 96>}, {pipeline_mode = #tpu.pipeline_mode<synchronous>, transform_indices = @transform_4, window_bounds = array<i64: 1, 96>}, {transform_indices = @transform_5, window_bounds = array<i64: 16, 96>}]} {
    %c0 = arith.constant 0 : index
    %c0_0 = arith.constant 0 : index
    %0 = vector.load %arg1[%c0, %c0_0] : memref<16x32xf32, #tpu.memory_space<vmem>>, vector<16x32xf32>
    %c0_1 = arith.constant 0 : index
    %c0_2 = arith.constant 0 : index
    %1 = vector.load %arg2[%c0_1, %c0_2] : memref<1x32xf32, #tpu.memory_space<vmem>>, vector<1x32xf32>
    %c0_3 = arith.constant 0 : index
    %c0_4 = arith.constant 0 : index
    %2 = vector.load %arg3[%c0_3, %c0_4] : memref<1x32xf32, #tpu.memory_space<vmem>>, vector<1x32xf32>
    %cst = arith.constant dense<0.000000e+00> : vector<16xf32>
    %3 = vector.multi_reduction <add>, %0, %cst [1] : vector<16x32xf32> to vector<16xf32>
    %4 = vector.shape_cast %3 : vector<16xf32> to vector<16x1xf32>
    %cst_5 = arith.constant 3.200000e+01 : f32
    %5 = vector.broadcast %cst_5 : f32 to vector<16x1xf32>
    %6 = arith.divf %4, %5 : vector<16x1xf32>
    %7 = vector.broadcast %6 : vector<16x1xf32> to vector<16x32xf32>
    %8 = arith.subf %0, %7 : vector<16x32xf32>
    %9 = arith.mulf %8, %8 : vector<16x32xf32>
    %cst_6 = arith.constant dense<0.000000e+00> : vector<16xf32>
    %10 = vector.multi_reduction <add>, %9, %cst_6 [1] : vector<16x32xf32> to vector<16xf32>
    %11 = vector.shape_cast %10 : vector<16xf32> to vector<16x1xf32>
    %cst_7 = arith.constant 3.200000e+01 : f32
    %12 = vector.broadcast %cst_7 : f32 to vector<16x1xf32>
    %13 = arith.divf %11, %12 : vector<16x1xf32>
    %14 = vector.broadcast %6 : vector<16x1xf32> to vector<16x32xf32>
    %15 = arith.subf %0, %14 : vector<16x32xf32>
    %cst_8 = arith.constant 9.99999974E-6 : f32
    %16 = vector.broadcast %cst_8 : f32 to vector<16x1xf32>
    %17 = arith.addf %13, %16 : vector<16x1xf32>
    %18 = math.rsqrt %17 : vector<16x1xf32>
    %19 = vector.broadcast %18 : vector<16x1xf32> to vector<16x32xf32>
    %20 = arith.mulf %15, %19 : vector<16x32xf32>
    %21 = vector.broadcast %1 : vector<1x32xf32> to vector<16x32xf32>
    %22 = arith.mulf %20, %21 : vector<16x32xf32>
    %23 = vector.broadcast %2 : vector<1x32xf32> to vector<16x32xf32>
    %24 = arith.addf %22, %23 : vector<16x32xf32>
    %25 = arith.truncf %24 : vector<16x32xf32> to vector<16x32xbf16>
    %c0_9 = arith.constant 0 : index
    %c0_10 = arith.constant 0 : index
    %26 = vector.load %arg4[%c0_9, %c0_10] : memref<32x96xbf16, #tpu.memory_space<vmem>>, vector<32x96xbf16>
    %cst_11 = arith.constant dense<0.000000e+00> : vector<16x96xf32>
    %27 = tpu.matmul %25, %26, %cst_11 {dimension_numbers = #tpu.dot_dimension_numbers<[1], [0], [0], [1], [0, 0, 1, 1], [], []>} : vector<16x32xbf16>, vector<32x96xbf16>, vector<16x96xf32> -> vector<16x96xf32>
    %c0_12 = arith.constant 0 : index
    %c0_13 = arith.constant 0 : index
    %28 = vector.load %arg5[%c0_12, %c0_13] : memref<1x96xf32, #tpu.memory_space<vmem>>, vector<1x96xf32>
    %29 = vector.broadcast %28 : vector<1x96xf32> to vector<16x96xf32>
    %30 = arith.addf %27, %29 : vector<16x96xf32>
    %31 = arith.truncf %30 : vector<16x96xf32> to vector<16x96xbf16>
    %c0_14 = arith.constant 0 : index
    %c0_15 = arith.constant 0 : index
    %32 = vector.load %arg6[%c0_14, %c0_15] : memref<16x96xbf16, #tpu.memory_space<vmem>>, vector<16x96xbf16>
    tpu.vector_store %arg6[%c0_14, %c0_15], %31 {strides = array<i32>} : memref<16x96xbf16, #tpu.memory_space<vmem>>, vector<16x96xbf16>,
    return
  }
  func.func @transform_0(%arg0: i32) -> (i32, i32) {
    %c0_i32 = arith.constant 0 : i32
    %c0_i32_0 = arith.constant 0 : i32
    return %arg0, %c0_i32 : i32, i32
  }
  func.func @transform_1(%arg0: i32) -> (i32, i32) {
    %c0_i32 = arith.constant 0 : i32
    %c0_i32_0 = arith.constant 0 : i32
    %c0_i32_1 = arith.constant 0 : i32
    return %c0_i32, %c0_i32_0 : i32, i32
  }
  func.func @transform_2(%arg0: i32) -> (i32, i32) {
    %c0_i32 = arith.constant 0 : i32
    %c0_i32_0 = arith.constant 0 : i32
    %c0_i32_1 = arith.constant 0 : i32
    return %c0_i32, %c0_i32_0 : i32, i32
  }
  func.func @transform_3(%arg0: i32) -> (i32, i32) {
    %c0_i32 = arith.constant 0 : i32
    %c0_i32_0 = arith.constant 0 : i32
    %c0_i32_1 = arith.constant 0 : i32
    return %c0_i32, %c0_i32_0 : i32, i32
  }
  func.func @transform_4(%arg0: i32) -> (i32, i32) {
    %c0_i32 = arith.constant 0 : i32
    %c0_i32_0 = arith.constant 0 : i32
    %c0_i32_1 = arith.constant 0 : i32
    return %c0_i32, %c0_i32_0 : i32, i32
  }
  func.func @transform_5(%arg0: i32) -> (i32, i32) {
    %c0_i32 = arith.constant 0 : i32
    %c0_i32_0 = arith.constant 0 : i32
    return %arg0, %c0_i32 : i32, i32
  }
}

module attributes {stable_mosaic.version = 11 : i64} {
  func.func @_ffn_kernel(%arg0: i32, %arg1: memref<16x32xf32, #tpu.memory_space<vmem>>, %arg2: memref<1x32xf32, #tpu.memory_space<vmem>>, %arg3: memref<1x32xf32, #tpu.memory_space<vmem>>, %arg4: memref<32x128xbf16, #tpu.memory_space<vmem>>, %arg5: memref<1x128xf32, #tpu.memory_space<vmem>>, %arg6: memref<128x32xbf16, #tpu.memory_space<vmem>>, %arg7: memref<1x32xf32, #tpu.memory_space<vmem>>, %arg8: memref<16x32xf32, #tpu.memory_space<vmem>>) attributes {dimension_semantics = [#tpu.dimension_semantics<parallel>], iteration_bounds = array<i64: 1>, scalar_prefetch = 0 : i64, scratch_operands = 0 : i64, tpu.core_type = #tpu.core_type<tc>, window_params = [{transform_indices = @transform_0, window_bounds = array<i64: 16, 32>}, {pipeline_mode = #tpu.pipeline_mode<synchronous>, transform_indices = @transform_1, window_bounds = array<i64: 1, 32>}, {pipeline_mode = #tpu.pipeline_mode<synchronous>, transform_indices = @transform_2, window_bounds = array<i64: 1, 32>}, {pipeline_mode = #tpu.pipeline_mode<synchronous>, transform_indices = @transform_3, window_bounds = array<i64: 32, 128>}, {pipeline_mode = #tpu.pipeline_mode<synchronous>, transform_indices = @transform_4, window_bounds = array<i64: 1, 128>}, {pipeline_mode = #tpu.pipeline_mode<synchronous>, transform_indices = @transform_5, window_bounds = array<i64: 128, 32>}, {pipeline_mode = #tpu.pipeline_mode<synchronous>, transform_indices = @transform_6, window_bounds = array<i64: 1, 32>}, {transform_indices = @transform_7, window_bounds = array<i64: 16, 32>}]} {
    %c0 = arith.constant 0 : index
    %c0_0 = arith.constant 0 : index
    %0 = vector.load %arg1[%c0, %c0_0] : memref<16x32xf32, #tpu.memory_space<vmem>>, vector<16x32xf32>
    %c0_1 = arith.constant 0 : index
    %c0_2 = arith.constant 0 : index
    %1 = vector.load %arg2[%c0_1, %c0_2] : memref<1x32xf32, #tpu.memory_space<vmem>>, vector<1x32xf32>
    %c0_3 = arith.constant 0 : index
    %c0_4 = arith.constant 0 : index
    %2 = vector.load %arg3[%c0_3, %c0_4] : memref<1x32xf32, #tpu.memory_space<vmem>>, vector<1x32xf32>
    %cst = arith.constant dense<0.000000e+00> : vector<16xf32>
    %3 = vector.multi_reduction <add>, %0, %cst [1] : vector<16x32xf32> to vector<16xf32>
    %4 = vector.shape_cast %3 : vector<16xf32> to vector<16x1xf32>
    %cst_5 = arith.constant 3.200000e+01 : f32
    %5 = vector.broadcast %cst_5 : f32 to vector<16x1xf32>
    %6 = arith.divf %4, %5 : vector<16x1xf32>
    %7 = vector.broadcast %6 : vector<16x1xf32> to vector<16x32xf32>
    %8 = arith.subf %0, %7 : vector<16x32xf32>
    %9 = arith.mulf %8, %8 : vector<16x32xf32>
    %cst_6 = arith.constant dense<0.000000e+00> : vector<16xf32>
    %10 = vector.multi_reduction <add>, %9, %cst_6 [1] : vector<16x32xf32> to vector<16xf32>
    %11 = vector.shape_cast %10 : vector<16xf32> to vector<16x1xf32>
    %cst_7 = arith.constant 3.200000e+01 : f32
    %12 = vector.broadcast %cst_7 : f32 to vector<16x1xf32>
    %13 = arith.divf %11, %12 : vector<16x1xf32>
    %14 = vector.broadcast %6 : vector<16x1xf32> to vector<16x32xf32>
    %15 = arith.subf %0, %14 : vector<16x32xf32>
    %cst_8 = arith.constant 9.99999974E-6 : f32
    %16 = vector.broadcast %cst_8 : f32 to vector<16x1xf32>
    %17 = arith.addf %13, %16 : vector<16x1xf32>
    %18 = math.rsqrt %17 : vector<16x1xf32>
    %19 = vector.broadcast %18 : vector<16x1xf32> to vector<16x32xf32>
    %20 = arith.mulf %15, %19 : vector<16x32xf32>
    %21 = vector.broadcast %1 : vector<1x32xf32> to vector<16x32xf32>
    %22 = arith.mulf %20, %21 : vector<16x32xf32>
    %23 = vector.broadcast %2 : vector<1x32xf32> to vector<16x32xf32>
    %24 = arith.addf %22, %23 : vector<16x32xf32>
    %25 = arith.truncf %24 : vector<16x32xf32> to vector<16x32xbf16>
    %c0_9 = arith.constant 0 : index
    %c0_10 = arith.constant 0 : index
    %26 = vector.load %arg4[%c0_9, %c0_10] : memref<32x128xbf16, #tpu.memory_space<vmem>>, vector<32x128xbf16>
    %cst_11 = arith.constant dense<0.000000e+00> : vector<16x128xf32>
    %27 = tpu.matmul %25, %26, %cst_11 {dimension_numbers = #tpu.dot_dimension_numbers<[1], [0], [0], [1], [0, 0, 1, 1], [], []>} : vector<16x32xbf16>, vector<32x128xbf16>, vector<16x128xf32> -> vector<16x128xf32>
    %c0_12 = arith.constant 0 : index
    %c0_13 = arith.constant 0 : index
    %28 = vector.load %arg5[%c0_12, %c0_13] : memref<1x128xf32, #tpu.memory_space<vmem>>, vector<1x128xf32>
    %29 = vector.broadcast %28 : vector<1x128xf32> to vector<16x128xf32>
    %30 = arith.addf %27, %29 : vector<16x128xf32>
    %31 = arith.negf %30 : vector<16x128xf32>
    %32 = math.exp %31 : vector<16x128xf32>
    %cst_14 = arith.constant 1.000000e+00 : f32
    %33 = vector.broadcast %cst_14 : f32 to vector<16x128xf32>
    %34 = arith.addf %33, %32 : vector<16x128xf32>
    %35 = arith.divf %33, %34 : vector<16x128xf32>
    %36 = arith.mulf %30, %35 : vector<16x128xf32>
    %37 = arith.truncf %36 : vector<16x128xf32> to vector<16x128xbf16>
    %c0_15 = arith.constant 0 : index
    %c0_16 = arith.constant 0 : index
    %38 = vector.load %arg6[%c0_15, %c0_16] : memref<128x32xbf16, #tpu.memory_space<vmem>>, vector<128x32xbf16>
    %cst_17 = arith.constant dense<0.000000e+00> : vector<16x32xf32>
    %39 = tpu.matmul %37, %38, %cst_17 {dimension_numbers = #tpu.dot_dimension_numbers<[1], [0], [0], [1], [0, 0, 1, 1], [], []>} : vector<16x128xbf16>, vector<128x32xbf16>, vector<16x32xf32> -> vector<16x32xf32>
    %c0_18 = arith.constant 0 : index
    %c0_19 = arith.constant 0 : index
    %40 = vector.load %arg7[%c0_18, %c0_19] : memref<1x32xf32, #tpu.memory_space<vmem>>, vector<1x32xf32>
    %41 = vector.broadcast %40 : vector<1x32xf32> to vector<16x32xf32>
    %42 = arith.addf %39, %41 : vector<16x32xf32>
    %cst_20 = arith.constant 5.000000e-01 : f32
    %43 = vector.broadcast %cst_20 : f32 to vector<16x32xf32>
    %44 = arith.mulf %43, %42 : vector<16x32xf32>
    %45 = arith.addf %0, %44 : vector<16x32xf32>
    %c0_21 = arith.constant 0 : index
    %c0_22 = arith.constant 0 : index
    %46 = vector.load %arg8[%c0_21, %c0_22] : memref<16x32xf32, #tpu.memory_space<vmem>>, vector<16x32xf32>
    tpu.vector_store %arg8[%c0_21, %c0_22], %45 {strides = array<i32>} : memref<16x32xf32, #tpu.memory_space<vmem>>, vector<16x32xf32>,
    return
  }
  func.func @transform_0(%arg0: i32) -> (i32, i32) {
    %c0_i32 = arith.constant 0 : i32
    %c0_i32_0 = arith.constant 0 : i32
    return %arg0, %c0_i32 : i32, i32
  }
  func.func @transform_1(%arg0: i32) -> (i32, i32) {
    %c0_i32 = arith.constant 0 : i32
    %c0_i32_0 = arith.constant 0 : i32
    %c0_i32_1 = arith.constant 0 : i32
    return %c0_i32, %c0_i32_0 : i32, i32
  }
  func.func @transform_2(%arg0: i32) -> (i32, i32) {
    %c0_i32 = arith.constant 0 : i32
    %c0_i32_0 = arith.constant 0 : i32
    %c0_i32_1 = arith.constant 0 : i32
    return %c0_i32, %c0_i32_0 : i32, i32
  }
  func.func @transform_3(%arg0: i32) -> (i32, i32) {
    %c0_i32 = arith.constant 0 : i32
    %c0_i32_0 = arith.constant 0 : i32
    %c0_i32_1 = arith.constant 0 : i32
    return %c0_i32, %c0_i32_0 : i32, i32
  }
  func.func @transform_4(%arg0: i32) -> (i32, i32) {
    %c0_i32 = arith.constant 0 : i32
    %c0_i32_0 = arith.constant 0 : i32
    %c0_i32_1 = arith.constant 0 : i32
    return %c0_i32, %c0_i32_0 : i32, i32
  }
  func.func @transform_5(%arg0: i32) -> (i32, i32) {
    %c0_i32 = arith.constant 0 : i32
    %c0_i32_0 = arith.constant 0 : i32
    %c0_i32_1 = arith.constant 0 : i32
    return %c0_i32, %c0_i32_0 : i32, i32
  }
  func.func @transform_6(%arg0: i32) -> (i32, i32) {
    %c0_i32 = arith.constant 0 : i32
    %c0_i32_0 = arith.constant 0 : i32
    %c0_i32_1 = arith.constant 0 : i32
    return %c0_i32, %c0_i32_0 : i32, i32
  }
  func.func @transform_7(%arg0: i32) -> (i32, i32) {
    %c0_i32 = arith.constant 0 : i32
    %c0_i32_0 = arith.constant 0 : i32
    return %arg0, %c0_i32 : i32, i32
  }
}

module attributes {stable_mosaic.version = 11 : i64} {
  func.func @_matmul_kernel(%arg0: i32, %arg1: i32, %arg2: i32, %arg3: memref<8x32xbf16, #tpu.memory_space<vmem>>, %arg4: memref<32x32xbf16, #tpu.memory_space<vmem>>, %arg5: memref<1x32xf32, #tpu.memory_space<vmem>>, %arg6: memref<8x32xbf16, #tpu.memory_space<vmem>>, %arg7: memref<8x32xf32, #tpu.memory_space<vmem>>) attributes {dimension_semantics = [#tpu.dimension_semantics<parallel>, #tpu.dimension_semantics<parallel>, #tpu.dimension_semantics<arbitrary>], iteration_bounds = array<i64: 1, 1, 1>, scalar_prefetch = 0 : i64, scratch_operands = 1 : i64, tpu.core_type = #tpu.core_type<tc>, window_params = [{transform_indices = @transform_0, window_bounds = array<i64: 8, 32>}, {transform_indices = @transform_1, window_bounds = array<i64: 32, 32>}, {transform_indices = @transform_2, window_bounds = array<i64: 1, 32>}, {transform_indices = @transform_3, window_bounds = array<i64: 8, 32>}]} {
    %c0_i32 = arith.constant 0 : i32
    %0 = arith.cmpi eq, %arg2, %c0_i32 : i32
    %1 = arith.extui %0 : i1 to i32
    %c0_i32_0 = arith.constant 0 : i32
    %2 = arith.cmpi ne, %1, %c0_i32_0 : i32
    scf.if %2 {
      %cst_10 = arith.constant 0.000000e+00 : f32
      %12 = vector.broadcast %cst_10 : f32 to vector<8x32xf32>
      %c0_11 = arith.constant 0 : index
      %c0_12 = arith.constant 0 : index
      %13 = vector.load %arg7[%c0_11, %c0_12] : memref<8x32xf32, #tpu.memory_space<vmem>>, vector<8x32xf32>
      tpu.vector_store %arg7[%c0_11, %c0_12], %12 {strides = array<i32>} : memref<8x32xf32, #tpu.memory_space<vmem>>, vector<8x32xf32>,
    } else {
    }
    %c0 = arith.constant 0 : index
    %c0_1 = arith.constant 0 : index
    %3 = vector.load %arg7[%c0, %c0_1] : memref<8x32xf32, #tpu.memory_space<vmem>>, vector<8x32xf32>
    %c0_2 = arith.constant 0 : index
    %c0_3 = arith.constant 0 : index
    %4 = vector.load %arg3[%c0_2, %c0_3] : memref<8x32xbf16, #tpu.memory_space<vmem>>, vector<8x32xbf16>
    %c0_4 = arith.constant 0 : index
    %c0_5 = arith.constant 0 : index
    %5 = vector.load %arg4[%c0_4, %c0_5] : memref<32x32xbf16, #tpu.memory_space<vmem>>, vector<32x32xbf16>
    %cst = arith.constant dense<0.000000e+00> : vector<8x32xf32>
    %6 = tpu.matmul %4, %5, %cst {dimension_numbers = #tpu.dot_dimension_numbers<[1], [0], [0], [1], [0, 0, 1, 1], [], []>} : vector<8x32xbf16>, vector<32x32xbf16>, vector<8x32xf32> -> vector<8x32xf32>
    %7 = arith.addf %3, %6 : vector<8x32xf32>
    %c0_6 = arith.constant 0 : index
    %c0_7 = arith.constant 0 : index
    %8 = vector.load %arg7[%c0_6, %c0_7] : memref<8x32xf32, #tpu.memory_space<vmem>>, vector<8x32xf32>
    tpu.vector_store %arg7[%c0_6, %c0_7], %7 {strides = array<i32>} : memref<8x32xf32, #tpu.memory_space<vmem>>, vector<8x32xf32>,
    %c0_i32_8 = arith.constant 0 : i32
    %9 = arith.cmpi eq, %arg2, %c0_i32_8 : i32
    %10 = arith.extui %9 : i1 to i32
    %c0_i32_9 = arith.constant 0 : i32
    %11 = arith.cmpi ne, %10, %c0_i32_9 : i32
    scf.if %11 {
      %c0_10 = arith.constant 0 : index
      %c0_11 = arith.constant 0 : index
      %12 = vector.load %arg7[%c0_10, %c0_11] : memref<8x32xf32, #tpu.memory_space<vmem>>, vector<8x32xf32>
      %c0_12 = arith.constant 0 : index
      %c0_13 = arith.constant 0 : index
      %13 = vector.load %arg5[%c0_12, %c0_13] : memref<1x32xf32, #tpu.memory_space<vmem>>, vector<1x32xf32>
      %14 = vector.broadcast %13 : vector<1x32xf32> to vector<8x32xf32>
      %15 = arith.addf %12, %14 : vector<8x32xf32>
      %16 = arith.truncf %15 : vector<8x32xf32> to vector<8x32xbf16>
      %c0_14 = arith.constant 0 : index
      %c0_15 = arith.constant 0 : index
      %17 = vector.load %arg6[%c0_14, %c0_15] : memref<8x32xbf16, #tpu.memory_space<vmem>>, vector<8x32xbf16>
      tpu.vector_store %arg6[%c0_14, %c0_15], %16 {strides = array<i32>} : memref<8x32xbf16, #tpu.memory_space<vmem>>, vector<8x32xbf16>,
    } else {
    }
    return
  }
  func.func @transform_0(%arg0: i32, %arg1: i32, %arg2: i32) -> (i32, i32) {
    %c0_i32 = arith.constant 0 : i32
    return %arg0, %arg2 : i32, i32
  }
  func.func @transform_1(%arg0: i32, %arg1: i32, %arg2: i32) -> (i32, i32) {
    %c0_i32 = arith.constant 0 : i32
    return %arg2, %arg1 : i32, i32
  }
  func.func @transform_2(%arg0: i32, %arg1: i32, %arg2: i32) -> (i32, i32) {
    %c0_i32 = arith.constant 0 : i32
    %c0_i32_0 = arith.constant 0 : i32
    return %c0_i32, %arg1 : i32, i32
  }
  func.func @transform_3(%arg0: i32, %arg1: i32, %arg2: i32) -> (i32, i32) {
    %c0_i32 = arith.constant 0 : i32
    return %arg0, %arg1 : i32, i32
  }
}

module attributes {stable_mosaic.version = 11 : i64} {
  func.func @_ln_glu_kernel(%arg0: i32, %arg1: memref<16x32xf32, #tpu.memory_space<vmem>>, %arg2: memref<1x32xf32, #tpu.memory_space<vmem>>, %arg3: memref<1x32xf32, #tpu.memory_space<vmem>>, %arg4: memref<32x32xbf16, #tpu.memory_space<vmem>>, %arg5: memref<1x32xf32, #tpu.memory_space<vmem>>, %arg6: memref<32x32xbf16, #tpu.memory_space<vmem>>, %arg7: memref<1x32xf32, #tpu.memory_space<vmem>>, %arg8: memref<16x32xbf16, #tpu.memory_space<vmem>>) attributes {dimension_semantics = [#tpu.dimension_semantics<parallel>], iteration_bounds = array<i64: 1>, scalar_prefetch = 0 : i64, scratch_operands = 0 : i64, tpu.core_type = #tpu.core_type<tc>, window_params = [{transform_indices = @transform_0, window_bounds = array<i64: 16, 32>}, {pipeline_mode = #tpu.pipeline_mode<synchronous>, transform_indices = @transform_1, window_bounds = array<i64: 1, 32>}, {pipeline_mode = #tpu.pipeline_mode<synchronous>, transform_indices = @transform_2, window_bounds = array<i64: 1, 32>}, {pipeline_mode = #tpu.pipeline_mode<synchronous>, transform_indices = @transform_3, window_bounds = array<i64: 32, 32>}, {pipeline_mode = #tpu.pipeline_mode<synchronous>, transform_indices = @transform_4, window_bounds = array<i64: 1, 32>}, {pipeline_mode = #tpu.pipeline_mode<synchronous>, transform_indices = @transform_5, window_bounds = array<i64: 32, 32>}, {pipeline_mode = #tpu.pipeline_mode<synchronous>, transform_indices = @transform_6, window_bounds = array<i64: 1, 32>}, {transform_indices = @transform_7, window_bounds = array<i64: 16, 32>}]} {
    %c0 = arith.constant 0 : index
    %c0_0 = arith.constant 0 : index
    %0 = vector.load %arg1[%c0, %c0_0] : memref<16x32xf32, #tpu.memory_space<vmem>>, vector<16x32xf32>
    %c0_1 = arith.constant 0 : index
    %c0_2 = arith.constant 0 : index
    %1 = vector.load %arg2[%c0_1, %c0_2] : memref<1x32xf32, #tpu.memory_space<vmem>>, vector<1x32xf32>
    %c0_3 = arith.constant 0 : index
    %c0_4 = arith.constant 0 : index
    %2 = vector.load %arg3[%c0_3, %c0_4] : memref<1x32xf32, #tpu.memory_space<vmem>>, vector<1x32xf32>
    %cst = arith.constant dense<0.000000e+00> : vector<16xf32>
    %3 = vector.multi_reduction <add>, %0, %cst [1] : vector<16x32xf32> to vector<16xf32>
    %4 = vector.shape_cast %3 : vector<16xf32> to vector<16x1xf32>
    %cst_5 = arith.constant 3.200000e+01 : f32
    %5 = vector.broadcast %cst_5 : f32 to vector<16x1xf32>
    %6 = arith.divf %4, %5 : vector<16x1xf32>
    %7 = vector.broadcast %6 : vector<16x1xf32> to vector<16x32xf32>
    %8 = arith.subf %0, %7 : vector<16x32xf32>
    %9 = arith.mulf %8, %8 : vector<16x32xf32>
    %cst_6 = arith.constant dense<0.000000e+00> : vector<16xf32>
    %10 = vector.multi_reduction <add>, %9, %cst_6 [1] : vector<16x32xf32> to vector<16xf32>
    %11 = vector.shape_cast %10 : vector<16xf32> to vector<16x1xf32>
    %cst_7 = arith.constant 3.200000e+01 : f32
    %12 = vector.broadcast %cst_7 : f32 to vector<16x1xf32>
    %13 = arith.divf %11, %12 : vector<16x1xf32>
    %14 = vector.broadcast %6 : vector<16x1xf32> to vector<16x32xf32>
    %15 = arith.subf %0, %14 : vector<16x32xf32>
    %cst_8 = arith.constant 9.99999974E-6 : f32
    %16 = vector.broadcast %cst_8 : f32 to vector<16x1xf32>
    %17 = arith.addf %13, %16 : vector<16x1xf32>
    %18 = math.rsqrt %17 : vector<16x1xf32>
    %19 = vector.broadcast %18 : vector<16x1xf32> to vector<16x32xf32>
    %20 = arith.mulf %15, %19 : vector<16x32xf32>
    %21 = vector.broadcast %1 : vector<1x32xf32> to vector<16x32xf32>
    %22 = arith.mulf %20, %21 : vector<16x32xf32>
    %23 = vector.broadcast %2 : vector<1x32xf32> to vector<16x32xf32>
    %24 = arith.addf %22, %23 : vector<16x32xf32>
    %25 = arith.truncf %24 : vector<16x32xf32> to vector<16x32xbf16>
    %c0_9 = arith.constant 0 : index
    %c0_10 = arith.constant 0 : index
    %26 = vector.load %arg4[%c0_9, %c0_10] : memref<32x32xbf16, #tpu.memory_space<vmem>>, vector<32x32xbf16>
    %cst_11 = arith.constant dense<0.000000e+00> : vector<16x32xf32>
    %27 = tpu.matmul %25, %26, %cst_11 {dimension_numbers = #tpu.dot_dimension_numbers<[1], [0], [0], [1], [0, 0, 1, 1], [], []>} : vector<16x32xbf16>, vector<32x32xbf16>, vector<16x32xf32> -> vector<16x32xf32>
    %c0_12 = arith.constant 0 : index
    %c0_13 = arith.constant 0 : index
    %28 = vector.load %arg5[%c0_12, %c0_13] : memref<1x32xf32, #tpu.memory_space<vmem>>, vector<1x32xf32>
    %29 = vector.broadcast %28 : vector<1x32xf32> to vector<16x32xf32>
    %30 = arith.addf %27, %29 : vector<16x32xf32>
    %c0_14 = arith.constant 0 : index
    %c0_15 = arith.constant 0 : index
    %31 = vector.load %arg6[%c0_14, %c0_15] : memref<32x32xbf16, #tpu.memory_space<vmem>>, vector<32x32xbf16>
    %cst_16 = arith.constant dense<0.000000e+00> : vector<16x32xf32>
    %32 = tpu.matmul %25, %31, %cst_16 {dimension_numbers = #tpu.dot_dimension_numbers<[1], [0], [0], [1], [0, 0, 1, 1], [], []>} : vector<16x32xbf16>, vector<32x32xbf16>, vector<16x32xf32> -> vector<16x32xf32>
    %c0_17 = arith.constant 0 : index
    %c0_18 = arith.constant 0 : index
    %33 = vector.load %arg7[%c0_17, %c0_18] : memref<1x32xf32, #tpu.memory_space<vmem>>, vector<1x32xf32>
    %34 = vector.broadcast %33 : vector<1x32xf32> to vector<16x32xf32>
    %35 = arith.addf %32, %34 : vector<16x32xf32>
    %36 = arith.negf %35 : vector<16x32xf32>
    %37 = math.exp %36 : vector<16x32xf32>
    %cst_19 = arith.constant 1.000000e+00 : f32
    %38 = vector.broadcast %cst_19 : f32 to vector<16x32xf32>
    %39 = arith.addf %38, %37 : vector<16x32xf32>
    %40 = arith.divf %38, %39 : vector<16x32xf32>
    %41 = arith.mulf %30, %40 : vector<16x32xf32>
    %42 = arith.truncf %41 : vector<16x32xf32> to vector<16x32xbf16>
    %c0_20 = arith.constant 0 : index
    %c0_21 = arith.constant 0 : index
    %43 = vector.load %arg8[%c0_20, %c0_21] : memref<16x32xbf16, #tpu.memory_space<vmem>>, vector<16x32xbf16>
    tpu.vector_store %arg8[%c0_20, %c0_21], %42 {strides = array<i32>} : memref<16x32xbf16, #tpu.memory_space<vmem>>, vector<16x32xbf16>,
    return
  }
  func.func @transform_0(%arg0: i32) -> (i32, i32) {
    %c0_i32 = arith.constant 0 : i32
    %c0_i32_0 = arith.constant 0 : i32
    return %arg0, %c0_i32 : i32, i32
  }
  func.func @transform_1(%arg0: i32) -> (i32, i32) {
    %c0_i32 = arith.constant 0 : i32
    %c0_i32_0 = arith.constant 0 : i32
    %c0_i32_1 = arith.constant 0 : i32
    return %c0_i32, %c0_i32_0 : i32, i32
  }
  func.func @transform_2(%arg0: i32) -> (i32, i32) {
    %c0_i32 = arith.constant 0 : i32
    %c0_i32_0 = arith.constant 0 : i32
    %c0_i32_1 = arith.constant 0 : i32
    return %c0_i32, %c0_i32_0 : i32, i32
  }
  func.func @transform_3(%arg0: i32) -> (i32, i32) {
    %c0_i32 = arith.constant 0 : i32
    %c0_i32_0 = arith.constant 0 : i32
    %c0_i32_1 = arith.constant 0 : i32
    return %c0_i32, %c0_i32_0 : i32, i32
  }
  func.func @transform_4(%arg0: i32) -> (i32, i32) {
    %c0_i32 = arith.constant 0 : i32
    %c0_i32_0 = arith.constant 0 : i32
    %c0_i32_1 = arith.constant 0 : i32
    return %c0_i32, %c0_i32_0 : i32, i32
  }
  func.func @transform_5(%arg0: i32) -> (i32, i32) {
    %c0_i32 = arith.constant 0 : i32
    %c0_i32_0 = arith.constant 0 : i32
    %c0_i32_1 = arith.constant 0 : i32
    return %c0_i32, %c0_i32_0 : i32, i32
  }
  func.func @transform_6(%arg0: i32) -> (i32, i32) {
    %c0_i32 = arith.constant 0 : i32
    %c0_i32_0 = arith.constant 0 : i32
    %c0_i32_1 = arith.constant 0 : i32
    return %c0_i32, %c0_i32_0 : i32, i32
  }
  func.func @transform_7(%arg0: i32) -> (i32, i32) {
    %c0_i32 = arith.constant 0 : i32
    %c0_i32_0 = arith.constant 0 : i32
    return %arg0, %c0_i32 : i32, i32
  }
}

module attributes {stable_mosaic.version = 11 : i64} {
  func.func @_attention_kernel(%arg0: i32, %arg1: memref<1x7x96xbf16, #tpu.memory_space<vmem>>, %arg2: memref<7x32xbf16, #tpu.memory_space<vmem>>, %arg3: memref<4x8xf32, #tpu.memory_space<vmem>>, %arg4: memref<4x8xf32, #tpu.memory_space<vmem>>, %arg5: memref<32x32xbf16, #tpu.memory_space<vmem>>, %arg6: memref<1x32xf32, #tpu.memory_space<vmem>>, %arg7: memref<1x7x32xf32, #tpu.memory_space<vmem>>, %arg8: memref<1x7x32xf32, #tpu.memory_space<vmem>>) attributes {dimension_semantics = [#tpu.dimension_semantics<parallel>], iteration_bounds = array<i64: 2>, scalar_prefetch = 0 : i64, scratch_operands = 0 : i64, tpu.core_type = #tpu.core_type<tc>, window_params = [{transform_indices = @transform_0, window_bounds = array<i64: 1, 7, 96>}, {pipeline_mode = #tpu.pipeline_mode<synchronous>, transform_indices = @transform_1, window_bounds = array<i64: 7, 32>}, {pipeline_mode = #tpu.pipeline_mode<synchronous>, transform_indices = @transform_2, window_bounds = array<i64: 4, 8>}, {pipeline_mode = #tpu.pipeline_mode<synchronous>, transform_indices = @transform_3, window_bounds = array<i64: 4, 8>}, {pipeline_mode = #tpu.pipeline_mode<synchronous>, transform_indices = @transform_4, window_bounds = array<i64: 32, 32>}, {pipeline_mode = #tpu.pipeline_mode<synchronous>, transform_indices = @transform_5, window_bounds = array<i64: 1, 32>}, {transform_indices = @transform_6, window_bounds = array<i64: 1, 7, 32>}, {transform_indices = @transform_7, window_bounds = array<i64: 1, 7, 32>}]} {
    %c0 = arith.constant 0 : index
    %c0_0 = arith.constant 0 : index
    %c0_1 = arith.constant 0 : index
    %0 = vector.load %arg1[%c0, %c0_0, %c0_1] : memref<1x7x96xbf16, #tpu.memory_space<vmem>>, vector<1x7x96xbf16>
    %1 = vector.shape_cast %0 : vector<1x7x96xbf16> to vector<7x96xbf16>
    %c0_2 = arith.constant 0 : index
    %c0_3 = arith.constant 0 : index
    %2 = vector.load %arg2[%c0_2, %c0_3] : memref<7x32xbf16, #tpu.memory_space<vmem>>, vector<7x32xbf16>
    %3 = vector.extract_strided_slice %1 {offsets = [0, 0], sizes = [7, 8], strides = [1, 1]} : vector<7x96xbf16> to vector<7x8xbf16>
    %4 = arith.extf %3 : vector<7x8xbf16> to vector<7x8xf32>
    %5 = vector.extract_strided_slice %1 {offsets = [0, 32], sizes = [7, 8], strides = [1, 1]} : vector<7x96xbf16> to vector<7x8xbf16>
    %6 = vector.extract_strided_slice %1 {offsets = [0, 64], sizes = [7, 8], strides = [1, 1]} : vector<7x96xbf16> to vector<7x8xbf16>
    %7 = vector.extract_strided_slice %2 {offsets = [0, 0], sizes = [7, 8], strides = [1, 1]} : vector<7x32xbf16> to vector<7x8xbf16>
    %c0_4 = arith.constant 0 : index
    %c0_5 = arith.constant 0 : index
    %8 = vector.load %arg3[%c0_4, %c0_5] : memref<4x8xf32, #tpu.memory_space<vmem>>, vector<1x8xf32>
    %9 = vector.broadcast %8 : vector<1x8xf32> to vector<7x8xf32>
    %10 = arith.addf %4, %9 : vector<7x8xf32>
    %11 = arith.truncf %10 : vector<7x8xf32> to vector<7x8xbf16>
    %c0_6 = arith.constant 0 : index
    %c0_7 = arith.constant 0 : index
    %12 = vector.load %arg4[%c0_6, %c0_7] : memref<4x8xf32, #tpu.memory_space<vmem>>, vector<1x8xf32>
    %13 = vector.broadcast %12 : vector<1x8xf32> to vector<7x8xf32>
    %14 = arith.addf %4, %13 : vector<7x8xf32>
    %15 = arith.truncf %14 : vector<7x8xf32> to vector<7x8xbf16>
    %cst = arith.constant dense<0.000000e+00> : vector<7x7xf32>
    %16 = tpu.matmul %11, %5, %cst {dimension_numbers = #tpu.dot_dimension_numbers<[1], [1], [0], [0], [0, 0, 1, 0], [], []>} : vector<7x8xbf16>, vector<7x8xbf16>, vector<7x7xf32> -> vector<7x7xf32>
    %cst_8 = arith.constant dense<0.000000e+00> : vector<7x7xf32>
    %17 = tpu.matmul %15, %7, %cst_8 {dimension_numbers = #tpu.dot_dimension_numbers<[1], [1], [0], [0], [0, 0, 1, 0], [], []>} : vector<7x8xbf16>, vector<7x8xbf16>, vector<7x7xf32> -> vector<7x7xf32>
    %18 = vector.extract_strided_slice %17 {offsets = [1, 0], sizes = [6, 7], strides = [1, 1]} : vector<7x7xf32> to vector<6x7xf32>
    %19 = vector.extract_strided_slice %17 {offsets = [0, 0], sizes = [1, 7], strides = [1, 1]} : vector<7x7xf32> to vector<1x7xf32>
    %20 = tpu.concatenate %18, %19 in 0 : vector<6x7xf32>, vector<1x7xf32> -> vector<7x7xf32>
    %cst_9 = arith.constant 0.000000e+00 : f32
    %21 = vector.broadcast %cst_9 : f32 to vector<7x1xf32>
    %22 = tpu.concatenate %21, %17, %21, %20 in 1 : vector<7x1xf32>, vector<7x7xf32>, vector<7x1xf32>, vector<7x7xf32> -> vector<7x16xf32>
    %23 = tpu.iota {dimensions = array<i32: 0>} : vector<7x16xi32>
    %c7_i32 = arith.constant 7 : i32
    %24 = vector.broadcast %c7_i32 : i32 to vector<7x16xi32>
    %25 = arith.subi %24, %23 : vector<7x16xi32>
    %26 = vector.extract_strided_slice %22 {offsets = [0, 1], sizes = [7, 15], strides = [1, 1]} : vector<7x16xf32> to vector<7x15xf32>
    %27 = vector.extract_strided_slice %22 {offsets = [0, 0], sizes = [7, 1], strides = [1, 1]} : vector<7x16xf32> to vector<7x1xf32>
    %28 = tpu.concatenate %26, %27 in 1 : vector<7x15xf32>, vector<7x1xf32> -> vector<7x16xf32>
    %c1_i32 = arith.constant 1 : i32
    %29 = vector.broadcast %c1_i32 : i32 to vector<7x16xi32>
    %30 = arith.andi %25, %29 : vector<7x16xi32>
    %c0_i32 = arith.constant 0 : i32
    %31 = vector.broadcast %c0_i32 : i32 to vector<7x16xi32>
    %32 = arith.cmpi ne, %30, %31 : vector<7x16xi32>
    %33 = arith.select %32, %28, %22 : vector<7x16xi1>, vector<7x16xf32>
    %34 = vector.extract_strided_slice %33 {offsets = [0, 2], sizes = [7, 14], strides = [1, 1]} : vector<7x16xf32> to vector<7x14xf32>
    %35 = vector.extract_strided_slice %33 {offsets = [0, 0], sizes = [7, 2], strides = [1, 1]} : vector<7x16xf32> to vector<7x2xf32>
    %36 = tpu.concatenate %34, %35 in 1 : vector<7x14xf32>, vector<7x2xf32> -> vector<7x16xf32>
    %c2_i32 = arith.constant 2 : i32
    %37 = vector.broadcast %c2_i32 : i32 to vector<7x16xi32>
    %38 = arith.andi %25, %37 : vector<7x16xi32>
    %c0_i32_10 = arith.constant 0 : i32
    %39 = vector.broadcast %c0_i32_10 : i32 to vector<7x16xi32>
    %40 = arith.cmpi ne, %38, %39 : vector<7x16xi32>
    %41 = arith.select %40, %36, %33 : vector<7x16xi1>, vector<7x16xf32>
    %42 = vector.extract_strided_slice %41 {offsets = [0, 4], sizes = [7, 12], strides = [1, 1]} : vector<7x16xf32> to vector<7x12xf32>
    %43 = vector.extract_strided_slice %41 {offsets = [0, 0], sizes = [7, 4], strides = [1, 1]} : vector<7x16xf32> to vector<7x4xf32>
    %44 = tpu.concatenate %42, %43 in 1 : vector<7x12xf32>, vector<7x4xf32> -> vector<7x16xf32>
    %c4_i32 = arith.constant 4 : i32
    %45 = vector.broadcast %c4_i32 : i32 to vector<7x16xi32>
    %46 = arith.andi %25, %45 : vector<7x16xi32>
    %c0_i32_11 = arith.constant 0 : i32
    %47 = vector.broadcast %c0_i32_11 : i32 to vector<7x16xi32>
    %48 = arith.cmpi ne, %46, %47 : vector<7x16xi32>
    %49 = arith.select %48, %44, %41 : vector<7x16xi1>, vector<7x16xf32>
    %50 = vector.extract_strided_slice %49 {offsets = [0, 0], sizes = [7, 7], strides = [1, 1]} : vector<7x16xf32> to vector<7x7xf32>
    %51 = arith.addf %16, %50 : vector<7x7xf32>
    %cst_12 = arith.constant 0.176776692 : f32
    %52 = vector.broadcast %cst_12 : f32 to vector<7x7xf32>
    %53 = arith.mulf %51, %52 : vector<7x7xf32>
    %cst_13 = arith.constant dense<0xFF800000> : vector<7xf32>
    %54 = vector.multi_reduction <maximumf>, %53, %cst_13 [1] : vector<7x7xf32> to vector<7xf32>
    %55 = vector.shape_cast %54 : vector<7xf32> to vector<7x1xf32>
    %56 = vector.broadcast %55 : vector<7x1xf32> to vector<7x7xf32>
    %57 = arith.subf %53, %56 : vector<7x7xf32>
    %58 = math.exp %57 : vector<7x7xf32>
    %cst_14 = arith.constant dense<0.000000e+00> : vector<7xf32>
    %59 = vector.multi_reduction <add>, %58, %cst_14 [1] : vector<7x7xf32> to vector<7xf32>
    %60 = vector.shape_cast %59 : vector<7xf32> to vector<7x1xf32>
    %61 = vector.broadcast %60 : vector<7x1xf32> to vector<7x7xf32>
    %62 = arith.divf %58, %61 : vector<7x7xf32>
    %63 = arith.truncf %62 : vector<7x7xf32> to vector<7x7xbf16>
    %cst_15 = arith.constant dense<0.000000e+00> : vector<7x8xf32>
    %64 = tpu.matmul %63, %6, %cst_15 {dimension_numbers = #tpu.dot_dimension_numbers<[1], [0], [0], [1], [0, 0, 1, 1], [], []>} : vector<7x7xbf16>, vector<7x8xbf16>, vector<7x8xf32> -> vector<7x8xf32>
    %65 = arith.truncf %64 : vector<7x8xf32> to vector<7x8xbf16>
    %66 = vector.extract_strided_slice %1 {offsets = [0, 8], sizes = [7, 8], strides = [1, 1]} : vector<7x96xbf16> to vector<7x8xbf16>
    %67 = arith.extf %66 : vector<7x8xbf16> to vector<7x8xf32>
    %68 = vector.extract_strided_slice %1 {offsets = [0, 40], sizes = [7, 8], strides = [1, 1]} : vector<7x96xbf16> to vector<7x8xbf16>
    %69 = vector.extract_strided_slice %1 {offsets = [0, 72], sizes = [7, 8], strides = [1, 1]} : vector<7x96xbf16> to vector<7x8xbf16>
    %70 = vector.extract_strided_slice %2 {offsets = [0, 8], sizes = [7, 8], strides = [1, 1]} : vector<7x32xbf16> to vector<7x8xbf16>
    %c1 = arith.constant 1 : index
    %c0_16 = arith.constant 0 : index
    %71 = vector.load %arg3[%c1, %c0_16] : memref<4x8xf32, #tpu.memory_space<vmem>>, vector<1x8xf32>
    %72 = vector.broadcast %71 : vector<1x8xf32> to vector<7x8xf32>
    %73 = arith.addf %67, %72 : vector<7x8xf32>
    %74 = arith.truncf %73 : vector<7x8xf32> to vector<7x8xbf16>
    %c1_17 = arith.constant 1 : index
    %c0_18 = arith.constant 0 : index
    %75 = vector.load %arg4[%c1_17, %c0_18] : memref<4x8xf32, #tpu.memory_space<vmem>>, vector<1x8xf32>
    %76 = vector.broadcast %75 : vector<1x8xf32> to vector<7x8xf32>
    %77 = arith.addf %67, %76 : vector<7x8xf32>
    %78 = arith.truncf %77 : vector<7x8xf32> to vector<7x8xbf16>
    %cst_19 = arith.constant dense<0.000000e+00> : vector<7x7xf32>
    %79 = tpu.matmul %74, %68, %cst_19 {dimension_numbers = #tpu.dot_dimension_numbers<[1], [1], [0], [0], [0, 0, 1, 0], [], []>} : vector<7x8xbf16>, vector<7x8xbf16>, vector<7x7xf32> -> vector<7x7xf32>
    %cst_20 = arith.constant dense<0.000000e+00> : vector<7x7xf32>
    %80 = tpu.matmul %78, %70, %cst_20 {dimension_numbers = #tpu.dot_dimension_numbers<[1], [1], [0], [0], [0, 0, 1, 0], [], []>} : vector<7x8xbf16>, vector<7x8xbf16>, vector<7x7xf32> -> vector<7x7xf32>
    %81 = vector.extract_strided_slice %80 {offsets = [1, 0], sizes = [6, 7], strides = [1, 1]} : vector<7x7xf32> to vector<6x7xf32>
    %82 = vector.extract_strided_slice %80 {offsets = [0, 0], sizes = [1, 7], strides = [1, 1]} : vector<7x7xf32> to vector<1x7xf32>
    %83 = tpu.concatenate %81, %82 in 0 : vector<6x7xf32>, vector<1x7xf32> -> vector<7x7xf32>
    %cst_21 = arith.constant 0.000000e+00 : f32
    %84 = vector.broadcast %cst_21 : f32 to vector<7x1xf32>
    %85 = tpu.concatenate %84, %80, %84, %83 in 1 : vector<7x1xf32>, vector<7x7xf32>, vector<7x1xf32>, vector<7x7xf32> -> vector<7x16xf32>
    %86 = tpu.iota {dimensions = array<i32: 0>} : vector<7x16xi32>
    %c7_i32_22 = arith.constant 7 : i32
    %87 = vector.broadcast %c7_i32_22 : i32 to vector<7x16xi32>
    %88 = arith.subi %87, %86 : vector<7x16xi32>
    %89 = vector.extract_strided_slice %85 {offsets = [0, 1], sizes = [7, 15], strides = [1, 1]} : vector<7x16xf32> to vector<7x15xf32>
    %90 = vector.extract_strided_slice %85 {offsets = [0, 0], sizes = [7, 1], strides = [1, 1]} : vector<7x16xf32> to vector<7x1xf32>
    %91 = tpu.concatenate %89, %90 in 1 : vector<7x15xf32>, vector<7x1xf32> -> vector<7x16xf32>
    %c1_i32_23 = arith.constant 1 : i32
    %92 = vector.broadcast %c1_i32_23 : i32 to vector<7x16xi32>
    %93 = arith.andi %88, %92 : vector<7x16xi32>
    %c0_i32_24 = arith.constant 0 : i32
    %94 = vector.broadcast %c0_i32_24 : i32 to vector<7x16xi32>
    %95 = arith.cmpi ne, %93, %94 : vector<7x16xi32>
    %96 = arith.select %95, %91, %85 : vector<7x16xi1>, vector<7x16xf32>
    %97 = vector.extract_strided_slice %96 {offsets = [0, 2], sizes = [7, 14], strides = [1, 1]} : vector<7x16xf32> to vector<7x14xf32>
    %98 = vector.extract_strided_slice %96 {offsets = [0, 0], sizes = [7, 2], strides = [1, 1]} : vector<7x16xf32> to vector<7x2xf32>
    %99 = tpu.concatenate %97, %98 in 1 : vector<7x14xf32>, vector<7x2xf32> -> vector<7x16xf32>
    %c2_i32_25 = arith.constant 2 : i32
    %100 = vector.broadcast %c2_i32_25 : i32 to vector<7x16xi32>
    %101 = arith.andi %88, %100 : vector<7x16xi32>
    %c0_i32_26 = arith.constant 0 : i32
    %102 = vector.broadcast %c0_i32_26 : i32 to vector<7x16xi32>
    %103 = arith.cmpi ne, %101, %102 : vector<7x16xi32>
    %104 = arith.select %103, %99, %96 : vector<7x16xi1>, vector<7x16xf32>
    %105 = vector.extract_strided_slice %104 {offsets = [0, 4], sizes = [7, 12], strides = [1, 1]} : vector<7x16xf32> to vector<7x12xf32>
    %106 = vector.extract_strided_slice %104 {offsets = [0, 0], sizes = [7, 4], strides = [1, 1]} : vector<7x16xf32> to vector<7x4xf32>
    %107 = tpu.concatenate %105, %106 in 1 : vector<7x12xf32>, vector<7x4xf32> -> vector<7x16xf32>
    %c4_i32_27 = arith.constant 4 : i32
    %108 = vector.broadcast %c4_i32_27 : i32 to vector<7x16xi32>
    %109 = arith.andi %88, %108 : vector<7x16xi32>
    %c0_i32_28 = arith.constant 0 : i32
    %110 = vector.broadcast %c0_i32_28 : i32 to vector<7x16xi32>
    %111 = arith.cmpi ne, %109, %110 : vector<7x16xi32>
    %112 = arith.select %111, %107, %104 : vector<7x16xi1>, vector<7x16xf32>
    %113 = vector.extract_strided_slice %112 {offsets = [0, 0], sizes = [7, 7], strides = [1, 1]} : vector<7x16xf32> to vector<7x7xf32>
    %114 = arith.addf %79, %113 : vector<7x7xf32>
    %cst_29 = arith.constant 0.176776692 : f32
    %115 = vector.broadcast %cst_29 : f32 to vector<7x7xf32>
    %116 = arith.mulf %114, %115 : vector<7x7xf32>
    %cst_30 = arith.constant dense<0xFF800000> : vector<7xf32>
    %117 = vector.multi_reduction <maximumf>, %116, %cst_30 [1] : vector<7x7xf32> to vector<7xf32>
    %118 = vector.shape_cast %117 : vector<7xf32> to vector<7x1xf32>
    %119 = vector.broadcast %118 : vector<7x1xf32> to vector<7x7xf32>
    %120 = arith.subf %116, %119 : vector<7x7xf32>
    %121 = math.exp %120 : vector<7x7xf32>
    %cst_31 = arith.constant dense<0.000000e+00> : vector<7xf32>
    %122 = vector.multi_reduction <add>, %121, %cst_31 [1] : vector<7x7xf32> to vector<7xf32>
    %123 = vector.shape_cast %122 : vector<7xf32> to vector<7x1xf32>
    %124 = vector.broadcast %123 : vector<7x1xf32> to vector<7x7xf32>
    %125 = arith.divf %121, %124 : vector<7x7xf32>
    %126 = arith.truncf %125 : vector<7x7xf32> to vector<7x7xbf16>
    %cst_32 = arith.constant dense<0.000000e+00> : vector<7x8xf32>
    %127 = tpu.matmul %126, %69, %cst_32 {dimension_numbers = #tpu.dot_dimension_numbers<[1], [0], [0], [1], [0, 0, 1, 1], [], []>} : vector<7x7xbf16>, vector<7x8xbf16>, vector<7x8xf32> -> vector<7x8xf32>
    %128 = arith.truncf %127 : vector<7x8xf32> to vector<7x8xbf16>
    %129 = vector.extract_strided_slice %1 {offsets = [0, 16], sizes = [7, 8], strides = [1, 1]} : vector<7x96xbf16> to vector<7x8xbf16>
    %130 = arith.extf %129 : vector<7x8xbf16> to vector<7x8xf32>
    %131 = vector.extract_strided_slice %1 {offsets = [0, 48], sizes = [7, 8], strides = [1, 1]} : vector<7x96xbf16> to vector<7x8xbf16>
    %132 = vector.extract_strided_slice %1 {offsets = [0, 80], sizes = [7, 8], strides = [1, 1]} : vector<7x96xbf16> to vector<7x8xbf16>
    %133 = vector.extract_strided_slice %2 {offsets = [0, 16], sizes = [7, 8], strides = [1, 1]} : vector<7x32xbf16> to vector<7x8xbf16>
    %c2 = arith.constant 2 : index
    %c0_33 = arith.constant 0 : index
    %134 = vector.load %arg3[%c2, %c0_33] : memref<4x8xf32, #tpu.memory_space<vmem>>, vector<1x8xf32>
    %135 = vector.broadcast %134 : vector<1x8xf32> to vector<7x8xf32>
    %136 = arith.addf %130, %135 : vector<7x8xf32>
    %137 = arith.truncf %136 : vector<7x8xf32> to vector<7x8xbf16>
    %c2_34 = arith.constant 2 : index
    %c0_35 = arith.constant 0 : index
    %138 = vector.load %arg4[%c2_34, %c0_35] : memref<4x8xf32, #tpu.memory_space<vmem>>, vector<1x8xf32>
    %139 = vector.broadcast %138 : vector<1x8xf32> to vector<7x8xf32>
    %140 = arith.addf %130, %139 : vector<7x8xf32>
    %141 = arith.truncf %140 : vector<7x8xf32> to vector<7x8xbf16>
    %cst_36 = arith.constant dense<0.000000e+00> : vector<7x7xf32>
    %142 = tpu.matmul %137, %131, %cst_36 {dimension_numbers = #tpu.dot_dimension_numbers<[1], [1], [0], [0], [0, 0, 1, 0], [], []>} : vector<7x8xbf16>, vector<7x8xbf16>, vector<7x7xf32> -> vector<7x7xf32>
    %cst_37 = arith.constant dense<0.000000e+00> : vector<7x7xf32>
    %143 = tpu.matmul %141, %133, %cst_37 {dimension_numbers = #tpu.dot_dimension_numbers<[1], [1], [0], [0], [0, 0, 1, 0], [], []>} : vector<7x8xbf16>, vector<7x8xbf16>, vector<7x7xf32> -> vector<7x7xf32>
    %144 = vector.extract_strided_slice %143 {offsets = [1, 0], sizes = [6, 7], strides = [1, 1]} : vector<7x7xf32> to vector<6x7xf32>
    %145 = vector.extract_strided_slice %143 {offsets = [0, 0], sizes = [1, 7], strides = [1, 1]} : vector<7x7xf32> to vector<1x7xf32>
    %146 = tpu.concatenate %144, %145 in 0 : vector<6x7xf32>, vector<1x7xf32> -> vector<7x7xf32>
    %cst_38 = arith.constant 0.000000e+00 : f32
    %147 = vector.broadcast %cst_38 : f32 to vector<7x1xf32>
    %148 = tpu.concatenate %147, %143, %147, %146 in 1 : vector<7x1xf32>, vector<7x7xf32>, vector<7x1xf32>, vector<7x7xf32> -> vector<7x16xf32>
    %149 = tpu.iota {dimensions = array<i32: 0>} : vector<7x16xi32>
    %c7_i32_39 = arith.constant 7 : i32
    %150 = vector.broadcast %c7_i32_39 : i32 to vector<7x16xi32>
    %151 = arith.subi %150, %149 : vector<7x16xi32>
    %152 = vector.extract_strided_slice %148 {offsets = [0, 1], sizes = [7, 15], strides = [1, 1]} : vector<7x16xf32> to vector<7x15xf32>
    %153 = vector.extract_strided_slice %148 {offsets = [0, 0], sizes = [7, 1], strides = [1, 1]} : vector<7x16xf32> to vector<7x1xf32>
    %154 = tpu.concatenate %152, %153 in 1 : vector<7x15xf32>, vector<7x1xf32> -> vector<7x16xf32>
    %c1_i32_40 = arith.constant 1 : i32
    %155 = vector.broadcast %c1_i32_40 : i32 to vector<7x16xi32>
    %156 = arith.andi %151, %155 : vector<7x16xi32>
    %c0_i32_41 = arith.constant 0 : i32
    %157 = vector.broadcast %c0_i32_41 : i32 to vector<7x16xi32>
    %158 = arith.cmpi ne, %156, %157 : vector<7x16xi32>
    %159 = arith.select %158, %154, %148 : vector<7x16xi1>, vector<7x16xf32>
    %160 = vector.extract_strided_slice %159 {offsets = [0, 2], sizes = [7, 14], strides = [1, 1]} : vector<7x16xf32> to vector<7x14xf32>
    %161 = vector.extract_strided_slice %159 {offsets = [0, 0], sizes = [7, 2], strides = [1, 1]} : vector<7x16xf32> to vector<7x2xf32>
    %162 = tpu.concatenate %160, %161 in 1 : vector<7x14xf32>, vector<7x2xf32> -> vector<7x16xf32>
    %c2_i32_42 = arith.constant 2 : i32
    %163 = vector.broadcast %c2_i32_42 : i32 to vector<7x16xi32>
    %164 = arith.andi %151, %163 : vector<7x16xi32>
    %c0_i32_43 = arith.constant 0 : i32
    %165 = vector.broadcast %c0_i32_43 : i32 to vector<7x16xi32>
    %166 = arith.cmpi ne, %164, %165 : vector<7x16xi32>
    %167 = arith.select %166, %162, %159 : vector<7x16xi1>, vector<7x16xf32>
    %168 = vector.extract_strided_slice %167 {offsets = [0, 4], sizes = [7, 12], strides = [1, 1]} : vector<7x16xf32> to vector<7x12xf32>
    %169 = vector.extract_strided_slice %167 {offsets = [0, 0], sizes = [7, 4], strides = [1, 1]} : vector<7x16xf32> to vector<7x4xf32>
    %170 = tpu.concatenate %168, %169 in 1 : vector<7x12xf32>, vector<7x4xf32> -> vector<7x16xf32>
    %c4_i32_44 = arith.constant 4 : i32
    %171 = vector.broadcast %c4_i32_44 : i32 to vector<7x16xi32>
    %172 = arith.andi %151, %171 : vector<7x16xi32>
    %c0_i32_45 = arith.constant 0 : i32
    %173 = vector.broadcast %c0_i32_45 : i32 to vector<7x16xi32>
    %174 = arith.cmpi ne, %172, %173 : vector<7x16xi32>
    %175 = arith.select %174, %170, %167 : vector<7x16xi1>, vector<7x16xf32>
    %176 = vector.extract_strided_slice %175 {offsets = [0, 0], sizes = [7, 7], strides = [1, 1]} : vector<7x16xf32> to vector<7x7xf32>
    %177 = arith.addf %142, %176 : vector<7x7xf32>
    %cst_46 = arith.constant 0.176776692 : f32
    %178 = vector.broadcast %cst_46 : f32 to vector<7x7xf32>
    %179 = arith.mulf %177, %178 : vector<7x7xf32>
    %cst_47 = arith.constant dense<0xFF800000> : vector<7xf32>
    %180 = vector.multi_reduction <maximumf>, %179, %cst_47 [1] : vector<7x7xf32> to vector<7xf32>
    %181 = vector.shape_cast %180 : vector<7xf32> to vector<7x1xf32>
    %182 = vector.broadcast %181 : vector<7x1xf32> to vector<7x7xf32>
    %183 = arith.subf %179, %182 : vector<7x7xf32>
    %184 = math.exp %183 : vector<7x7xf32>
    %cst_48 = arith.constant dense<0.000000e+00> : vector<7xf32>
    %185 = vector.multi_reduction <add>, %184, %cst_48 [1] : vector<7x7xf32> to vector<7xf32>
    %186 = vector.shape_cast %185 : vector<7xf32> to vector<7x1xf32>
    %187 = vector.broadcast %186 : vector<7x1xf32> to vector<7x7xf32>
    %188 = arith.divf %184, %187 : vector<7x7xf32>
    %189 = arith.truncf %188 : vector<7x7xf32> to vector<7x7xbf16>
    %cst_49 = arith.constant dense<0.000000e+00> : vector<7x8xf32>
    %190 = tpu.matmul %189, %132, %cst_49 {dimension_numbers = #tpu.dot_dimension_numbers<[1], [0], [0], [1], [0, 0, 1, 1], [], []>} : vector<7x7xbf16>, vector<7x8xbf16>, vector<7x8xf32> -> vector<7x8xf32>
    %191 = arith.truncf %190 : vector<7x8xf32> to vector<7x8xbf16>
    %192 = vector.extract_strided_slice %1 {offsets = [0, 24], sizes = [7, 8], strides = [1, 1]} : vector<7x96xbf16> to vector<7x8xbf16>
    %193 = arith.extf %192 : vector<7x8xbf16> to vector<7x8xf32>
    %194 = vector.extract_strided_slice %1 {offsets = [0, 56], sizes = [7, 8], strides = [1, 1]} : vector<7x96xbf16> to vector<7x8xbf16>
    %195 = vector.extract_strided_slice %1 {offsets = [0, 88], sizes = [7, 8], strides = [1, 1]} : vector<7x96xbf16> to vector<7x8xbf16>
    %196 = vector.extract_strided_slice %2 {offsets = [0, 24], sizes = [7, 8], strides = [1, 1]} : vector<7x32xbf16> to vector<7x8xbf16>
    %c3 = arith.constant 3 : index
    %c0_50 = arith.constant 0 : index
    %197 = vector.load %arg3[%c3, %c0_50] : memref<4x8xf32, #tpu.memory_space<vmem>>, vector<1x8xf32>
    %198 = vector.broadcast %197 : vector<1x8xf32> to vector<7x8xf32>
    %199 = arith.addf %193, %198 : vector<7x8xf32>
    %200 = arith.truncf %199 : vector<7x8xf32> to vector<7x8xbf16>
    %c3_51 = arith.constant 3 : index
    %c0_52 = arith.constant 0 : index
    %201 = vector.load %arg4[%c3_51, %c0_52] : memref<4x8xf32, #tpu.memory_space<vmem>>, vector<1x8xf32>
    %202 = vector.broadcast %201 : vector<1x8xf32> to vector<7x8xf32>
    %203 = arith.addf %193, %202 : vector<7x8xf32>
    %204 = arith.truncf %203 : vector<7x8xf32> to vector<7x8xbf16>
    %cst_53 = arith.constant dense<0.000000e+00> : vector<7x7xf32>
    %205 = tpu.matmul %200, %194, %cst_53 {dimension_numbers = #tpu.dot_dimension_numbers<[1], [1], [0], [0], [0, 0, 1, 0], [], []>} : vector<7x8xbf16>, vector<7x8xbf16>, vector<7x7xf32> -> vector<7x7xf32>
    %cst_54 = arith.constant dense<0.000000e+00> : vector<7x7xf32>
    %206 = tpu.matmul %204, %196, %cst_54 {dimension_numbers = #tpu.dot_dimension_numbers<[1], [1], [0], [0], [0, 0, 1, 0], [], []>} : vector<7x8xbf16>, vector<7x8xbf16>, vector<7x7xf32> -> vector<7x7xf32>
    %207 = vector.extract_strided_slice %206 {offsets = [1, 0], sizes = [6, 7], strides = [1, 1]} : vector<7x7xf32> to vector<6x7xf32>
    %208 = vector.extract_strided_slice %206 {offsets = [0, 0], sizes = [1, 7], strides = [1, 1]} : vector<7x7xf32> to vector<1x7xf32>
    %209 = tpu.concatenate %207, %208 in 0 : vector<6x7xf32>, vector<1x7xf32> -> vector<7x7xf32>
    %cst_55 = arith.constant 0.000000e+00 : f32
    %210 = vector.broadcast %cst_55 : f32 to vector<7x1xf32>
    %211 = tpu.concatenate %210, %206, %210, %209 in 1 : vector<7x1xf32>, vector<7x7xf32>, vector<7x1xf32>, vector<7x7xf32> -> vector<7x16xf32>
    %212 = tpu.iota {dimensions = array<i32: 0>} : vector<7x16xi32>
    %c7_i32_56 = arith.constant 7 : i32
    %213 = vector.broadcast %c7_i32_56 : i32 to vector<7x16xi32>
    %214 = arith.subi %213, %212 : vector<7x16xi32>
    %215 = vector.extract_strided_slice %211 {offsets = [0, 1], sizes = [7, 15], strides = [1, 1]} : vector<7x16xf32> to vector<7x15xf32>
    %216 = vector.extract_strided_slice %211 {offsets = [0, 0], sizes = [7, 1], strides = [1, 1]} : vector<7x16xf32> to vector<7x1xf32>
    %217 = tpu.concatenate %215, %216 in 1 : vector<7x15xf32>, vector<7x1xf32> -> vector<7x16xf32>
    %c1_i32_57 = arith.constant 1 : i32
    %218 = vector.broadcast %c1_i32_57 : i32 to vector<7x16xi32>
    %219 = arith.andi %214, %218 : vector<7x16xi32>
    %c0_i32_58 = arith.constant 0 : i32
    %220 = vector.broadcast %c0_i32_58 : i32 to vector<7x16xi32>
    %221 = arith.cmpi ne, %219, %220 : vector<7x16xi32>
    %222 = arith.select %221, %217, %211 : vector<7x16xi1>, vector<7x16xf32>
    %223 = vector.extract_strided_slice %222 {offsets = [0, 2], sizes = [7, 14], strides = [1, 1]} : vector<7x16xf32> to vector<7x14xf32>
    %224 = vector.extract_strided_slice %222 {offsets = [0, 0], sizes = [7, 2], strides = [1, 1]} : vector<7x16xf32> to vector<7x2xf32>
    %225 = tpu.concatenate %223, %224 in 1 : vector<7x14xf32>, vector<7x2xf32> -> vector<7x16xf32>
    %c2_i32_59 = arith.constant 2 : i32
    %226 = vector.broadcast %c2_i32_59 : i32 to vector<7x16xi32>
    %227 = arith.andi %214, %226 : vector<7x16xi32>
    %c0_i32_60 = arith.constant 0 : i32
    %228 = vector.broadcast %c0_i32_60 : i32 to vector<7x16xi32>
    %229 = arith.cmpi ne, %227, %228 : vector<7x16xi32>
    %230 = arith.select %229, %225, %222 : vector<7x16xi1>, vector<7x16xf32>
    %231 = vector.extract_strided_slice %230 {offsets = [0, 4], sizes = [7, 12], strides = [1, 1]} : vector<7x16xf32> to vector<7x12xf32>
    %232 = vector.extract_strided_slice %230 {offsets = [0, 0], sizes = [7, 4], strides = [1, 1]} : vector<7x16xf32> to vector<7x4xf32>
    %233 = tpu.concatenate %231, %232 in 1 : vector<7x12xf32>, vector<7x4xf32> -> vector<7x16xf32>
    %c4_i32_61 = arith.constant 4 : i32
    %234 = vector.broadcast %c4_i32_61 : i32 to vector<7x16xi32>
    %235 = arith.andi %214, %234 : vector<7x16xi32>
    %c0_i32_62 = arith.constant 0 : i32
    %236 = vector.broadcast %c0_i32_62 : i32 to vector<7x16xi32>
    %237 = arith.cmpi ne, %235, %236 : vector<7x16xi32>
    %238 = arith.select %237, %233, %230 : vector<7x16xi1>, vector<7x16xf32>
    %239 = vector.extract_strided_slice %238 {offsets = [0, 0], sizes = [7, 7], strides = [1, 1]} : vector<7x16xf32> to vector<7x7xf32>
    %240 = arith.addf %205, %239 : vector<7x7xf32>
    %cst_63 = arith.constant 0.176776692 : f32
    %241 = vector.broadcast %cst_63 : f32 to vector<7x7xf32>
    %242 = arith.mulf %240, %241 : vector<7x7xf32>
    %cst_64 = arith.constant dense<0xFF800000> : vector<7xf32>
    %243 = vector.multi_reduction <maximumf>, %242, %cst_64 [1] : vector<7x7xf32> to vector<7xf32>
    %244 = vector.shape_cast %243 : vector<7xf32> to vector<7x1xf32>
    %245 = vector.broadcast %244 : vector<7x1xf32> to vector<7x7xf32>
    %246 = arith.subf %242, %245 : vector<7x7xf32>
    %247 = math.exp %246 : vector<7x7xf32>
    %cst_65 = arith.constant dense<0.000000e+00> : vector<7xf32>
    %248 = vector.multi_reduction <add>, %247, %cst_65 [1] : vector<7x7xf32> to vector<7xf32>
    %249 = vector.shape_cast %248 : vector<7xf32> to vector<7x1xf32>
    %250 = vector.broadcast %249 : vector<7x1xf32> to vector<7x7xf32>
    %251 = arith.divf %247, %250 : vector<7x7xf32>
    %252 = arith.truncf %251 : vector<7x7xf32> to vector<7x7xbf16>
    %cst_66 = arith.constant dense<0.000000e+00> : vector<7x8xf32>
    %253 = tpu.matmul %252, %195, %cst_66 {dimension_numbers = #tpu.dot_dimension_numbers<[1], [0], [0], [1], [0, 0, 1, 1], [], []>} : vector<7x7xbf16>, vector<7x8xbf16>, vector<7x8xf32> -> vector<7x8xf32>
    %254 = arith.truncf %253 : vector<7x8xf32> to vector<7x8xbf16>
    %255 = tpu.concatenate %65, %128, %191, %254 in 1 : vector<7x8xbf16>, vector<7x8xbf16>, vector<7x8xbf16>, vector<7x8xbf16> -> vector<7x32xbf16>
    %c0_67 = arith.constant 0 : index
    %c0_68 = arith.constant 0 : index
    %256 = vector.load %arg5[%c0_67, %c0_68] : memref<32x32xbf16, #tpu.memory_space<vmem>>, vector<32x32xbf16>
    %cst_69 = arith.constant dense<0.000000e+00> : vector<7x32xf32>
    %257 = tpu.matmul %255, %256, %cst_69 {dimension_numbers = #tpu.dot_dimension_numbers<[1], [0], [0], [1], [0, 0, 1, 1], [], []>} : vector<7x32xbf16>, vector<32x32xbf16>, vector<7x32xf32> -> vector<7x32xf32>
    %c0_70 = arith.constant 0 : index
    %c0_71 = arith.constant 0 : index
    %258 = vector.load %arg6[%c0_70, %c0_71] : memref<1x32xf32, #tpu.memory_space<vmem>>, vector<1x32xf32>
    %259 = vector.broadcast %258 : vector<1x32xf32> to vector<7x32xf32>
    %260 = arith.addf %257, %259 : vector<7x32xf32>
    %c0_72 = arith.constant 0 : index
    %c0_73 = arith.constant 0 : index
    %c0_74 = arith.constant 0 : index
    %261 = vector.load %arg7[%c0_72, %c0_73, %c0_74] : memref<1x7x32xf32, #tpu.memory_space<vmem>>, vector<1x7x32xf32>
    %262 = vector.shape_cast %261 : vector<1x7x32xf32> to vector<7x32xf32>
    %263 = arith.addf %260, %262 : vector<7x32xf32>
    %c0_75 = arith.constant 0 : index
    %c0_76 = arith.constant 0 : index
    %c0_77 = arith.constant 0 : index
    %264 = vector.load %arg8[%c0_75, %c0_76, %c0_77] : memref<1x7x32xf32, #tpu.memory_space<vmem>>, vector<1x7x32xf32>
    %265 = vector.shape_cast %264 : vector<1x7x32xf32> to vector<7x32xf32>
    %266 = vector.shape_cast %263 : vector<7x32xf32> to vector<1x7x32xf32>
    tpu.vector_store %arg8[%c0_75, %c0_76, %c0_77], %266 {strides = array<i32>} : memref<1x7x32xf32, #tpu.memory_space<vmem>>, vector<1x7x32xf32>,
    return
  }
  func.func @transform_0(%arg0: i32) -> (i32, i32, i32) {
    %c0_i32 = arith.constant 0 : i32
    %c0_i32_0 = arith.constant 0 : i32
    %c0_i32_1 = arith.constant 0 : i32
    return %arg0, %c0_i32, %c0_i32_0 : i32, i32, i32
  }
  func.func @transform_1(%arg0: i32) -> (i32, i32) {
    %c0_i32 = arith.constant 0 : i32
    %c0_i32_0 = arith.constant 0 : i32
    %c0_i32_1 = arith.constant 0 : i32
    return %c0_i32, %c0_i32_0 : i32, i32
  }
  func.func @transform_2(%arg0: i32) -> (i32, i32) {
    %c0_i32 = arith.constant 0 : i32
    %c0_i32_0 = arith.constant 0 : i32
    %c0_i32_1 = arith.constant 0 : i32
    return %c0_i32, %c0_i32_0 : i32, i32
  }
  func.func @transform_3(%arg0: i32) -> (i32, i32) {
    %c0_i32 = arith.constant 0 : i32
    %c0_i32_0 = arith.constant 0 : i32
    %c0_i32_1 = arith.constant 0 : i32
    return %c0_i32, %c0_i32_0 : i32, i32
  }
  func.func @transform_4(%arg0: i32) -> (i32, i32) {
    %c0_i32 = arith.constant 0 : i32
    %c0_i32_0 = arith.constant 0 : i32
    %c0_i32_1 = arith.constant 0 : i32
    return %c0_i32, %c0_i32_0 : i32, i32
  }
  func.func @transform_5(%arg0: i32) -> (i32, i32) {
    %c0_i32 = arith.constant 0 : i32
    %c0_i32_0 = arith.constant 0 : i32
    %c0_i32_1 = arith.constant 0 : i32
    return %c0_i32, %c0_i32_0 : i32, i32
  }
  func.func @transform_6(%arg0: i32) -> (i32, i32, i32) {
    %c0_i32 = arith.constant 0 : i32
    %c0_i32_0 = arith.constant 0 : i32
    %c0_i32_1 = arith.constant 0 : i32
    return %arg0, %c0_i32, %c0_i32_0 : i32, i32, i32
  }
  func.func @transform_7(%arg0: i32) -> (i32, i32, i32) {
    %c0_i32 = arith.constant 0 : i32
    %c0_i32_0 = arith.constant 0 : i32
    %c0_i32_1 = arith.constant 0 : i32
    return %arg0, %c0_i32, %c0_i32_0 : i32, i32, i32
  }
}

module attributes {stable_mosaic.version = 11 : i64} {
  func.func @_dwconv_bn_swish_kernel(%arg0: i32, %arg1: memref<1x13x32xbf16, #tpu.memory_space<vmem>>, %arg2: memref<7x32xf32, #tpu.memory_space<vmem>>, %arg3: memref<1x32xf32, #tpu.memory_space<vmem>>, %arg4: memref<1x32xf32, #tpu.memory_space<vmem>>, %arg5: memref<1x7x32xbf16, #tpu.memory_space<vmem>>) attributes {dimension_semantics = [#tpu.dimension_semantics<parallel>], iteration_bounds = array<i64: 2>, scalar_prefetch = 0 : i64, scratch_operands = 0 : i64, tpu.core_type = #tpu.core_type<tc>, window_params = [{transform_indices = @transform_0, window_bounds = array<i64: 1, 13, 32>}, {pipeline_mode = #tpu.pipeline_mode<synchronous>, transform_indices = @transform_1, window_bounds = array<i64: 7, 32>}, {pipeline_mode = #tpu.pipeline_mode<synchronous>, transform_indices = @transform_2, window_bounds = array<i64: 1, 32>}, {pipeline_mode = #tpu.pipeline_mode<synchronous>, transform_indices = @transform_3, window_bounds = array<i64: 1, 32>}, {transform_indices = @transform_4, window_bounds = array<i64: 1, 7, 32>}]} {
    %c0 = arith.constant 0 : index
    %c0_0 = arith.constant 0 : index
    %c0_1 = arith.constant 0 : index
    %0 = vector.load %arg1[%c0, %c0_0, %c0_1] : memref<1x13x32xbf16, #tpu.memory_space<vmem>>, vector<1x7x32xbf16>
    %1 = vector.shape_cast %0 : vector<1x7x32xbf16> to vector<7x32xbf16>
    %c0_2 = arith.constant 0 : index
    %c0_3 = arith.constant 0 : index
    %2 = vector.load %arg2[%c0_2, %c0_3] : memref<7x32xf32, #tpu.memory_space<vmem>>, vector<1x32xf32>
    %3 = arith.extf %1 : vector<7x32xbf16> to vector<7x32xf32>
    %4 = vector.broadcast %2 : vector<1x32xf32> to vector<7x32xf32>
    %5 = arith.mulf %3, %4 : vector<7x32xf32>
    %c0_4 = arith.constant 0 : index
    %c1 = arith.constant 1 : index
    %c0_5 = arith.constant 0 : index
    %6 = vector.load %arg1[%c0_4, %c1, %c0_5] : memref<1x13x32xbf16, #tpu.memory_space<vmem>>, vector<1x7x32xbf16>
    %7 = vector.shape_cast %6 : vector<1x7x32xbf16> to vector<7x32xbf16>
    %c1_6 = arith.constant 1 : index
    %c0_7 = arith.constant 0 : index
    %8 = vector.load %arg2[%c1_6, %c0_7] : memref<7x32xf32, #tpu.memory_space<vmem>>, vector<1x32xf32>
    %9 = arith.extf %7 : vector<7x32xbf16> to vector<7x32xf32>
    %10 = vector.broadcast %8 : vector<1x32xf32> to vector<7x32xf32>
    %11 = arith.mulf %9, %10 : vector<7x32xf32>
    %12 = arith.addf %5, %11 : vector<7x32xf32>
    %c0_8 = arith.constant 0 : index
    %c2 = arith.constant 2 : index
    %c0_9 = arith.constant 0 : index
    %13 = vector.load %arg1[%c0_8, %c2, %c0_9] : memref<1x13x32xbf16, #tpu.memory_space<vmem>>, vector<1x7x32xbf16>
    %14 = vector.shape_cast %13 : vector<1x7x32xbf16> to vector<7x32xbf16>
    %c2_10 = arith.constant 2 : index
    %c0_11 = arith.constant 0 : index
    %15 = vector.load %arg2[%c2_10, %c0_11] : memref<7x32xf32, #tpu.memory_space<vmem>>, vector<1x32xf32>
    %16 = arith.extf %14 : vector<7x32xbf16> to vector<7x32xf32>
    %17 = vector.broadcast %15 : vector<1x32xf32> to vector<7x32xf32>
    %18 = arith.mulf %16, %17 : vector<7x32xf32>
    %19 = arith.addf %12, %18 : vector<7x32xf32>
    %c0_12 = arith.constant 0 : index
    %c3 = arith.constant 3 : index
    %c0_13 = arith.constant 0 : index
    %20 = vector.load %arg1[%c0_12, %c3, %c0_13] : memref<1x13x32xbf16, #tpu.memory_space<vmem>>, vector<1x7x32xbf16>
    %21 = vector.shape_cast %20 : vector<1x7x32xbf16> to vector<7x32xbf16>
    %c3_14 = arith.constant 3 : index
    %c0_15 = arith.constant 0 : index
    %22 = vector.load %arg2[%c3_14, %c0_15] : memref<7x32xf32, #tpu.memory_space<vmem>>, vector<1x32xf32>
    %23 = arith.extf %21 : vector<7x32xbf16> to vector<7x32xf32>
    %24 = vector.broadcast %22 : vector<1x32xf32> to vector<7x32xf32>
    %25 = arith.mulf %23, %24 : vector<7x32xf32>
    %26 = arith.addf %19, %25 : vector<7x32xf32>
    %c0_16 = arith.constant 0 : index
    %c4 = arith.constant 4 : index
    %c0_17 = arith.constant 0 : index
    %27 = vector.load %arg1[%c0_16, %c4, %c0_17] : memref<1x13x32xbf16, #tpu.memory_space<vmem>>, vector<1x7x32xbf16>
    %28 = vector.shape_cast %27 : vector<1x7x32xbf16> to vector<7x32xbf16>
    %c4_18 = arith.constant 4 : index
    %c0_19 = arith.constant 0 : index
    %29 = vector.load %arg2[%c4_18, %c0_19] : memref<7x32xf32, #tpu.memory_space<vmem>>, vector<1x32xf32>
    %30 = arith.extf %28 : vector<7x32xbf16> to vector<7x32xf32>
    %31 = vector.broadcast %29 : vector<1x32xf32> to vector<7x32xf32>
    %32 = arith.mulf %30, %31 : vector<7x32xf32>
    %33 = arith.addf %26, %32 : vector<7x32xf32>
    %c0_20 = arith.constant 0 : index
    %c5 = arith.constant 5 : index
    %c0_21 = arith.constant 0 : index
    %34 = vector.load %arg1[%c0_20, %c5, %c0_21] : memref<1x13x32xbf16, #tpu.memory_space<vmem>>, vector<1x7x32xbf16>
    %35 = vector.shape_cast %34 : vector<1x7x32xbf16> to vector<7x32xbf16>
    %c5_22 = arith.constant 5 : index
    %c0_23 = arith.constant 0 : index
    %36 = vector.load %arg2[%c5_22, %c0_23] : memref<7x32xf32, #tpu.memory_space<vmem>>, vector<1x32xf32>
    %37 = arith.extf %35 : vector<7x32xbf16> to vector<7x32xf32>
    %38 = vector.broadcast %36 : vector<1x32xf32> to vector<7x32xf32>
    %39 = arith.mulf %37, %38 : vector<7x32xf32>
    %40 = arith.addf %33, %39 : vector<7x32xf32>
    %c0_24 = arith.constant 0 : index
    %c6 = arith.constant 6 : index
    %c0_25 = arith.constant 0 : index
    %41 = vector.load %arg1[%c0_24, %c6, %c0_25] : memref<1x13x32xbf16, #tpu.memory_space<vmem>>, vector<1x7x32xbf16>
    %42 = vector.shape_cast %41 : vector<1x7x32xbf16> to vector<7x32xbf16>
    %c6_26 = arith.constant 6 : index
    %c0_27 = arith.constant 0 : index
    %43 = vector.load %arg2[%c6_26, %c0_27] : memref<7x32xf32, #tpu.memory_space<vmem>>, vector<1x32xf32>
    %44 = arith.extf %42 : vector<7x32xbf16> to vector<7x32xf32>
    %45 = vector.broadcast %43 : vector<1x32xf32> to vector<7x32xf32>
    %46 = arith.mulf %44, %45 : vector<7x32xf32>
    %47 = arith.addf %40, %46 : vector<7x32xf32>
    %c0_28 = arith.constant 0 : index
    %c0_29 = arith.constant 0 : index
    %48 = vector.load %arg3[%c0_28, %c0_29] : memref<1x32xf32, #tpu.memory_space<vmem>>, vector<1x32xf32>
    %49 = vector.broadcast %48 : vector<1x32xf32> to vector<7x32xf32>
    %50 = arith.mulf %47, %49 : vector<7x32xf32>
    %c0_30 = arith.constant 0 : index
    %c0_31 = arith.constant 0 : index
    %51 = vector.load %arg4[%c0_30, %c0_31] : memref<1x32xf32, #tpu.memory_space<vmem>>, vector<1x32xf32>
    %52 = vector.broadcast %51 : vector<1x32xf32> to vector<7x32xf32>
    %53 = arith.addf %50, %52 : vector<7x32xf32>
    %54 = arith.negf %53 : vector<7x32xf32>
    %55 = math.exp %54 : vector<7x32xf32>
    %cst = arith.constant 1.000000e+00 : f32
    %56 = vector.broadcast %cst : f32 to vector<7x32xf32>
    %57 = arith.addf %56, %55 : vector<7x32xf32>
    %58 = arith.divf %56, %57 : vector<7x32xf32>
    %59 = arith.mulf %53, %58 : vector<7x32xf32>
    %60 = arith.truncf %59 : vector<7x32xf32> to vector<7x32xbf16>
    %c0_32 = arith.constant 0 : index
    %c0_33 = arith.constant 0 : index
    %c0_34 = arith.constant 0 : index
    %61 = vector.load %arg5[%c0_32, %c0_33, %c0_34] : memref<1x7x32xbf16, #tpu.memory_space<vmem>>, vector<1x7x32xbf16>
    %62 = vector.shape_cast %61 : vector<1x7x32xbf16> to vector<7x32xbf16>
    %63 = vector.shape_cast %60 : vector<7x32xbf16> to vector<1x7x32xbf16>
    tpu.vector_store %arg5[%c0_32, %c0_33, %c0_34], %63 {strides = array<i32>} : memref<1x7x32xbf16, #tpu.memory_space<vmem>>, vector<1x7x32xbf16>,
    return
  }
  func.func @transform_0(%arg0: i32) -> (i32, i32, i32) {
    %c0_i32 = arith.constant 0 : i32
    %c0_i32_0 = arith.constant 0 : i32
    %c0_i32_1 = arith.constant 0 : i32
    return %arg0, %c0_i32, %c0_i32_0 : i32, i32, i32
  }
  func.func @transform_1(%arg0: i32) -> (i32, i32) {
    %c0_i32 = arith.constant 0 : i32
    %c0_i32_0 = arith.constant 0 : i32
    %c0_i32_1 = arith.constant 0 : i32
    return %c0_i32, %c0_i32_0 : i32, i32
  }
  func.func @transform_2(%arg0: i32) -> (i32, i32) {
    %c0_i32 = arith.constant 0 : i32
    %c0_i32_0 = arith.constant 0 : i32
    %c0_i32_1 = arith.constant 0 : i32
    return %c0_i32, %c0_i32_0 : i32, i32
  }
  func.func @transform_3(%arg0: i32) -> (i32, i32) {
    %c0_i32 = arith.constant 0 : i32
    %c0_i32_0 = arith.constant 0 : i32
    %c0_i32_1 = arith.constant 0 : i32
    return %c0_i32, %c0_i32_0 : i32, i32
  }
  func.func @transform_4(%arg0: i32) -> (i32, i32, i32) {
    %c0_i32 = arith.constant 0 : i32
    %c0_i32_0 = arith.constant 0 : i32
    %c0_i32_1 = arith.constant 0 : i32
    return %arg0, %c0_i32, %c0_i32_0 : i32, i32, i32
  }
}

module attributes {stable_mosaic.version = 11 : i64} {
  func.func @_layernorm_kernel(%arg0: i32, %arg1: memref<16x32xf32, #tpu.memory_space<vmem>>, %arg2: memref<1x32xf32, #tpu.memory_space<vmem>>, %arg3: memref<1x32xf32, #tpu.memory_space<vmem>>, %arg4: memref<16x32xf32, #tpu.memory_space<vmem>>) attributes {dimension_semantics = [#tpu.dimension_semantics<parallel>], iteration_bounds = array<i64: 1>, scalar_prefetch = 0 : i64, scratch_operands = 0 : i64, tpu.core_type = #tpu.core_type<tc>, window_params = [{transform_indices = @transform_0, window_bounds = array<i64: 16, 32>}, {pipeline_mode = #tpu.pipeline_mode<synchronous>, transform_indices = @transform_1, window_bounds = array<i64: 1, 32>}, {pipeline_mode = #tpu.pipeline_mode<synchronous>, transform_indices = @transform_2, window_bounds = array<i64: 1, 32>}, {transform_indices = @transform_3, window_bounds = array<i64: 16, 32>}]} {
    %c0 = arith.constant 0 : index
    %c0_0 = arith.constant 0 : index
    %0 = vector.load %arg1[%c0, %c0_0] : memref<16x32xf32, #tpu.memory_space<vmem>>, vector<16x32xf32>
    %cst = arith.constant dense<0.000000e+00> : vector<16xf32>
    %1 = vector.multi_reduction <add>, %0, %cst [1] : vector<16x32xf32> to vector<16xf32>
    %2 = vector.shape_cast %1 : vector<16xf32> to vector<16x1xf32>
    %cst_1 = arith.constant 3.200000e+01 : f32
    %3 = vector.broadcast %cst_1 : f32 to vector<16x1xf32>
    %4 = arith.divf %2, %3 : vector<16x1xf32>
    %5 = vector.broadcast %4 : vector<16x1xf32> to vector<16x32xf32>
    %6 = arith.subf %0, %5 : vector<16x32xf32>
    %7 = arith.mulf %6, %6 : vector<16x32xf32>
    %cst_2 = arith.constant dense<0.000000e+00> : vector<16xf32>
    %8 = vector.multi_reduction <add>, %7, %cst_2 [1] : vector<16x32xf32> to vector<16xf32>
    %9 = vector.shape_cast %8 : vector<16xf32> to vector<16x1xf32>
    %cst_3 = arith.constant 3.200000e+01 : f32
    %10 = vector.broadcast %cst_3 : f32 to vector<16x1xf32>
    %11 = arith.divf %9, %10 : vector<16x1xf32>
    %12 = vector.broadcast %4 : vector<16x1xf32> to vector<16x32xf32>
    %13 = arith.subf %0, %12 : vector<16x32xf32>
    %cst_4 = arith.constant 9.99999974E-6 : f32
    %14 = vector.broadcast %cst_4 : f32 to vector<16x1xf32>
    %15 = arith.addf %11, %14 : vector<16x1xf32>
    %16 = math.rsqrt %15 : vector<16x1xf32>
    %17 = vector.broadcast %16 : vector<16x1xf32> to vector<16x32xf32>
    %18 = arith.mulf %13, %17 : vector<16x32xf32>
    %c0_5 = arith.constant 0 : index
    %c0_6 = arith.constant 0 : index
    %19 = vector.load %arg2[%c0_5, %c0_6] : memref<1x32xf32, #tpu.memory_space<vmem>>, vector<1x32xf32>
    %20 = vector.broadcast %19 : vector<1x32xf32> to vector<16x32xf32>
    %21 = arith.mulf %18, %20 : vector<16x32xf32>
    %c0_7 = arith.constant 0 : index
    %c0_8 = arith.constant 0 : index
    %22 = vector.load %arg3[%c0_7, %c0_8] : memref<1x32xf32, #tpu.memory_space<vmem>>, vector<1x32xf32>
    %23 = vector.broadcast %22 : vector<1x32xf32> to vector<16x32xf32>
    %24 = arith.addf %21, %23 : vector<16x32xf32>
    %c0_9 = arith.constant 0 : index
    %c0_10 = arith.constant 0 : index
    %25 = vector.load %arg4[%c0_9, %c0_10] : memref<16x32xf32, #tpu.memory_space<vmem>>, vector<16x32xf32>
    tpu.vector_store %arg4[%c0_9, %c0_10], %24 {strides = array<i32>} : memref<16x32xf32, #tpu.memory_space<vmem>>, vector<16x32xf32>,
    return
  }
  func.func @transform_0(%arg0: i32) -> (i32, i32) {
    %c0_i32 = arith.constant 0 : i32
    %c0_i32_0 = arith.constant 0 : i32
    return %arg0, %c0_i32 : i32, i32
  }
  func.func @transform_1(%arg0: i32) -> (i32, i32) {
    %c0_i32 = arith.constant 0 : i32
    %c0_i32_0 = arith.constant 0 : i32
    %c0_i32_1 = arith.constant 0 : i32
    return %c0_i32, %c0_i32_0 : i32, i32
  }
  func.func @transform_2(%arg0: i32) -> (i32, i32) {
    %c0_i32 = arith.constant 0 : i32
    %c0_i32_0 = arith.constant 0 : i32
    %c0_i32_1 = arith.constant 0 : i32
    return %c0_i32, %c0_i32_0 : i32, i32
  }
  func.func @transform_3(%arg0: i32) -> (i32, i32) {
    %c0_i32 = arith.constant 0 : i32
    %c0_i32_0 = arith.constant 0 : i32
    return %arg0, %c0_i32 : i32, i32
  }
}

module attributes {stable_mosaic.version = 11 : i64} {
  func.func @_matmul_kernel(%arg0: i32, %arg1: i32, %arg2: i32, %arg3: memref<16x32xbf16, #tpu.memory_space<vmem>>, %arg4: memref<32x32xbf16, #tpu.memory_space<vmem>>, %arg5: memref<1x32xf32, #tpu.memory_space<vmem>>, %arg6: memref<16x32xf32, #tpu.memory_space<vmem>>, %arg7: memref<16x32xf32, #tpu.memory_space<vmem>>, %arg8: memref<16x32xf32, #tpu.memory_space<vmem>>) attributes {dimension_semantics = [#tpu.dimension_semantics<parallel>, #tpu.dimension_semantics<parallel>, #tpu.dimension_semantics<arbitrary>], iteration_bounds = array<i64: 1, 1, 1>, scalar_prefetch = 0 : i64, scratch_operands = 1 : i64, tpu.core_type = #tpu.core_type<tc>, window_params = [{transform_indices = @transform_0, window_bounds = array<i64: 16, 32>}, {transform_indices = @transform_1, window_bounds = array<i64: 32, 32>}, {transform_indices = @transform_2, window_bounds = array<i64: 1, 32>}, {transform_indices = @transform_3, window_bounds = array<i64: 16, 32>}, {transform_indices = @transform_4, window_bounds = array<i64: 16, 32>}]} {
    %c0_i32 = arith.constant 0 : i32
    %0 = arith.cmpi eq, %arg2, %c0_i32 : i32
    %1 = arith.extui %0 : i1 to i32
    %c0_i32_0 = arith.constant 0 : i32
    %2 = arith.cmpi ne, %1, %c0_i32_0 : i32
    scf.if %2 {
      %cst_10 = arith.constant 0.000000e+00 : f32
      %12 = vector.broadcast %cst_10 : f32 to vector<16x32xf32>
      %c0_11 = arith.constant 0 : index
      %c0_12 = arith.constant 0 : index
      %13 = vector.load %arg8[%c0_11, %c0_12] : memref<16x32xf32, #tpu.memory_space<vmem>>, vector<16x32xf32>
      tpu.vector_store %arg8[%c0_11, %c0_12], %12 {strides = array<i32>} : memref<16x32xf32, #tpu.memory_space<vmem>>, vector<16x32xf32>,
    } else {
    }
    %c0 = arith.constant 0 : index
    %c0_1 = arith.constant 0 : index
    %3 = vector.load %arg8[%c0, %c0_1] : memref<16x32xf32, #tpu.memory_space<vmem>>, vector<16x32xf32>
    %c0_2 = arith.constant 0 : index
    %c0_3 = arith.constant 0 : index
    %4 = vector.load %arg3[%c0_2, %c0_3] : memref<16x32xbf16, #tpu.memory_space<vmem>>, vector<16x32xbf16>
    %c0_4 = arith.constant 0 : index
    %c0_5 = arith.constant 0 : index
    %5 = vector.load %arg4[%c0_4, %c0_5] : memref<32x32xbf16, #tpu.memory_space<vmem>>, vector<32x32xbf16>
    %cst = arith.constant dense<0.000000e+00> : vector<16x32xf32>
    %6 = tpu.matmul %4, %5, %cst {dimension_numbers = #tpu.dot_dimension_numbers<[1], [0], [0], [1], [0, 0, 1, 1], [], []>} : vector<16x32xbf16>, vector<32x32xbf16>, vector<16x32xf32> -> vector<16x32xf32>
    %7 = arith.addf %3, %6 : vector<16x32xf32>
    %c0_6 = arith.constant 0 : index
    %c0_7 = arith.constant 0 : index
    %8 = vector.load %arg8[%c0_6, %c0_7] : memref<16x32xf32, #tpu.memory_space<vmem>>, vector<16x32xf32>
    tpu.vector_store %arg8[%c0_6, %c0_7], %7 {strides = array<i32>} : memref<16x32xf32, #tpu.memory_space<vmem>>, vector<16x32xf32>,
    %c0_i32_8 = arith.constant 0 : i32
    %9 = arith.cmpi eq, %arg2, %c0_i32_8 : i32
    %10 = arith.extui %9 : i1 to i32
    %c0_i32_9 = arith.constant 0 : i32
    %11 = arith.cmpi ne, %10, %c0_i32_9 : i32
    scf.if %11 {
      %c0_10 = arith.constant 0 : index
      %c0_11 = arith.constant 0 : index
      %12 = vector.load %arg8[%c0_10, %c0_11] : memref<16x32xf32, #tpu.memory_space<vmem>>, vector<16x32xf32>
      %c0_12 = arith.constant 0 : index
      %c0_13 = arith.constant 0 : index
      %13 = vector.load %arg5[%c0_12, %c0_13] : memref<1x32xf32, #tpu.memory_space<vmem>>, vector<1x32xf32>
      %14 = vector.broadcast %13 : vector<1x32xf32> to vector<16x32xf32>
      %15 = arith.addf %12, %14 : vector<16x32xf32>
      %c0_14 = arith.constant 0 : index
      %c0_15 = arith.constant 0 : index
      %16 = vector.load %arg6[%c0_14, %c0_15] : memref<16x32xf32, #tpu.memory_space<vmem>>, vector<16x32xf32>
      %cst_16 = arith.constant 1.000000e+00 : f32
      %17 = vector.broadcast %cst_16 : f32 to vector<16x32xf32>
      %18 = arith.mulf %17, %15 : vector<16x32xf32>
      %19 = arith.addf %16, %18 : vector<16x32xf32>
      %c0_17 = arith.constant 0 : index
      %c0_18 = arith.constant 0 : index
      %20 = vector.load %arg7[%c0_17, %c0_18] : memref<16x32xf32, #tpu.memory_space<vmem>>, vector<16x32xf32>
      tpu.vector_store %arg7[%c0_17, %c0_18], %19 {strides = array<i32>} : memref<16x32xf32, #tpu.memory_space<vmem>>, vector<16x32xf32>,
    } else {
    }
    return
  }
  func.func @transform_0(%arg0: i32, %arg1: i32, %arg2: i32) -> (i32, i32) {
    %c0_i32 = arith.constant 0 : i32
    return %arg0, %arg2 : i32, i32
  }
  func.func @transform_1(%arg0: i32, %arg1: i32, %arg2: i32) -> (i32, i32) {
    %c0_i32 = arith.constant 0 : i32
    return %arg2, %arg1 : i32, i32
  }
  func.func @transform_2(%arg0: i32, %arg1: i32, %arg2: i32) -> (i32, i32) {
    %c0_i32 = arith.constant 0 : i32
    %c0_i32_0 = arith.constant 0 : i32
    return %c0_i32, %arg1 : i32, i32
  }
  func.func @transform_3(%arg0: i32, %arg1: i32, %arg2: i32) -> (i32, i32) {
    %c0_i32 = arith.constant 0 : i32
    return %arg0, %arg1 : i32, i32
  }
  func.func @transform_4(%arg0: i32, %arg1: i32, %arg2: i32) -> (i32, i32) {
    %c0_i32 = arith.constant 0 : i32
    return %arg0, %arg1 : i32, i32
  }
}

</mosaic_0001>

<bundles_post_ra>
// kernel: conformer_encoder.21
= control target key start
LH: loop header
LB: loop body
LE: loop exit
PB: predicated region body
PF: predicated region fallthrough
CT: control target
= control target key end

     0   :  { %8 = vsyncpa [#allocation4], 0  ;;  %s1176_s0 = inlined_call_operand.hbm [shape: bf16[216,9], index: 0, kind: input, shape index: {}]   ;;  %s1177_s1 = inlined_call_operand.hbm [shape: bf16[9,32], index: 1, kind: input, shape index: {}]   ;;  %s1178_s2 = inlined_call_operand.hbm [shape: f32[1,32], index: 2, kind: input, shape index: {}]   ;;  %s1179_s3 = inlined_call_operand.hbm [shape: bf16[216,32], index: 3, kind: output, shape index: {}]  }
   0x1   :  { %9 = vsyncpa [#allocation7], 0 }
   0x2   :  { %10 = vsyncpa [#allocation5], 0  ;;  %s959_s12 = smov [#allocation6]   ;;  %s960_s14 = smov [#allocation3]  }
   0x3   :  { %s28_s13 = sshll.u32 %s959_s12, 4  ;;  %s16_s15 = sshll.u32 %s960_s14, 4  ;;  %s29_s13 = int_to_ptr.vmem [resolvable:$true] %s28_s13  ;;  %s987_s15 = int_to_ptr.vmem [resolvable:$true] %s16_s15 }
   0x4   :  { %s865_s18 = scalar_lea.hbm %s1177_s1, 128 }
   0x5   :  { %p866_p0 = scmp.ne.s32.totalorder %s1177_s1, %s865_s18  ;;  %p869_p1 = scmp.lt.u32.totalorder %s865_s18, %s1177_s1 }
   0x7   :  { %p871_p2 = pnand %p869_p1, %p866_p0 }
   0x9   :  { %874 = shalt.err (!%p871_p2)
}
   0xa   :  { %s875_s23 = scalar_lea.vmem %s29_s13, 128  ;;  %p880_p4 = scmp.lt.s32.totalorder %s29_s13, %s29_s13 }
   0xb   :  { %p876_p3 = scmp.ne.s32.totalorder %s29_s13, %s875_s23  ;;  %p881_p5 = scmp.lt.s32.totalorder %s875_s23, %s875_s23 }
   0xd   :  { %p882_p6 = por %p881_p5, %p880_p4 }
   0xf   :  { %p883_p7 = pnand %p882_p6, %p876_p3 }
  0x11   :  { %886 = shalt.err (!%p883_p7)
}
  0x12   :  { %s961_s24 = smov 64   ;;  %s962_s25 = smov 4  }
  0x13   :  { %34 = dma.hbm_to_vmem [thread:$0]  %s1177_s1, 128, %s29_s13, [#allocation7], %s961_s24, %s961_s24, %s962_s25  }
  0x14   :  { %s887_s30 = scalar_lea.hbm %s1176_s0, 1728 }
  0x15   :  { %p888_p8 = scmp.ne.s32.totalorder %s1176_s0, %s887_s30  ;;  %p891_p9 = scmp.lt.u32.totalorder %s887_s30, %s1176_s0 }
  0x17   :  { %p893_p10 = pnand %p891_p9, %p888_p8 }
  0x19   :  { %896 = shalt.err (!%p893_p10)
}
  0x1a   :  { %s897_s8 = scalar_lea.vmem %s987_s15, 1728  ;;  %p902_p12 = scmp.lt.s32.totalorder %s987_s15, %s987_s15 }
  0x1b   :  { %p898_p11 = scmp.ne.s32.totalorder %s987_s15, %s897_s8  ;;  %p903_p13 = scmp.lt.s32.totalorder %s897_s8, %s897_s8 }
  0x1d   :  { %p904_p0 = por %p903_p13, %p902_p12 }
  0x1f   :  { %p905_p1 = pnand %p904_p0, %p898_p11 }
  0x21   :  { %908 = shalt.err (!%p905_p1)
}
  0x22   :  { %22 = dma.hbm_to_vmem [thread:$0]  %s1176_s0, 1728, %s987_s15, [#allocation4], %s961_s24, %s961_s24, %s962_s25  }
  0x23   :  { %s963_s10 = smov [#allocation8]   ;;  %s909_s14 = scalar_lea.hbm %s1178_s2, 16 }
  0x24   :  { %s41_s11 = sshll.u32 %s963_s10, 4  ;;  %p910_p2 = scmp.ne.s32.totalorder %s1178_s2, %s909_s14  ;;  %s42_s11 = int_to_ptr.vmem [resolvable:$true] %s41_s11 }
  0x25   :  { %p913_p3 = scmp.lt.u32.totalorder %s909_s14, %s1178_s2 }
  0x27   :  { %p915_p4 = pnand %p913_p3, %p910_p2 }
  0x29   :  { %918 = shalt.err (!%p915_p4)
}
  0x2a   :  { %s919_s20 = scalar_lea.vmem %s42_s11, 16  ;;  %s923_s0 = scalar_lea.vmem %s42_s11, 32 }
  0x2b   :  { %p920_p5 = scmp.ne.s32.totalorder %s42_s11, %s919_s20  ;;  %p924_p6 = scmp.lt.s32.totalorder %s42_s11, %s42_s11 }
  0x2c   :  { %p925_p7 = scmp.lt.s32.totalorder %s923_s0, %s919_s20 }
  0x2e   :  { %p926_p8 = por %p925_p7, %p924_p6 }
  0x30   :  { %p927_p9 = pnand %p926_p8, %p920_p5 }
  0x32   :  { %930 = shalt.err (!%p927_p9)
}
  0x33   :  { %44 = dma.hbm_to_vmem [thread:$0]  %s1178_s2, 16, %s42_s11, [#allocation7]  }
  0x34   :  { %953 = dma.done.wait [#allocation4], 1728  }
  0x35   :  { %954 = vsyncadd [#allocation4], 4294965568 }
  0x36   :  { %955 = dma.done.wait [#allocation7], 144  }
  0x37   :  { %956 = vsyncadd [#allocation7], 4294967152  ;;  %vm259_vm0 = vcmask 1043456   ;;  %vm59_vm1 = vcmask 261120   ;;  %v964_v0 = vmov 0.0   ;;  %vm260_vm2 = vcmask 1044480  }
  0x38   :  { %62 = vst.msk [vmem:[#allocation2 + $0x10] sm:$0xff] %vm59_vm1, %v964_v0  ;;  %60 = vst.msk [vmem:[#allocation2] sm:$0xff] %vm59_vm1, %v964_v0  ;;  %v965_v1 = vmov 65535   ;;  %vm216_vm3 = vcmask 72704   ;;  %v850_v4 = vld [vmem:[#allocation6] sm:$0x1f]  }
  0x39   :  { %61 = vst.msk [vmem:[#allocation2 + $0x8] sm:$0xff] %vm59_vm1, %v964_v0  ;;  %63 = vst.msk [vmem:[#allocation2 + $0x18] sm:$0xff] %vm59_vm1, %v964_v0  ;;  %v261_v2 = vsel %vm259_vm0, 4294967295, %v965_v1  ;;  %v851_v5 = vld [vmem:[#allocation3] sm:$0xff]   ;;  %v852_v7 = vld [vmem:[#allocation3 + $0x8] sm:$0xff]   ;;  %vm665_vm4 = vcmask 257024  }
  0x3a   :  { %64 = vst.msk [vmem:[#allocation2 + $0x20] sm:$0xff] %vm59_vm1, %v964_v0  ;;  %65 = vst.msk [vmem:[#allocation2 + $0x28] sm:$0xff] %vm59_vm1, %v964_v0  ;;  %v262_v3 = vsel %vm260_vm2, %v261_v2, 0  ;;  %812 = vmatprep.mubr.msk.bf16.mxu0 %vm216_vm3, %v851_v5  ;;  %v853_v8 = vld [vmem:[#allocation3 + $0x40] sm:$0xff]   ;;  %v854_v9 = vld [vmem:[#allocation3 + $0x48] sm:$0xff]   ;;  %s966_s2 = smov [#allocation9]  }
  0x3b   :  { %66 = vst.msk [vmem:[#allocation2 + $0x30] sm:$0xff] %vm59_vm1, %v964_v0  ;;  %67 = vst.msk [vmem:[#allocation2 + $0x38] sm:$0xff] %vm59_vm1, %v964_v0  ;;  %v264_v6 = vand.u32 %v850_v4, %v262_v3  ;;  %v855_v10 = vld [vmem:[#allocation3 + $0x10] sm:$0xff]   ;;  %828 = vmatprep.mubr.msk.bf16.mxu1 %vm216_vm3, %v853_v8  ;;  %v856_v12 = vld [vmem:[#allocation3 + $0x18] sm:$0xff]   ;;  %s698_s22 = sshll.u32 %s966_s2, 4  ;;  %s699_s22 = int_to_ptr.vmem [resolvable:$true] %s698_s22 }
  0x3c   :  { %68 = vst.msk [vmem:[#allocation2 + $0x40] sm:$0xff] %vm59_vm1, %v964_v0  ;;  %69 = vst.msk [vmem:[#allocation2 + $0x48] sm:$0xff] %vm59_vm1, %v964_v0  ;;  %v857_v11 = vld [vmem:[#allocation3 + $0x50] sm:$0xff]   ;;  %v858_v13 = vld [vmem:[#allocation3 + $0x58] sm:$0xff]   ;;  %s931_s23 = scalar_lea.vmem %s699_s22, 1728  ;;  %p936_p11 = scmp.lt.s32.totalorder %s699_s22, %s699_s22 }
  0x3d   :  { %70 = vst.msk [vmem:[#allocation2 + $0x50] sm:$0xff] %vm59_vm1, %v964_v0  ;;  %71 = vst.msk [vmem:[#allocation2 + $0x58] sm:$0xff] %vm59_vm1, %v964_v0  ;;  %810 = vmatprep.subr.bf16.mxu0 %v264_v6  ;;  %840 = vmatprep.subr.bf16.mxu1 %v264_v6  ;;  %v859_v14 = vld [vmem:[#allocation3 + $0x20] sm:$0xff]   ;;  %v860_v16 = vld [vmem:[#allocation3 + $0x28] sm:$0xff]   ;;  %p932_p10 = scmp.ne.s32.totalorder %s699_s22, %s931_s23  ;;  %p937_p12 = scmp.lt.s32.totalorder %s931_s23, %s931_s23 }
  0x3e   :  { %72 = vst.msk [vmem:[#allocation2 + $0x60] sm:$0xff] %vm59_vm1, %v964_v0  ;;  %73 = vst.msk [vmem:[#allocation2 + $0x68] sm:$0xff] %vm59_vm1, %v964_v0  ;;  %811 = vmatpush3.bf16.msra.mxu0 %v264_v6  ;;  %841 = vmatpush3.bf16.msra.mxu1 %v264_v6  ;;  %v861_v15 = vld [vmem:[#allocation3 + $0x60] sm:$0xff]   ;;  %v862_v17 = vld [vmem:[#allocation3 + $0x68] ss:$0 sps:$4 sm:$0xff]  }
  0x3f   :  { %74 = vst.msk [vmem:[#allocation2 + $0x70] sm:$0xff] %vm59_vm1, %v964_v0  ;;  %75 = vst.msk [vmem:[#allocation2 + $0x78] sm:$0xff] %vm59_vm1, %v964_v0  ;;  %v863_v18 = vld [vmem:[#allocation3 + $0x30] sm:$0xff]   ;;  %v864_v19 = vld [vmem:[#allocation3 + $0x38] sm:$0xff]   ;;  %p938_p13 = por %p937_p12, %p936_p11 }
  0x40   :  { %76 = vst.msk [vmem:[#allocation2 + $0x80] sm:$0xff] %vm59_vm1, %v964_v0  ;;  %77 = vst.msk [vmem:[#allocation2 + $0x88] sm:$0xff] %vm59_vm1, %v964_v0  ;;  %v89_v20 = vld [vmem:[#allocation2 + $0x10] sm:$0xff]  ;;  %v87_v22 = vld [vmem:[#allocation2] sm:$0xff] }
  0x41   :  { %78 = vst.msk [vmem:[#allocation2 + $0x90] sm:$0xff] %vm59_vm1, %v964_v0  ;;  %79 = vst.msk [vmem:[#allocation2 + $0x98] sm:$0xff] %vm59_vm1, %v964_v0  ;;  %813 = vmatmul.mubr.msk.bf16.vlgmr.msra.gmra.mrb[0].mxu0 %vm216_vm3, %v852_v7  ;;  %829 = vmatmul.mubr.msk.bf16.vlgmr.msra.gmra.mrb[0].mxu1 %vm216_vm3, %v854_v9  ;;  %v90_v25 = vld [vmem:[#allocation2 + $0x18] sm:$0xff]  ;;  %v88_v30 = vld [vmem:[#allocation2 + $0x8] sm:$0xff]  ;;  %p939_p0 = pnand %p938_p13, %p932_p10 }
  0x42   :  { %80 = vst.msk [vmem:[#allocation2 + $0xa0] sm:$0xff] %vm59_vm1, %v964_v0  ;;  %81 = vst.msk [vmem:[#allocation2 + $0xa8] sm:$0xff] %vm59_vm1, %v964_v0  ;;  %816 = vmatprep.mubr.msk.bf16.mxu0 %vm216_vm3, %v855_v10  ;;  %832 = vmatprep.mubr.msk.bf16.mxu1 %vm216_vm3, %v857_v11  ;;  %v93_v44 = vld [vmem:[#allocation2 + $0x30] sm:$0xff]  ;;  %v91_v46 = vld [vmem:[#allocation2 + $0x20] sm:$0xff] }
  0x43   :  { %82 = vst.msk [vmem:[#allocation2 + $0xb0] sm:$0xff] %vm59_vm1, %v964_v0  ;;  %83 = vst.msk [vmem:[#allocation2 + $0xb8] sm:$0xff] %vm59_vm1, %v964_v0  ;;  %v1086_v48 = vld [vmem:[#allocation8] ss:$0 sm:$0xff]  ;;  %v94_v50 = vld [vmem:[#allocation2 + $0x38] sm:$0xff] }
  0x44   :  { %84 = vst.msk [vmem:[#allocation2 + $0xc0] sm:$0xff] %vm59_vm1, %v964_v0  ;;  %85 = vst.msk [vmem:[#allocation2 + $0xc8] sm:$0xff] %vm59_vm1, %v964_v0  ;;  %v92_v55 = vld [vmem:[#allocation2 + $0x28] sm:$0xff] }
  0x45   :  { %86 = vst.msk [vmem:[#allocation2 + $0xd0] sm:$0xff] %vm59_vm1, %v964_v0 }
  0x47   :  { %v103_v23 = vld [vmem:[#allocation2 + $0x80] sm:$0xff]  ;;  %v104_v33 = vld [vmem:[#allocation2 + $0x88] sm:$0xff] }
  0x48   :  { %v105_v21 = vld [vmem:[#allocation2 + $0x90] sm:$0xff]  ;;  %v106_v27 = vld [vmem:[#allocation2 + $0x98] sm:$0xff] }
  0x49   :  { %817 = vmatmul.mubr.msk.bf16.gmra.mrb[4].mxu0 %vm216_vm3, %v856_v12  ;;  %833 = vmatmul.mubr.msk.bf16.gmra.mrb[4].mxu1 %vm216_vm3, %v858_v13  ;;  %v107_v47 = vld [vmem:[#allocation2 + $0xa0] sm:$0xff]  ;;  %v108_v58 = vld [vmem:[#allocation2 + $0xa8] sm:$0xff] }
  0x4a   :  { %820 = vmatprep.mubr.msk.bf16.mxu0 %vm216_vm3, %v859_v14  ;;  %836 = vmatprep.mubr.msk.bf16.mxu1 %vm216_vm3, %v861_v15  ;;  %v109_v45 = vld [vmem:[#allocation2 + $0xb0] sm:$0xff]  ;;  %v110_v52 = vld [vmem:[#allocation2 + $0xb8] sm:$0xff] }
  0x51   :  { %821 = vmatmul.mubr.msk.bf16.gmra.mrb[8].mxu0 %vm216_vm3, %v860_v16  ;;  %837 = vmatmul.mubr.msk.bf16.gmra.mrb[8].mxu1 %vm216_vm3, %v862_v17 }
  0x52   :  { %824 = vmatprep.mubr.msk.bf16.mxu0 %vm216_vm3, %v863_v18 }
  0x59   :  { %825 = vmatmul.mubr.msk.bf16.gmra.mrb[12].mxu0 %vm216_vm3, %v864_v19 }
 0x114   :  { %v814_v24 = vpop.f32.mrb[0].mxu0  ;;  %v830_v26 = vpop.f32.mrb[0].mxu1 }
 0x115   :  { %v412_v28 = vadd.f32 %v814_v24, %v89_v20  ;;  %v300_v29 = vpop.f32.mrb[1].mxu0  ;;  %v428_v31 = vadd.f32 %v830_v26, %v105_v21  ;;  %v364_v32 = vpop.f32.mrb[1].mxu1  ;;  %v113_v26 = vld [vmem:[#allocation2 + $0xd0] sm:$0xff] }
 0x116   :  { %v410_v34 = vadd.f32 %v300_v29, %v87_v22  ;;  %v815_v35 = vpop.f32.mrb[2].mxu0  ;;  %v426_v36 = vadd.f32 %v364_v32, %v103_v23  ;;  %v831_v37 = vpop.f32.mrb[2].mxu1  ;;  %v111_v32 = vld [vmem:[#allocation2 + $0xc0] sm:$0xff] }
 0x117   :  { %440 = vst.msk [vmem:[#allocation2 + $0x10] sm:$0xff] %vm59_vm1, %v412_v28  ;;  %v413_v38 = vadd.f32 %v815_v35, %v90_v25  ;;  %v303_v39 = vpop.f32.mrb[3].mxu0  ;;  %456 = vst.msk [vmem:[#allocation2 + $0x90] sm:$0xff] %vm59_vm1, %v428_v31  ;;  %v429_v40 = vadd.f32 %v831_v37, %v106_v27  ;;  %v367_v41 = vpop.f32.mrb[3].mxu1  ;;  %v97_v25 = vld [vmem:[#allocation2 + $0x50] sm:$0xff]  ;;  %v95_v31 = vld [vmem:[#allocation2 + $0x40] sm:$0xff] }
 0x118   :  { %438 = vst.msk [vmem:[#allocation2] sm:$0xff] %vm59_vm1, %v410_v34  ;;  %v411_v42 = vadd.f32 %v303_v39, %v88_v30  ;;  %454 = vst.msk [vmem:[#allocation2 + $0x80] sm:$0xff] %vm59_vm1, %v426_v36  ;;  %v427_v43 = vadd.f32 %v367_v41, %v104_v33 }
 0x119   :  { %441 = vst.msk [vmem:[#allocation2 + $0x18] sm:$0xff] %vm59_vm1, %v413_v38  ;;  %457 = vst.msk [vmem:[#allocation2 + $0x98] sm:$0xff] %vm59_vm1, %v429_v40  ;;  %v98_v38 = vld [vmem:[#allocation2 + $0x58] sm:$0xff] }
 0x11a   :  { %439 = vst.msk [vmem:[#allocation2 + $0x8] sm:$0xff] %vm59_vm1, %v411_v42  ;;  %455 = vst.msk [vmem:[#allocation2 + $0x88] sm:$0xff] %vm59_vm1, %v427_v43 }
 0x11c   :  { %v818_v49 = vpop.f32.mrb[4].mxu0  ;;  %v834_v51 = vpop.f32.mrb[4].mxu1 }
 0x11d   :  { %v416_v53 = vadd.f32 %v818_v49, %v93_v44  ;;  %v316_v54 = vpop.f32.mrb[5].mxu0  ;;  %v432_v56 = vadd.f32 %v834_v51, %v109_v45  ;;  %v380_v57 = vpop.f32.mrb[5].mxu1  ;;  %v96_v44 = vld [vmem:[#allocation2 + $0x48] sm:$0xff] }
 0x11e   :  { %v470_v59 = vld [vmem:[#allocation2 + $0x10] sm:$0xff]  ;;  %v414_v61 = vadd.f32 %v316_v54, %v91_v46  ;;  %v819_v62 = vpop.f32.mrb[6].mxu0  ;;  %v430_v63 = vadd.f32 %v380_v57, %v107_v47  ;;  %v835_v0 = vpop.f32.mrb[6].mxu1  ;;  %v112_v47 = vld [vmem:[#allocation2 + $0xc8] sm:$0xff] }
 0x11f   :  { %v486_v60 = vld [vmem:[#allocation2 + $0x90] sm:$0xff]  ;;  %v504_v1 = vadd.f32 %v1086_v48, %v470_v59  ;;  %v468_v2 = vld [vmem:[#allocation2] sm:$0xff]  ;;  %444 = vst.msk [vmem:[#allocation2 + $0x30] sm:$0xff] %vm59_vm1, %v416_v53  ;;  %v417_v5 = vadd.f32 %v819_v62, %v94_v50  ;;  %v319_v6 = vpop.f32.mrb[7].mxu0  ;;  %460 = vst.msk [vmem:[#allocation2 + $0xb0] sm:$0xff] %vm59_vm1, %v432_v56  ;;  %v433_v7 = vadd.f32 %v835_v0, %v110_v52  ;;  %v383_v8 = vpop.f32.mrb[7].mxu1 }
 0x120   :  { %v520_v3 = vadd.f32 %v1086_v48, %v486_v60  ;;  %v484_v4 = vld [vmem:[#allocation2 + $0x80] sm:$0xff]  ;;  %v502_v9 = vadd.f32 %v1086_v48, %v468_v2  ;;  %v471_v10 = vld [vmem:[#allocation2 + $0x18] sm:$0xff]  ;;  %442 = vst.msk [vmem:[#allocation2 + $0x20] sm:$0xff] %vm59_vm1, %v414_v61  ;;  %v415_v13 = vadd.f32 %v319_v6, %v92_v55  ;;  %458 = vst.msk [vmem:[#allocation2 + $0xa0] sm:$0xff] %vm59_vm1, %v430_v63 }
 0x121   :  { %v518_v11 = vadd.f32 %v1086_v48, %v484_v4  ;;  %v487_v12 = vld [vmem:[#allocation2 + $0x98] sm:$0xff]  ;;  %v431_v14 = vadd.f32 %v383_v8, %v108_v58  ;;  %v531_v15 = vmax.f32 %v504_v1, 0.0  ;;  %v505_v16 = vadd.f32 %v1086_v48, %v471_v10  ;;  %v469_v17 = vld [vmem:[#allocation2 + $0x8] sm:$0xff]  ;;  %445 = vst.msk [vmem:[#allocation2 + $0x38] sm:$0xff] %vm59_vm1, %v417_v5  ;;  %461 = vst.msk [vmem:[#allocation2 + $0xb8] sm:$0xff] %vm59_vm1, %v433_v7 }
 0x122   :  { %v547_v18 = vmax.f32 %v520_v3, 0.0  ;;  %v521_v19 = vadd.f32 %v1086_v48, %v487_v12  ;;  %v485_v20 = vld [vmem:[#allocation2 + $0x88] sm:$0xff]  ;;  %v529_v21 = vmax.f32 %v502_v9, 0.0  ;;  %v503_v22 = vadd.f32 %v1086_v48, %v469_v17  ;;  %443 = vst.msk [vmem:[#allocation2 + $0x28] sm:$0xff] %vm59_vm1, %v415_v13 }
 0x123   :  { %v545_v23 = vmax.f32 %v518_v11, 0.0  ;;  %v519_v24 = vadd.f32 %v1086_v48, %v485_v20  ;;  %459 = vst.msk [vmem:[#allocation2 + $0xa8] sm:$0xff] %vm59_vm1, %v431_v14  ;;  %v770_v27 = vpack.c.bf16 %v531_v15, %v531_v15  ;;  %v532_v28 = vmax.f32 %v505_v16, 0.0  ;;  %v101_v16 = vld [vmem:[#allocation2 + $0x70] sm:$0xff] }
 0x124   :  { %v786_v29 = vpack.c.bf16 %v547_v18, %v547_v18  ;;  %v548_v30 = vmax.f32 %v521_v19, 0.0  ;;  %v768_v33 = vpack.c.bf16 %v529_v21, %v529_v21  ;;  %v530_v34 = vmax.f32 %v503_v22, 0.0  ;;  %v822_v37 = vpop.f32.mrb[8].mxu0  ;;  %v838_v39 = vpop.f32.mrb[8].mxu1  ;;  %v99_v21 = vld [vmem:[#allocation2 + $0x60] sm:$0xff] }
 0x125   :  { %v784_v35 = vpack.c.bf16 %v545_v23, %v545_v23  ;;  %v546_v36 = vmax.f32 %v519_v24, 0.0  ;;  %668 = vst.msk [vmem:[#allocation9 + $0x8] sm:$0xf] %vm665_vm4, %v770_v27  ;;  %v771_v40 = vpack.c.bf16 %v532_v28, %v532_v28  ;;  %v420_v42 = vadd.f32 %v822_v37, %v97_v25  ;;  %v332_v43 = vpop.f32.mrb[9].mxu0  ;;  %v396_v46 = vpop.f32.mrb[9].mxu1  ;;  %v102_v27 = vld [vmem:[#allocation2 + $0x78] sm:$0xff] }
 0x126   :  { %684 = vst.msk [vmem:[#allocation9 + $0x48] sm:$0xf] %vm665_vm4, %v786_v29  ;;  %v787_v41 = vpack.c.bf16 %v548_v30, %v548_v30  ;;  %v436_v45 = vadd.f32 %v838_v39, %v113_v26  ;;  %666 = vst.msk [vmem:[#allocation9] sm:$0xf] %vm665_vm4, %v768_v33  ;;  %v769_v49 = vpack.c.bf16 %v530_v34, %v530_v34  ;;  %v474_v50 = vld [vmem:[#allocation2 + $0x30] sm:$0xff]  ;;  %v823_v54 = vpop.f32.mrb[10].mxu0 }
 0x127   :  { %682 = vst.msk [vmem:[#allocation9 + $0x40] sm:$0xf] %vm665_vm4, %v784_v35  ;;  %v785_v51 = vpack.c.bf16 %v546_v36, %v546_v36  ;;  %v490_v52 = vld [vmem:[#allocation2 + $0xb0] sm:$0xff]  ;;  %v418_v53 = vadd.f32 %v332_v43, %v95_v31  ;;  %v434_v55 = vadd.f32 %v396_v46, %v111_v32  ;;  %v839_v56 = vpop.f32.mrb[10].mxu1  ;;  %669 = vst.msk [vmem:[#allocation9 + $0xc] sm:$0xf] %vm665_vm4, %v771_v40 }
 0x128   :  { %685 = vst.msk [vmem:[#allocation9 + $0x4c] sm:$0xf] %vm665_vm4, %v787_v41  ;;  %v508_v57 = vadd.f32 %v1086_v48, %v474_v50  ;;  %v472_v58 = vld [vmem:[#allocation2 + $0x20] sm:$0xff]  ;;  %v524_v59 = vadd.f32 %v1086_v48, %v490_v52  ;;  %v421_v61 = vadd.f32 %v823_v54, %v98_v38  ;;  %v335_v62 = vpop.f32.mrb[11].mxu0  ;;  %v399_v63 = vpop.f32.mrb[11].mxu1  ;;  %v475_v1 = vld [vmem:[#allocation2 + $0x38] sm:$0xff] }
 0x129   :  { %v488_v60 = vld [vmem:[#allocation2 + $0xa0] sm:$0xff]  ;;  %448 = vst.msk [vmem:[#allocation2 + $0x50] sm:$0xff] %vm59_vm1, %v420_v42  ;;  %464 = vst.msk [vmem:[#allocation2 + $0xd0] sm:$0xff] %vm59_vm1, %v436_v45  ;;  %v506_v0 = vadd.f32 %v1086_v48, %v472_v58  ;;  %v491_v3 = vld [vmem:[#allocation2 + $0xb8] sm:$0xff]  ;;  %v419_v4 = vadd.f32 %v335_v62, %v96_v44  ;;  %v435_v5 = vadd.f32 %v399_v63, %v112_v47 }
 0x12a   :  { %667 = vst.msk [vmem:[#allocation9 + $0x4] sm:$0xf] %vm665_vm4, %v769_v49  ;;  %683 = vst.msk [vmem:[#allocation9 + $0x44] sm:$0xf] %vm665_vm4, %v785_v51  ;;  %v522_v2 = vadd.f32 %v1086_v48, %v488_v60  ;;  %v535_v6 = vmax.f32 %v508_v57, 0.0  ;;  %v509_v7 = vadd.f32 %v1086_v48, %v475_v1  ;;  %v473_v8 = vld [vmem:[#allocation2 + $0x28] sm:$0xff]  ;;  %v525_v10 = vadd.f32 %v1086_v48, %v491_v3 }
 0x12b   :  { %446 = vst.msk [vmem:[#allocation2 + $0x40] sm:$0xff] %vm59_vm1, %v418_v53  ;;  %462 = vst.msk [vmem:[#allocation2 + $0xc0] sm:$0xff] %vm59_vm1, %v434_v55  ;;  %v551_v9 = vmax.f32 %v524_v59, 0.0  ;;  %v489_v11 = vld [vmem:[#allocation2 + $0xa8] sm:$0xff]  ;;  %v533_v12 = vmax.f32 %v506_v0, 0.0  ;;  %v507_v13 = vadd.f32 %v1086_v48, %v473_v8 }
 0x12c   :  { %449 = vst.msk [vmem:[#allocation2 + $0x58] sm:$0xff] %vm59_vm1, %v421_v61  ;;  %v549_v14 = vmax.f32 %v522_v2, 0.0  ;;  %v523_v15 = vadd.f32 %v1086_v48, %v489_v11  ;;  %447 = vst.msk [vmem:[#allocation2 + $0x48] sm:$0xff] %vm59_vm1, %v419_v4  ;;  %v774_v17 = vpack.c.bf16 %v535_v6, %v535_v6  ;;  %v536_v18 = vmax.f32 %v509_v7, 0.0  ;;  %v826_v26 = vpop.f32.mrb[12].mxu0  ;;  %v100_v32 = vld [vmem:[#allocation2 + $0x68] sm:$0xff] }
 0x12d   :  { %463 = vst.msk [vmem:[#allocation2 + $0xc8] sm:$0xff] %vm59_vm1, %v435_v5  ;;  %v790_v19 = vpack.c.bf16 %v551_v9, %v551_v9  ;;  %v552_v20 = vmax.f32 %v525_v10, 0.0  ;;  %v772_v22 = vpack.c.bf16 %v533_v12, %v533_v12  ;;  %v534_v23 = vmax.f32 %v507_v13, 0.0  ;;  %v348_v31 = vpop.f32.mrb[13].mxu0 }
 0x12e   :  { %v788_v24 = vpack.c.bf16 %v549_v14, %v549_v14  ;;  %v550_v25 = vmax.f32 %v523_v15, 0.0  ;;  %672 = vst.msk [vmem:[#allocation9 + $0x18] sm:$0xf] %vm665_vm4, %v774_v17  ;;  %v775_v28 = vpack.c.bf16 %v536_v18, %v536_v18  ;;  %v424_v30 = vadd.f32 %v826_v26, %v101_v16  ;;  %v827_v38 = vpop.f32.mrb[14].mxu0 }
 0x12f   :  { %688 = vst.msk [vmem:[#allocation9 + $0x58] sm:$0xf] %vm665_vm4, %v790_v19  ;;  %v791_v29 = vpack.c.bf16 %v552_v20, %v552_v20  ;;  %670 = vst.msk [vmem:[#allocation9 + $0x10] sm:$0xf] %vm665_vm4, %v772_v22  ;;  %v773_v33 = vpack.c.bf16 %v534_v23, %v534_v23  ;;  %v422_v37 = vadd.f32 %v348_v31, %v99_v21  ;;  %v351_v44 = vpop.f32.mrb[15].mxu0 }
 0x130   :  { %686 = vst.msk [vmem:[#allocation9 + $0x50] sm:$0xf] %vm665_vm4, %v788_v24  ;;  %v478_v34 = vld [vmem:[#allocation2 + $0x50] sm:$0xff]  ;;  %v789_v35 = vpack.c.bf16 %v550_v25, %v550_v25  ;;  %673 = vst.msk [vmem:[#allocation9 + $0x1c] sm:$0xf] %vm665_vm4, %v775_v28  ;;  %v425_v43 = vadd.f32 %v827_v38, %v102_v27  ;;  %v423_v49 = vadd.f32 %v351_v44, %v100_v32 }
 0x131   :  { %v494_v36 = vld [vmem:[#allocation2 + $0xd0] sm:$0xff]  ;;  %689 = vst.msk [vmem:[#allocation9 + $0x5c] sm:$0xf] %vm665_vm4, %v791_v29  ;;  %v512_v39 = vadd.f32 %v1086_v48, %v478_v34  ;;  %671 = vst.msk [vmem:[#allocation9 + $0x14] sm:$0xf] %vm665_vm4, %v773_v33 }
 0x132   :  { %v476_v40 = vld [vmem:[#allocation2 + $0x40] sm:$0xff]  ;;  %v528_v41 = vadd.f32 %v1086_v48, %v494_v36  ;;  %452 = vst.msk [vmem:[#allocation2 + $0x70] sm:$0xff] %vm59_vm1, %v424_v30  ;;  %450 = vst.msk [vmem:[#allocation2 + $0x60] sm:$0xff] %vm59_vm1, %v422_v37 }
 0x133   :  { %v492_v42 = vld [vmem:[#allocation2 + $0xc0] sm:$0xff]  ;;  %687 = vst.msk [vmem:[#allocation9 + $0x54] sm:$0xf] %vm665_vm4, %v789_v35  ;;  %v510_v45 = vadd.f32 %v1086_v48, %v476_v40  ;;  %v479_v46 = vld [vmem:[#allocation2 + $0x58] sm:$0xff]  ;;  %v539_v50 = vmax.f32 %v512_v39, 0.0  ;;  %v477_v52 = vld [vmem:[#allocation2 + $0x48] sm:$0xff] }
 0x134   :  { %v526_v47 = vadd.f32 %v1086_v48, %v492_v42  ;;  %v513_v51 = vadd.f32 %v1086_v48, %v479_v46  ;;  %v555_v53 = vmax.f32 %v528_v41, 0.0  ;;  %v493_v54 = vld [vmem:[#allocation2 + $0xc8] sm:$0xff]  ;;  %453 = vst.msk [vmem:[#allocation2 + $0x78] sm:$0xff] %vm59_vm1, %v425_v43  ;;  %v511_v56 = vadd.f32 %v1086_v48, %v477_v52  ;;  %451 = vst.msk [vmem:[#allocation2 + $0x68] sm:$0xff] %vm59_vm1, %v423_v49 }
 0x135   :  { %v537_v55 = vmax.f32 %v510_v45, 0.0  ;;  %v527_v58 = vadd.f32 %v1086_v48, %v493_v54  ;;  %v778_v59 = vpack.c.bf16 %v539_v50, %v539_v50 }
 0x136   :  { %v553_v57 = vmax.f32 %v526_v47, 0.0  ;;  %v540_v60 = vmax.f32 %v513_v51, 0.0  ;;  %v794_v61 = vpack.c.bf16 %v555_v53, %v555_v53  ;;  %v538_v63 = vmax.f32 %v511_v56, 0.0 }
 0x137   :  { %v776_v62 = vpack.c.bf16 %v537_v55, %v537_v55  ;;  %v554_v1 = vmax.f32 %v527_v58, 0.0  ;;  %676 = vst.msk [vmem:[#allocation9 + $0x28] sm:$0xf] %vm665_vm4, %v778_v59 }
 0x138   :  { %v792_v0 = vpack.c.bf16 %v553_v57, %v553_v57  ;;  %v779_v2 = vpack.c.bf16 %v540_v60, %v540_v60  ;;  %692 = vst.msk [vmem:[#allocation9 + $0x68] sm:$0xf] %vm665_vm4, %v794_v61  ;;  %v777_v3 = vpack.c.bf16 %v538_v63, %v538_v63 }
 0x139   :  { %674 = vst.msk [vmem:[#allocation9 + $0x20] sm:$0xf] %vm665_vm4, %v776_v62  ;;  %v482_v4 = vld [vmem:[#allocation2 + $0x70] sm:$0xff]  ;;  %v793_v5 = vpack.c.bf16 %v554_v1, %v554_v1  ;;  %v480_v7 = vld [vmem:[#allocation2 + $0x60] sm:$0xff] }
 0x13a   :  { %690 = vst.msk [vmem:[#allocation9 + $0x60] sm:$0xf] %vm665_vm4, %v792_v0  ;;  %677 = vst.msk [vmem:[#allocation9 + $0x2c] sm:$0xf] %vm665_vm4, %v779_v2  ;;  %v516_v6 = vadd.f32 %v1086_v48, %v482_v4  ;;  %v514_v8 = vadd.f32 %v1086_v48, %v480_v7 }
 0x13b   :  { %675 = vst.msk [vmem:[#allocation9 + $0x24] sm:$0xf] %vm665_vm4, %v777_v3  ;;  %691 = vst.msk [vmem:[#allocation9 + $0x64] sm:$0xf] %vm665_vm4, %v793_v5  ;;  %v483_v9 = vld [vmem:[#allocation2 + $0x78] sm:$0xff]  ;;  %v481_v12 = vld [vmem:[#allocation2 + $0x68] sm:$0xff] }
 0x13c   :  { %v543_v10 = vmax.f32 %v516_v6, 0.0  ;;  %v517_v11 = vadd.f32 %v1086_v48, %v483_v9  ;;  %v541_v13 = vmax.f32 %v514_v8, 0.0  ;;  %v515_v14 = vadd.f32 %v1086_v48, %v481_v12 }
 0x13e   :  { %v782_v15 = vpack.c.bf16 %v543_v10, %v543_v10  ;;  %v544_v16 = vmax.f32 %v517_v11, 0.0  ;;  %v780_v17 = vpack.c.bf16 %v541_v13, %v541_v13  ;;  %v542_v18 = vmax.f32 %v515_v14, 0.0 }
 0x140   :  { %680 = vst.msk [vmem:[#allocation9 + $0x38] sm:$0xf] %vm665_vm4, %v782_v15  ;;  %v783_v19 = vpack.c.bf16 %v544_v16, %v544_v16  ;;  %678 = vst.msk [vmem:[#allocation9 + $0x30] sm:$0xf] %vm665_vm4, %v780_v17  ;;  %v781_v20 = vpack.c.bf16 %v542_v18, %v542_v18 }
 0x142   :  { %681 = vst.msk [vmem:[#allocation9 + $0x3c] sm:$0xf] %vm665_vm4, %v783_v19  ;;  %679 = vst.msk [vmem:[#allocation9 + $0x34] sm:$0xf] %vm665_vm4, %v781_v20 }
 0x143   :  { %942 = shalt.err (!%p939_p0)
}
 0x144   :  { %s943_s28 = scalar_lea.hbm %s1179_s3, 1728 }
 0x145   :  { %p944_p1 = scmp.ne.s32.totalorder %s1179_s3, %s943_s28  ;;  %p947_p2 = scmp.lt.u32.totalorder %s943_s28, %s1179_s3 }
 0x147   :  { %p949_p3 = pnand %p947_p2, %p944_p1 }
 0x149   :  { %952 = shalt.err (!%p949_p3)
}
 0x14a   :  { %704 = dma.vmem_to_hbm [thread:$0]  %s699_s22, 1728, %s1179_s3, [#allocation5], %s961_s24, %s961_s24, %s962_s25  }
 0x14b   :  { %957 = dma.done.wait [#allocation5], 1728  }
 0x14c   :  { %958 = vsyncadd [#allocation5], 4294965568 }
 0x14d   :  { %708 = vsyncpa [#allocation4], 1 }
 0x14e   :  { %709 = vsyncpa [#allocation7], 1 }
 0x14f   :  { %710 = vsyncpa [#allocation5], 1 }

// kernel: conformer_encoder.22
= control target key start
LH: loop header
LB: loop body
LE: loop exit
PB: predicated region body
PF: predicated region fallthrough
CT: control target
= control target key end

     0   :  { %8 = vsyncpa [#allocation4], 0  ;;  %s826_s0 = inlined_call_operand.hbm [shape: bf16[48,288], index: 0, kind: input, shape index: {}]   ;;  %s827_s1 = inlined_call_operand.hbm [shape: bf16[288,32], index: 1, kind: input, shape index: {}]   ;;  %s828_s2 = inlined_call_operand.hbm [shape: f32[1,32], index: 2, kind: input, shape index: {}]   ;;  %s829_s3 = inlined_call_operand.hbm [shape: bf16[48,32], index: 3, kind: output, shape index: {}]  }
   0x1   :  { %9 = vsyncpa [#allocation7], 0 }
   0x2   :  { %10 = vsyncpa [#allocation5], 0  ;;  %s718_s12 = smov [#allocation6]   ;;  %s624_s16 = scalar_lea.hbm %s827_s1, 2304 }
   0x3   :  { %s28_s13 = sshll.u32 %s718_s12, 4  ;;  %p625_p0 = scmp.ne.s32.totalorder %s827_s1, %s624_s16  ;;  %s29_s13 = int_to_ptr.vmem [resolvable:$true] %s28_s13 }
   0x4   :  { %p628_p1 = scmp.lt.u32.totalorder %s624_s16, %s827_s1 }
   0x6   :  { %p630_p2 = pnand %p628_p1, %p625_p0 }
   0x8   :  { %633 = shalt.err (!%p630_p2)
}
   0x9   :  { %s634_s21 = scalar_lea.vmem %s29_s13, 2304  ;;  %p639_p4 = scmp.lt.s32.totalorder %s29_s13, %s29_s13 }
   0xa   :  { %p635_p3 = scmp.ne.s32.totalorder %s29_s13, %s634_s21  ;;  %p640_p5 = scmp.lt.s32.totalorder %s634_s21, %s634_s21 }
   0xc   :  { %p641_p6 = por %p640_p5, %p639_p4 }
   0xe   :  { %p642_p7 = pnand %p641_p6, %p635_p3 }
  0x10   :  { %645 = shalt.err (!%p642_p7)
}
  0x11   :  { %s719_s22 = smov 64   ;;  %s720_s23 = smov 4  }
  0x12   :  { %34 = dma.hbm_to_vmem [thread:$0]  %s827_s1, 2304, %s29_s13, [#allocation7], %s719_s22, %s719_s22, %s720_s23  }
  0x13   :  { %s721_s26 = smov [#allocation3]   ;;  %s646_s30 = scalar_lea.hbm %s826_s0, 1152 }
  0x14   :  { %s16_s27 = sshll.u32 %s721_s26, 4  ;;  %p647_p8 = scmp.ne.s32.totalorder %s826_s0, %s646_s30  ;;  %s17_s27 = int_to_ptr.vmem [resolvable:$true] %s16_s27 }
  0x15   :  { %p650_p9 = scmp.lt.u32.totalorder %s646_s30, %s826_s0 }
  0x17   :  { %p652_p10 = pnand %p650_p9, %p647_p8 }
  0x19   :  { %655 = shalt.err (!%p652_p10)
}
  0x1a   :  { %s656_s8 = scalar_lea.vmem %s17_s27, 1152  ;;  %p661_p12 = scmp.lt.s32.totalorder %s17_s27, %s17_s27 }
  0x1b   :  { %p657_p11 = scmp.ne.s32.totalorder %s17_s27, %s656_s8  ;;  %p662_p13 = scmp.lt.s32.totalorder %s656_s8, %s656_s8 }
  0x1d   :  { %p663_p0 = por %p662_p13, %p661_p12 }
  0x1f   :  { %p664_p1 = pnand %p663_p0, %p657_p11 }
  0x21   :  { %667 = shalt.err (!%p664_p1)
}
  0x22   :  { %s722_s1 = smov 192   ;;  %s723_s9 = smov 12  }
  0x23   :  { %22 = dma.hbm_to_vmem [thread:$0]  %s826_s0, 1152, %s17_s27, [#allocation4], %s722_s1, %s722_s1, %s723_s9  }
  0x24   :  { %s724_s12 = smov [#allocation8]   ;;  %s668_s16 = scalar_lea.hbm %s828_s2, 16 }
  0x25   :  { %s41_s13 = sshll.u32 %s724_s12, 4  ;;  %p669_p2 = scmp.ne.s32.totalorder %s828_s2, %s668_s16  ;;  %s42_s13 = int_to_ptr.vmem [resolvable:$true] %s41_s13 }
  0x26   :  { %p672_p3 = scmp.lt.u32.totalorder %s668_s16, %s828_s2 }
  0x28   :  { %p674_p4 = pnand %p672_p3, %p669_p2 }
  0x2a   :  { %677 = shalt.err (!%p674_p4)
}
  0x2b   :  { %s678_s21 = scalar_lea.vmem %s42_s13, 16  ;;  %s682_s0 = scalar_lea.vmem %s42_s13, 32 }
  0x2c   :  { %p679_p5 = scmp.ne.s32.totalorder %s42_s13, %s678_s21  ;;  %p683_p6 = scmp.lt.s32.totalorder %s42_s13, %s42_s13 }
  0x2d   :  { %p684_p7 = scmp.lt.s32.totalorder %s682_s0, %s678_s21 }
  0x2f   :  { %p685_p8 = por %p684_p7, %p683_p6 }
  0x31   :  { %p686_p9 = pnand %p685_p8, %p679_p5 }
  0x33   :  { %689 = shalt.err (!%p686_p9)
}
  0x34   :  { %44 = dma.hbm_to_vmem [thread:$0]  %s828_s2, 16, %s42_s13, [#allocation7]  }
  0x35   :  { %712 = dma.done.wait [#allocation4], 1152  }
  0x36   :  { %713 = vsyncadd [#allocation4], 4294966144 }
  0x37   :  { %714 = dma.done.wait [#allocation7], 2320  }
  0x38   :  { %715 = vsyncadd [#allocation7], 4294964976  ;;  %vm59_vm0 = vcmask 261120   ;;  %v725_v0 = vmov 0.0   ;;  %vm726_vm1 = vmmov 0   ;;  %v594_v1 = vld [vmem:[#allocation6 + $0x40] sm:$0xff]  }
  0x39   :  { %568 = vmatprep.subr.bf16.mxu1 %v725_v0  ;;  %572 = vmatprep.mubr.msk.bf16.mxu1 %vm726_vm1, %v725_v0  ;;  %60 = vst.msk [vmem:[#allocation2] sm:$0xff] %vm59_vm0, %v725_v0  ;;  %61 = vst.msk [vmem:[#allocation2 + $0x8] sm:$0xff] %vm59_vm0, %v725_v0  ;;  %v595_v2 = vld [vmem:[#allocation6] sm:$0xff]   ;;  %v596_v3 = vld [vmem:[#allocation6 + $0x48] sm:$0xff]   ;;  %vm461_vm2 = vcmask 257024   ;;  %s727_s2 = smov [#allocation9]  }
  0x3a   :  { %62 = vst.msk [vmem:[#allocation2 + $0x10] sm:$0xff] %vm59_vm0, %v725_v0  ;;  %63 = vst.msk [vmem:[#allocation2 + $0x18] sm:$0xff] %vm59_vm0, %v725_v0  ;;  %529 = vmatprep.subr.bf16.mxu0 %v594_v1  ;;  %v597_v4 = vld [vmem:[#allocation6 + $0x8] sm:$0xff]   ;;  %v598_v5 = vld [vmem:[#allocation6 + $0x50] sm:$0xff]   ;;  %s473_s26 = sshll.u32 %s727_s2, 4  ;;  %s474_s26 = int_to_ptr.vmem [resolvable:$true] %s473_s26 }
  0x3b   :  { %64 = vst.msk [vmem:[#allocation2 + $0x20] sm:$0xff] %vm59_vm0, %v725_v0  ;;  %65 = vst.msk [vmem:[#allocation2 + $0x28] sm:$0xff] %vm59_vm0, %v725_v0  ;;  %530 = vmatpush3.bf16.msra.mxu0 %v595_v2  ;;  %v599_v6 = vld [vmem:[#allocation6 + $0x10] sm:$0xff]   ;;  %v600_v7 = vld [vmem:[#allocation6 + $0x58] sm:$0xff]   ;;  %s690_s27 = scalar_lea.vmem %s474_s26, 384  ;;  %p695_p11 = scmp.lt.s32.totalorder %s474_s26, %s474_s26 }
  0x3c   :  { %531 = vmatprep.subr.bf16.mxu0 %v596_v3  ;;  %v601_v8 = vld [vmem:[#allocation6 + $0x18] sm:$0xff]   ;;  %v602_v9 = vld [vmem:[#allocation6 + $0x60] sm:$0xff]   ;;  %v604_v12 = vld [vmem:[#allocation6 + $0x68] sm:$0xff]   ;;  %p691_p10 = scmp.ne.s32.totalorder %s474_s26, %s690_s27  ;;  %p696_p12 = scmp.lt.s32.totalorder %s690_s27, %s690_s27 }
  0x3d   :  { %v608_v10 = vld [vmem:[#allocation6 + $0x80] sm:$0xff]   ;;  %v605_v13 = vld [vmem:[#allocation6 + $0x28] sm:$0xff]   ;;  %v606_v15 = vld [vmem:[#allocation6 + $0x70] sm:$0xff]  }
  0x3e   :  { %v603_v11 = vld [vmem:[#allocation6 + $0x20] sm:$0xff]   ;;  %569 = vmatpush3.bf16.msra.mxu1 %v608_v10  ;;  %v611_v14 = vld [vmem:[#allocation6 + $0x88] sm:$0xff]   ;;  %v607_v18 = vld [vmem:[#allocation6 + $0x30] sm:$0xff]   ;;  %p697_p13 = por %p696_p12, %p695_p11 }
  0x3f   :  { %532 = vmatpush3.bf16.msra.mxu0 %v597_v4  ;;  %570 = vmatprep.subr.bf16.mxu1 %v725_v0  ;;  %v614_v16 = vld [vmem:[#allocation3 + $0x4] ss:$12 sps:$4 sm:$0xff]   ;;  %v615_v17 = vld [vmem:[#allocation3 + $0x8] ss:$12 sps:$4 sm:$0xff]   ;;  %v619_v21 = vld [vmem:[#allocation3 + $0x20] ss:$12 sps:$4 sm:$0xff]  }
  0x40   :  { %533 = vmatprep.subr.bf16.mxu0 %v598_v5  ;;  %315 = vmatprep.mubr.bf16.mxu0 %v614_v16  ;;  %v609_v19 = vld [vmem:[#allocation6 + $0x78] sm:$0xff]   ;;  %v616_v23 = vld [vmem:[#allocation3 + $0x1c] ss:$12 sps:$4 sm:$0xff]   ;;  %v66_v40 = vld [vmem:[#allocation2] sm:$0xff]  ;;  %p698_p0 = pnand %p697_p13, %p691_p10 }
  0x41   :  { %v610_v20 = vld [vmem:[#allocation6 + $0x38] sm:$0xff]   ;;  %v622_v27 = vld [vmem:[#allocation3 + $0x30] ss:$12 sps:$4 sm:$0xff]   ;;  %v69_v60 = vld [vmem:[#allocation2 + $0x18] sm:$0xff] }
  0x42   :  { %571 = vmatpush3.bf16.msra.mxu1 %v611_v14  ;;  %v612_v22 = vld [vmem:[#allocation3] ss:$12 sps:$4 sm:$0xff]   ;;  %v623_v24 = vld [vmem:[#allocation3 + $0x38] ss:$12 sps:$4 sm:$0xff]   ;;  %v70_v10 = vld [vmem:[#allocation2 + $0x20] sm:$0xff] }
  0x43   :  { %534 = vmatpush3.bf16.msra.mxu0 %v599_v6  ;;  %v618_v25 = vld [vmem:[#allocation3 + $0x18] ss:$12 sps:$4 sm:$0xff]   ;;  %v620_v26 = vld [vmem:[#allocation3 + $0x34] ss:$12 sps:$4 sm:$0xff]  }
  0x44   :  { %535 = vmatprep.subr.bf16.mxu0 %v600_v7  ;;  %v67_v44 = vld [vmem:[#allocation2 + $0x8] sm:$0xff]  ;;  %v68_v56 = vld [vmem:[#allocation2 + $0x10] sm:$0xff] }
  0x45   :  { %573 = vmatmul.mubr.msk.bf16.vlgmr.msra.gmra.mrb[0].mxu1 %vm59_vm0, %v615_v17  ;;  %v516_v61 = vld [vmem:[#allocation8] ss:$0 sm:$0xff] }
  0x46   :  { %576 = vmatprep.mubr.msk.bf16.mxu1 %vm726_vm1, %v725_v0  ;;  %v71_v16 = vld [vmem:[#allocation2 + $0x28] sm:$0xff] }
  0x47   :  { %536 = vmatpush3.bf16.msra.mxu0 %v601_v8 }
  0x48   :  { %537 = vmatprep.subr.bf16.mxu0 %v602_v9 }
  0x4b   :  { %538 = vmatpush3.bf16.msra.mxu0 %v603_v11 }
  0x4c   :  { %539 = vmatprep.subr.bf16.mxu0 %v604_v12 }
  0x4d   :  { %577 = vmatmul.mubr.msk.bf16.gmra.mrb[4].mxu1 %vm59_vm0, %v619_v21 }
  0x4e   :  { %580 = vmatprep.mubr.msk.bf16.mxu1 %vm726_vm1, %v725_v0 }
  0x4f   :  { %540 = vmatpush3.bf16.msra.mxu0 %v605_v13 }
  0x50   :  { %541 = vmatprep.subr.bf16.mxu0 %v606_v15 }
  0x53   :  { %542 = vmatpush3.bf16.msra.mxu0 %v607_v18 }
  0x54   :  { %543 = vmatprep.subr.bf16.mxu0 %v609_v19 }
  0x55   :  { %581 = vmatmul.mubr.msk.bf16.gmra.mrb[8].mxu1 %vm59_vm0, %v623_v24 }
  0x57   :  { %544 = vmatpush3.bf16.msra.mxu0 %v610_v20 }
  0x5a   :  { %316 = vmatmul.mubr.bf16.vlgmr.msra.gmra.mrb[0].mxu0 %v612_v22 }
  0x5b   :  { %323 = vmatprep.mubr.bf16.mxu0 %v616_v23 }
  0x62   :  { %324 = vmatmul.mubr.bf16.gmra.mrb[4].mxu0 %v618_v25 }
  0x63   :  { %331 = vmatprep.mubr.bf16.mxu0 %v620_v26 }
  0x6a   :  { %332 = vmatmul.mubr.bf16.gmra.mrb[8].mxu0 %v622_v27 }
 0x118   :  { %v374_v28 = vpop.f32.mrb[0].mxu1 }
 0x119   :  { %v574_v29 = vpop.f32.mrb[1].mxu1 }
 0x11a   :  { %v377_v30 = vpop.f32.mrb[2].mxu1 }
 0x11b   :  { %v575_v31 = vpop.f32.mrb[3].mxu1 }
 0x120   :  { %v382_v32 = vpop.f32.mrb[4].mxu1 }
 0x121   :  { %v578_v33 = vpop.f32.mrb[5].mxu1 }
 0x122   :  { %v385_v34 = vpop.f32.mrb[6].mxu1 }
 0x123   :  { %v579_v36 = vpop.f32.mrb[7].mxu1 }
 0x128   :  { %v390_v45 = vpop.f32.mrb[8].mxu1 }
 0x129   :  { %v582_v48 = vpop.f32.mrb[9].mxu1 }
 0x12a   :  { %v393_v49 = vpop.f32.mrb[10].mxu1 }
 0x12b   :  { %v583_v52 = vpop.f32.mrb[11].mxu1 }
 0x12d   :  { %v545_v35 = vpop.f32.mrb[0].mxu0 }
 0x12e   :  { %v546_v37 = vpop.f32.mrb[1].mxu0 }
 0x12f   :  { %v547_v38 = vadd.f32 %v546_v37, %v545_v35  ;;  %v548_v39 = vpop.f32.mrb[2].mxu0 }
 0x130   :  { %v549_v41 = vpop.f32.mrb[3].mxu0 }
 0x131   :  { %v375_v42 = vadd.f32 %v547_v38, %v374_v28  ;;  %v550_v43 = vadd.f32 %v549_v41, %v548_v39 }
 0x133   :  { %v397_v46 = vadd.f32 %v375_v42, %v66_v40  ;;  %v378_v47 = vadd.f32 %v550_v43, %v377_v30 }
 0x135   :  { %403 = vst.msk [vmem:[#allocation2] sm:$0xff] %vm59_vm0, %v397_v46  ;;  %v398_v50 = vadd.f32 %v378_v47, %v67_v44  ;;  %v551_v51 = vpop.f32.mrb[4].mxu0 }
 0x136   :  { %v552_v53 = vpop.f32.mrb[5].mxu0 }
 0x137   :  { %404 = vst.msk [vmem:[#allocation2 + $0x8] sm:$0xff] %vm59_vm0, %v398_v50  ;;  %v553_v54 = vadd.f32 %v552_v53, %v551_v51  ;;  %v554_v55 = vpop.f32.mrb[6].mxu0 }
 0x138   :  { %v555_v57 = vpop.f32.mrb[7].mxu0 }
 0x139   :  { %v383_v58 = vadd.f32 %v553_v54, %v382_v32  ;;  %v556_v59 = vadd.f32 %v555_v57, %v554_v55 }
 0x13b   :  { %v399_v62 = vadd.f32 %v383_v58, %v68_v56  ;;  %v386_v63 = vadd.f32 %v556_v59, %v385_v34 }
 0x13c   :  { %v412_v0 = vld [vmem:[#allocation2] sm:$0xff] }
 0x13d   :  { %405 = vst.msk [vmem:[#allocation2 + $0x10] sm:$0xff] %vm59_vm0, %v399_v62  ;;  %v400_v1 = vadd.f32 %v386_v63, %v69_v60  ;;  %v557_v2 = vpop.f32.mrb[8].mxu0  ;;  %v425_v3 = vadd.f32 %v516_v61, %v412_v0 }
 0x13e   :  { %v558_v4 = vpop.f32.mrb[9].mxu0  ;;  %v413_v5 = vld [vmem:[#allocation2 + $0x8] sm:$0xff] }
 0x13f   :  { %406 = vst.msk [vmem:[#allocation2 + $0x18] sm:$0xff] %vm59_vm0, %v400_v1  ;;  %v559_v6 = vadd.f32 %v558_v4, %v557_v2  ;;  %v560_v7 = vpop.f32.mrb[10].mxu0  ;;  %v426_v8 = vadd.f32 %v516_v61, %v413_v5  ;;  %v431_v9 = vmax.f32 %v425_v3, 0.0 }
 0x140   :  { %v561_v11 = vpop.f32.mrb[11].mxu0 }
 0x141   :  { %v391_v12 = vadd.f32 %v559_v6, %v390_v45  ;;  %v562_v13 = vadd.f32 %v561_v11, %v560_v7  ;;  %v432_v14 = vmax.f32 %v426_v8, 0.0  ;;  %v523_v15 = vpack.c.bf16 %v431_v9, %v431_v9 }
 0x143   :  { %v401_v17 = vadd.f32 %v391_v12, %v70_v10  ;;  %v394_v18 = vadd.f32 %v562_v13, %v393_v49  ;;  %v524_v19 = vpack.c.bf16 %v432_v14, %v432_v14  ;;  %462 = vst.msk [vmem:[#allocation9] sm:$0xf] %vm461_vm2, %v523_v15 }
 0x144   :  { %v414_v20 = vld [vmem:[#allocation2 + $0x10] sm:$0xff] }
 0x145   :  { %407 = vst.msk [vmem:[#allocation2 + $0x20] sm:$0xff] %vm59_vm0, %v401_v17  ;;  %v402_v21 = vadd.f32 %v394_v18, %v71_v16  ;;  %v427_v22 = vadd.f32 %v516_v61, %v414_v20 }
 0x146   :  { %463 = vst.msk [vmem:[#allocation9 + $0x4] sm:$0xf] %vm461_vm2, %v524_v19  ;;  %v415_v23 = vld [vmem:[#allocation2 + $0x18] sm:$0xff] }
 0x147   :  { %408 = vst.msk [vmem:[#allocation2 + $0x28] sm:$0xff] %vm59_vm0, %v402_v21  ;;  %v428_v24 = vadd.f32 %v516_v61, %v415_v23  ;;  %v433_v25 = vmax.f32 %v427_v22, 0.0 }
 0x149   :  { %v434_v26 = vmax.f32 %v428_v24, 0.0  ;;  %v525_v27 = vpack.c.bf16 %v433_v25, %v433_v25 }
 0x14b   :  { %v526_v28 = vpack.c.bf16 %v434_v26, %v434_v26  ;;  %464 = vst.msk [vmem:[#allocation9 + $0x8] sm:$0xf] %vm461_vm2, %v525_v27 }
 0x14c   :  { %v416_v29 = vld [vmem:[#allocation2 + $0x20] sm:$0xff] }
 0x14d   :  { %v429_v30 = vadd.f32 %v516_v61, %v416_v29  ;;  %465 = vst.msk [vmem:[#allocation9 + $0xc] sm:$0xf] %vm461_vm2, %v526_v28 }
 0x14e   :  { %v417_v31 = vld [vmem:[#allocation2 + $0x28] sm:$0xff] }
 0x14f   :  { %v430_v32 = vadd.f32 %v516_v61, %v417_v31  ;;  %v435_v33 = vmax.f32 %v429_v30, 0.0 }
 0x151   :  { %v436_v34 = vmax.f32 %v430_v32, 0.0  ;;  %v527_v35 = vpack.c.bf16 %v435_v33, %v435_v33 }
 0x153   :  { %v528_v36 = vpack.c.bf16 %v436_v34, %v436_v34  ;;  %466 = vst.msk [vmem:[#allocation9 + $0x10] sm:$0xf] %vm461_vm2, %v527_v35 }
 0x155   :  { %467 = vst.msk [vmem:[#allocation9 + $0x14] sm:$0xf] %vm461_vm2, %v528_v36 }
 0x156   :  { %701 = shalt.err (!%p698_p0)
}
 0x157   :  { %s702_s30 = scalar_lea.hbm %s829_s3, 384 }
 0x158   :  { %p703_p1 = scmp.ne.s32.totalorder %s829_s3, %s702_s30  ;;  %p706_p2 = scmp.lt.u32.totalorder %s702_s30, %s829_s3 }
 0x15a   :  { %p708_p3 = pnand %p706_p2, %p703_p1 }
 0x15c   :  { %711 = shalt.err (!%p708_p3)
}
 0x15d   :  { %479 = dma.vmem_to_hbm [thread:$0]  %s474_s26, 384, %s829_s3, [#allocation5], %s719_s22, %s719_s22, %s720_s23  }
 0x15e   :  { %716 = dma.done.wait [#allocation5], 384  }
 0x15f   :  { %717 = vsyncadd [#allocation5], 4294966912 }
 0x160   :  { %483 = vsyncpa [#allocation4], 1 }
 0x161   :  { %484 = vsyncpa [#allocation7], 1 }
 0x162   :  { %485 = vsyncpa [#allocation5], 1 }

// kernel: conformer_encoder.23
= control target key start
LH: loop header
LB: loop body
LE: loop exit
PB: predicated region body
PF: predicated region fallthrough
CT: control target
= control target key end

     0   :  { %8 = vsyncpa [#allocation4], 0  ;;  %s437_s0 = inlined_call_operand.hbm [shape: bf16[16,96], index: 0, kind: input, shape index: {}]   ;;  %s438_s1 = inlined_call_operand.hbm [shape: bf16[96,32], index: 1, kind: input, shape index: {}]   ;;  %s439_s2 = inlined_call_operand.hbm [shape: f32[1,32], index: 2, kind: input, shape index: {}]   ;;  %s440_s3 = inlined_call_operand.hbm [shape: f32[16,32], index: 3, kind: output, shape index: {}]  }
   0x1   :  { %9 = vsyncpa [#allocation7], 0 }
   0x2   :  { %10 = vsyncpa [#allocation5], 0  ;;  %s346_s12 = smov [#allocation6]   ;;  %s347_s14 = smov [#allocation3]  }
   0x3   :  { %s28_s13 = sshll.u32 %s346_s12, 4  ;;  %s16_s15 = sshll.u32 %s347_s14, 4  ;;  %s29_s13 = int_to_ptr.vmem [resolvable:$true] %s28_s13  ;;  %s376_s15 = int_to_ptr.vmem [resolvable:$true] %s16_s15 }
   0x4   :  { %s252_s18 = scalar_lea.hbm %s438_s1, 768 }
   0x5   :  { %p253_p0 = scmp.ne.s32.totalorder %s438_s1, %s252_s18  ;;  %p256_p1 = scmp.lt.u32.totalorder %s252_s18, %s438_s1 }
   0x7   :  { %p258_p2 = pnand %p256_p1, %p253_p0 }
   0x9   :  { %261 = shalt.err (!%p258_p2)
}
   0xa   :  { %s262_s23 = scalar_lea.vmem %s29_s13, 768  ;;  %p267_p4 = scmp.lt.s32.totalorder %s29_s13, %s29_s13 }
   0xb   :  { %p263_p3 = scmp.ne.s32.totalorder %s29_s13, %s262_s23  ;;  %p268_p5 = scmp.lt.s32.totalorder %s262_s23, %s262_s23 }
   0xd   :  { %p269_p6 = por %p268_p5, %p267_p4 }
   0xf   :  { %p270_p7 = pnand %p269_p6, %p263_p3 }
  0x11   :  { %273 = shalt.err (!%p270_p7)
}
  0x12   :  { %s348_s24 = smov 64   ;;  %s349_s25 = smov 4  }
  0x13   :  { %34 = dma.hbm_to_vmem [thread:$0]  %s438_s1, 768, %s29_s13, [#allocation7], %s348_s24, %s348_s24, %s349_s25  }
  0x14   :  { %s274_s30 = scalar_lea.hbm %s437_s0, 128 }
  0x15   :  { %p275_p8 = scmp.ne.s32.totalorder %s437_s0, %s274_s30  ;;  %p278_p9 = scmp.lt.u32.totalorder %s274_s30, %s437_s0 }
  0x17   :  { %p280_p10 = pnand %p278_p9, %p275_p8 }
  0x19   :  { %283 = shalt.err (!%p280_p10)
}
  0x1a   :  { %s284_s8 = scalar_lea.vmem %s376_s15, 128  ;;  %p289_p12 = scmp.lt.s32.totalorder %s376_s15, %s376_s15 }
  0x1b   :  { %p285_p11 = scmp.ne.s32.totalorder %s376_s15, %s284_s8  ;;  %p290_p13 = scmp.lt.s32.totalorder %s284_s8, %s284_s8 }
  0x1d   :  { %p291_p0 = por %p290_p13, %p289_p12 }
  0x1f   :  { %p292_p1 = pnand %p291_p0, %p285_p11 }
  0x21   :  { %295 = shalt.err (!%p292_p1)
}
  0x22   :  { %22 = dma.hbm_to_vmem [thread:$0]  %s437_s0, 128, %s376_s15, [#allocation4], %s348_s24, %s348_s24, %s349_s25  }
  0x23   :  { %s350_s10 = smov [#allocation8]   ;;  %s296_s14 = scalar_lea.hbm %s439_s2, 16 }
  0x24   :  { %s41_s11 = sshll.u32 %s350_s10, 4  ;;  %p297_p2 = scmp.ne.s32.totalorder %s439_s2, %s296_s14  ;;  %s42_s11 = int_to_ptr.vmem [resolvable:$true] %s41_s11 }
  0x25   :  { %p300_p3 = scmp.lt.u32.totalorder %s296_s14, %s439_s2 }
  0x27   :  { %p302_p4 = pnand %p300_p3, %p297_p2 }
  0x29   :  { %305 = shalt.err (!%p302_p4)
}
  0x2a   :  { %s306_s20 = scalar_lea.vmem %s42_s11, 16  ;;  %s310_s0 = scalar_lea.vmem %s42_s11, 32 }
  0x2b   :  { %p307_p5 = scmp.ne.s32.totalorder %s42_s11, %s306_s20  ;;  %p311_p6 = scmp.lt.s32.totalorder %s42_s11, %s42_s11 }
  0x2c   :  { %p312_p7 = scmp.lt.s32.totalorder %s310_s0, %s306_s20 }
  0x2e   :  { %p313_p8 = por %p312_p7, %p311_p6 }
  0x30   :  { %p314_p9 = pnand %p313_p8, %p307_p5 }
  0x32   :  { %317 = shalt.err (!%p314_p9)
}
  0x33   :  { %44 = dma.hbm_to_vmem [thread:$0]  %s439_s2, 16, %s42_s11, [#allocation7]  }
  0x34   :  { %340 = dma.done.wait [#allocation4], 128  }
  0x35   :  { %341 = vsyncadd [#allocation4], 4294967168 }
  0x36   :  { %342 = dma.done.wait [#allocation7], 784  }
  0x37   :  { %343 = vsyncadd [#allocation7], 4294966512  ;;  %vm59_vm0 = vcmask 261120   ;;  %v351_v0 = vmov 0.0   ;;  %vm352_vm1 = vmmov 0   ;;  %v245_v1 = vld [vmem:[#allocation6] sm:$0xff]  }
  0x38   :  { %219 = vmatprep.subr.bf16.mxu0 %v351_v0  ;;  %231 = vmatprep.mubr.msk.bf16.mxu0 %vm352_vm1, %v351_v0  ;;  %60 = vst.msk [vmem:[#allocation2] sm:$0xff] %vm59_vm0, %v351_v0  ;;  %61 = vst.msk [vmem:[#allocation2 + $0x8] sm:$0xff] %vm59_vm0, %v351_v0  ;;  %v246_v2 = vld [vmem:[#allocation6 + $0x8] sm:$0xff]   ;;  %v247_v3 = vld [vmem:[#allocation6 + $0x10] sm:$0xff]   ;;  %vm119_vm2 = vcmask 785408   ;;  %s353_s2 = smov [#allocation9]  }
  0x39   :  { %220 = vmatpush3.bf16.msra.mxu0 %v245_v1  ;;  %v248_v4 = vld [vmem:[#allocation6 + $0x18] sm:$0xff]   ;;  %v249_v5 = vld [vmem:[#allocation6 + $0x20] sm:$0xff]   ;;  %v250_v6 = vld [vmem:[#allocation6 + $0x28] sm:$0xff]   ;;  %s190_s22 = sshll.u32 %s353_s2, 4  ;;  %s191_s22 = int_to_ptr.vmem [resolvable:$true] %s190_s22 }
  0x3a   :  { %221 = vmatprep.subr.bf16.mxu0 %v351_v0  ;;  %v251_v7 = vld [vmem:[#allocation3] sm:$0xff]   ;;  %v211_v16 = vld [vmem:[#allocation8] ss:$0 sm:$0xff]  ;;  %s318_s23 = scalar_lea.vmem %s191_s22, 256  ;;  %p323_p11 = scmp.lt.s32.totalorder %s191_s22, %s191_s22 }
  0x3b   :  { %p319_p10 = scmp.ne.s32.totalorder %s191_s22, %s318_s23  ;;  %p324_p12 = scmp.lt.s32.totalorder %s318_s23, %s318_s23 }
  0x3d   :  { %222 = vmatpush3.bf16.msra.mxu0 %v246_v2  ;;  %p325_p13 = por %p324_p12, %p323_p11 }
  0x3e   :  { %223 = vmatprep.subr.bf16.mxu0 %v351_v0 }
  0x3f   :  { %v62_v8 = vld [vmem:[#allocation2] sm:$0xff]  ;;  %v63_v10 = vld [vmem:[#allocation2 + $0x8] sm:$0xff]  ;;  %p326_p0 = pnand %p325_p13, %p319_p10 }
  0x41   :  { %224 = vmatpush3.bf16.msra.mxu0 %v247_v3 }
  0x42   :  { %225 = vmatprep.subr.bf16.mxu0 %v351_v0 }
  0x45   :  { %226 = vmatpush3.bf16.msra.mxu0 %v248_v4 }
  0x46   :  { %227 = vmatprep.subr.bf16.mxu0 %v351_v0 }
  0x49   :  { %228 = vmatpush3.bf16.msra.mxu0 %v249_v5 }
  0x4a   :  { %229 = vmatprep.subr.bf16.mxu0 %v351_v0 }
  0x4d   :  { %230 = vmatpush3.bf16.msra.mxu0 %v250_v6 }
  0x50   :  { %232 = vmatmul.mubr.msk.bf16.vlgmr.msra.gmra.mrb[0].mxu0 %vm119_vm2, %v251_v7 }
 0x123   :  { %v157_v9 = vpop.f32.mrb[0].mxu0 }
 0x124   :  { %v164_v11 = vadd.f32 %v157_v9, %v62_v8  ;;  %v233_v12 = vpop.f32.mrb[1].mxu0 }
 0x125   :  { %v160_v13 = vpop.f32.mrb[2].mxu0 }
 0x126   :  { %167 = vst.msk [vmem:[#allocation2] sm:$0xff] %vm59_vm0, %v164_v11  ;;  %v165_v14 = vadd.f32 %v160_v13, %v63_v10  ;;  %v234_v15 = vpop.f32.mrb[3].mxu0 }
 0x128   :  { %168 = vst.msk [vmem:[#allocation2 + $0x8] sm:$0xff] %vm59_vm0, %v165_v14 }
 0x12d   :  { %v172_v17 = vld [vmem:[#allocation2] sm:$0xff] }
 0x12e   :  { %v181_v18 = vadd.f32 %v211_v16, %v172_v17 }
 0x12f   :  { %v173_v19 = vld [vmem:[#allocation2 + $0x8] sm:$0xff] }
 0x130   :  { %v182_v20 = vadd.f32 %v211_v16, %v173_v19  ;;  %183 = vst.msk [vmem:[#allocation9] sm:$0xff] %vm59_vm0, %v181_v18 }
 0x132   :  { %184 = vst.msk [vmem:[#allocation9 + $0x8] sm:$0xff] %vm59_vm0, %v182_v20 }
 0x133   :  { %329 = shalt.err (!%p326_p0)
}
 0x134   :  { %s330_s26 = scalar_lea.hbm %s440_s3, 256 }
 0x135   :  { %p331_p1 = scmp.ne.s32.totalorder %s440_s3, %s330_s26  ;;  %p334_p2 = scmp.lt.u32.totalorder %s330_s26, %s440_s3 }
 0x137   :  { %p336_p3 = pnand %p334_p2, %p331_p1 }
 0x139   :  { %339 = shalt.err (!%p336_p3)
}
 0x13a   :  { %s354_s4 = smov 128   ;;  %s355_s5 = smov 8  }
 0x13b   :  { %196 = dma.vmem_to_hbm [thread:$0]  %s191_s22, 256, %s440_s3, [#allocation5], %s354_s4, %s354_s4, %s355_s5  }
 0x13c   :  { %344 = dma.done.wait [#allocation5], 256  }
 0x13d   :  { %345 = vsyncadd [#allocation5], 4294967040 }
 0x13e   :  { %200 = vsyncpa [#allocation4], 1 }
 0x13f   :  { %201 = vsyncpa [#allocation7], 1 }
 0x140   :  { %202 = vsyncpa [#allocation5], 1 }

// kernel: conformer_encoder.25
= control target key start
LH: loop header
LB: loop body
LE: loop exit
PB: predicated region body
PF: predicated region fallthrough
CT: control target
= control target key end

     0   :  { %10 = vsyncpa [#allocation3], 0  ;;  %s541_s0 = inlined_call_operand.hbm [shape: f32[16,32], index: 0, kind: input, shape index: {}]   ;;  %s542_s1 = inlined_call_operand.hbm [shape: f32[1,32], index: 1, kind: input, shape index: {}]   ;;  %s543_s2 = inlined_call_operand.hbm [shape: f32[1,32], index: 2, kind: input, shape index: {}]   ;;  %s544_s3 = inlined_call_operand.hbm [shape: bf16[32,96], index: 3, kind: input, shape index: {}]   ;;  %s545_s4 = inlined_call_operand.hbm [shape: f32[1,96], index: 4, kind: input, shape index: {}]   ;;  %s546_s5 = inlined_call_operand.hbm [shape: bf16[16,96], index: 5, kind: output, shape index: {}]  }
   0x1   :  { %11 = vsyncpa [#allocation6], 0 }
   0x2   :  { %12 = vsyncpa [#allocation9], 0 }
   0x3   :  { %13 = vsyncpa [#allocation4], 0  ;;  %s409_s18 = smov [#allocation5]   ;;  %s410_s20 = smov [#allocation8]  }
   0x4   :  { %s32_s19 = sshll.u32 %s409_s18, 4  ;;  %s51_s21 = sshll.u32 %s410_s20, 4  ;;  %s33_s19 = int_to_ptr.vmem [resolvable:$true] %s32_s19  ;;  %s451_s21 = int_to_ptr.vmem [resolvable:$true] %s51_s21 }
   0x5   :  { %s269_s24 = scalar_lea.hbm %s542_s1, 16 }
   0x6   :  { %p270_p0 = scmp.ne.s32.totalorder %s542_s1, %s269_s24  ;;  %p273_p1 = scmp.lt.u32.totalorder %s269_s24, %s542_s1 }
   0x8   :  { %p275_p2 = pnand %p273_p1, %p270_p0 }
   0xa   :  { %278 = shalt.err (!%p275_p2)
}
   0xb   :  { %s279_s29 = scalar_lea.vmem %s33_s19, 16  ;;  %s283_s30 = scalar_lea.vmem %s33_s19, 32 }
   0xc   :  { %p280_p3 = scmp.ne.s32.totalorder %s33_s19, %s279_s29  ;;  %p284_p4 = scmp.lt.s32.totalorder %s33_s19, %s33_s19 }
   0xd   :  { %p285_p5 = scmp.lt.s32.totalorder %s283_s30, %s279_s29 }
   0xf   :  { %p286_p6 = por %p285_p5, %p284_p4 }
  0x11   :  { %p287_p7 = pnand %p286_p6, %p280_p3 }
  0x13   :  { %290 = shalt.err (!%p287_p7)
}
  0x14   :  { %35 = dma.hbm_to_vmem [thread:$0]  %s542_s1, 16, %s33_s19, [#allocation6]  }
  0x15   :  { %s291_s10 = scalar_lea.hbm %s544_s3, 256 }
  0x16   :  { %p292_p8 = scmp.ne.s32.totalorder %s544_s3, %s291_s10  ;;  %p295_p9 = scmp.lt.u32.totalorder %s291_s10, %s544_s3 }
  0x18   :  { %p297_p10 = pnand %p295_p9, %p292_p8 }
  0x1a   :  { %300 = shalt.err (!%p297_p10)
}
  0x1b   :  { %s301_s15 = scalar_lea.vmem %s451_s21, 256  ;;  %p306_p12 = scmp.lt.s32.totalorder %s451_s21, %s451_s21 }
  0x1c   :  { %p302_p11 = scmp.ne.s32.totalorder %s451_s21, %s301_s15  ;;  %p307_p13 = scmp.lt.s32.totalorder %s301_s15, %s301_s15 }
  0x1e   :  { %p308_p0 = por %p307_p13, %p306_p12 }
  0x20   :  { %p309_p1 = pnand %p308_p0, %p302_p11 }
  0x22   :  { %312 = shalt.err (!%p309_p1)
}
  0x23   :  { %s411_s1 = smov 64   ;;  %s412_s16 = smov 4  }
  0x24   :  { %57 = dma.hbm_to_vmem [thread:$0]  %s544_s3, 256, %s451_s21, [#allocation9], %s411_s1, %s411_s1, %s412_s16  }
  0x25   :  { %s413_s19 = smov [#allocation2]   ;;  %s313_s24 = scalar_lea.hbm %s541_s0, 256 }
  0x26   :  { %s19_s20 = sshll.u32 %s413_s19, 4  ;;  %p314_p2 = scmp.ne.s32.totalorder %s541_s0, %s313_s24  ;;  %s20_s20 = int_to_ptr.vmem [resolvable:$true] %s19_s20 }
  0x27   :  { %p317_p3 = scmp.lt.u32.totalorder %s313_s24, %s541_s0 }
  0x29   :  { %p319_p4 = pnand %p317_p3, %p314_p2 }
  0x2b   :  { %322 = shalt.err (!%p319_p4)
}
  0x2c   :  { %s323_s29 = scalar_lea.vmem %s20_s20, 256  ;;  %p328_p6 = scmp.lt.s32.totalorder %s20_s20, %s20_s20 }
  0x2d   :  { %p324_p5 = scmp.ne.s32.totalorder %s20_s20, %s323_s29  ;;  %p329_p7 = scmp.lt.s32.totalorder %s323_s29, %s323_s29 }
  0x2f   :  { %p330_p8 = por %p329_p7, %p328_p6 }
  0x31   :  { %p331_p9 = pnand %p330_p8, %p324_p5 }
  0x33   :  { %334 = shalt.err (!%p331_p9)
}
  0x34   :  { %s414_s3 = smov 128   ;;  %s415_s21 = smov 8  }
  0x35   :  { %25 = dma.hbm_to_vmem [thread:$0]  %s541_s0, 256, %s20_s20, [#allocation3], %s414_s3, %s414_s3, %s415_s21  }
  0x36   :  { %s416_s7 = smov [#allocation7]   ;;  %s417_s9 = smov [#allocation10]  }
  0x37   :  { %s42_s8 = sshll.u32 %s416_s7, 4  ;;  %s64_s10 = sshll.u32 %s417_s9, 4  ;;  %s43_s8 = int_to_ptr.vmem [resolvable:$true] %s42_s8  ;;  %s65_s10 = int_to_ptr.vmem [resolvable:$true] %s64_s10 }
  0x38   :  { %s335_s13 = scalar_lea.hbm %s543_s2, 16 }
  0x39   :  { %p336_p10 = scmp.ne.s32.totalorder %s543_s2, %s335_s13  ;;  %p339_p11 = scmp.lt.u32.totalorder %s335_s13, %s543_s2 }
  0x3b   :  { %p341_p12 = pnand %p339_p11, %p336_p10 }
  0x3d   :  { %344 = shalt.err (!%p341_p12)
}
  0x3e   :  { %s345_s0 = scalar_lea.vmem %s43_s8, 16  ;;  %s349_s19 = scalar_lea.vmem %s43_s8, 32 }
  0x3f   :  { %p346_p13 = scmp.ne.s32.totalorder %s43_s8, %s345_s0  ;;  %p350_p0 = scmp.lt.s32.totalorder %s43_s8, %s43_s8 }
  0x40   :  { %p351_p1 = scmp.lt.s32.totalorder %s349_s19, %s345_s0 }
  0x42   :  { %p352_p2 = por %p351_p1, %p350_p0 }
  0x44   :  { %p353_p3 = pnand %p352_p2, %p346_p13 }
  0x46   :  { %356 = shalt.err (!%p353_p3)
}
  0x47   :  { %45 = dma.hbm_to_vmem [thread:$0]  %s543_s2, 16, %s43_s8, [#allocation6]  }
  0x48   :  { %s357_s25 = scalar_lea.hbm %s545_s4, 16 }
  0x49   :  { %p358_p4 = scmp.ne.s32.totalorder %s545_s4, %s357_s25  ;;  %p361_p5 = scmp.lt.u32.totalorder %s357_s25, %s545_s4 }
  0x4b   :  { %p363_p6 = pnand %p361_p5, %p358_p4 }
  0x4d   :  { %366 = shalt.err (!%p363_p6)
}
  0x4e   :  { %s367_s3 = scalar_lea.vmem %s65_s10, 16  ;;  %s371_s21 = scalar_lea.vmem %s65_s10, 32 }
  0x4f   :  { %p368_p7 = scmp.ne.s32.totalorder %s65_s10, %s367_s3  ;;  %p372_p8 = scmp.lt.s32.totalorder %s65_s10, %s65_s10 }
  0x50   :  { %p373_p9 = scmp.lt.s32.totalorder %s371_s21, %s367_s3 }
  0x52   :  { %p374_p10 = por %p373_p9, %p372_p8 }
  0x54   :  { %p375_p11 = pnand %p374_p10, %p368_p7 }
  0x56   :  { %378 = shalt.err (!%p375_p11)
}
  0x57   :  { %67 = dma.hbm_to_vmem [thread:$0]  %s545_s4, 16, %s65_s10, [#allocation9]  }
  0x58   :  { %401 = dma.done.wait [#allocation3], 256  }
  0x59   :  { %402 = vsyncadd [#allocation3], 4294967040 }
  0x5a   :  { %403 = dma.done.wait [#allocation6], 32  }
  0x5b   :  { %404 = vsyncadd [#allocation6], 4294967264 }
  0x5c   :  { %405 = dma.done.wait [#allocation9], 272  }
  0x5d   :  { %406 = vsyncadd [#allocation9], 4294967024  ;;  %vm88_vm0 = vcmask 261120   ;;  %v84_v0 = vld [vmem:[#allocation2] sm:$0xff]  ;;  %v85_v1 = vld [vmem:[#allocation2 + $0x8] sm:$0xff]  ;;  %v418_v15 = vmov 0.0  }
  0x5e   :  { %v89_v2 = vsel %vm88_vm0, %v84_v0, 0.0  ;;  %v92_v3 = vsel %vm88_vm0, %v85_v1, 0.0  ;;  %v263_v14 = vld [vmem:[#allocation8] sm:$0xff]   ;;  %243 = vmatprep.subr.bf16.mxu0 %v418_v15  ;;  %v264_v16 = vld [vmem:[#allocation8 + $0x8] sm:$0xff]   ;;  %vm419_vm1 = vmmov 0   ;;  %vm208_vm2 = vcmask 781312  }
  0x5f   :  { %90 = vadd.xlane.f32.xlu0 %v89_v2  ;;  %244 = vmatpush3.bf16.msra.mxu0 %v263_v14  ;;  %v230_v25 = vld [vmem:[#allocation5] ss:$0 sm:$0xff]  ;;  %v231_v29 = vld [vmem:[#allocation7] ss:$0 sm:$0xff]  ;;  %v232_v34 = vld [vmem:[#allocation10] ss:$0 sm:$0xff] }
  0x60   :  { %247 = vmatprep.mubr.msk.bf16.mxu0 %vm419_vm1, %v418_v15  ;;  %245 = vmatprep.subr.bf16.mxu0 %v418_v15  ;;  %s420_s4 = smov [#allocation11]  }
  0x61   :  { %s216_s6 = sshll.u32 %s420_s4, 4  ;;  %s217_s6 = int_to_ptr.vmem [resolvable:$true] %s216_s6 }
  0x62   :  { %s379_s7 = scalar_lea.vmem %s217_s6, 128  ;;  %p384_p13 = scmp.lt.s32.totalorder %s217_s6, %s217_s6 }
  0x63   :  { %93 = vadd.xlane.f32.xlu0 %v92_v3  ;;  %246 = vmatpush3.bf16.msra.mxu0 %v264_v16  ;;  %p380_p12 = scmp.ne.s32.totalorder %s217_s6, %s379_s7  ;;  %p385_p0 = scmp.lt.s32.totalorder %s379_s7, %s379_s7 }
  0x65   :  { %p386_p1 = por %p385_p0, %p384_p13 }
  0x67   :  { %p387_p2 = pnand %p386_p1, %p380_p12 }
  0xec   :  { %v91_v4 = vpop.xlane.xlu0 %90 }
  0xed   :  { %v96_v5 = vmul.f32 0.03125, %v91_v4 }
  0xef   :  { %v98_v6 = vsub.f32 %v84_v0, %v96_v5 }
  0xf0   :  { %v94_v7 = vpop.xlane.xlu0 %93 }
  0xf1   :  { %v97_v8 = vmul.f32 0.03125, %v94_v7  ;;  %v100_v9 = vmul.f32 %v98_v6, %v98_v6 }
  0xf3   :  { %v99_v10 = vsub.f32 %v85_v1, %v97_v8  ;;  %v102_v11 = vsel %vm88_vm0, %v100_v9, 0.0 }
  0xf4   :  { %103 = vadd.xlane.f32.xlu1 %v102_v11 }
  0xf5   :  { %v101_v12 = vmul.f32 %v99_v10, %v99_v10 }
  0xf7   :  { %v105_v13 = vsel %vm88_vm0, %v101_v12, 0.0 }
  0xf8   :  { %106 = vadd.xlane.f32.xlu1 %v105_v13 }
 0x181   :  { %v104_v17 = vpop.xlane.xlu1 %103 }
 0x182   :  { %v108_v18 = vmul.f32 0.03125, %v104_v17 }
 0x184   :  { %v110_v19 = vadd.f32 1e-05, %v108_v18 }
 0x185   :  { %v107_v20 = vpop.xlane.xlu1 %106 }
 0x186   :  { %265 = vrsqrt.f32 %v110_v19  ;;  %v109_v21 = vmul.f32 0.03125, %v107_v20 }
 0x188   :  { %v111_v22 = vadd.f32 1e-05, %v109_v21 }
 0x18a   :  { %267 = vrsqrt.f32 %v111_v22 }
 0x190   :  { %v266_v23 = vpop.eup %265 }
 0x191   :  { %v114_v24 = vmul.f32 %v266_v23, %v98_v6 }
 0x193   :  { %v122_v28 = vmul.f32 %v230_v25, %v114_v24 }
 0x194   :  { %v268_v26 = vpop.eup %267 }
 0x195   :  { %v115_v27 = vmul.f32 %v268_v26, %v99_v10  ;;  %v130_v31 = vadd.f32 %v231_v29, %v122_v28 }
 0x197   :  { %v123_v30 = vmul.f32 %v230_v25, %v115_v27 }
 0x199   :  { %v131_v32 = vadd.f32 %v231_v29, %v123_v30 }
 0x19b   :  { %v132_v33 = vpack.c.bf16 %v131_v32, %v130_v31 }
 0x19d   :  { %248 = vmatmul.mubr.msk.bf16.vlgmr.msra.gmra.mrb[0].mxu0 %vm88_vm0, %v132_v33 }
 0x270   :  { %v193_v35 = vpop.f32.mrb[0].mxu0 }
 0x271   :  { %v194_v36 = vadd.f32 %v232_v34, %v193_v35  ;;  %v249_v37 = vpop.f32.mrb[1].mxu0 }
 0x272   :  { %v196_v38 = vpop.f32.mrb[2].mxu0 }
 0x273   :  { %v238_v39 = vpack.c.bf16 %v194_v36, %v194_v36  ;;  %v197_v40 = vadd.f32 %v232_v34, %v196_v38  ;;  %v250_v41 = vpop.f32.mrb[3].mxu0 }
 0x275   :  { %v239_v42 = vpack.c.bf16 %v197_v40, %v197_v40  ;;  %209 = vst.msk [vmem:[#allocation11] sm:$0xf] %vm208_vm2, %v238_v39 }
 0x277   :  { %210 = vst.msk [vmem:[#allocation11 + $0x4] sm:$0xf] %vm208_vm2, %v239_v42 }
 0x278   :  { %390 = shalt.err (!%p387_p2)
}
 0x279   :  { %s391_s10 = scalar_lea.hbm %s546_s5, 128 }
 0x27a   :  { %p392_p3 = scmp.ne.s32.totalorder %s546_s5, %s391_s10  ;;  %p395_p4 = scmp.lt.u32.totalorder %s391_s10, %s546_s5 }
 0x27c   :  { %p397_p5 = pnand %p395_p4, %p392_p3 }
 0x27e   :  { %400 = shalt.err (!%p397_p5)
}
 0x27f   :  { %222 = dma.vmem_to_hbm [thread:$0]  %s217_s6, 128, %s546_s5, [#allocation4], %s411_s1, %s411_s1, %s412_s16  }
 0x280   :  { %407 = dma.done.wait [#allocation4], 128  }
 0x281   :  { %408 = vsyncadd [#allocation4], 4294967168 }
 0x282   :  { %226 = vsyncpa [#allocation3], 1 }
 0x283   :  { %227 = vsyncpa [#allocation6], 1 }
 0x284   :  { %228 = vsyncpa [#allocation9], 1 }
 0x285   :  { %229 = vsyncpa [#allocation4], 1 }

// kernel: conformer_encoder.24
= control target key start
LH: loop header
LB: loop body
LE: loop exit
PB: predicated region body
PF: predicated region fallthrough
CT: control target
= control target key end

     0   :  { %12 = vsyncpa [#allocation3], 0  ;;  %s850_s0 = inlined_call_operand.hbm [shape: f32[16,32], index: 0, kind: input, shape index: {}]   ;;  %s851_s1 = inlined_call_operand.hbm [shape: f32[1,32], index: 1, kind: input, shape index: {}]   ;;  %s852_s2 = inlined_call_operand.hbm [shape: f32[1,32], index: 2, kind: input, shape index: {}]   ;;  %s853_s3 = inlined_call_operand.hbm [shape: bf16[32,128], index: 3, kind: input, shape index: {}]   ;;  %s854_s4 = inlined_call_operand.hbm [shape: f32[1,128], index: 4, kind: input, shape index: {}]   ;;  %s855_s5 = inlined_call_operand.hbm [shape: bf16[128,32], index: 5, kind: input, shape index: {}]   ;;  %s856_s6 = inlined_call_operand.hbm [shape: f32[1,32], index: 6, kind: input, shape index: {}]   ;;  %s857_s7 = inlined_call_operand.hbm [shape: f32[16,32], index: 7, kind: output, shape index: {}]  }
   0x1   :  { %13 = vsyncpa [#allocation6], 0 }
   0x2   :  { %14 = vsyncpa [#allocation9], 0 }
   0x3   :  { %15 = vsyncpa [#allocation12], 0 }
   0x4   :  { %16 = vsyncpa [#allocation4], 0  ;;  %s663_s24 = smov [#allocation5]   ;;  %s664_s26 = smov [#allocation8]  }
   0x5   :  { %s35_s25 = sshll.u32 %s663_s24, 4  ;;  %s54_s27 = sshll.u32 %s664_s26, 4  ;;  %s36_s25 = int_to_ptr.vmem [resolvable:$true] %s35_s25  ;;  %s717_s27 = int_to_ptr.vmem [resolvable:$true] %s54_s27 }
   0x6   :  { %s477_s30 = scalar_lea.hbm %s851_s1, 16 }
   0x7   :  { %p478_p0 = scmp.ne.s32.totalorder %s851_s1, %s477_s30  ;;  %p481_p1 = scmp.lt.u32.totalorder %s477_s30, %s851_s1 }
   0x9   :  { %p483_p2 = pnand %p481_p1, %p478_p0 }
   0xb   :  { %486 = shalt.err (!%p483_p2)
}
   0xc   :  { %s487_s12 = scalar_lea.vmem %s36_s25, 16  ;;  %s491_s13 = scalar_lea.vmem %s36_s25, 32 }
   0xd   :  { %p488_p3 = scmp.ne.s32.totalorder %s36_s25, %s487_s12  ;;  %p492_p4 = scmp.lt.s32.totalorder %s36_s25, %s36_s25 }
   0xe   :  { %p493_p5 = scmp.lt.s32.totalorder %s491_s13, %s487_s12 }
  0x10   :  { %p494_p6 = por %p493_p5, %p492_p4 }
  0x12   :  { %p495_p7 = pnand %p494_p6, %p488_p3 }
  0x14   :  { %498 = shalt.err (!%p495_p7)
}
  0x15   :  { %38 = dma.hbm_to_vmem [thread:$0]  %s851_s1, 16, %s36_s25, [#allocation6]  }
  0x16   :  { %s499_s18 = scalar_lea.hbm %s853_s3, 256 }
  0x17   :  { %p500_p8 = scmp.ne.s32.totalorder %s853_s3, %s499_s18  ;;  %p503_p9 = scmp.lt.u32.totalorder %s499_s18, %s853_s3 }
  0x19   :  { %p505_p10 = pnand %p503_p9, %p500_p8 }
  0x1b   :  { %508 = shalt.err (!%p505_p10)
}
  0x1c   :  { %s509_s23 = scalar_lea.vmem %s717_s27, 256  ;;  %p514_p12 = scmp.lt.s32.totalorder %s717_s27, %s717_s27 }
  0x1d   :  { %p510_p11 = scmp.ne.s32.totalorder %s717_s27, %s509_s23  ;;  %p515_p13 = scmp.lt.s32.totalorder %s509_s23, %s509_s23 }
  0x1f   :  { %p516_p0 = por %p515_p13, %p514_p12 }
  0x21   :  { %p517_p1 = pnand %p516_p0, %p510_p11 }
  0x23   :  { %520 = shalt.err (!%p517_p1)
}
  0x24   :  { %s665_s1 = smov 64   ;;  %s666_s24 = smov 4  }
  0x25   :  { %60 = dma.hbm_to_vmem [thread:$0]  %s853_s3, 256, %s717_s27, [#allocation9], %s665_s1, %s665_s1, %s666_s24  }
  0x26   :  { %s667_s28 = smov [#allocation11]   ;;  %s668_s30 = smov [#allocation2]  }
  0x27   :  { %s76_s29 = sshll.u32 %s667_s28, 4  ;;  %s22_s8 = sshll.u32 %s668_s30, 4  ;;  %s77_s29 = int_to_ptr.vmem [resolvable:$true] %s76_s29  ;;  %s748_s8 = int_to_ptr.vmem [resolvable:$true] %s22_s8 }
  0x28   :  { %s521_s11 = scalar_lea.hbm %s855_s5, 1024 }
  0x29   :  { %p522_p2 = scmp.ne.s32.totalorder %s855_s5, %s521_s11  ;;  %p525_p3 = scmp.lt.u32.totalorder %s521_s11, %s855_s5 }
  0x2b   :  { %p527_p4 = pnand %p525_p3, %p522_p2 }
  0x2d   :  { %530 = shalt.err (!%p527_p4)
}
  0x2e   :  { %s531_s3 = scalar_lea.vmem %s77_s29, 1024  ;;  %p536_p6 = scmp.lt.s32.totalorder %s77_s29, %s77_s29 }
  0x2f   :  { %p532_p5 = scmp.ne.s32.totalorder %s77_s29, %s531_s3  ;;  %p537_p7 = scmp.lt.s32.totalorder %s531_s3, %s531_s3 }
  0x31   :  { %p538_p8 = por %p537_p7, %p536_p6 }
  0x33   :  { %p539_p9 = pnand %p538_p8, %p532_p5 }
  0x35   :  { %542 = shalt.err (!%p539_p9)
}
  0x36   :  { %82 = dma.hbm_to_vmem [thread:$0]  %s855_s5, 1024, %s77_s29, [#allocation12], %s665_s1, %s665_s1, %s666_s24  }
  0x37   :  { %s543_s19 = scalar_lea.hbm %s850_s0, 256 }
  0x38   :  { %p544_p10 = scmp.ne.s32.totalorder %s850_s0, %s543_s19  ;;  %p547_p11 = scmp.lt.u32.totalorder %s543_s19, %s850_s0 }
  0x3a   :  { %p549_p12 = pnand %p547_p11, %p544_p10 }
  0x3c   :  { %552 = shalt.err (!%p549_p12)
}
  0x3d   :  { %s553_s25 = scalar_lea.vmem %s748_s8, 256  ;;  %p558_p0 = scmp.lt.s32.totalorder %s748_s8, %s748_s8 }
  0x3e   :  { %p554_p13 = scmp.ne.s32.totalorder %s748_s8, %s553_s25  ;;  %p559_p1 = scmp.lt.s32.totalorder %s553_s25, %s553_s25 }
  0x40   :  { %p560_p2 = por %p559_p1, %p558_p0 }
  0x42   :  { %p561_p3 = pnand %p560_p2, %p554_p13 }
  0x44   :  { %564 = shalt.err (!%p561_p3)
}
  0x45   :  { %s669_s5 = smov 128   ;;  %s670_s1 = smov 8  }
  0x46   :  { %28 = dma.hbm_to_vmem [thread:$0]  %s850_s0, 256, %s748_s8, [#allocation3], %s669_s5, %s669_s5, %s670_s1  }
  0x47   :  { %s671_s28 = smov [#allocation7]   ;;  %s672_s30 = smov [#allocation10]  }
  0x48   :  { %s45_s29 = sshll.u32 %s671_s28, 4  ;;  %s67_s9 = sshll.u32 %s672_s30, 4  ;;  %s46_s29 = int_to_ptr.vmem [resolvable:$true] %s45_s29  ;;  %s68_s9 = int_to_ptr.vmem [resolvable:$true] %s67_s9 }
  0x49   :  { %s565_s12 = scalar_lea.hbm %s852_s2, 16 }
  0x4a   :  { %p566_p4 = scmp.ne.s32.totalorder %s852_s2, %s565_s12  ;;  %p569_p5 = scmp.lt.u32.totalorder %s565_s12, %s852_s2 }
  0x4c   :  { %p571_p6 = pnand %p569_p5, %p566_p4 }
  0x4e   :  { %574 = shalt.err (!%p571_p6)
}
  0x4f   :  { %s575_s0 = scalar_lea.vmem %s46_s29, 16  ;;  %s579_s8 = scalar_lea.vmem %s46_s29, 32 }
  0x50   :  { %p576_p7 = scmp.ne.s32.totalorder %s46_s29, %s575_s0  ;;  %p580_p8 = scmp.lt.s32.totalorder %s46_s29, %s46_s29 }
  0x51   :  { %p581_p9 = scmp.lt.s32.totalorder %s579_s8, %s575_s0 }
  0x53   :  { %p582_p10 = por %p581_p9, %p580_p8 }
  0x55   :  { %p583_p11 = pnand %p582_p10, %p576_p7 }
  0x57   :  { %586 = shalt.err (!%p583_p11)
}
  0x58   :  { %48 = dma.hbm_to_vmem [thread:$0]  %s852_s2, 16, %s46_s29, [#allocation6]  }
  0x59   :  { %s587_s19 = scalar_lea.hbm %s854_s4, 16 }
  0x5a   :  { %p588_p12 = scmp.ne.s32.totalorder %s854_s4, %s587_s19  ;;  %p591_p13 = scmp.lt.u32.totalorder %s587_s19, %s854_s4 }
  0x5c   :  { %p593_p0 = pnand %p591_p13, %p588_p12 }
  0x5e   :  { %596 = shalt.err (!%p593_p0)
}
  0x5f   :  { %s597_s25 = scalar_lea.vmem %s68_s9, 16  ;;  %s601_s24 = scalar_lea.vmem %s68_s9, 32 }
  0x60   :  { %p598_p1 = scmp.ne.s32.totalorder %s68_s9, %s597_s25  ;;  %p602_p2 = scmp.lt.s32.totalorder %s68_s9, %s68_s9 }
  0x61   :  { %p603_p3 = scmp.lt.s32.totalorder %s601_s24, %s597_s25 }
  0x63   :  { %p604_p4 = por %p603_p3, %p602_p2 }
  0x65   :  { %p605_p5 = pnand %p604_p4, %p598_p1 }
  0x67   :  { %608 = shalt.err (!%p605_p5)
}
  0x68   :  { %70 = dma.hbm_to_vmem [thread:$0]  %s854_s4, 16, %s68_s9, [#allocation9]  }
  0x69   :  { %s673_s28 = smov [#allocation13]   ;;  %s609_s11 = scalar_lea.hbm %s856_s6, 16 }
  0x6a   :  { %s89_s29 = sshll.u32 %s673_s28, 4  ;;  %p610_p6 = scmp.ne.s32.totalorder %s856_s6, %s609_s11  ;;  %s90_s29 = int_to_ptr.vmem [resolvable:$true] %s89_s29 }
  0x6b   :  { %p613_p7 = scmp.lt.u32.totalorder %s609_s11, %s856_s6 }
  0x6d   :  { %p615_p8 = pnand %p613_p7, %p610_p6 }
  0x6f   :  { %618 = shalt.err (!%p615_p8)
}
  0x70   :  { %s619_s3 = scalar_lea.vmem %s90_s29, 16  ;;  %s623_s4 = scalar_lea.vmem %s90_s29, 32 }
  0x71   :  { %p620_p9 = scmp.ne.s32.totalorder %s90_s29, %s619_s3  ;;  %p624_p10 = scmp.lt.s32.totalorder %s90_s29, %s90_s29 }
  0x72   :  { %p625_p11 = scmp.lt.s32.totalorder %s623_s4, %s619_s3 }
  0x74   :  { %p626_p12 = por %p625_p11, %p624_p10 }
  0x76   :  { %p627_p13 = pnand %p626_p12, %p620_p9 }
  0x78   :  { %630 = shalt.err (!%p627_p13)
}
  0x79   :  { %92 = dma.hbm_to_vmem [thread:$0]  %s856_s6, 16, %s90_s29, [#allocation12]  }
  0x7a   :  { %653 = dma.done.wait [#allocation3], 256  }
  0x7b   :  { %654 = vsyncadd [#allocation3], 4294967040 }
  0x7c   :  { %655 = dma.done.wait [#allocation6], 32  }
  0x7d   :  { %656 = vsyncadd [#allocation6], 4294967264 }
  0x7e   :  { %657 = dma.done.wait [#allocation9], 272  }
  0x7f   :  { %658 = vsyncadd [#allocation9], 4294967024 }
  0x80   :  { %659 = dma.done.wait [#allocation12], 1040  }
  0x81   :  { %660 = vsyncadd [#allocation12], 4294966256  ;;  %vm119_vm0 = vcmask 261120   ;;  %v818_v0 = vld [vmem:[#allocation2] sm:$0xff]  ;;  %v820_v1 = vld [vmem:[#allocation2 + $0x8] sm:$0xff]  ;;  %v674_v15 = vmov 0.0  }
  0x82   :  { %v120_v2 = vsel %vm119_vm0, %v818_v0, 0.0  ;;  %v123_v3 = vsel %vm119_vm0, %v820_v1, 0.0  ;;  %v455_v14 = vld [vmem:[#allocation8] sm:$0xff]   ;;  %413 = vmatprep.subr.bf16.mxu0 %v674_v15  ;;  %421 = vmatprep.subr.bf16.mxu1 %v674_v15  ;;  %v456_v16 = vld [vmem:[#allocation8 + $0x8] sm:$0xff]   ;;  %vm675_vm1 = vmmov 0   ;;  %v457_v34 = vld [vmem:[#allocation11] sm:$0xff]  }
  0x83   :  { %121 = vadd.xlane.f32.xlu0 %v120_v2  ;;  %414 = vmatpush3.bf16.msra.mxu0 %v455_v14  ;;  %v384_v25 = vld [vmem:[#allocation5] ss:$0 sm:$0xff]  ;;  %v385_v29 = vld [vmem:[#allocation7] ss:$0 sm:$0xff]  ;;  %v459_v36 = vld [vmem:[#allocation11 + $0x10] sm:$0xff]   ;;  %s676_s6 = smov [#allocation14]  }
  0x84   :  { %417 = vmatprep.mubr.msk.bf16.mxu0 %vm675_vm1, %v674_v15  ;;  %415 = vmatprep.subr.bf16.mxu0 %v674_v15  ;;  %v458_v35 = vld [vmem:[#allocation11 + $0x8] sm:$0xff]   ;;  %v460_v37 = vld [vmem:[#allocation11 + $0x18] sm:$0xff]   ;;  %v461_v38 = vld [vmem:[#allocation11 + $0x20] sm:$0xff]   ;;  %s369_s8 = sshll.u32 %s676_s6, 4  ;;  %s370_s8 = int_to_ptr.vmem [resolvable:$true] %s369_s8 }
  0x85   :  { %437 = vmatprep.mubr.msk.bf16.mxu1 %vm675_vm1, %v674_v15  ;;  %422 = vmatpush3.bf16.msra.mxu1 %v457_v34  ;;  %v462_v39 = vld [vmem:[#allocation11 + $0x28] sm:$0xff]   ;;  %v463_v40 = vld [vmem:[#allocation11 + $0x30] sm:$0xff]   ;;  %v464_v41 = vld [vmem:[#allocation11 + $0x38] sm:$0xff]   ;;  %s631_s27 = scalar_lea.vmem %s370_s8, 256  ;;  %p636_p1 = scmp.lt.s32.totalorder %s370_s8, %s370_s8 }
  0x86   :  { %423 = vmatprep.subr.bf16.mxu1 %v674_v15  ;;  %v386_v42 = vld [vmem:[#allocation10] ss:$0 sm:$0xff]  ;;  %v392_v60 = vld [vmem:[#allocation13] ss:$0 sm:$0xff]  ;;  %p632_p0 = scmp.ne.s32.totalorder %s370_s8, %s631_s27  ;;  %p637_p2 = scmp.lt.s32.totalorder %s631_s27, %s631_s27 }
  0x87   :  { %124 = vadd.xlane.f32.xlu0 %v123_v3  ;;  %416 = vmatpush3.bf16.msra.mxu0 %v456_v16 }
  0x88   :  { %p638_p3 = por %p637_p2, %p636_p1 }
  0x89   :  { %424 = vmatpush3.bf16.msra.mxu1 %v458_v35 }
  0x8a   :  { %425 = vmatprep.subr.bf16.mxu1 %v674_v15  ;;  %p639_p4 = pnand %p638_p3, %p632_p0 }
  0x8d   :  { %426 = vmatpush3.bf16.msra.mxu1 %v459_v36 }
  0x8e   :  { %427 = vmatprep.subr.bf16.mxu1 %v674_v15 }
  0x91   :  { %428 = vmatpush3.bf16.msra.mxu1 %v460_v37 }
  0x92   :  { %429 = vmatprep.subr.bf16.mxu1 %v674_v15 }
  0x95   :  { %430 = vmatpush3.bf16.msra.mxu1 %v461_v38 }
  0x96   :  { %431 = vmatprep.subr.bf16.mxu1 %v674_v15 }
  0x99   :  { %432 = vmatpush3.bf16.msra.mxu1 %v462_v39 }
  0x9a   :  { %433 = vmatprep.subr.bf16.mxu1 %v674_v15 }
  0x9d   :  { %434 = vmatpush3.bf16.msra.mxu1 %v463_v40 }
  0x9e   :  { %435 = vmatprep.subr.bf16.mxu1 %v674_v15 }
  0xa1   :  { %436 = vmatpush3.bf16.msra.mxu1 %v464_v41 }
 0x110   :  { %v122_v4 = vpop.xlane.xlu0 %121 }
 0x111   :  { %v127_v5 = vmul.f32 0.03125, %v122_v4 }
 0x113   :  { %v129_v6 = vsub.f32 %v818_v0, %v127_v5 }
 0x114   :  { %v125_v7 = vpop.xlane.xlu0 %124 }
 0x115   :  { %v128_v8 = vmul.f32 0.03125, %v125_v7  ;;  %v131_v9 = vmul.f32 %v129_v6, %v129_v6 }
 0x117   :  { %v130_v10 = vsub.f32 %v820_v1, %v128_v8  ;;  %v133_v11 = vsel %vm119_vm0, %v131_v9, 0.0 }
 0x118   :  { %134 = vadd.xlane.f32.xlu1 %v133_v11 }
 0x119   :  { %v132_v12 = vmul.f32 %v130_v10, %v130_v10 }
 0x11b   :  { %v136_v13 = vsel %vm119_vm0, %v132_v12, 0.0 }
 0x11c   :  { %137 = vadd.xlane.f32.xlu1 %v136_v13 }
 0x1a5   :  { %v135_v17 = vpop.xlane.xlu1 %134 }
 0x1a6   :  { %v139_v18 = vmul.f32 0.03125, %v135_v17 }
 0x1a8   :  { %v141_v19 = vadd.f32 1e-05, %v139_v18 }
 0x1a9   :  { %v138_v20 = vpop.xlane.xlu1 %137 }
 0x1aa   :  { %465 = vrsqrt.f32 %v141_v19  ;;  %v140_v21 = vmul.f32 0.03125, %v138_v20 }
 0x1ac   :  { %v142_v22 = vadd.f32 1e-05, %v140_v21 }
 0x1ae   :  { %467 = vrsqrt.f32 %v142_v22 }
 0x1b4   :  { %v466_v23 = vpop.eup %465 }
 0x1b5   :  { %v145_v24 = vmul.f32 %v466_v23, %v129_v6 }
 0x1b7   :  { %v153_v28 = vmul.f32 %v384_v25, %v145_v24 }
 0x1b8   :  { %v468_v26 = vpop.eup %467 }
 0x1b9   :  { %v146_v27 = vmul.f32 %v468_v26, %v130_v10  ;;  %v161_v31 = vadd.f32 %v385_v29, %v153_v28 }
 0x1bb   :  { %v154_v30 = vmul.f32 %v384_v25, %v146_v27 }
 0x1bd   :  { %v162_v32 = vadd.f32 %v385_v29, %v154_v30 }
 0x1bf   :  { %v163_v33 = vpack.c.bf16 %v162_v32, %v161_v31 }
 0x1c1   :  { %418 = vmatmul.mubr.msk.bf16.vlgmr.msra.gmra.mrb[0].mxu0 %vm119_vm0, %v163_v33 }
 0x294   :  { %v224_v43 = vpop.f32.mrb[0].mxu0 }
 0x295   :  { %v225_v44 = vadd.f32 %v386_v42, %v224_v43  ;;  %v419_v45 = vpop.f32.mrb[1].mxu0 }
 0x296   :  { %v227_v46 = vpop.f32.mrb[2].mxu0 }
 0x297   :  { %v390_v47 = vmul.f32 -1.442695, %v225_v44  ;;  %v228_v48 = vadd.f32 %v386_v42, %v227_v46  ;;  %v420_v49 = vpop.f32.mrb[3].mxu0 }
 0x299   :  { %469 = vpow2.f32 %v390_v47  ;;  %v391_v50 = vmul.f32 -1.442695, %v228_v48 }
 0x29b   :  { %471 = vpow2.f32 %v391_v50 }
 0x2a3   :  { %v470_v51 = vpop.eup %469 }
 0x2a4   :  { %v237_v52 = vadd.f32 1.0, %v470_v51 }
 0x2a5   :  { %v472_v53 = vpop.eup %471 }
 0x2a6   :  { %473 = vrcp.f32 %v237_v52  ;;  %v238_v54 = vadd.f32 1.0, %v472_v53 }
 0x2a8   :  { %475 = vrcp.f32 %v238_v54 }
 0x2b0   :  { %v474_v55 = vpop.eup %473 }
 0x2b1   :  { %v243_v57 = vmul.f32 %v474_v55, %v225_v44 }
 0x2b2   :  { %v476_v56 = vpop.eup %475 }
 0x2b3   :  { %v244_v58 = vmul.f32 %v476_v56, %v228_v48 }
 0x2b5   :  { %v245_v59 = vpack.c.bf16 %v244_v58, %v243_v57 }
 0x2b7   :  { %438 = vmatmul.mubr.bf16.vlgmr.msra.gmra.mrb[0].mxu1 %v245_v59 }
 0x38a   :  { %v351_v61 = vpop.f32.mrb[0].mxu1 }
 0x38b   :  { %v352_v62 = vadd.f32 %v392_v60, %v351_v61  ;;  %v439_v63 = vpop.f32.mrb[1].mxu1 }
 0x38c   :  { %v354_v2 = vpop.f32.mrb[2].mxu1 }
 0x38d   :  { %v358_v3 = vmul.f32 0.5, %v352_v62  ;;  %v355_v4 = vadd.f32 %v392_v60, %v354_v2  ;;  %v440_v5 = vpop.f32.mrb[3].mxu1 }
 0x38f   :  { %v360_v6 = vadd.f32 %v358_v3, %v818_v0  ;;  %v359_v7 = vmul.f32 0.5, %v355_v4 }
 0x391   :  { %362 = vst.msk [vmem:[#allocation14] sm:$0xff] %vm119_vm0, %v360_v6  ;;  %v361_v8 = vadd.f32 %v359_v7, %v820_v1 }
 0x393   :  { %363 = vst.msk [vmem:[#allocation14 + $0x8] sm:$0xff] %vm119_vm0, %v361_v8 }
 0x394   :  { %642 = shalt.err (!%p639_p4)
}
 0x395   :  { %s643_s18 = scalar_lea.hbm %s857_s7, 256 }
 0x396   :  { %p644_p5 = scmp.ne.s32.totalorder %s857_s7, %s643_s18  ;;  %p647_p6 = scmp.lt.u32.totalorder %s643_s18, %s857_s7 }
 0x398   :  { %p649_p7 = pnand %p647_p6, %p644_p5 }
 0x39a   :  { %652 = shalt.err (!%p649_p7)
}
 0x39b   :  { %375 = dma.vmem_to_hbm [thread:$0]  %s370_s8, 256, %s857_s7, [#allocation4], %s669_s5, %s669_s5, %s670_s1  }
 0x39c   :  { %661 = dma.done.wait [#allocation4], 256  }
 0x39d   :  { %662 = vsyncadd [#allocation4], 4294967040 }
 0x39e   :  { %379 = vsyncpa [#allocation3], 1 }
 0x39f   :  { %380 = vsyncpa [#allocation6], 1 }
 0x3a0   :  { %381 = vsyncpa [#allocation9], 1 }
 0x3a1   :  { %382 = vsyncpa [#allocation12], 1 }
 0x3a2   :  { %383 = vsyncpa [#allocation4], 1 }

// kernel: conformer_encoder.26
= control target key start
LH: loop header
LB: loop body
LE: loop exit
PB: predicated region body
PF: predicated region fallthrough
CT: control target
= control target key end

     0   :  { %8 = vsyncpa [#allocation4], 0  ;;  %s352_s0 = inlined_call_operand.hbm [shape: bf16[8,32], index: 0, kind: input, shape index: {}]   ;;  %s353_s1 = inlined_call_operand.hbm [shape: bf16[32,32], index: 1, kind: input, shape index: {}]   ;;  %s354_s2 = inlined_call_operand.hbm [shape: f32[1,32], index: 2, kind: input, shape index: {}]   ;;  %s355_s3 = inlined_call_operand.hbm [shape: bf16[8,32], index: 3, kind: output, shape index: {}]  }
   0x1   :  { %9 = vsyncpa [#allocation7], 0 }
   0x2   :  { %10 = vsyncpa [#allocation5], 0  ;;  %s273_s12 = smov [#allocation6]   ;;  %s179_s16 = scalar_lea.hbm %s353_s1, 256 }
   0x3   :  { %s26_s13 = sshll.u32 %s273_s12, 4  ;;  %p180_p0 = scmp.ne.s32.totalorder %s353_s1, %s179_s16  ;;  %s27_s13 = int_to_ptr.vmem [resolvable:$true] %s26_s13 }
   0x4   :  { %p183_p1 = scmp.lt.u32.totalorder %s179_s16, %s353_s1 }
   0x6   :  { %p185_p2 = pnand %p183_p1, %p180_p0 }
   0x8   :  { %188 = shalt.err (!%p185_p2)
}
   0x9   :  { %s189_s21 = scalar_lea.vmem %s27_s13, 256  ;;  %p194_p4 = scmp.lt.s32.totalorder %s27_s13, %s27_s13 }
   0xa   :  { %p190_p3 = scmp.ne.s32.totalorder %s27_s13, %s189_s21  ;;  %p195_p5 = scmp.lt.s32.totalorder %s189_s21, %s189_s21 }
   0xc   :  { %p196_p6 = por %p195_p5, %p194_p4 }
   0xe   :  { %p197_p7 = pnand %p196_p6, %p190_p3 }
  0x10   :  { %200 = shalt.err (!%p197_p7)
}
  0x11   :  { %s274_s22 = smov 64   ;;  %s275_s23 = smov 4  }
  0x12   :  { %32 = dma.hbm_to_vmem [thread:$0]  %s353_s1, 256, %s27_s13, [#allocation7], %s274_s22, %s274_s22, %s275_s23  }
  0x13   :  { %s276_s26 = smov [#allocation3]   ;;  %s277_s28 = smov [#allocation8]  }
  0x14   :  { %s17_s27 = sshll.u32 %s276_s26, 4  ;;  %s39_s29 = sshll.u32 %s277_s28, 4  ;;  %s18_s27 = int_to_ptr.vmem [resolvable:$true] %s17_s27  ;;  %s40_s29 = int_to_ptr.vmem [resolvable:$true] %s39_s29 }
  0x15   :  { %s201_s5 = scalar_lea.hbm %s352_s0, 64 }
  0x16   :  { %p202_p8 = scmp.ne.s32.totalorder %s352_s0, %s201_s5  ;;  %p205_p9 = scmp.lt.u32.totalorder %s201_s5, %s352_s0 }
  0x18   :  { %p207_p10 = pnand %p205_p9, %p202_p8 }
  0x1a   :  { %210 = shalt.err (!%p207_p10)
}
  0x1b   :  { %s211_s1 = scalar_lea.vmem %s18_s27, 64  ;;  %p216_p12 = scmp.lt.s32.totalorder %s18_s27, %s18_s27 }
  0x1c   :  { %p212_p11 = scmp.ne.s32.totalorder %s18_s27, %s211_s1  ;;  %p217_p13 = scmp.lt.s32.totalorder %s211_s1, %s211_s1 }
  0x1e   :  { %p218_p0 = por %p217_p13, %p216_p12 }
  0x20   :  { %p219_p1 = pnand %p218_p0, %p212_p11 }
  0x22   :  { %222 = shalt.err (!%p219_p1)
}
  0x23   :  { %20 = dma.hbm_to_vmem [thread:$0]  %s352_s0, 64, %s18_s27, [#allocation4]  }
  0x24   :  { %s223_s14 = scalar_lea.hbm %s354_s2, 16 }
  0x25   :  { %p224_p2 = scmp.ne.s32.totalorder %s354_s2, %s223_s14  ;;  %p227_p3 = scmp.lt.u32.totalorder %s223_s14, %s354_s2 }
  0x27   :  { %p229_p4 = pnand %p227_p3, %p224_p2 }
  0x29   :  { %232 = shalt.err (!%p229_p4)
}
  0x2a   :  { %s233_s19 = scalar_lea.vmem %s40_s29, 16  ;;  %s237_s20 = scalar_lea.vmem %s40_s29, 32 }
  0x2b   :  { %p234_p5 = scmp.ne.s32.totalorder %s40_s29, %s233_s19  ;;  %p238_p6 = scmp.lt.s32.totalorder %s40_s29, %s40_s29 }
  0x2c   :  { %p239_p7 = scmp.lt.s32.totalorder %s237_s20, %s233_s19 }
  0x2e   :  { %p240_p8 = por %p239_p7, %p238_p6 }
  0x30   :  { %p241_p9 = pnand %p240_p8, %p234_p5 }
  0x32   :  { %244 = shalt.err (!%p241_p9)
}
  0x33   :  { %42 = dma.hbm_to_vmem [thread:$0]  %s354_s2, 16, %s40_s29, [#allocation7]  }
  0x34   :  { %267 = dma.done.wait [#allocation4], 64  }
  0x35   :  { %268 = vsyncadd [#allocation4], 4294967232 }
  0x36   :  { %269 = dma.done.wait [#allocation7], 272  }
  0x37   :  { %270 = vsyncadd [#allocation7], 4294967024  ;;  %vm57_vm0 = vcmask 261120   ;;  %v278_v0 = vmov 0.0   ;;  %vm279_vm1 = vmmov 0   ;;  %v177_v1 = vld [vmem:[#allocation6] sm:$0xff]  }
  0x38   :  { %161 = vmatprep.subr.bf16.mxu0 %v278_v0  ;;  %165 = vmatprep.mubr.msk.bf16.mxu0 %vm279_vm1, %v278_v0  ;;  %58 = vst.msk [vmem:[#allocation2] sm:$0xff] %vm57_vm0, %v278_v0  ;;  %v178_v2 = vld [vmem:[#allocation6 + $0x8] sm:$0xff]   ;;  %v60_v3 = vld [vmem:[#allocation3] sm:$0xf]  ;;  %v157_v10 = vld [vmem:[#allocation8] ss:$0 sm:$0xff] }
  0x39   :  { %162 = vmatpush3.bf16.msra.mxu0 %v177_v1  ;;  %s280_s2 = smov [#allocation9]   ;;  %vm136_vm2 = vcmask 257024  }
  0x3a   :  { %163 = vmatprep.subr.bf16.mxu0 %v278_v0  ;;  %s144_s22 = sshll.u32 %s280_s2, 4  ;;  %s145_s22 = int_to_ptr.vmem [resolvable:$true] %s144_s22 }
  0x3b   :  { %s245_s23 = scalar_lea.vmem %s145_s22, 64  ;;  %p250_p11 = scmp.lt.s32.totalorder %s145_s22, %s145_s22 }
  0x3c   :  { %p246_p10 = scmp.ne.s32.totalorder %s145_s22, %s245_s23  ;;  %p251_p12 = scmp.lt.s32.totalorder %s245_s23, %s245_s23 }
  0x3d   :  { %164 = vmatpush3.bf16.msra.mxu0 %v178_v2 }
  0x3e   :  { %p252_p13 = por %p251_p12, %p250_p11 }
  0x3f   :  { %v59_v4 = vld [vmem:[#allocation2] sm:$0xff] }
  0x40   :  { %166 = vmatmul.mubr.msk.bf16.vlgmr.msra.gmra.mrb[0].mxu0 %vm57_vm0, %v60_v3  ;;  %p253_p0 = pnand %p252_p13, %p246_p10 }
 0x113   :  { %v115_v5 = vpop.f32.mrb[0].mxu0 }
 0x114   :  { %v121_v6 = vadd.f32 %v115_v5, %v59_v4  ;;  %v167_v7 = vpop.f32.mrb[1].mxu0 }
 0x115   :  { %v118_v8 = vpop.f32.mrb[2].mxu0 }
 0x116   :  { %122 = vst.msk [vmem:[#allocation2] sm:$0xff] %vm57_vm0, %v121_v6  ;;  %v168_v9 = vpop.f32.mrb[3].mxu0 }
 0x11d   :  { %v126_v11 = vld [vmem:[#allocation2] sm:$0xff] }
 0x11e   :  { %v134_v12 = vadd.f32 %v157_v10, %v126_v11 }
 0x120   :  { %v135_v13 = vpack.c.bf16 %v134_v12, %v134_v12 }
 0x122   :  { %137 = vst.msk [vmem:[#allocation9] sm:$0xf] %vm136_vm2, %v135_v13 }
 0x123   :  { %256 = shalt.err (!%p253_p0)
}
 0x124   :  { %s257_s26 = scalar_lea.hbm %s355_s3, 64 }
 0x125   :  { %p258_p1 = scmp.ne.s32.totalorder %s355_s3, %s257_s26  ;;  %p261_p2 = scmp.lt.u32.totalorder %s257_s26, %s355_s3 }
 0x127   :  { %p263_p3 = pnand %p261_p2, %p258_p1 }
 0x129   :  { %266 = shalt.err (!%p263_p3)
}
 0x12a   :  { %147 = dma.vmem_to_hbm [thread:$0]  %s145_s22, 64, %s355_s3, [#allocation5]  }
 0x12b   :  { %271 = dma.done.wait [#allocation5], 64  }
 0x12c   :  { %272 = vsyncadd [#allocation5], 4294967232 }
 0x12d   :  { %151 = vsyncpa [#allocation4], 1 }
 0x12e   :  { %152 = vsyncpa [#allocation7], 1 }
 0x12f   :  { %153 = vsyncpa [#allocation5], 1 }

// kernel: conformer_encoder.28
= control target key start
LH: loop header
LB: loop body
LE: loop exit
PB: predicated region body
PF: predicated region fallthrough
CT: control target
= control target key end

     0   :  { %12 = vsyncpa [#allocation3], 0  ;;  %s773_s0 = inlined_call_operand.hbm [shape: f32[16,32], index: 0, kind: input, shape index: {}]   ;;  %s774_s1 = inlined_call_operand.hbm [shape: f32[1,32], index: 1, kind: input, shape index: {}]   ;;  %s775_s2 = inlined_call_operand.hbm [shape: f32[1,32], index: 2, kind: input, shape index: {}]   ;;  %s776_s3 = inlined_call_operand.hbm [shape: bf16[32,32], index: 3, kind: input, shape index: {}]   ;;  %s777_s4 = inlined_call_operand.hbm [shape: f32[1,32], index: 4, kind: input, shape index: {}]   ;;  %s778_s5 = inlined_call_operand.hbm [shape: bf16[32,32], index: 5, kind: input, shape index: {}]   ;;  %s779_s6 = inlined_call_operand.hbm [shape: f32[1,32], index: 6, kind: input, shape index: {}]   ;;  %s780_s7 = inlined_call_operand.hbm [shape: bf16[16,32], index: 7, kind: output, shape index: {}]  }
   0x1   :  { %13 = vsyncpa [#allocation6], 0 }
   0x2   :  { %14 = vsyncpa [#allocation9], 0 }
   0x3   :  { %15 = vsyncpa [#allocation12], 0 }
   0x4   :  { %16 = vsyncpa [#allocation4], 0  ;;  %s594_s24 = smov [#allocation5]   ;;  %s595_s26 = smov [#allocation8]  }
   0x5   :  { %s35_s25 = sshll.u32 %s594_s24, 4  ;;  %s54_s27 = sshll.u32 %s595_s26, 4  ;;  %s36_s25 = int_to_ptr.vmem [resolvable:$true] %s35_s25  ;;  %s648_s27 = int_to_ptr.vmem [resolvable:$true] %s54_s27 }
   0x6   :  { %s408_s30 = scalar_lea.hbm %s774_s1, 16 }
   0x7   :  { %p409_p0 = scmp.ne.s32.totalorder %s774_s1, %s408_s30  ;;  %p412_p1 = scmp.lt.u32.totalorder %s408_s30, %s774_s1 }
   0x9   :  { %p414_p2 = pnand %p412_p1, %p409_p0 }
   0xb   :  { %417 = shalt.err (!%p414_p2)
}
   0xc   :  { %s418_s12 = scalar_lea.vmem %s36_s25, 16  ;;  %s422_s13 = scalar_lea.vmem %s36_s25, 32 }
   0xd   :  { %p419_p3 = scmp.ne.s32.totalorder %s36_s25, %s418_s12  ;;  %p423_p4 = scmp.lt.s32.totalorder %s36_s25, %s36_s25 }
   0xe   :  { %p424_p5 = scmp.lt.s32.totalorder %s422_s13, %s418_s12 }
  0x10   :  { %p425_p6 = por %p424_p5, %p423_p4 }
  0x12   :  { %p426_p7 = pnand %p425_p6, %p419_p3 }
  0x14   :  { %429 = shalt.err (!%p426_p7)
}
  0x15   :  { %38 = dma.hbm_to_vmem [thread:$0]  %s774_s1, 16, %s36_s25, [#allocation6]  }
  0x16   :  { %s430_s18 = scalar_lea.hbm %s776_s3, 256 }
  0x17   :  { %p431_p8 = scmp.ne.s32.totalorder %s776_s3, %s430_s18  ;;  %p434_p9 = scmp.lt.u32.totalorder %s430_s18, %s776_s3 }
  0x19   :  { %p436_p10 = pnand %p434_p9, %p431_p8 }
  0x1b   :  { %439 = shalt.err (!%p436_p10)
}
  0x1c   :  { %s440_s23 = scalar_lea.vmem %s648_s27, 256  ;;  %p445_p12 = scmp.lt.s32.totalorder %s648_s27, %s648_s27 }
  0x1d   :  { %p441_p11 = scmp.ne.s32.totalorder %s648_s27, %s440_s23  ;;  %p446_p13 = scmp.lt.s32.totalorder %s440_s23, %s440_s23 }
  0x1f   :  { %p447_p0 = por %p446_p13, %p445_p12 }
  0x21   :  { %p448_p1 = pnand %p447_p0, %p441_p11 }
  0x23   :  { %451 = shalt.err (!%p448_p1)
}
  0x24   :  { %s596_s1 = smov 64   ;;  %s597_s24 = smov 4  }
  0x25   :  { %60 = dma.hbm_to_vmem [thread:$0]  %s776_s3, 256, %s648_s27, [#allocation9], %s596_s1, %s596_s1, %s597_s24  }
  0x26   :  { %s598_s28 = smov [#allocation11]   ;;  %s599_s30 = smov [#allocation2]  }
  0x27   :  { %s76_s29 = sshll.u32 %s598_s28, 4  ;;  %s22_s8 = sshll.u32 %s599_s30, 4  ;;  %s77_s29 = int_to_ptr.vmem [resolvable:$true] %s76_s29  ;;  %s682_s8 = int_to_ptr.vmem [resolvable:$true] %s22_s8 }
  0x28   :  { %s452_s11 = scalar_lea.hbm %s778_s5, 256 }
  0x29   :  { %p453_p2 = scmp.ne.s32.totalorder %s778_s5, %s452_s11  ;;  %p456_p3 = scmp.lt.u32.totalorder %s452_s11, %s778_s5 }
  0x2b   :  { %p458_p4 = pnand %p456_p3, %p453_p2 }
  0x2d   :  { %461 = shalt.err (!%p458_p4)
}
  0x2e   :  { %s462_s3 = scalar_lea.vmem %s77_s29, 256  ;;  %p467_p6 = scmp.lt.s32.totalorder %s77_s29, %s77_s29 }
  0x2f   :  { %p463_p5 = scmp.ne.s32.totalorder %s77_s29, %s462_s3  ;;  %p468_p7 = scmp.lt.s32.totalorder %s462_s3, %s462_s3 }
  0x31   :  { %p469_p8 = por %p468_p7, %p467_p6 }
  0x33   :  { %p470_p9 = pnand %p469_p8, %p463_p5 }
  0x35   :  { %473 = shalt.err (!%p470_p9)
}
  0x36   :  { %82 = dma.hbm_to_vmem [thread:$0]  %s778_s5, 256, %s77_s29, [#allocation12], %s596_s1, %s596_s1, %s597_s24  }
  0x37   :  { %s474_s19 = scalar_lea.hbm %s773_s0, 256 }
  0x38   :  { %p475_p10 = scmp.ne.s32.totalorder %s773_s0, %s474_s19  ;;  %p478_p11 = scmp.lt.u32.totalorder %s474_s19, %s773_s0 }
  0x3a   :  { %p480_p12 = pnand %p478_p11, %p475_p10 }
  0x3c   :  { %483 = shalt.err (!%p480_p12)
}
  0x3d   :  { %s484_s25 = scalar_lea.vmem %s682_s8, 256  ;;  %p489_p0 = scmp.lt.s32.totalorder %s682_s8, %s682_s8 }
  0x3e   :  { %p485_p13 = scmp.ne.s32.totalorder %s682_s8, %s484_s25  ;;  %p490_p1 = scmp.lt.s32.totalorder %s484_s25, %s484_s25 }
  0x40   :  { %p491_p2 = por %p490_p1, %p489_p0 }
  0x42   :  { %p492_p3 = pnand %p491_p2, %p485_p13 }
  0x44   :  { %495 = shalt.err (!%p492_p3)
}
  0x45   :  { %s600_s5 = smov 128   ;;  %s601_s26 = smov 8  }
  0x46   :  { %28 = dma.hbm_to_vmem [thread:$0]  %s773_s0, 256, %s682_s8, [#allocation3], %s600_s5, %s600_s5, %s601_s26  }
  0x47   :  { %s602_s30 = smov [#allocation7]   ;;  %s603_s10 = smov [#allocation10]  }
  0x48   :  { %s45_s9 = sshll.u32 %s602_s30, 4  ;;  %s67_s11 = sshll.u32 %s603_s10, 4  ;;  %s46_s9 = int_to_ptr.vmem [resolvable:$true] %s45_s9  ;;  %s68_s11 = int_to_ptr.vmem [resolvable:$true] %s67_s11 }
  0x49   :  { %s496_s14 = scalar_lea.hbm %s775_s2, 16 }
  0x4a   :  { %p497_p4 = scmp.ne.s32.totalorder %s775_s2, %s496_s14  ;;  %p500_p5 = scmp.lt.u32.totalorder %s496_s14, %s775_s2 }
  0x4c   :  { %p502_p6 = pnand %p500_p5, %p497_p4 }
  0x4e   :  { %505 = shalt.err (!%p502_p6)
}
  0x4f   :  { %s506_s0 = scalar_lea.vmem %s46_s9, 16  ;;  %s510_s8 = scalar_lea.vmem %s46_s9, 32 }
  0x50   :  { %p507_p7 = scmp.ne.s32.totalorder %s46_s9, %s506_s0  ;;  %p511_p8 = scmp.lt.s32.totalorder %s46_s9, %s46_s9 }
  0x51   :  { %p512_p9 = scmp.lt.s32.totalorder %s510_s8, %s506_s0 }
  0x53   :  { %p513_p10 = por %p512_p9, %p511_p8 }
  0x55   :  { %p514_p11 = pnand %p513_p10, %p507_p7 }
  0x57   :  { %517 = shalt.err (!%p514_p11)
}
  0x58   :  { %48 = dma.hbm_to_vmem [thread:$0]  %s775_s2, 16, %s46_s9, [#allocation6]  }
  0x59   :  { %s518_s21 = scalar_lea.hbm %s777_s4, 16 }
  0x5a   :  { %p519_p12 = scmp.ne.s32.totalorder %s777_s4, %s518_s21  ;;  %p522_p13 = scmp.lt.u32.totalorder %s518_s21, %s777_s4 }
  0x5c   :  { %p524_p0 = pnand %p522_p13, %p519_p12 }
  0x5e   :  { %527 = shalt.err (!%p524_p0)
}
  0x5f   :  { %s528_s26 = scalar_lea.vmem %s68_s11, 16  ;;  %s532_s28 = scalar_lea.vmem %s68_s11, 32 }
  0x60   :  { %p529_p1 = scmp.ne.s32.totalorder %s68_s11, %s528_s26  ;;  %p533_p2 = scmp.lt.s32.totalorder %s68_s11, %s68_s11 }
  0x61   :  { %p534_p3 = scmp.lt.s32.totalorder %s532_s28, %s528_s26 }
  0x63   :  { %p535_p4 = por %p534_p3, %p533_p2 }
  0x65   :  { %p536_p5 = pnand %p535_p4, %p529_p1 }
  0x67   :  { %539 = shalt.err (!%p536_p5)
}
  0x68   :  { %70 = dma.hbm_to_vmem [thread:$0]  %s777_s4, 16, %s68_s11, [#allocation9]  }
  0x69   :  { %s604_s30 = smov [#allocation13]   ;;  %s540_s13 = scalar_lea.hbm %s779_s6, 16 }
  0x6a   :  { %s89_s9 = sshll.u32 %s604_s30, 4  ;;  %p541_p6 = scmp.ne.s32.totalorder %s779_s6, %s540_s13  ;;  %s90_s9 = int_to_ptr.vmem [resolvable:$true] %s89_s9 }
  0x6b   :  { %p544_p7 = scmp.lt.u32.totalorder %s540_s13, %s779_s6 }
  0x6d   :  { %p546_p8 = pnand %p544_p7, %p541_p6 }
  0x6f   :  { %549 = shalt.err (!%p546_p8)
}
  0x70   :  { %s550_s16 = scalar_lea.vmem %s90_s9, 16  ;;  %s554_s4 = scalar_lea.vmem %s90_s9, 32 }
  0x71   :  { %p551_p9 = scmp.ne.s32.totalorder %s90_s9, %s550_s16  ;;  %p555_p10 = scmp.lt.s32.totalorder %s90_s9, %s90_s9 }
  0x72   :  { %p556_p11 = scmp.lt.s32.totalorder %s554_s4, %s550_s16 }
  0x74   :  { %p557_p12 = por %p556_p11, %p555_p10 }
  0x76   :  { %p558_p13 = pnand %p557_p12, %p551_p9 }
  0x78   :  { %561 = shalt.err (!%p558_p13)
}
  0x79   :  { %92 = dma.hbm_to_vmem [thread:$0]  %s779_s6, 16, %s90_s9, [#allocation12]  }
  0x7a   :  { %584 = dma.done.wait [#allocation3], 256  }
  0x7b   :  { %585 = vsyncadd [#allocation3], 4294967040 }
  0x7c   :  { %586 = dma.done.wait [#allocation6], 32  }
  0x7d   :  { %587 = vsyncadd [#allocation6], 4294967264 }
  0x7e   :  { %588 = dma.done.wait [#allocation9], 272  }
  0x7f   :  { %589 = vsyncadd [#allocation9], 4294967024 }
  0x80   :  { %590 = dma.done.wait [#allocation12], 272  }
  0x81   :  { %591 = vsyncadd [#allocation12], 4294967024  ;;  %vm119_vm0 = vcmask 261120   ;;  %v115_v0 = vld [vmem:[#allocation2] sm:$0xff]  ;;  %v116_v1 = vld [vmem:[#allocation2 + $0x8] sm:$0xff]  ;;  %v605_v16 = vmov 0.0  }
  0x82   :  { %v120_v2 = vsel %vm119_vm0, %v115_v0, 0.0  ;;  %v123_v3 = vsel %vm119_vm0, %v116_v1, 0.0  ;;  %v392_v14 = vld [vmem:[#allocation8] sm:$0xff]   ;;  %v393_v15 = vld [vmem:[#allocation11] sm:$0xff]   ;;  %362 = vmatprep.subr.bf16.mxu0 %v605_v16  ;;  %370 = vmatprep.subr.bf16.mxu1 %v605_v16  ;;  %v394_v17 = vld [vmem:[#allocation8 + $0x8] sm:$0xff]   ;;  %vm606_vm1 = vmmov 0  }
  0x83   :  { %121 = vadd.xlane.f32.xlu0 %v120_v2  ;;  %363 = vmatpush3.bf16.msra.mxu0 %v392_v14  ;;  %v395_v18 = vld [vmem:[#allocation11 + $0x8] sm:$0xff]   ;;  %v346_v36 = vld [vmem:[#allocation13] ss:$0 sm:$0xff]  ;;  %v342_v53 = vld [vmem:[#allocation10] ss:$0 sm:$0xff]  ;;  %vm317_vm2 = vcmask 257024  }
  0x84   :  { %371 = vmatpush3.bf16.msra.mxu1 %v393_v15  ;;  %364 = vmatprep.subr.bf16.mxu0 %v605_v16  ;;  %v340_v27 = vld [vmem:[#allocation5] ss:$0 sm:$0xff]  ;;  %v341_v31 = vld [vmem:[#allocation7] ss:$0 sm:$0xff]  ;;  %s607_s6 = smov [#allocation14]  }
  0x85   :  { %372 = vmatprep.subr.bf16.mxu1 %v605_v16  ;;  %366 = vmatprep.mubr.msk.bf16.mxu0 %vm606_vm1, %v605_v16  ;;  %s325_s8 = sshll.u32 %s607_s6, 4  ;;  %s326_s8 = int_to_ptr.vmem [resolvable:$true] %s325_s8 }
  0x86   :  { %374 = vmatprep.mubr.msk.bf16.mxu1 %vm606_vm1, %v605_v16  ;;  %s562_s17 = scalar_lea.vmem %s326_s8, 128  ;;  %p567_p1 = scmp.lt.s32.totalorder %s326_s8, %s326_s8 }
  0x87   :  { %124 = vadd.xlane.f32.xlu0 %v123_v3  ;;  %365 = vmatpush3.bf16.msra.mxu0 %v394_v17  ;;  %p563_p0 = scmp.ne.s32.totalorder %s326_s8, %s562_s17  ;;  %p568_p2 = scmp.lt.s32.totalorder %s562_s17, %s562_s17 }
  0x88   :  { %373 = vmatpush3.bf16.msra.mxu1 %v395_v18 }
  0x89   :  { %p569_p3 = por %p568_p2, %p567_p1 }
  0x8b   :  { %p570_p4 = pnand %p569_p3, %p563_p0 }
 0x110   :  { %v122_v4 = vpop.xlane.xlu0 %121 }
 0x111   :  { %v127_v5 = vmul.f32 0.03125, %v122_v4 }
 0x113   :  { %v129_v6 = vsub.f32 %v115_v0, %v127_v5 }
 0x114   :  { %v125_v7 = vpop.xlane.xlu0 %124 }
 0x115   :  { %v128_v8 = vmul.f32 0.03125, %v125_v7  ;;  %v131_v9 = vmul.f32 %v129_v6, %v129_v6 }
 0x117   :  { %v130_v10 = vsub.f32 %v116_v1, %v128_v8  ;;  %v133_v11 = vsel %vm119_vm0, %v131_v9, 0.0 }
 0x118   :  { %134 = vadd.xlane.f32.xlu1 %v133_v11 }
 0x119   :  { %v132_v12 = vmul.f32 %v130_v10, %v130_v10 }
 0x11b   :  { %v136_v13 = vsel %vm119_vm0, %v132_v12, 0.0 }
 0x11c   :  { %137 = vadd.xlane.f32.xlu1 %v136_v13 }
 0x1a5   :  { %v135_v19 = vpop.xlane.xlu1 %134 }
 0x1a6   :  { %v139_v20 = vmul.f32 0.03125, %v135_v19 }
 0x1a8   :  { %v141_v21 = vadd.f32 1e-05, %v139_v20 }
 0x1a9   :  { %v138_v22 = vpop.xlane.xlu1 %137 }
 0x1aa   :  { %396 = vrsqrt.f32 %v141_v21  ;;  %v140_v23 = vmul.f32 0.03125, %v138_v22 }
 0x1ac   :  { %v142_v24 = vadd.f32 1e-05, %v140_v23 }
 0x1ae   :  { %398 = vrsqrt.f32 %v142_v24 }
 0x1b4   :  { %v397_v25 = vpop.eup %396 }
 0x1b5   :  { %v145_v26 = vmul.f32 %v397_v25, %v129_v6 }
 0x1b7   :  { %v153_v30 = vmul.f32 %v340_v27, %v145_v26 }
 0x1b8   :  { %v399_v28 = vpop.eup %398 }
 0x1b9   :  { %v146_v29 = vmul.f32 %v399_v28, %v130_v10  ;;  %v161_v33 = vadd.f32 %v341_v31, %v153_v30 }
 0x1bb   :  { %v154_v32 = vmul.f32 %v340_v27, %v146_v29 }
 0x1bd   :  { %v162_v34 = vadd.f32 %v341_v31, %v154_v32 }
 0x1bf   :  { %v163_v35 = vpack.c.bf16 %v162_v34, %v161_v33 }
 0x1c1   :  { %367 = vmatmul.mubr.msk.bf16.vlgmr.msra.gmra.mrb[0].mxu0 %vm119_vm0, %v163_v35  ;;  %375 = vmatmul.mubr.msk.bf16.vlgmr.msra.gmra.mrb[0].mxu1 %vm119_vm0, %v163_v35 }
 0x294   :  { %v224_v37 = vpop.f32.mrb[0].mxu0  ;;  %v288_v38 = vpop.f32.mrb[0].mxu1 }
 0x295   :  { %v289_v39 = vadd.f32 %v346_v36, %v288_v38  ;;  %v368_v40 = vpop.f32.mrb[1].mxu0  ;;  %v376_v41 = vpop.f32.mrb[1].mxu1  ;;  %v225_v54 = vadd.f32 %v342_v53, %v224_v37 }
 0x296   :  { %v227_v42 = vpop.f32.mrb[2].mxu0  ;;  %v291_v43 = vpop.f32.mrb[2].mxu1 }
 0x297   :  { %v350_v44 = vmul.f32 -1.442695, %v289_v39  ;;  %v292_v45 = vadd.f32 %v346_v36, %v291_v43  ;;  %v369_v46 = vpop.f32.mrb[3].mxu0  ;;  %v377_v47 = vpop.f32.mrb[3].mxu1  ;;  %v228_v56 = vadd.f32 %v342_v53, %v227_v42 }
 0x299   :  { %400 = vpow2.f32 %v350_v44  ;;  %v351_v48 = vmul.f32 -1.442695, %v292_v45 }
 0x29b   :  { %402 = vpow2.f32 %v351_v48 }
 0x2a3   :  { %v401_v49 = vpop.eup %400 }
 0x2a4   :  { %v301_v50 = vadd.f32 1.0, %v401_v49 }
 0x2a5   :  { %v403_v51 = vpop.eup %402 }
 0x2a6   :  { %404 = vrcp.f32 %v301_v50  ;;  %v302_v52 = vadd.f32 1.0, %v403_v51 }
 0x2a8   :  { %406 = vrcp.f32 %v302_v52 }
 0x2b0   :  { %v405_v55 = vpop.eup %404 }
 0x2b1   :  { %v307_v57 = vmul.f32 %v405_v55, %v225_v54 }
 0x2b2   :  { %v407_v58 = vpop.eup %406 }
 0x2b3   :  { %v308_v59 = vmul.f32 %v407_v58, %v228_v56  ;;  %v354_v60 = vpack.c.bf16 %v307_v57, %v307_v57 }
 0x2b5   :  { %v355_v61 = vpack.c.bf16 %v308_v59, %v308_v59  ;;  %318 = vst.msk [vmem:[#allocation14] sm:$0xf] %vm317_vm2, %v354_v60 }
 0x2b7   :  { %319 = vst.msk [vmem:[#allocation14 + $0x4] sm:$0xf] %vm317_vm2, %v355_v61 }
 0x2b8   :  { %573 = shalt.err (!%p570_p4)
}
 0x2b9   :  { %s574_s20 = scalar_lea.hbm %s780_s7, 128 }
 0x2ba   :  { %p575_p5 = scmp.ne.s32.totalorder %s780_s7, %s574_s20  ;;  %p578_p6 = scmp.lt.u32.totalorder %s574_s20, %s780_s7 }
 0x2bc   :  { %p580_p7 = pnand %p578_p6, %p575_p5 }
 0x2be   :  { %583 = shalt.err (!%p580_p7)
}
 0x2bf   :  { %331 = dma.vmem_to_hbm [thread:$0]  %s326_s8, 128, %s780_s7, [#allocation4], %s596_s1, %s596_s1, %s597_s24  }
 0x2c0   :  { %592 = dma.done.wait [#allocation4], 128  }
 0x2c1   :  { %593 = vsyncadd [#allocation4], 4294967168 }
 0x2c2   :  { %335 = vsyncpa [#allocation3], 1 }
 0x2c3   :  { %336 = vsyncpa [#allocation6], 1 }
 0x2c4   :  { %337 = vsyncpa [#allocation9], 1 }
 0x2c5   :  { %338 = vsyncpa [#allocation12], 1 }
 0x2c6   :  { %339 = vsyncpa [#allocation4], 1 }

// kernel: conformer_encoder.29
= control target key start
LH: loop header
LB: loop body
LE: loop exit
PB: predicated region body
PF: predicated region fallthrough
CT: control target
= control target key end

     0   :  { %9 = vsyncpa [#allocation3], 0  ;;  %s1106_s0 = inlined_call_operand.hbm [shape: bf16[2,13,32], index: 0, kind: input, shape index: {}]   ;;  %s1107_s1 = inlined_call_operand.hbm [shape: f32[7,32], index: 1, kind: input, shape index: {}]   ;;  %s1108_s2 = inlined_call_operand.hbm [shape: f32[1,32], index: 2, kind: input, shape index: {}]   ;;  %s1109_s3 = inlined_call_operand.hbm [shape: f32[1,32], index: 3, kind: input, shape index: {}]   ;;  %s1110_s4 = inlined_call_operand.hbm [shape: bf16[2,7,32], index: 4, kind: output, shape index: {}]  }
   0x1   :  { %11 = vsyncpa [#allocation3 + $0x1], 0 }
   0x2   :  { %12 = vsyncpa [#allocation6], 0 }
   0x3   :  { %13 = vsyncpa [#allocation9], 0 }
   0x4   :  { %14 = vsyncpa [#allocation4], 0 }
   0x5   :  { %16 = vsyncpa [#allocation4 + $0x1], 0  ;;  %s837_s15 = smov 0   ;;  %s839_s16 = smov 0  }
   0x6   :  { %s841_s17 = smov 0   ;;  %s843_s18 = smov 0  }
   0x7 LB: > { %s858_s19 = sadd.s32 4294967295, %s803_s18   ;;  %s502_s20 = sadd.s32 4294967294, %s803_s18   ;;  %s803_s18 = sphi %s843_s18, %s1133_s18   ;;  %s799_s17 = sphi %s841_s17, %s1132_s17   ;;  %s795_s16 = sphi %s839_s16, %s1131_s16   ;;  %s791_s15 = sphi %s837_s15, %s1130_s15  }
   0x8   : > { %p42_p0 = scmp.ne.s32.totalorder %s795_s16, %s791_s15  ;;  %p1111_p1 = scmp.eq.s32.totalorder %s858_s19, 0 }
   0x9   : > { %p135_p3 = scmp.eq.s32.totalorder %s502_s20, 1  ;;  %p503_p5 = scmp.ge.s32.totalorder %s803_s18, 1 }
   0xa   : > { %p867_p4 = por %p1111_p1, %p42_p0  ;;  %p142_p7 = scmp.lt.s32.totalorder %s803_s18, 3 }
   0xb   : > { %p872_p6 = por %p135_p3, %p42_p0  ;;  %s805_s24 = smov [#allocation5]  }
   0xc   : > { %s1114_s21 = scalar_select %p867_p4, 1, 0 }
   0xd   : > { %s1115_s22 = scalar_select %p872_p6, 1, 0 }
   0xe   : > { %p877_p8 = pnand %p503_p5, %p142_p7  ;;  %s155_s25 = sshll.u32 %s805_s24, 4  ;;  %s156_s25 = int_to_ptr.vmem [resolvable:$true] %s155_s25 }
   0xf   : > { %s806_s26 = smov [#allocation7]   ;;  %s807_s29 = smov [#allocation8]  }
  0x10   : > { %s1116_s23 = scalar_select %p877_p8, 1, 0 }
  0x11   : > { %p548_p10 = pneg %p877_p8  ;;  %s166_s27 = sshll.u32 %s806_s26, 4  ;;  %s890_s27 = int_to_ptr.vmem [resolvable:$true] %s166_s27 }
  0x12   : > { %s177_s30 = sshll.u32 %s807_s29, 4  ;;  %s615_s7 = scalar_lea.hbm %s1107_s1, 128  ;;  %s892_s30 = int_to_ptr.vmem [resolvable:$true] %s177_s30 }
  0x13   : > { %p886_p11 = pnand %p548_p10, %p1111_p1  ;;  %p616_p12 = scmp.ne.s32.totalorder %s1107_s1, %s615_s7 }
  0x14   : > { %p622_p5 = scmp.lt.u32.totalorder %s615_s7, %s1107_s1 }
  0x15   : > { %p902_p13 = pneg %p886_p11 }
  0x17   : > { %p618_p0 = pnand %p902_p13, %p616_p12 }
  0x19   : > { %p619_p3 = pneg %p618_p0 }
  0x1b   : > { %p624_p7 = pnand %p622_p5, %p619_p3 }
  0x1d   : > { %627 = shalt.err (!%p624_p7)
}
  0x1e   : > { %s628_s13 = scalar_lea.vmem %s156_s25, 128  ;;  %p636_p2 = scmp.lt.s32.totalorder %s156_s25, %s156_s25 }
  0x1f   : > { %p629_p10 = scmp.ne.s32.totalorder %s156_s25, %s628_s13  ;;  %p637_p6 = scmp.lt.s32.totalorder %s628_s13, %s628_s13 }
  0x21   : > { %p631_p9 = pnand %p629_p10, %p902_p13  ;;  %p638_p4 = por %p637_p6, %p636_p2 }
  0x23   : > { %p632_p1 = pneg %p631_p9 }
  0x25   : > { %p639_p8 = pnand %p638_p4, %p632_p1 }
  0x27   : > { %642 = shalt.err (!%p639_p8)
}
  0x28   : > { %551 = dma.hbm_to_vmem [thread:$0]  (!%p886_p11), %s1107_s1, 128, %s156_s25, [#allocation6]  }
  0x29   : > { %s643_s29 = scalar_lea.hbm %s1108_s2, 16 }
  0x2a   : > { %p644_p9 = scmp.ne.s32.totalorder %s1108_s2, %s643_s29  ;;  %p650_p1 = scmp.lt.u32.totalorder %s643_s29, %s1108_s2 }
  0x2c   : > { %p646_p12 = pnand %p644_p9, %p902_p13 }
  0x2e   : > { %p647_p2 = pneg %p646_p12 }
  0x30   : > { %p652_p4 = pnand %p650_p1, %p647_p2 }
  0x32   : > { %655 = shalt.err (!%p652_p4)
}
  0x33   : > { %s656_s25 = scalar_lea.vmem %s890_s27, 16  ;;  %s663_s9 = scalar_lea.vmem %s890_s27, 32 }
  0x34   : > { %p657_p6 = scmp.ne.s32.totalorder %s890_s27, %s656_s25  ;;  %p664_p3 = scmp.lt.s32.totalorder %s890_s27, %s890_s27 }
  0x35   : > { %p665_p5 = scmp.lt.s32.totalorder %s663_s9, %s656_s25 }
  0x36   : > { %p659_p8 = pnand %p657_p6, %p902_p13 }
  0x37   : > { %p666_p7 = por %p665_p5, %p664_p3 }
  0x38   : > { %p660_p0 = pneg %p659_p8 }
  0x3a   : > { %p667_p10 = pnand %p666_p7, %p660_p0 }
  0x3c   : > { %670 = shalt.err (!%p667_p10)
}
  0x3d   : > { %554 = dma.hbm_to_vmem [thread:$0]  (!%p886_p11), %s1108_s2, 16, %s890_s27, [#allocation6]  }
  0x3e   : > { %s671_s20 = scalar_lea.hbm %s1109_s3, 16 }
  0x3f   : > { %p672_p9 = scmp.ne.s32.totalorder %s1109_s3, %s671_s20  ;;  %p678_p1 = scmp.lt.u32.totalorder %s671_s20, %s1109_s3 }
  0x41   : > { %p674_p12 = pnand %p672_p9, %p902_p13 }
  0x43   : > { %p675_p2 = pneg %p674_p12 }
  0x45   : > { %p680_p4 = pnand %p678_p1, %p675_p2 }
  0x47   : > { %683 = shalt.err (!%p680_p4)
}
  0x48   : > { %s684_s27 = scalar_lea.vmem %s892_s30, 16  ;;  %s691_s6 = scalar_lea.vmem %s892_s30, 32 }
  0x49   : > { %p685_p6 = scmp.ne.s32.totalorder %s892_s30, %s684_s27  ;;  %p692_p3 = scmp.lt.s32.totalorder %s892_s30, %s892_s30 }
  0x4a   : > { %p693_p5 = scmp.lt.s32.totalorder %s691_s6, %s684_s27 }
  0x4b   : > { %p687_p8 = pnand %p685_p6, %p902_p13 }
  0x4c   : > { %p694_p7 = por %p693_p5, %p692_p3 }
  0x4d   : > { %p688_p0 = pneg %p687_p8 }
  0x4f   : > { %p695_p10 = pnand %p694_p7, %p688_p0 }
  0x51   : > { %698 = shalt.err (!%p695_p10)
}
  0x52   : > { %557 = dma.hbm_to_vmem [thread:$0]  (!%p886_p11), %s1109_s3, 16, %s892_s30, [#allocation9]  }
  0x53   : > { %s967_s10 = sadd.s32 1, %s803_s18   ;;  %s29_s25 = sadd.s32 1, %s799_s17 }
  0x54   : > { %s26_s28 = ssub.s32 %s803_s18, %s967_s10  ;;  %p36_p9 = scmp.ne.s32.totalorder %s799_s17, %s795_s16 }
  0x55   : > { %p27_p13 = scmp.eq.s32.totalorder %s26_s28, 0  ;;  %p37_p12 = scmp.eq.s32.totalorder %s803_s18, 0 }
  0x56   : > { %p569_p2 = scmp.lt.s32.totalorder %s803_s18, 2  ;;  %p1119_p4 = scmp.eq.s32.totalorder %s858_s19, 1 }
  0x57   : > { %s977_s9 = scalar_select %p27_p13, %s799_s17, %s29_s25  }
  0x58   : > { %p38_p1 = por %p37_p12, %p36_p9  ;;  %p981_p6 = por %p1119_p4, %p36_p9 }
  0x59   : > { %s188_s12 = sand.u32 1, %s799_s17   ;;  %s531_s13 = sshll.u32 %s803_s18, 7 }
  0x5a   : > { %s508_s30 = sshll.u32 %s188_s12, 3  ;;  %s990_s24 = scalar_lea.hbm %s1106_s0, %s531_s13 }
  0x5b   : > { %s192_s26 = scalar_lea.vmem [#allocation2], %s508_s30  ;;  %p992_p11 = pnand %p569_p2, %p38_p1 }
  0x5c   : > { %s199_s29 = sshll.u32 %s192_s26, 4  ;;  %s998_s27 = scalar_lea.sflag [#allocation3], %s188_s12  ;;  %s996_s29 = int_to_ptr.vmem [resolvable:$true] %s199_s29 }
  0x5d   : > { %s699_s6 = scalar_lea.hbm %s990_s24, 128  ;;  %p701_p0 = pneg %p992_p11 }
  0x5e   : > { %p700_p8 = scmp.ne.s32.totalorder %s990_s24, %s699_s6  ;;  %s704_s28 = scalar_lea.hbm %s1106_s0, 256 }
  0x5f   : > { %p705_p7 = scmp.lt.u32.totalorder %s990_s24, %s1106_s0  ;;  %p706_p10 = scmp.lt.u32.totalorder %s704_s28, %s699_s6 }
  0x60   : > { %p702_p3 = pnand %p701_p0, %p700_p8  ;;  %p708_p9 = scmp.lt.u32.totalorder %s699_s6, %s990_s24 }
  0x61   : > { %p707_p13 = por %p706_p10, %p705_p7 }
  0x62   : > { %p703_p5 = pneg %p702_p3 }
  0x63   : > { %p709_p12 = por %p708_p9, %p707_p13 }
  0x65   : > { %p710_p2 = pnand %p709_p12, %p703_p5 }
  0x67   : > { %713 = shalt.err (!%p710_p2)
}
  0x68   : > { %s714_s12 = scalar_lea.vmem %s996_s29, 128  ;;  %s808_s30 = smov [#allocation2]  }
  0x69   : > { %p715_p1 = scmp.ne.s32.totalorder %s996_s29, %s714_s12  ;;  %s719_s14 = sshll.u32 %s808_s30, 4  ;;  %s720_s14 = int_to_ptr.vmem [resolvable:$false] %s719_s14 }
  0x6a   : > { %s721_s20 = scalar_lea.vmem %s720_s14, 256  ;;  %p722_p3 = scmp.lt.s32.totalorder %s996_s29, %s720_s14 }
  0x6b   : > { %p717_p4 = pnand %p715_p1, %p701_p0  ;;  %p723_p7 = scmp.lt.s32.totalorder %s721_s20, %s714_s12 }
  0x6d   : > { %p718_p8 = pneg %p717_p4  ;;  %p724_p10 = por %p723_p7, %p722_p3 }
  0x6f   : > { %p725_p13 = pnand %p724_p10, %p718_p8 }
  0x71   : > { %728 = shalt.err (!%p725_p13)
}
  0x72   : > { %s809_s26 = smov 64   ;;  %s810_s6 = smov 4  }
  0x73   : > { %561 = dma.hbm_to_vmem [thread:$0]  (!%p992_p11), %s990_s24, 128, %s996_s29, %s998_s27, %s809_s26, %s809_s26, %s810_s6  }
  0x74   : > { %p1122_p0 = scmp.ne.s32.totalorder %s1116_s23, 0 }
  0x75   : > { %s1029_s7 = sand.u32 (!%p1122_p0), 1, %s795_s16   ;;  %p1123_p5 = scmp.ne.s32.totalorder (!%p1122_p0), %s1114_s21, 0 }
  0x76   : > { %211 = sbr.rel (%p1122_p0) target bundleno = 202 (0xca), region = 36  ;;  %s512_s8 = sshll.u32 (!%p1122_p0), %s1029_s7, 3 }
  0x77   : > { %s214_s28 = scalar_lea.sflag (!%p1122_p0), [#allocation3], %s1029_s7  ;;  %s1033_s25 = scalar_lea.vmem (!%p1122_p0), [#allocation2], %s512_s8 }
  0x7d   : > { %774 = dma.done.wait (%p1123_p5), %s214_s28, 128  }
  0x7e   : > { %776 = vsyncadd (%p1123_p5), %s214_s28, 4294967168  ;;  %p1124_p11 = scmp.eq.s32.totalorder %s858_s19, 0 }
  0x80   : > { %778 = dma.done.wait (%p1124_p11), [#allocation6], 144   ;;  %p1125_p9 = pmov %p1124_p11 }
  0x82   : > { %780 = vsyncadd (%p1125_p9), [#allocation6], 4294967152  ;;  %p1126_p12 = pmov %p1125_p9 }
  0x83   : > { %p1127_p2 = pmov %p1125_p9 }
  0x84   : > { %782 = dma.done.wait (%p1126_p12), [#allocation9], 16  }
  0x85   : > { %784 = vsyncadd (%p1127_p2), [#allocation9], 4294967280  ;;  %vm285_vm0 = vcmask 1045504   ;;  %vm300_vm1 = vcmask 1044480   ;;  %vm319_vm2 = vcmask 1043456   ;;  %vm334_vm3 = vcmask 1042432  }
  0x86   : > { %v254_v0 = vld [vmem:[%s1033_s25] sm:$0xf]  ;;  %v517_v1 = vld [vmem:[#allocation5] ss:$0 sm:$0xff]  ;;  %v518_v2 = vld [vmem:[#allocation5 + $0x1] ss:$0 sm:$0xff] }
  0x87   : > { %v256_v3 = vunpack.c.l.bf16 %v254_v0  ;;  %v272_v4 = vld [vmem:[%s1033_s25] sm:$0xe]  ;;  %v273_v5 = vld [vmem:[%s1033_s25 + $0x4] sm:$0x1]  ;;  %v519_v6 = vld [vmem:[#allocation5 + $0x2] ss:$0 sm:$0xff] }
  0x88   : > { %v275_v7 = vunpack.c.l.bf16 %v272_v4  ;;  %v276_v8 = vunpack.c.l.bf16 %v273_v5  ;;  %v520_v9 = vld [vmem:[#allocation5 + $0x3] ss:$0 sm:$0xff]  ;;  %v306_v10 = vld [vmem:[%s1033_s25] sm:$0xc]  ;;  %v307_v11 = vld [vmem:[%s1033_s25 + $0x4] sm:$0x3] }
  0x89   : > { %v261_v12 = vmul.f32 %v517_v1, %v256_v3  ;;  %v267_v13 = vmul.f32 %v518_v2, %v256_v3  ;;  %v521_v14 = vld [vmem:[#allocation5 + $0x4] ss:$0 sm:$0xff]  ;;  %v309_v15 = vunpack.c.l.bf16 %v306_v10  ;;  %v310_v16 = vunpack.c.l.bf16 %v307_v11  ;;  %v522_v17 = vld [vmem:[#allocation5 + $0x5] ss:$0 sm:$0xff]  ;;  %v340_v26 = vld [vmem:[%s1033_s25] sm:$0x8] }
  0x8a   : > { %v281_v18 = vmul.f32 %v519_v6, %v275_v7  ;;  %v282_v19 = vmul.f32 %v519_v6, %v276_v8  ;;  %v296_v20 = vmul.f32 %v520_v9, %v275_v7  ;;  %v297_v21 = vmul.f32 %v520_v9, %v276_v8  ;;  %v341_v31 = vld [vmem:[%s1033_s25 + $0x4] sm:$0x7]  ;;  %v523_v36 = vld [vmem:[#allocation5 + $0x6] ss:$0 sm:$0xff]  ;;  %v524_v54 = vld [vmem:[#allocation7] ss:$0 sm:$0xff] }
  0x8b   : > { %v269_v22 = vrot.slane %v267_v13, 1  ;;  %v315_v23 = vmul.f32 %v521_v14, %v309_v15  ;;  %v316_v24 = vmul.f32 %v521_v14, %v310_v16  ;;  %v330_v25 = vmul.f32 %v522_v17, %v309_v15  ;;  %v525_v56 = vld [vmem:[#allocation8] ss:$0 sm:$0xff]  ;;  %s516_s21 = sshll.u32 %s1029_s7, 2  ;;  %s528_s29 = sshll.u32 %s858_s19, 6 }
  0x8c   : > { %v286_v27 = vrot.slane %v281_v18, 2  ;;  %v287_v28 = vrot.slane %v282_v19, 2  ;;  %v301_v29 = vrot.slane %v296_v20, 3  ;;  %v302_v30 = vrot.slane %v297_v21, 3  ;;  %s253_s23 = scalar_lea.vmem [#allocation10], %s516_s21  ;;  %s1062_s13 = scalar_lea.hbm %s1110_s4, %s528_s29 }
  0x8d   : > { %v271_v32 = vadd.f32 %v269_v22, %v261_v12  ;;  %v320_v33 = vrot.slane %v315_v23, 4  ;;  %v321_v34 = vrot.slane %v316_v24, 4  ;;  %v331_v35 = vmul.f32 %v522_v17, %v310_v16  ;;  %s403_s24 = sshll.u32 %s253_s23, 4  ;;  %v386_v0 = vld [vmem:[%s253_s23] sm:$0xf]  ;;  %s390_s12 = scalar_lea.sflag [#allocation4], %s1029_s7  ;;  %s1064_s24 = int_to_ptr.vmem [resolvable:$true] %s403_s24 }
  0x8e   : > { %v288_v37 = vsel %vm285_vm0, %v286_v27, %v287_v28  ;;  %v303_v38 = vsel %vm300_vm1, %v301_v29, %v302_v30  ;;  %v335_v39 = vrot.slane %v330_v25, 5  ;;  %v343_v40 = vunpack.c.l.bf16 %v340_v26  ;;  %s729_s30 = scalar_lea.vmem %s1064_s24, 64  ;;  %s811_s19 = smov [#allocation10]  }
  0x8f   : > { %v290_v41 = vadd.f32 %v288_v37, %v271_v32  ;;  %v336_v42 = vrot.slane %v331_v35, 5  ;;  %v344_v43 = vunpack.c.l.bf16 %v341_v31  ;;  %v322_v44 = vsel %vm319_vm2, %v320_v33, %v321_v34  ;;  %p730_p1 = scmp.ne.s32.totalorder %s1064_s24, %s729_s30  ;;  %s733_s14 = sshll.u32 %s811_s19, 4  ;;  %s734_s14 = int_to_ptr.vmem [resolvable:$false] %s733_s14 }
  0x90   : > { %v349_v45 = vmul.f32 %v523_v36, %v343_v40  ;;  %vm353_vm4 = vcmask 1041408   ;;  %vm383_vm5 = vcmask 257024   ;;  %vm384_vm6 = vsmask.f32 3328  ;;  %s735_s20 = scalar_lea.vmem %s734_s14, 128  ;;  %p736_p3 = scmp.lt.s32.totalorder %s1064_s24, %s734_s14 }
  0x91   : > { %v305_v46 = vadd.f32 %v303_v38, %v290_v41  ;;  %v350_v47 = vmul.f32 %v523_v36, %v344_v43  ;;  %v337_v48 = vsel %vm334_vm3, %v335_v39, %v336_v42  ;;  %vm385_vm7 = vmand %vm383_vm5, %vm384_vm6  ;;  %p731_p4 = pnand %p730_p1, %p981_p6  ;;  %p737_p7 = scmp.lt.s32.totalorder %s735_s20, %s729_s30 }
  0x92   : > { %v354_v49 = vrot.slane %v349_v45, 6 }
  0x93   : > { %v324_v50 = vadd.f32 %v322_v44, %v305_v46  ;;  %v355_v51 = vrot.slane %v350_v47, 6  ;;  %p732_p8 = pneg %p731_p4  ;;  %p738_p10 = por %p737_p7, %p736_p3 }
  0x95   : > { %v339_v52 = vadd.f32 %v337_v48, %v324_v50  ;;  %v356_v53 = vsel %vm353_vm4, %v354_v49, %v355_v51  ;;  %p739_p13 = pnand %p738_p10, %p732_p8 }
  0x97   : > { %v358_v55 = vadd.f32 %v356_v53, %v339_v52 }
  0x99   : > { %v366_v57 = vmul.f32 %v524_v54, %v358_v55 }
  0x9b   : > { %v374_v58 = vadd.f32 %v525_v56, %v366_v57 }
  0x9d   : > { %v526_v59 = vmul.f32 -1.442695, %v374_v58 }
  0x9f   : > { %611 = vpow2.f32 %v526_v59 }
  0xa9   : > { %v612_v60 = vpop.eup %611 }
  0xaa   : > { %v378_v61 = vadd.f32 1.0, %v612_v60 }
  0xac   : > { %613 = vrcp.f32 %v378_v61 }
  0xb6   : > { %v614_v62 = vpop.eup %613 }
  0xb7   : > { %v381_v63 = vmul.f32 %v614_v62, %v374_v58 }
  0xb9   : > { %v382_v1 = vpack.c.bf16 %v381_v63, %v381_v63 }
  0xbb   : > { %v387_v2 = vsel %vm385_vm7, %v382_v1, %v386_v0 }
  0xbc   : > { %388 = vst [vmem:[%s253_s23] sm:$0xf] %v387_v2 }
  0xbd   : > { %742 = shalt.err (!%p739_p13)
}
  0xbe   : > { %s743_s26 = scalar_lea.hbm %s1062_s13, 64  ;;  %s747_s8 = scalar_lea.hbm %s1110_s4, 128 }
  0xbf   : > { %p744_p0 = scmp.ne.s32.totalorder %s1062_s13, %s743_s26  ;;  %p748_p9 = scmp.lt.u32.totalorder %s1062_s13, %s1110_s4 }
  0xc0   : > { %p749_p12 = scmp.lt.u32.totalorder %s747_s8, %s743_s26  ;;  %p751_p1 = scmp.lt.u32.totalorder %s743_s26, %s1062_s13 }
  0xc1   : > { %p745_p5 = pnand %p744_p0, %p981_p6 }
  0xc2   : > { %p750_p2 = por %p749_p12, %p748_p9 }
  0xc3   : > { %p746_p11 = pneg %p745_p5 }
  0xc4   : > { %p752_p4 = por %p751_p1, %p750_p2 }
  0xc6   : > { %p753_p8 = pnand %p752_p4, %p746_p11 }
  0xc8   : > { %756 = shalt.err (!%p753_p8)
}
  0xc9   : > { %546 = dma.vmem_to_hbm [thread:$0]  (%p981_p6), %s1064_s24, 64, %s1062_s13, %s390_s12  }
  0xca PF: > { %s415_s21 = sand.u32 1, %s791_s15   ;;  %p1128_p3 = scmp.ne.s32.totalorder %s1115_s22, 0 }
  0xcb   : > { %p1129_p7 = scmp.ge.s32.totalorder %s803_s18, 2  ;;  %s416_s23 = scalar_lea.sflag [#allocation4], %s415_s21 }
  0xcd   : > { %p563_p10 = pnand %p1129_p7, %p1128_p3 }
  0xcf   : > { %786 = dma.done.wait (!%p563_p10), %s416_s23, 64  }
  0xd0   : > { %788 = vsyncadd (!%p563_p10), %s416_s23, 4294967232  ;;  %p19_p13 = scmp.ge.s32.totalorder %s967_s10, 4   ;;  %s1130_s15 = smov %s795_s16 }
  0xd1   : > { %s1131_s16 = smov %s799_s17  ;;  %s1132_s17 = smov %s977_s9 }
  0xd2   : > { %s1133_s18 = smov %s967_s10  ;;  %21 = sbr.rel (!%p19_p13) target bundleno = 7 (0x7), region = 93 }
  0xd9   :  { %421 = vsyncpa [#allocation3], 1 }
  0xda   :  { %423 = vsyncpa [#allocation3 + $0x1], 1 }
  0xdb   :  { %424 = vsyncpa [#allocation6], 1 }
  0xdc   :  { %425 = vsyncpa [#allocation9], 1 }
  0xdd   :  { %426 = vsyncpa [#allocation4], 1 }
  0xde   :  { %428 = vsyncpa [#allocation4 + $0x1], 1 }

// kernel: conformer_encoder.27
= control target key start
LH: loop header
LB: loop body
LE: loop exit
PB: predicated region body
PF: predicated region fallthrough
CT: control target
= control target key end

     0   :  { %s2786_s0 = inlined_call_operand.hbm [shape: bf16[2,7,96], index: 0, kind: input, shape index: {}]   ;;  %s2787_s1 = inlined_call_operand.hbm [shape: bf16[7,32], index: 1, kind: input, shape index: {}]   ;;  %s2788_s2 = inlined_call_operand.hbm [shape: f32[4,8], index: 2, kind: input, shape index: {}]   ;;  %s2789_s3 = inlined_call_operand.hbm [shape: f32[4,8], index: 3, kind: input, shape index: {}]   ;;  %s2790_s4 = inlined_call_operand.hbm [shape: bf16[32,32], index: 4, kind: input, shape index: {}]   ;;  %s2791_s5 = inlined_call_operand.hbm [shape: f32[1,32], index: 5, kind: input, shape index: {}]   ;;  %s2792_s6 = inlined_call_operand.hbm [shape: f32[2,7,32], index: 6, kind: input, shape index: {}]   ;;  %s2793_s7 = inlined_call_operand.hbm [shape: f32[2,7,32], index: 7, kind: output, shape index: {}]  }
   0x1   :  { %2807 = sst [smem:[#allocation25_spill]] %s2786_s0 }
   0x2   :  { %2808 = sst [smem:[#allocation26_spill]] %s2787_s1 }
   0x3   :  { %2809 = sst [smem:[#allocation27_spill]] %s2788_s2 }
   0x4   :  { %2810 = sst [smem:[#allocation28_spill]] %s2789_s3 }
   0x5   :  { %12 = vsyncpa [#allocation3], 0 }
   0x6   :  { %14 = vsyncpa [#allocation3 + $0x1], 0 }
   0x7   :  { %15 = vsyncpa [#allocation6], 0 }
   0x8   :  { %16 = vsyncpa [#allocation9], 0 }
   0x9   :  { %17 = vsyncpa [#allocation12], 0 }
   0xa   :  { %18 = vsyncpa [#allocation4], 0 }
   0xb   :  { %20 = vsyncpa [#allocation4 + $0x1], 0  ;;  %s2231_s24 = smov 0   ;;  %s2233_s25 = smov 0  }
   0xc   :  { %s2235_s26 = smov 0   ;;  %s2237_s27 = smov 0  }
   0xd LB: > { %2811 = sst [smem:[#allocation21_spill]] %s2150_s26  ;;  %s2156_s28 = smov [#allocation5]   ;;  %s2154_s27 = sphi %s2237_s27, %s2850_s27   ;;  %s2150_s26 = sphi %s2235_s26, %s2852_s26   ;;  %s2146_s25 = sphi %s2233_s25, %s2854_s25   ;;  %s2142_s24 = sphi %s2231_s24, %s2853_s24  }
   0xe   : > { %s227_s29 = sshll.u32 %s2156_s28, 4  ;;  %s2252_s30 = sadd.s32 4294967295, %s2154_s27   ;;  %s228_s29 = int_to_ptr.vmem [resolvable:$true] %s227_s29 }
   0xf   : > { %p1566_p0 = scmp.ge.s32.totalorder %s2154_s27, 1  ;;  %p2794_p1 = scmp.eq.s32.totalorder %s2252_s30, 0 }
  0x10   : > { %p214_p2 = scmp.lt.s32.totalorder %s2154_s27, 3  ;;  %s2157_s9 = smov [#allocation8]  }
  0x11   : > { %s249_s10 = sshll.u32 %s2157_s9, 4  ;;  %s2814_s1 = sld [smem:[#allocation26_spill]]  ;;  %s2264_s10 = int_to_ptr.vmem [resolvable:$true] %s249_s10 }
  0x12   : > { %p2257_p3 = pnand %p1566_p0, %p214_p2 }
  0x14   : > { %s2812_s8 = scalar_select %p2257_p3, 1, 0 }
  0x15   : > { %p1749_p5 = pneg %p2257_p3 }
  0x17   : > { %p2268_p6 = pnand %p1749_p5, %p2794_p1  ;;  %s1872_s14 = scalar_lea.hbm %s2814_s1, 64 }
  0x18   : > { %p1873_p7 = scmp.ne.s32.totalorder %s2814_s1, %s1872_s14  ;;  %p1879_p11 = scmp.lt.u32.totalorder %s1872_s14, %s2814_s1 }
  0x19   : > { %s2813_s11 = scalar_select %p2268_p6, 1, 0 }
  0x1a   : > { %p2280_p8 = pneg %p2268_p6 }
  0x1c   : > { %p1875_p9 = pnand %p2280_p8, %p1873_p7 }
  0x1e   : > { %p1876_p10 = pneg %p1875_p9 }
  0x20   : > { %p1881_p12 = pnand %p1879_p11, %p1876_p10 }
  0x22   : > { %1884 = shalt.err (!%p1881_p12)
}
  0x23   : > { %s1885_s20 = scalar_lea.vmem %s228_s29, 64  ;;  %p1893_p5 = scmp.lt.s32.totalorder %s228_s29, %s228_s29 }
  0x24   : > { %p1886_p13 = scmp.ne.s32.totalorder %s228_s29, %s1885_s20  ;;  %p1894_p4 = scmp.lt.s32.totalorder %s1885_s20, %s1885_s20 }
  0x26   : > { %p1888_p0 = pnand %p1886_p13, %p2280_p8  ;;  %p1895_p1 = por %p1894_p4, %p1893_p5 }
  0x28   : > { %p1889_p2 = pneg %p1888_p0 }
  0x2a   : > { %p1896_p3 = pnand %p1895_p1, %p1889_p2 }
  0x2c   : > { %1899 = shalt.err (!%p1896_p3)
}
  0x2d   : > { %1752 = dma.hbm_to_vmem [thread:$0]  (!%p2268_p6), %s2814_s1, 64, %s228_s29, [#allocation6]  }
  0x2e   : > { %s2816_s3 = sld [smem:[#allocation28_spill]] }
  0x34   : > { %s1900_s9 = scalar_lea.hbm %s2816_s3, 64 }
  0x35   : > { %p1901_p7 = scmp.ne.s32.totalorder %s2816_s3, %s1900_s9  ;;  %p1907_p1 = scmp.lt.u32.totalorder %s1900_s9, %s2816_s3 }
  0x37   : > { %p1903_p9 = pnand %p1901_p7, %p2280_p8 }
  0x39   : > { %p1904_p4 = pneg %p1903_p9 }
  0x3b   : > { %p1909_p3 = pnand %p1907_p1, %p1904_p4 }
  0x3d   : > { %1912 = shalt.err (!%p1909_p3)
}
  0x3e   : > { %s1913_s29 = scalar_lea.vmem %s2264_s10, 64  ;;  %p1921_p13 = scmp.lt.s32.totalorder %s2264_s10, %s2264_s10 }
  0x3f   : > { %p1914_p10 = scmp.ne.s32.totalorder %s2264_s10, %s1913_s29  ;;  %p1922_p0 = scmp.lt.s32.totalorder %s1913_s29, %s1913_s29 }
  0x41   : > { %p1916_p11 = pnand %p1914_p10, %p2280_p8  ;;  %p1923_p2 = por %p1922_p0, %p1921_p13 }
  0x43   : > { %p1917_p12 = pneg %p1916_p11 }
  0x45   : > { %p1924_p5 = pnand %p1923_p2, %p1917_p12 }
  0x47   : > { %1927 = shalt.err (!%p1924_p5)
}
  0x48   : > { %1758 = dma.hbm_to_vmem [thread:$0]  (!%p2268_p6), %s2816_s3, 64, %s2264_s10, [#allocation9]  }
  0x49   : > { %s1565_s19 = sadd.s32 4294967294, %s2154_s27   ;;  %s2321_s20 = sadd.s32 1, %s2154_s27  }
  0x4a   : > { %2817 = sst [smem:[#allocation22_spill]] %s2321_s20  ;;  %s30_s21 = ssub.s32 %s2154_s27, %s2321_s20 }
  0x4b   : > { %s33_s22 = sadd.s32 1, %s2150_s26  ;;  %p31_p7 = scmp.eq.s32.totalorder %s30_s21, 0 }
  0x4c   : > { %p40_p9 = scmp.ne.s32.totalorder %s2150_s26, %s2146_s25  ;;  %p41_p4 = scmp.eq.s32.totalorder %s2154_s27, 0 }
  0x4d   : > { %p46_p1 = scmp.ne.s32.totalorder %s2146_s25, %s2142_s24  ;;  %p2820_p10 = scmp.eq.s32.totalorder %s2252_s30, 0 }
  0x4e   : > { %s2332_s23 = scalar_select %p31_p7, %s2150_s26, %s33_s22  }
  0x4f   : > { %p2334_p3 = por %p41_p4, %p40_p9  ;;  %p2340_p11 = por %p2820_p10, %p46_p1 }
  0x50   : > { %2818 = sst [smem:[#allocation23_spill]] %s2332_s23  ;;  %p201_p12 = scmp.eq.s32.totalorder %s2252_s30, 1 }
  0x51   : > { %s2821_s10 = scalar_select %p2340_p11, 1, 0 }
  0x52   : > { %p207_p13 = scmp.eq.s32.totalorder %s1565_s19, 1  ;;  %p1781_p0 = scmp.lt.s32.totalorder %s2154_s27, 2 }
  0x53   : > { %s284_s9 = sand.u32 1, %s2154_s27   ;;  %p2347_p2 = por %p201_p12, %p40_p9 }
  0x54   : > { %p2351_p5 = por %p207_p13, %p46_p1  ;;  %s286_s14 = sand.u32 1, %s2150_s26  }
  0x55   : > { %s2822_s12 = scalar_select %p2347_p2, 1, 0 }
  0x56   : > { %s2823_s13 = scalar_select %p2351_p5, 1, 0 }
  0x57   : > { %s1573_s15 = sshll.u32 %s286_s14, 2  ;;  %s1574_s29 = sshll.u32 %s2154_s27, 6 }
  0x58   : > { %2824 = sst [smem:[#allocation24_spill]] %s2823_s13  ;;  %s2825_s0 = sld [smem:[#allocation25_spill]] }
  0x59   : > { %s288_s19 = scalar_lea.vmem [#allocation2], %s1573_s15  ;;  %p2364_p7 = pnand %p1781_p0, %p2334_p3 }
  0x5a   : > { %s295_s22 = sshll.u32 %s288_s19, 4  ;;  %s2370_s3 = sshll.u32 %s286_s14, 3  ;;  %s2368_s22 = int_to_ptr.vmem [resolvable:$true] %s295_s22 }
  0x5b   : > { %s2826_s1 = scalar_select %p2364_p7, 1, 0 }
  0x5c   : > { %s2372_s16 = scalar_lea.sflag [#allocation3], %s284_s9  ;;  %p2803_p4 = pneg %p2364_p7 }
  0x5e   : > { %s2360_s21 = scalar_lea.hbm %s2825_s0, %s1574_s29  ;;  %s1933_s18 = scalar_lea.hbm %s2825_s0, 128 }
  0x5f   : > { %s1928_s29 = scalar_lea.hbm %s2360_s21, 64  ;;  %p1934_p3 = scmp.lt.u32.totalorder %s2360_s21, %s2825_s0 }
  0x60   : > { %p1929_p9 = scmp.ne.s32.totalorder %s2360_s21, %s1928_s29  ;;  %p1935_p12 = scmp.lt.u32.totalorder %s1933_s18, %s1928_s29 }
  0x61   : > { %p1937_p0 = scmp.lt.u32.totalorder %s1928_s29, %s2360_s21 }
  0x62   : > { %p1931_p1 = pnand %p2803_p4, %p1929_p9  ;;  %p1936_p13 = por %p1935_p12, %p1934_p3 }
  0x64   : > { %p1932_p10 = pneg %p1931_p1  ;;  %p1938_p5 = por %p1937_p0, %p1936_p13 }
  0x66   : > { %p1939_p2 = pnand %p1938_p5, %p1932_p10 }
  0x68   : > { %1942 = shalt.err (!%p1939_p2)
}
  0x69   : > { %s1943_s9 = scalar_lea.vmem %s2368_s22, 64  ;;  %s2158_s14 = smov [#allocation2]  }
  0x6a   : > { %p1944_p9 = scmp.ne.s32.totalorder %s2368_s22, %s1943_s9  ;;  %s1948_s28 = sshll.u32 %s2158_s14, 4  ;;  %s1949_s28 = int_to_ptr.vmem [resolvable:$false] %s1948_s28 }
  0x6b   : > { %s1950_s23 = scalar_lea.vmem %s1949_s28, 128  ;;  %p1951_p6 = scmp.lt.s32.totalorder %s2368_s22, %s1949_s28 }
  0x6c   : > { %p1946_p1 = pnand %p1944_p9, %p2803_p4  ;;  %p1952_p3 = scmp.lt.s32.totalorder %s1950_s23, %s1943_s9 }
  0x6e   : > { %p1947_p11 = pneg %p1946_p1  ;;  %p1953_p12 = por %p1952_p3, %p1951_p6 }
  0x70   : > { %p1954_p13 = pnand %p1953_p12, %p1947_p11 }
  0x72   : > { %1957 = shalt.err (!%p1954_p13)
}
  0x73   : > { %1768 = dma.hbm_to_vmem [thread:$0]  (!%p2364_p7), %s2360_s21, 64, %s2368_s22, %s2372_s16  }
  0x74   : > { %s2159_s29 = smov [#allocation7]   ;;  %s2160_s18 = smov [#allocation10]  }
  0x75   : > { %s238_s15 = sshll.u32 %s2159_s29, 4  ;;  %s259_s19 = sshll.u32 %s2160_s18, 4  ;;  %s239_s15 = int_to_ptr.vmem [resolvable:$true] %s238_s15  ;;  %s260_s19 = int_to_ptr.vmem [resolvable:$true] %s259_s19 }
  0x76   : > { %s2827_s2 = sld [smem:[#allocation27_spill]] }
  0x7c   : > { %s1958_s28 = scalar_lea.hbm %s2827_s2, 64 }
  0x7d   : > { %p1959_p6 = scmp.ne.s32.totalorder %s2827_s2, %s1958_s28  ;;  %p1965_p5 = scmp.lt.u32.totalorder %s1958_s28, %s2827_s2 }
  0x7f   : > { %p1961_p11 = pnand %p1959_p6, %p2280_p8 }
  0x81   : > { %p1962_p2 = pneg %p1961_p11 }
  0x83   : > { %p1967_p10 = pnand %p1965_p5, %p1962_p2 }
  0x85   : > { %1970 = shalt.err (!%p1967_p10)
}
  0x86   : > { %s1971_s21 = scalar_lea.vmem %s239_s15, 64  ;;  %p1979_p3 = scmp.lt.s32.totalorder %s239_s15, %s239_s15 }
  0x87   : > { %p1972_p0 = scmp.ne.s32.totalorder %s239_s15, %s1971_s21  ;;  %p1980_p12 = scmp.lt.s32.totalorder %s1971_s21, %s1971_s21 }
  0x89   : > { %p1974_p9 = pnand %p1972_p0, %p2280_p8  ;;  %p1981_p13 = por %p1980_p12, %p1979_p3 }
  0x8b   : > { %p1975_p1 = pneg %p1974_p9 }
  0x8d   : > { %p1982_p4 = pnand %p1981_p13, %p1975_p1 }
  0x8f   : > { %1985 = shalt.err (!%p1982_p4)
}
  0x90   : > { %p2828_p6 = scmp.ne.s32.totalorder %s2813_s11, 0  ;;  %s1986_s29 = scalar_lea.hbm %s2790_s4, 256 }
  0x91   : > { %p1987_p11 = scmp.ne.s32.totalorder %s2790_s4, %s1986_s29  ;;  %p1993_p4 = scmp.lt.u32.totalorder %s1986_s29, %s2790_s4 }
  0x92   : > { %1755 = dma.hbm_to_vmem [thread:$0]  (!%p2828_p6), %s2827_s2, 64, %s239_s15, [#allocation6]  }
  0x93   : > { %p1989_p2 = pnand %p1987_p11, %p2280_p8 }
  0x95   : > { %p1990_p5 = pneg %p1989_p2 }
  0x97   : > { %p1995_p10 = pnand %p1993_p4, %p1990_p5 }
  0x99   : > { %1998 = shalt.err (!%p1995_p10)
}
  0x9a   : > { %s1999_s23 = scalar_lea.vmem %s260_s19, 256  ;;  %p2007_p3 = scmp.lt.s32.totalorder %s260_s19, %s260_s19 }
  0x9b   : > { %p2000_p0 = scmp.ne.s32.totalorder %s260_s19, %s1999_s23  ;;  %p2008_p12 = scmp.lt.s32.totalorder %s1999_s23, %s1999_s23 }
  0x9d   : > { %p2002_p9 = pnand %p2000_p0, %p2280_p8  ;;  %p2009_p13 = por %p2008_p12, %p2007_p3 }
  0x9f   : > { %p2003_p1 = pneg %p2002_p9 }
  0xa1   : > { %p2010_p7 = pnand %p2009_p13, %p2003_p1 }
  0xa3   : > { %2013 = shalt.err (!%p2010_p7)
}
  0xa4   : > { %s2161_s15 = smov 64   ;;  %s2162_s21 = smov 4  }
  0xa5   : > { %1761 = dma.hbm_to_vmem [thread:$0]  (!%p2828_p6), %s2790_s4, 256, %s260_s19, [#allocation9], %s2161_s15, %s2161_s15, %s2162_s21  }
  0xa6   : > { %s2163_s26 = smov [#allocation11]   ;;  %s1576_s29 = sshll.u32 %s2154_s27, 7 }
  0xa7   : > { %s273_s20 = sshll.u32 %s2163_s26, 4  ;;  %s2014_s28 = scalar_lea.hbm %s2791_s5, 16  ;;  %s274_s20 = int_to_ptr.vmem [resolvable:$true] %s273_s20 }
  0xa8   : > { %p2015_p7 = scmp.ne.s32.totalorder %s2791_s5, %s2014_s28  ;;  %p2021_p5 = scmp.lt.u32.totalorder %s2014_s28, %s2791_s5 }
  0xaa   : > { %p2017_p11 = pnand %p2015_p7, %p2280_p8 }
  0xac   : > { %p2018_p2 = pneg %p2017_p11 }
  0xae   : > { %p2023_p4 = pnand %p2021_p5, %p2018_p2 }
  0xb0   : > { %2026 = shalt.err (!%p2023_p4)
}
  0xb1   : > { %s2027_s19 = scalar_lea.vmem %s274_s20, 16  ;;  %s2034_s15 = scalar_lea.vmem %s274_s20, 32 }
  0xb2   : > { %p2028_p10 = scmp.ne.s32.totalorder %s274_s20, %s2027_s19  ;;  %p2035_p1 = scmp.lt.s32.totalorder %s274_s20, %s274_s20 }
  0xb3   : > { %p2036_p3 = scmp.lt.s32.totalorder %s2034_s15, %s2027_s19 }
  0xb4   : > { %p2030_p0 = pnand %p2028_p10, %p2280_p8 }
  0xb5   : > { %p2037_p12 = por %p2036_p3, %p2035_p1 }
  0xb6   : > { %p2031_p9 = pneg %p2030_p0 }
  0xb8   : > { %p2038_p13 = pnand %p2037_p12, %p2031_p9 }
  0xba   : > { %2041 = shalt.err (!%p2038_p13)
}
  0xbb   : > { %1764 = dma.hbm_to_vmem [thread:$0]  (!%p2828_p6), %s2791_s5, 16, %s274_s20, [#allocation12]  }
  0xbc   : > { %s2458_s17 = scalar_lea.hbm %s2792_s6, %s1576_s29  ;;  %s306_s22 = scalar_lea.vmem [#allocation13], %s2370_s3 }
  0xbd   : > { %s313_s26 = sshll.u32 %s306_s22, 4  ;;  %s2042_s18 = scalar_lea.hbm %s2458_s17, 128  ;;  %s314_s26 = int_to_ptr.vmem [resolvable:$true] %s313_s26 }
  0xbe   : > { %p2043_p8 = scmp.ne.s32.totalorder %s2458_s17, %s2042_s18  ;;  %p2829_p7 = scmp.ne.s32.totalorder %s2826_s1, 0 }
  0xbf   : > { %s2047_s14 = scalar_lea.hbm %s2792_s6, 256  ;;  %p2048_p6 = scmp.lt.u32.totalorder %s2458_s17, %s2792_s6 }
  0xc0   : > { %p2830_p11 = pneg %p2829_p7  ;;  %p2049_p4 = scmp.lt.u32.totalorder %s2047_s14, %s2042_s18 }
  0xc1   : > { %p2051_p0 = scmp.lt.u32.totalorder %s2042_s18, %s2458_s17 }
  0xc2   : > { %p2045_p2 = pnand %p2043_p8, %p2830_p11  ;;  %p2050_p10 = por %p2049_p4, %p2048_p6 }
  0xc4   : > { %p2046_p5 = pneg %p2045_p2  ;;  %p2052_p9 = por %p2051_p0, %p2050_p10 }
  0xc6   : > { %p2053_p1 = pnand %p2052_p9, %p2046_p5 }
  0xc8   : > { %2056 = shalt.err (!%p2053_p1)
}
  0xc9   : > { %s2057_s3 = scalar_lea.vmem %s314_s26, 128  ;;  %p2831_p12 = pmov %p2830_p11 }
  0xca   : > { %p2058_p3 = scmp.ne.s32.totalorder %s314_s26, %s2057_s3  ;;  %s2164_s9 = smov [#allocation13]  }
  0xcb   : > { %s2062_s23 = sshll.u32 %s2164_s9, 4  ;;  %s2063_s23 = int_to_ptr.vmem [resolvable:$false] %s2062_s23 }
  0xcc   : > { %p2060_p13 = pnand %p2058_p3, %p2831_p12  ;;  %s2064_s19 = scalar_lea.vmem %s2063_s23, 256 }
  0xcd   : > { %p2065_p11 = scmp.lt.s32.totalorder %s314_s26, %s2063_s23  ;;  %p2066_p2 = scmp.lt.s32.totalorder %s2064_s19, %s2057_s3 }
  0xce   : > { %p2061_p8 = pneg %p2060_p13 }
  0xcf   : > { %p2067_p4 = por %p2066_p2, %p2065_p11 }
  0xd1   : > { %p2068_p6 = pnand %p2067_p4, %p2061_p8 }
  0xd3   : > { %2071 = shalt.err (!%p2068_p6)
}
  0xd4   : > { %1771 = dma.hbm_to_vmem [thread:$0]  (!%p2829_p7), %s2458_s17, 128, %s314_s26, %s2372_s16  }
  0xd5   : > { %p2832_p5 = scmp.ne.s32.totalorder %s2812_s8, 0 }
  0xd6   : > { %s324_s15 = sand.u32 (!%p2832_p5), 1, %s2252_s30   ;;  %s2485_s21 = sand.u32 (!%p2832_p5), 1, %s2146_s25  }
  0xd7   : > { %322 = sbr.rel (%p2832_p5) target bundleno = 3803 (0xedb), region = 48  ;;  %s1578_s0 = sshll.u32 (!%p2832_p5), %s2485_s21, 2 }
  0xd8   : > { %s325_s2 = scalar_lea.sflag (!%p2832_p5), [#allocation3], %s324_s15  ;;  %s328_s13 = scalar_lea.vmem (!%p2832_p5), [#allocation2], %s1578_s0 }
  0xd9   : > { %p2833_p10 = scmp.ne.s32.totalorder (!%p2832_p5), %s2821_s10, 0 }
  0xde   : > { %2117 = dma.done.wait (%p2833_p10), %s325_s2, 64  }
  0xdf   : > { %2119 = vsyncadd (%p2833_p10), %s325_s2, 4294967232  ;;  %p2834_p7 = scmp.eq.s32.totalorder %s2252_s30, 0 }
  0xe1   : > { %2121 = dma.done.wait (%p2834_p7), [#allocation6], 128   ;;  %p2835_p0 = pmov %p2834_p7 }
  0xe3   : > { %2123 = vsyncadd (%p2835_p0), [#allocation6], 4294967168  ;;  %p2836_p9 = pmov %p2835_p0 }
  0xe4   : > { %p2837_p1 = pmov %p2835_p0 }
  0xe5   : > { %2125 = dma.done.wait (%p2836_p9), [#allocation9], 320  }
  0xe6   : > { %2127 = vsyncadd (%p2837_p1), [#allocation9], 4294966976  ;;  %p2838_p3 = pmov %p2835_p0 }
  0xe7   : > { %p2839_p12 = pmov %p2835_p0 }
  0xe8   : > { %2129 = dma.done.wait (%p2838_p3), [#allocation12], 16  }
  0xe9   : > { %2131 = vsyncadd (%p2839_p12), [#allocation12], 4294967280  ;;  %s1584_s1 = sshll.u32 %s2485_s21, 3 }
  0xea   : > { %s2507_s8 = scalar_lea.vmem [#allocation13], %s1584_s1 }
  0xeb   : > { %2133 = dma.done.wait (%p2833_p10), %s325_s2, 128  }
  0xec   : > { %2135 = vsyncadd (%p2833_p10), %s325_s2, 4294967168  ;;  %v2165_v0 = vmov 0.0   ;;  %vm2166_vm0 = vmmov 0   ;;  %vm411_vm1 = vcmask 64512   ;;  %v395_v1 = vld [vmem:[#allocation5] sm:$0xf]  ;;  %v477_v27 = vlaneseq }
  0xed   : > { %1643 = vmatprep.subr.bf16.mxu0 %v2165_v0  ;;  %1645 = vmatprep.mubr.msk.bf16.mxu0 %vm2166_vm0, %v2165_v0  ;;  %v394_v2 = vld [vmem:[%s328_s13] sm:$0xf]  ;;  %v1587_v3 = vld [vmem:[#allocation8] ss:$0 sm:$0xff]  ;;  %v416_v4 = vsel %vm411_vm1, %v395_v1, 0  ;;  %s2167_s10 = smov 96   ;;  %v2552_v36 = vcombine.low %v395_v1, %v395_v1 }
  0xee   : > { %1649 = vmatprep.subr.bf16.mxu1 %v2165_v0  ;;  %1651 = vmatprep.mubr.msk.bf16.mxu1 %vm2166_vm0, %v2165_v0  ;;  %v2520_v5 = vunpack.c.l.bf16 %v394_v2  ;;  %v2522_v6 = vcombine.low %v394_v2, %v394_v2  ;;  %vm463_vm2 = vcmask 1045504   ;;  %s2168_s16 = smov 1   ;;  %s2169_s17 = smov 9   ;;  %v1586_v18 = vld [vmem:[#allocation7] ss:$0 sm:$0xff]  ;;  %vm472_vm3 = vcmask 7168  }
  0xef   : > { %1644 = vmatpush3.bf16.xpose.msra.mxu0 %v416_v4  ;;  %vm475_vm4 = vcmask 72704   ;;  %s2170_s22 = smov 15   ;;  %s2171_s26 = smov 127   ;;  %v1593_v26 = vld [vmem:[#allocation8 + $0x1] ss:$0 sm:$0xff]  ;;  %v478_v28 = vshrl.u32 %v477_v27, 7 }
  0xf0   : > { %v409_v7 = vadd.f32 %v1587_v3, %v2520_v5  ;;  %519 = vrot.lane.b32.xlu0 %v2522_v6, %s2167_s10  ;;  %1655 = vmatprep.subr.bf16.mxu0 %v2165_v0  ;;  %v402_v19 = vadd.f32 %v1586_v18, %v2520_v5  ;;  %s2172_s18 = smov 8   ;;  %vm487_vm5 = vcmask 121856   ;;  %s2173_s11 = smov 14   ;;  %vm499_vm7 = vcmask 113664   ;;  %v1592_v51 = vld [vmem:[#allocation7 + $0x1] ss:$0 sm:$0xff] }
  0xf1   : > { %v479_v29 = vsub.s32 7, %v478_v28  ;;  %s2174_s20 = smov 126   ;;  %s2175_s14 = smov 120   ;;  %vm511_vm9 = vcmask 97280   ;;  %vm568_vm11 = vcmask 55296   ;;  %vm587_vm12 = vcmask 1042432  }
  0xf2   : > { %v410_v8 = vpack.c.bf16 %v409_v7, %v409_v7  ;;  %v403_v20 = vpack.c.bf16 %v402_v19, %v402_v19  ;;  %s2176_s28 = smov 12   ;;  %s2177_s29 = smov 124   ;;  %vm588_vm13 = vcmask 1043456   ;;  %vm583_vm14 = vcmask 56320  }
  0xf3   : > { %v489_v30 = vand.u32 1, %v479_v29  ;;  %v501_v44 = vand.u32 2, %v479_v29  ;;  %v513_v54 = vand.u32 4, %v479_v29  ;;  %s2178_s3 = smov 64   ;;  %s2180_s9 = smov 88   ;;  %vm1337_vm15 = vcmask 130048  }
  0xf4   : > { %s2181_s23 = smov 16   ;;  %s2182_s19 = smov 112  }
  0xf5   : > { %vm2545_vm6 = vcmp.ne.s32.totalorder %v489_v30, 0  ;;  %vm2560_vm8 = vcmp.ne.s32.totalorder %v501_v44, 0  ;;  %vm2575_vm10 = vcmp.ne.s32.totalorder %v513_v54, 0  ;;  %s2183_s15 = smov 56   ;;  %s2184_s0 = smov 80  }
  0xf6   : > { %1646 = vmatmul.mubr.msk.bf16.vlgmr.msra.gmra.mrb[0].mxu0 %vm411_vm1, %v410_v8  ;;  %s2185_s2 = smov 24   ;;  %s2186_s13 = smov 104  }
  0xf7   : > { %1657 = vmatprep.mubr.msk.bf16.mxu0 %vm2166_vm0, %v2165_v0  ;;  %s2187_s10 = smov 48   ;;  %p2846_p8 = scmp.ne.s32.totalorder %s2822_s12, 0 }
 0x162   : > { %v520_v9 = vpop.permute.xlu0 %519 }
 0x163   : > { %v525_v10 = vsel %vm411_vm1, %v520_v9, 0  ;;  %v2179_v9 = vmov 65535  }
 0x164   : > { %1650 = vmatpush3.bf16.xpose.msra.mxu1 %v525_v10  ;;  %v589_v10 = vsel %vm587_vm12, 4294967295, %v2179_v9 }
 0x165   : > { %1661 = vmatprep.subr.bf16.mxu1 %v2165_v0 }
 0x16b   : > { %1652 = vmatmul.mubr.msk.bf16.vlgmr.msra.gmra.mrb[0].mxu1 %vm411_vm1, %v403_v20 }
 0x16c   : > { %1663 = vmatprep.mubr.msk.bf16.mxu1 %vm2166_vm0, %v2165_v0 }
 0x1c9   : > { %v452_v11 = vpop.f32.mrb[0].mxu0 }
 0x1ca   : > { %v459_v12 = vrot.slane %v452_v11, 1  ;;  %v461_v13 = vrot.slane %v452_v11, 2  ;;  %465 = vrot.lane.b32.xlu0 %v452_v11, %s2168_s16  ;;  %v1647_v14 = vpop.f32.mrb[1].mxu0 }
 0x1cb   : > { %v455_v15 = vpop.f32.mrb[2].mxu0 }
 0x1cc   : > { %v1648_v16 = vpop.f32.mrb[3].mxu0  ;;  %v464_v17 = vsel %vm463_vm2, %v459_v12, %v461_v13  ;;  %v2587_v13 = vsel %vm588_vm13, %v589_v10, 0 }
 0x1cd   : > { %469 = vrot.lane.b32.xlu1 %v464_v17, %s2169_s17 }
 0x23c   : > { %v466_v21 = vpop.permute.xlu0 %465 }
 0x23d   : > { %v473_v22 = vsel %vm472_vm3, 0.0, %v466_v21 }
 0x23e   : > { %v474_v23 = vsel %vm411_vm1, %v473_v22, 0.0  ;;  %v561_v40 = vpop.f32.mrb[0].mxu1 }
 0x23f   : > { %v470_v24 = vpop.permute.xlu1 %469  ;;  %v1653_v41 = vpop.f32.mrb[1].mxu1 }
 0x240   : > { %v476_v25 = vsel %vm475_vm4, %v474_v23, %v470_v24  ;;  %v564_v42 = vpop.f32.mrb[2].mxu1 }
 0x241   : > { %484 = vrot.lane.b32.xlu0 %v476_v25, %s2170_s22  ;;  %481 = vrot.lane.b32.xlu1 %v476_v25, %s2171_s26  ;;  %v1654_v43 = vpop.f32.mrb[3].mxu1 }
 0x245   : > { %652 = vrot.lane.b32.xlu1 %v1593_v26, %s2172_s18 }
 0x2b3   : > { %v485_v32 = vpop.permute.xlu0 %484  ;;  %v482_v33 = vpop.permute.xlu1 %481 }
 0x2b4   : > { %v488_v34 = vsel %vm487_vm5, %v482_v33, %v485_v32  ;;  %v1599_v32 = vld [vmem:[#allocation8 + $0x2] ss:$0 sm:$0xff] }
 0x2b5   : > { %v491_v35 = vsel %vm2545_vm6, %v488_v34, %v476_v25 }
 0x2b6   : > { %496 = vrot.lane.b32.xlu1 %v491_v35, %s2173_s11  ;;  %493 = vrot.lane.b32.xlu0 %v491_v35, %s2174_s20 }
 0x2b7   : > { %v653_v37 = vpop.permute.xlu1 %652 }
 0x2b8   : > { %v655_v38 = vadd.f32 %v653_v37, %v2520_v5 }
 0x2ba   : > { %663 = vrot.lane.b32.xlu0 %v2552_v36, %s2175_s14  ;;  %v656_v39 = vpack.c.bf16 %v655_v38, %v655_v38 }
 0x2bc   : > { %658 = vrot.lane.b32.xlu1 %v656_v39, %s2175_s14 }
 0x328   : > { %v494_v46 = vpop.permute.xlu0 %493  ;;  %v497_v47 = vpop.permute.xlu1 %496 }
 0x329   : > { %v500_v48 = vsel %vm499_vm7, %v494_v46, %v497_v47 }
 0x32a   : > { %v503_v49 = vsel %vm2560_vm8, %v500_v48, %v491_v35 }
 0x32b   : > { %508 = vrot.lane.b32.xlu1 %v503_v49, %s2176_s28  ;;  %505 = vrot.lane.b32.xlu0 %v503_v49, %s2177_s29 }
 0x32c   : > { %v664_v50 = vpop.permute.xlu0 %663 }
 0x32d   : > { %v669_v52 = vsel %vm411_vm1, %v664_v50, 0 }
 0x32e   : > { %1662 = vmatpush3.bf16.xpose.msra.mxu1 %v669_v52  ;;  %v659_v53 = vpop.permute.xlu1 %658 }
 0x32f   : > { %641 = vrot.lane.b32.xlu1 %v1592_v51, %s2172_s18  ;;  %1673 = vmatprep.subr.bf16.mxu1 %v2165_v0 }
 0x335   : > { %1664 = vmatmul.mubr.msk.bf16.vlgmr.msra.gmra.mrb[4].mxu1 %vm411_vm1, %v659_v53 }
 0x336   : > { %1675 = vmatprep.mubr.msk.bf16.mxu1 %vm2166_vm0, %v2165_v0 }
 0x39d   : > { %v506_v56 = vpop.permute.xlu0 %505  ;;  %v509_v57 = vpop.permute.xlu1 %508 }
 0x39e   : > { %v512_v58 = vsel %vm511_vm9, %v506_v56, %v509_v57 }
 0x39f   : > { %v515_v59 = vsel %vm2575_vm10, %v512_v58, %v503_v49 }
 0x3a0   : > { %v562_v60 = vadd.f32 %v561_v40, %v515_v59  ;;  %v1598_v59 = vld [vmem:[#allocation7 + $0x2] ss:$0 sm:$0xff] }
 0x3a1   : > { %v642_v63 = vpop.permute.xlu1 %641 }
 0x3a2   : > { %v567_v61 = vmul.f32 0.17677669, %v562_v60  ;;  %v644_v1 = vadd.f32 %v642_v63, %v2520_v5 }
 0x3a4   : > { %v569_v62 = vsel %vm568_vm11, %v567_v61, -inf  ;;  %v645_v2 = vpack.c.bf16 %v644_v1, %v644_v1 }
 0x3a5   : > { %570 = vmax.xlane.f32.xlu0 %v569_v62 }
 0x3bb   : > { %581 = vrot.lane.b32.xlu0 %v2522_v6, %s2178_s3 }
 0x3bf   : > { %755 = vrot.lane.b32.xlu0 %v645_v2, %s2175_s14  ;;  %s2188_s14 = smov 72  }
 0x408   : > { %v705_v3 = vpop.f32.mrb[4].mxu1 }
 0x409   : > { %v1665_v4 = vpop.f32.mrb[5].mxu1  ;;  %717 = vrot.lane.b32.xlu0 %v705_v3, %s2168_s16  ;;  %v712_v19 = vrot.slane %v705_v3, 1  ;;  %v714_v20 = vrot.slane %v705_v3, 2 }
 0x40a   : > { %v708_v7 = vpop.f32.mrb[6].mxu1 }
 0x40b   : > { %v1666_v8 = vpop.f32.mrb[7].mxu1  ;;  %v716_v21 = vsel %vm463_vm2, %v712_v19, %v714_v20 }
 0x432   : > { %v571_v11 = vpop.xlane.xlu0 %570 }
 0x433   : > { %v572_v12 = vsub.f32 %v567_v61, %v571_v11 }
 0x435   : > { %v573_v14 = vmul.f32 1.442695, %v572_v12 }
 0x436   : > { %v582_v15 = vpop.permute.xlu0 %581 }
 0x437   : > { %1856 = vpow2.f32 %v573_v14  ;;  %v592_v16 = vand.u32 %v2587_v13, %v582_v15 }
 0x439   : > { %1656 = vmatpush3.bf16.msra.mxu0 %v592_v16 }
 0x43a   : > { %1667 = vmatprep.subr.bf16.mxu0 %v2165_v0  ;;  %v756_v22 = vpop.permute.xlu0 %755 }
 0x441   : > { %v1857_v17 = vpop.eup %1856 }
 0x442   : > { %v575_v18 = vsel %vm568_vm11, %v1857_v17, 0.0 }
 0x443   : > { %576 = vadd.xlane.f32.xlu1 %v575_v18 }
 0x454   : > { %757 = vrot.lane.b32.xlu1 %v2522_v6, %s2180_s9 }
 0x458   : > { %721 = vrot.lane.b32.xlu1 %v716_v21, %s2169_s17 }
 0x47b   : > { %v718_v24 = vpop.permute.xlu0 %717 }
 0x47c   : > { %v724_v25 = vsel %vm472_vm3, 0.0, %v718_v24 }
 0x47d   : > { %v725_v27 = vsel %vm411_vm1, %v724_v25, 0.0 }
 0x4d0   : > { %v577_v23 = vpop.xlane.xlu1 %576 }
 0x4d1   : > { %1858 = vrcp.f32 %v577_v23 }
 0x4d4   : > { %v758_v26 = vpop.permute.xlu1 %757 }
 0x4d5   : > { %v763_v35 = vsel %vm411_vm1, %v758_v26, 0 }
 0x4d8   : > { %v722_v28 = vpop.permute.xlu1 %721 }
 0x4d9   : > { %v726_v29 = vsel %vm475_vm4, %v725_v27, %v722_v28 }
 0x4da   : > { %731 = vrot.lane.b32.xlu1 %v726_v29, %s2170_s22  ;;  %728 = vrot.lane.b32.xlu0 %v726_v29, %s2171_s26 }
 0x4db   : > { %v1859_v30 = vpop.eup %1858 }
 0x4dc   : > { %v579_v33 = vmul.f32 %v1859_v30, %v1857_v17 }
 0x4de   : > { %v580_v34 = vpack.c.bf16 %v579_v33, %v579_v33  ;;  %884 = vrot.lane.b32.xlu0 %v1599_v32, %s2181_s23 }
 0x4e0   : > { %1658 = vmatmul.mubr.msk.bf16.vlgmr.msra.gmra.mrb[4].mxu0 %vm583_vm14, %v580_v34 }
 0x4e1   : > { %1668 = vmatpush3.bf16.xpose.msra.mxu0 %v763_v35  ;;  %1669 = vmatprep.mubr.msk.bf16.mxu0 %vm2166_vm0, %v2165_v0 }
 0x4e2   : > { %1679 = vmatprep.subr.bf16.mxu0 %v2165_v0 }
 0x4e8   : > { %1670 = vmatmul.mubr.msk.bf16.vlgmr.msra.gmra.mrb[8].mxu0 %vm411_vm1, %v756_v22 }
 0x4e9   : > { %1681 = vmatprep.mubr.msk.bf16.mxu0 %vm2166_vm0, %v2165_v0 }
 0x54c   : > { %v732_v37 = vpop.permute.xlu1 %731  ;;  %v729_v38 = vpop.permute.xlu0 %728 }
 0x54d   : > { %v734_v39 = vsel %vm487_vm5, %v729_v38, %v732_v37  ;;  %v1604_v37 = vld [vmem:[#allocation8 + $0x3] ss:$0 sm:$0xff] }
 0x54e   : > { %v735_v40 = vsel %vm2545_vm6, %v734_v39, %v726_v29 }
 0x54f   : > { %740 = vrot.lane.b32.xlu0 %v735_v40, %s2173_s11  ;;  %737 = vrot.lane.b32.xlu1 %v735_v40, %s2174_s20 }
 0x550   : > { %v885_v41 = vpop.permute.xlu0 %884 }
 0x551   : > { %v887_v42 = vadd.f32 %v885_v41, %v2520_v5 }
 0x553   : > { %892 = vrot.lane.b32.xlu1 %v2552_v36, %s2182_s19  ;;  %v888_v43 = vpack.c.bf16 %v887_v42, %v887_v42 }
 0x555   : > { %890 = vrot.lane.b32.xlu0 %v888_v43, %s2182_s19 }
 0x5b3   : > { %v2618_v44 = vpop.f32.mrb[4].mxu0 }
 0x5b4   : > { %v1659_v46 = vpop.f32.mrb[5].mxu0 }
 0x5b5   : > { %v631_v47 = vpop.f32.mrb[6].mxu0 }
 0x5b6   : > { %v1660_v48 = vpop.f32.mrb[7].mxu0 }
 0x5bb   : > { %v799_v49 = vpop.f32.mrb[8].mxu0 }
 0x5bc   : > { %v1671_v50 = vpop.f32.mrb[9].mxu0 }
 0x5bd   : > { %v802_v51 = vpop.f32.mrb[10].mxu0 }
 0x5be   : > { %v1672_v52 = vpop.f32.mrb[11].mxu0 }
 0x5c1   : > { %v738_v53 = vpop.permute.xlu1 %737  ;;  %v741_v54 = vpop.permute.xlu0 %740 }
 0x5c2   : > { %v743_v56 = vsel %vm499_vm7, %v738_v53, %v741_v54 }
 0x5c3   : > { %v744_v57 = vsel %vm2560_vm8, %v743_v56, %v735_v40 }
 0x5c4   : > { %749 = vrot.lane.b32.xlu0 %v744_v57, %s2176_s28  ;;  %746 = vrot.lane.b32.xlu1 %v744_v57, %s2177_s29 }
 0x5c5   : > { %v893_v58 = vpop.permute.xlu1 %892 }
 0x5c6   : > { %v898_v60 = vsel %vm411_vm1, %v893_v58, 0 }
 0x5c7   : > { %1680 = vmatpush3.bf16.xpose.msra.mxu0 %v898_v60  ;;  %v891_v61 = vpop.permute.xlu0 %890 }
 0x5c8   : > { %873 = vrot.lane.b32.xlu0 %v1598_v59, %s2181_s23  ;;  %1691 = vmatprep.subr.bf16.mxu0 %v2165_v0 }
 0x5ce   : > { %1682 = vmatmul.mubr.msk.bf16.vlgmr.msra.gmra.mrb[12].mxu0 %vm411_vm1, %v891_v61 }
 0x5cf   : > { %1693 = vmatprep.mubr.msk.bf16.mxu0 %vm2166_vm0, %v2165_v0 }
 0x636   : > { %v747_v62 = vpop.permute.xlu1 %746  ;;  %v750_v63 = vpop.permute.xlu0 %749 }
 0x637   : > { %v752_v1 = vsel %vm511_vm9, %v747_v62, %v750_v63  ;;  %v1603_v63 = vld [vmem:[#allocation7 + $0x3] ss:$0 sm:$0xff] }
 0x638   : > { %v753_v2 = vsel %vm2575_vm10, %v752_v1, %v744_v57 }
 0x639   : > { %v800_v3 = vadd.f32 %v799_v49, %v753_v2 }
 0x63a   : > { %v874_v8 = vpop.permute.xlu0 %873 }
 0x63b   : > { %v805_v4 = vmul.f32 0.17677669, %v800_v3  ;;  %v876_v9 = vadd.f32 %v874_v8, %v2520_v5 }
 0x63d   : > { %v806_v7 = vsel %vm568_vm11, %v805_v4, -inf  ;;  %v877_v10 = vpack.c.bf16 %v876_v9, %v876_v9 }
 0x63e   : > { %807 = vmax.xlane.f32.xlu1 %v806_v7 }
 0x64f   : > { %818 = vrot.lane.b32.xlu1 %v2522_v6, %s2183_s15 }
 0x653   : > { %984 = vrot.lane.b32.xlu1 %v877_v10, %s2182_s19 }
 0x6a1   : > { %v934_v11 = vpop.f32.mrb[12].mxu0 }
 0x6a2   : > { %v1683_v12 = vpop.f32.mrb[13].mxu0  ;;  %946 = vrot.lane.b32.xlu1 %v934_v11, %s2168_s16  ;;  %v941_v23 = vrot.slane %v934_v11, 1  ;;  %v943_v24 = vrot.slane %v934_v11, 2 }
 0x6a3   : > { %v937_v14 = vpop.f32.mrb[14].mxu0 }
 0x6a4   : > { %v1684_v15 = vpop.f32.mrb[15].mxu0  ;;  %v945_v25 = vsel %vm463_vm2, %v941_v23, %v943_v24 }
 0x6cb   : > { %v808_v16 = vpop.xlane.xlu1 %807 }
 0x6cc   : > { %v809_v17 = vsub.f32 %v805_v4, %v808_v16 }
 0x6ce   : > { %v810_v18 = vmul.f32 1.442695, %v809_v17 }
 0x6cf   : > { %v819_v19 = vpop.permute.xlu1 %818 }
 0x6d0   : > { %1860 = vpow2.f32 %v810_v18  ;;  %v824_v20 = vand.u32 %v819_v19, %v2587_v13 }
 0x6d2   : > { %1674 = vmatpush3.bf16.msra.mxu1 %v824_v20 }
 0x6d3   : > { %1685 = vmatprep.subr.bf16.mxu1 %v2165_v0  ;;  %v985_v26 = vpop.permute.xlu1 %984 }
 0x6da   : > { %v1861_v21 = vpop.eup %1860 }
 0x6db   : > { %v812_v22 = vsel %vm568_vm11, %v1861_v21, 0.0 }
 0x6dc   : > { %813 = vadd.xlane.f32.xlu0 %v812_v22 }
 0x6f2   : > { %986 = vrot.lane.b32.xlu0 %v2522_v6, %s2184_s0 }
 0x6f6   : > { %950 = vrot.lane.b32.xlu0 %v945_v25, %s2169_s17 }
 0x714   : > { %v947_v28 = vpop.permute.xlu1 %946 }
 0x715   : > { %v953_v29 = vsel %vm472_vm3, 0.0, %v947_v28 }
 0x716   : > { %v954_v32 = vsel %vm411_vm1, %v953_v29, 0.0 }
 0x769   : > { %v814_v27 = vpop.xlane.xlu0 %813 }
 0x76a   : > { %1862 = vrcp.f32 %v814_v27 }
 0x76d   : > { %v987_v30 = vpop.permute.xlu0 %986 }
 0x76e   : > { %v992_v40 = vsel %vm411_vm1, %v987_v30, 0 }
 0x771   : > { %v951_v33 = vpop.permute.xlu0 %950 }
 0x772   : > { %v955_v34 = vsel %vm475_vm4, %v954_v32, %v951_v33 }
 0x773   : > { %960 = vrot.lane.b32.xlu0 %v955_v34, %s2170_s22  ;;  %957 = vrot.lane.b32.xlu1 %v955_v34, %s2171_s26 }
 0x774   : > { %v1863_v35 = vpop.eup %1862 }
 0x775   : > { %v816_v38 = vmul.f32 %v1863_v35, %v1861_v21 }
 0x777   : > { %v817_v39 = vpack.c.bf16 %v816_v38, %v816_v38  ;;  %1113 = vrot.lane.b32.xlu1 %v1604_v37, %s2185_s2 }
 0x779   : > { %1676 = vmatmul.mubr.msk.bf16.vlgmr.msra.gmra.mrb[8].mxu1 %vm583_vm14, %v817_v39 }
 0x77a   : > { %1686 = vmatpush3.bf16.xpose.msra.mxu1 %v992_v40  ;;  %1687 = vmatprep.mubr.msk.bf16.mxu1 %vm2166_vm0, %v2165_v0 }
 0x77b   : > { %1697 = vmatprep.subr.bf16.mxu1 %v2165_v0 }
 0x781   : > { %1688 = vmatmul.mubr.msk.bf16.vlgmr.msra.gmra.mrb[12].mxu1 %vm411_vm1, %v985_v26 }
 0x782   : > { %1699 = vmatprep.mubr.msk.bf16.mxu1 %vm2166_vm0, %v2165_v0 }
 0x7e5   : > { %v961_v41 = vpop.permute.xlu0 %960  ;;  %v958_v42 = vpop.permute.xlu1 %957 }
 0x7e6   : > { %v963_v43 = vsel %vm487_vm5, %v958_v42, %v961_v41 }
 0x7e7   : > { %v964_v46 = vsel %vm2545_vm6, %v963_v43, %v955_v34 }
 0x7e8   : > { %969 = vrot.lane.b32.xlu1 %v964_v46, %s2173_s11  ;;  %966 = vrot.lane.b32.xlu0 %v964_v46, %s2174_s20 }
 0x7e9   : > { %v1114_v47 = vpop.permute.xlu1 %1113 }
 0x7ea   : > { %v1116_v48 = vadd.f32 %v1114_v47, %v2520_v5 }
 0x7ec   : > { %1121 = vrot.lane.b32.xlu0 %v2552_v36, %s2186_s13  ;;  %v1117_v49 = vpack.c.bf16 %v1116_v48, %v1116_v48 }
 0x7ee   : > { %1119 = vrot.lane.b32.xlu1 %v1117_v49, %s2186_s13 }
 0x84c   : > { %v2668_v50 = vpop.f32.mrb[8].mxu1 }
 0x84d   : > { %v1677_v51 = vpop.f32.mrb[9].mxu1 }
 0x84e   : > { %v863_v52 = vpop.f32.mrb[10].mxu1 }
 0x84f   : > { %v1678_v53 = vpop.f32.mrb[11].mxu1 }
 0x854   : > { %v1028_v54 = vpop.f32.mrb[12].mxu1 }
 0x855   : > { %v1689_v56 = vpop.f32.mrb[13].mxu1 }
 0x856   : > { %v1031_v57 = vpop.f32.mrb[14].mxu1 }
 0x857   : > { %v1690_v58 = vpop.f32.mrb[15].mxu1 }
 0x85a   : > { %v967_v59 = vpop.permute.xlu0 %966  ;;  %v970_v60 = vpop.permute.xlu1 %969 }
 0x85b   : > { %v972_v61 = vsel %vm499_vm7, %v967_v59, %v970_v60 }
 0x85c   : > { %v973_v62 = vsel %vm2560_vm8, %v972_v61, %v964_v46 }
 0x85d   : > { %978 = vrot.lane.b32.xlu1 %v973_v62, %s2176_s28  ;;  %975 = vrot.lane.b32.xlu0 %v973_v62, %s2177_s29 }
 0x85e   : > { %v1122_v36 = vpop.permute.xlu0 %1121 }
 0x85f   : > { %v1127_v1 = vsel %vm411_vm1, %v1122_v36, 0 }
 0x860   : > { %1698 = vmatpush3.bf16.xpose.msra.mxu1 %v1127_v1  ;;  %v1120_v2 = vpop.permute.xlu1 %1119 }
 0x861   : > { %1102 = vrot.lane.b32.xlu1 %v1603_v63, %s2185_s2  ;;  %1709 = vmatprep.subr.bf16.mxu1 %v2165_v0 }
 0x867   : > { %1700 = vmatmul.mubr.msk.bf16.vlgmr.msra.gmra.mrb[16].mxu1 %vm411_vm1, %v1120_v2 }
 0x868   : > { %1711 = vmatprep.mubr.msk.bf16.mxu1 %vm2166_vm0, %v2165_v0 }
 0x8cf   : > { %v976_v3 = vpop.permute.xlu0 %975  ;;  %v979_v4 = vpop.permute.xlu1 %978 }
 0x8d0   : > { %v981_v7 = vsel %vm511_vm9, %v976_v3, %v979_v4 }
 0x8d1   : > { %v982_v8 = vsel %vm2575_vm10, %v981_v7, %v973_v62 }
 0x8d2   : > { %v1029_v9 = vadd.f32 %v1028_v54, %v982_v8 }
 0x8d3   : > { %v1103_v12 = vpop.permute.xlu1 %1102 }
 0x8d4   : > { %v1034_v10 = vmul.f32 0.17677669, %v1029_v9  ;;  %v1105_v14 = vadd.f32 %v1103_v12, %v2520_v5 }
 0x8d6   : > { %v1035_v11 = vsel %vm568_vm11, %v1034_v10, -inf  ;;  %v1106_v15 = vpack.c.bf16 %v1105_v14, %v1105_v14  ;;  %v866_v14 = vpack.c.bf16 %v2668_v50, %v2668_v50 }
 0x8d7   : > { %1036 = vmax.xlane.f32.xlu0 %v1035_v11 }
 0x8ed   : > { %1047 = vrot.lane.b32.xlu0 %v2522_v6, %s2187_s10 }
 0x8f1   : > { %1213 = vrot.lane.b32.xlu0 %v1106_v15, %s2186_s13 }
 0x93a   : > { %v1163_v16 = vpop.f32.mrb[16].mxu1 }
 0x93b   : > { %v1701_v17 = vpop.f32.mrb[17].mxu1  ;;  %1175 = vrot.lane.b32.xlu0 %v1163_v16, %s2168_s16  ;;  %v1170_v26 = vrot.slane %v1163_v16, 1  ;;  %v1172_v27 = vrot.slane %v1163_v16, 2  ;;  %s2189_s16 = smov 40  }
 0x93c   : > { %v1166_v18 = vpop.f32.mrb[18].mxu1 }
 0x93d   : > { %v1702_v19 = vpop.f32.mrb[19].mxu1  ;;  %v1174_v28 = vsel %vm463_vm2, %v1170_v26, %v1172_v27  ;;  %v1854_v18 = vld [vmem:[#allocation10] sm:$0xff]   ;;  %vm1366_vm2 = vcmask 261120  }
 0x964   : > { %v1037_v20 = vpop.xlane.xlu0 %1036 }
 0x965   : > { %v1038_v21 = vsub.f32 %v1034_v10, %v1037_v20 }
 0x967   : > { %v1039_v22 = vmul.f32 1.442695, %v1038_v21 }
 0x968   : > { %v1048_v23 = vpop.permute.xlu0 %1047 }
 0x969   : > { %1864 = vpow2.f32 %v1039_v22  ;;  %v1053_v24 = vand.u32 %v1048_v23, %v2587_v13 }
 0x96b   : > { %1692 = vmatpush3.bf16.msra.mxu0 %v1053_v24  ;;  %v634_v24 = vpack.c.bf16 %v2618_v44, %v2618_v44 }
 0x96c   : > { %1703 = vmatprep.subr.bf16.mxu0 %v2165_v0  ;;  %v1214_v29 = vpop.permute.xlu0 %1213 }
 0x973   : > { %v1865_v5 = vpop.eup %1864 }
 0x974   : > { %v1041_v25 = vsel %vm568_vm11, %v1865_v5, 0.0 }
 0x975   : > { %1042 = vadd.xlane.f32.xlu1 %v1041_v25 }
 0x986   : > { %1215 = vrot.lane.b32.xlu1 %v2522_v6, %s2188_s14 }
 0x98a   : > { %1179 = vrot.lane.b32.xlu1 %v1174_v28, %s2169_s17  ;;  %v1608_v28 = vld [vmem:[#allocation11] ss:$0 sm:$0xff]  ;;  %s1613_s17 = sshll.u32 %s2252_s30, 7  ;;  %s1414_s30 = scalar_lea.sflag [#allocation4], %s2485_s21 }
 0x9ad   : > { %v1176_v32 = vpop.permute.xlu0 %1175 }
 0x9ae   : > { %v1182_v33 = vsel %vm472_vm3, 0.0, %v1176_v32 }
 0x9af   : > { %v1183_v35 = vsel %vm411_vm1, %v1182_v33, 0.0 }
 0xa02   : > { %v1043_v30 = vpop.xlane.xlu1 %1042 }
 0xa03   : > { %1866 = vrcp.f32 %v1043_v30  ;;  %v1409_v30 = vld [vmem:[%s2507_s8] sm:$0x7f]  ;;  %s2190_s8 = smov [#allocation14]  }
 0xa06   : > { %v1216_v34 = vpop.permute.xlu1 %1215 }
 0xa07   : > { %v1221_v42 = vsel %vm411_vm1, %v1216_v34, 0 }
 0xa0a   : > { %v1180_v37 = vpop.permute.xlu1 %1179 }
 0xa0b   : > { %v1184_v38 = vsel %vm475_vm4, %v1183_v35, %v1180_v37 }
 0xa0c   : > { %1189 = vrot.lane.b32.xlu1 %v1184_v38, %s2170_s22  ;;  %1186 = vrot.lane.b32.xlu0 %v1184_v38, %s2171_s26  ;;  %s392_s22 = scalar_lea.vmem [#allocation14], %s1584_s1 }
 0xa0d   : > { %v1867_v39 = vpop.eup %1866  ;;  %s1427_s26 = sshll.u32 %s392_s22, 4  ;;  %s2744_s26 = int_to_ptr.vmem [resolvable:$true] %s1427_s26 }
 0xa0e   : > { %v1045_v40 = vmul.f32 %v1867_v39, %v1865_v5  ;;  %s2072_s1 = scalar_lea.vmem %s2744_s26, 128 }
 0xa0f   : > { %p2073_p13 = scmp.ne.s32.totalorder %s2744_s26, %s2072_s1 }
 0xa10   : > { %v1046_v41 = vpack.c.bf16 %v1045_v40, %v1045_v40 }
 0xa11   : > { %p2074_p11 = pnand %p2073_p13, %p2846_p8 }
 0xa12   : > { %1694 = vmatmul.mubr.msk.bf16.vlgmr.msra.gmra.mrb[16].mxu0 %vm583_vm14, %v1046_v41 }
 0xa13   : > { %1704 = vmatpush3.bf16.xpose.msra.mxu0 %v1221_v42  ;;  %1705 = vmatprep.mubr.msk.bf16.mxu0 %vm2166_vm0, %v2165_v0  ;;  %p2075_p2 = pneg %p2074_p11 }
 0xa14   : > { %1715 = vmatprep.subr.bf16.mxu0 %v2165_v0 }
 0xa1a   : > { %1706 = vmatmul.mubr.msk.bf16.vlgmr.msra.gmra.mrb[20].mxu0 %vm411_vm1, %v1214_v29 }
 0xa1b   : > { %1719 = vmatprep.mubr.msk.bf16.mxu0 %vm2166_vm0, %v2165_v0  ;;  %1716 = vmatpush3.bf16.msra.mxu0 %v1854_v18  ;;  %vm1340_vm0 = vcmask 195584  }
 0xa1c   : > { %1717 = vmatprep.subr.bf16.mxu0 %v2165_v0 }
 0xa7e   : > { %v1190_v43 = vpop.permute.xlu1 %1189  ;;  %v1187_v46 = vpop.permute.xlu0 %1186 }
 0xa7f   : > { %v1192_v47 = vsel %vm487_vm5, %v1187_v46, %v1190_v43 }
 0xa80   : > { %v1193_v48 = vsel %vm2545_vm6, %v1192_v47, %v1184_v38 }
 0xa81   : > { %1198 = vrot.lane.b32.xlu1 %v1193_v48, %s2173_s11  ;;  %1195 = vrot.lane.b32.xlu0 %v1193_v48, %s2174_s20  ;;  %s2742_s20 = scalar_lea.hbm %s2793_s7, %s1613_s17 }
 0xae5   : > { %v1089_v49 = vpop.f32.mrb[16].mxu0 }
 0xae6   : > { %v1695_v51 = vpop.f32.mrb[17].mxu0  ;;  %v1095_v45 = vpack.c.bf16 %v1089_v49, %v1089_v49 }
 0xae7   : > { %v1092_v52 = vpop.f32.mrb[18].mxu0 }
 0xae8   : > { %v1696_v53 = vpop.f32.mrb[19].mxu0 }
 0xaed   : > { %v1257_v54 = vpop.f32.mrb[20].mxu0 }
 0xaee   : > { %v1707_v56 = vpop.f32.mrb[21].mxu0 }
 0xaef   : > { %v1260_v57 = vpop.f32.mrb[22].mxu0 }
 0xaf0   : > { %v1708_v58 = vpop.f32.mrb[23].mxu0 }
 0xaf3   : > { %v1199_v59 = vpop.permute.xlu1 %1198  ;;  %v1196_v60 = vpop.permute.xlu0 %1195 }
 0xaf4   : > { %v1201_v61 = vsel %vm499_vm7, %v1196_v60, %v1199_v59 }
 0xaf5   : > { %v1202_v31 = vsel %vm2560_vm8, %v1201_v61, %v1193_v48 }
 0xaf6   : > { %1207 = vrot.lane.b32.xlu1 %v1202_v31, %s2176_s28  ;;  %1204 = vrot.lane.b32.xlu0 %v1202_v31, %s2177_s29  ;;  %s2076_s28 = sshll.u32 %s2190_s8, 4  ;;  %s2077_s28 = int_to_ptr.vmem [resolvable:$false] %s2076_s28 }
 0xaf7   : > { %s2078_s29 = scalar_lea.vmem %s2077_s28, 256  ;;  %p2079_p4 = scmp.lt.s32.totalorder %s2744_s26, %s2077_s28 }
 0xaf8   : > { %p2080_p6 = scmp.lt.s32.totalorder %s2078_s29, %s2072_s1 }
 0xafa   : > { %p2081_p5 = por %p2080_p6, %p2079_p4 }
 0xafc   : > { %p2082_p10 = pnand %p2081_p5, %p2075_p2 }
 0xb68   : > { %v1208_v62 = vpop.permute.xlu1 %1207  ;;  %v1205_v36 = vpop.permute.xlu0 %1204 }
 0xb69   : > { %v1210_v63 = vsel %vm511_vm9, %v1205_v36, %v1208_v62 }
 0xb6a   : > { %v1211_v1 = vsel %vm2575_vm10, %v1210_v63, %v1202_v31 }
 0xb6b   : > { %v1258_v2 = vadd.f32 %v1257_v54, %v1211_v1 }
 0xb6d   : > { %v1263_v3 = vmul.f32 0.17677669, %v1258_v2 }
 0xb6f   : > { %v1264_v4 = vsel %vm568_vm11, %v1263_v3, -inf }
 0xb70   : > { %1265 = vmax.xlane.f32.xlu0 %v1264_v4 }
 0xb86   : > { %1276 = vrot.lane.b32.xlu0 %v2522_v6, %s2189_s16 }
 0xb8a   : > { %1329 = vrot.lane.b32.xlu0 %v1095_v45, %s2181_s23 }
 0xbfd   : > { %v1266_v7 = vpop.xlane.xlu0 %1265 }
 0xbfe   : > { %v1267_v8 = vsub.f32 %v1263_v3, %v1266_v7 }
 0xc00   : > { %v1268_v9 = vmul.f32 1.442695, %v1267_v8 }
 0xc01   : > { %v1277_v10 = vpop.permute.xlu0 %1276 }
 0xc02   : > { %1868 = vpow2.f32 %v1268_v9  ;;  %v1282_v11 = vand.u32 %v1277_v10, %v2587_v13  ;;  %v1855_v13 = vld [vmem:[#allocation10 + $0x8] sm:$0xff]  }
 0xc03   : > { %1718 = vmatpush3.bf16.msra.mxu0 %v1855_v13 }
 0xc04   : > { %1710 = vmatpush3.bf16.msra.mxu1 %v1282_v11 }
 0xc05   : > { %v1330_v0 = vpop.permute.xlu0 %1329 }
 0xc0c   : > { %v1869_v55 = vpop.eup %1868 }
 0xc0d   : > { %v1270_v12 = vsel %vm568_vm11, %v1869_v55, 0.0 }
 0xc0e   : > { %1271 = vadd.xlane.f32.xlu1 %v1270_v12 }
 0xc1f   : > { %1326 = vrot.lane.b32.xlu1 %v866_v14, %s2172_s18 }
 0xc9b   : > { %v1272_v6 = vpop.xlane.xlu1 %1271 }
 0xc9c   : > { %1870 = vrcp.f32 %v1272_v6 }
 0xc9f   : > { %v1327_v23 = vpop.permute.xlu1 %1326 }
 0xca0   : > { %v1336_v5 = vsel %vm411_vm1, %v634_v24, %v1327_v23  ;;  %vm1411_vm1 = vcmask 260096  }
 0xca1   : > { %v1339_v25 = vsel %vm1337_vm15, %v1336_v5, %v1330_v0 }
 0xca6   : > { %v1871_v15 = vpop.eup %1870 }
 0xca7   : > { %v1274_v16 = vmul.f32 %v1871_v15, %v1869_v55 }
 0xca9   : > { %v1275_v17 = vpack.c.bf16 %v1274_v16, %v1274_v16 }
 0xcab   : > { %1712 = vmatmul.mubr.msk.bf16.vlgmr.msra.gmra.mrb[20].mxu1 %vm583_vm14, %v1275_v17 }
 0xd7e   : > { %v1318_v19 = vpop.f32.mrb[20].mxu1 }
 0xd7f   : > { %v1324_v20 = vpack.c.bf16 %v1318_v19, %v1318_v19  ;;  %v1713_v21 = vpop.f32.mrb[21].mxu1 }
 0xd80   : > { %v1321_v22 = vpop.f32.mrb[22].mxu1 }
 0xd81   : > { %1332 = vrot.lane.b32.xlu1 %v1324_v20, %s2185_s2  ;;  %v1714_v50 = vpop.f32.mrb[23].mxu1 }
 0xdf3   : > { %v1333_v26 = vpop.permute.xlu1 %1332 }
 0xdf4   : > { %v1342_v27 = vsel %vm1340_vm0, %v1339_v25, %v1333_v26 }
 0xdf5   : > { %1720 = vmatmul.mubr.msk.bf16.vlgmr.msra.gmra.mrb[24].mxu0 %vm1366_vm2, %v1342_v27 }
 0xec8   : > { %v1403_v29 = vpop.f32.mrb[24].mxu0 }
 0xec9   : > { %v1404_v44 = vadd.f32 %v1608_v28, %v1403_v29  ;;  %v1721_v32 = vpop.f32.mrb[25].mxu0 }
 0xeca   : > { %v1406_v33 = vpop.f32.mrb[26].mxu0 }
 0xecb   : > { %v1410_v34 = vadd.f32 %v1409_v30, %v1404_v44  ;;  %v1722_v35 = vpop.f32.mrb[27].mxu0 }
 0xecd   : > { %1412 = vst.msk [vmem:[%s392_s22] sm:$0x7f] %vm1411_vm1, %v1410_v34 }
 0xece   : > { %2085 = shalt.err (!%p2082_p10)
}
 0xecf   : > { %s2086_s21 = scalar_lea.hbm %s2742_s20, 128  ;;  %s2090_s23 = scalar_lea.hbm %s2793_s7, 256 }
 0xed0   : > { %p2087_p7 = scmp.ne.s32.totalorder %s2742_s20, %s2086_s21  ;;  %p2091_p1 = scmp.lt.u32.totalorder %s2742_s20, %s2793_s7 }
 0xed1   : > { %p2092_p3 = scmp.lt.u32.totalorder %s2090_s23, %s2086_s21  ;;  %p2094_p13 = scmp.lt.u32.totalorder %s2086_s21, %s2742_s20 }
 0xed2   : > { %p2088_p0 = pnand %p2087_p7, %p2846_p8 }
 0xed3   : > { %p2093_p12 = por %p2092_p3, %p2091_p1 }
 0xed4   : > { %p2089_p9 = pneg %p2088_p0 }
 0xed5   : > { %p2095_p11 = por %p2094_p13, %p2093_p12 }
 0xed7   : > { %p2096_p2 = pnand %p2095_p11, %p2089_p9 }
 0xed9   : > { %2099 = shalt.err (!%p2096_p2)
}
 0xeda   : > { %1747 = dma.vmem_to_hbm [thread:$0]  (%p2846_p8), %s2744_s26, 128, %s2742_s20, %s1414_s30  }
 0xedb PF: > { %s2847_s0 = sld [smem:[#allocation24_spill]]  ;;  %s1439_s2 = sand.u32 1, %s2142_s24  }
 0xedc   : > { %p2849_p6 = scmp.ge.s32.totalorder %s2154_s27, 2  ;;  %s1440_s13 = scalar_lea.sflag [#allocation4], %s1439_s2 }
 0xee1   : > { %p2848_p4 = scmp.ne.s32.totalorder %s2847_s0, 0 }
 0xee3   : > { %p1773_p5 = pnand %p2849_p6, %p2848_p4 }
 0xee5   : > { %2137 = dma.done.wait (!%p1773_p5), %s1440_s13, 128  }
 0xee6   : > { %2139 = vsyncadd (!%p1773_p5), %s1440_s13, 4294967168  ;;  %s2850_s27 = sld [smem:[#allocation22_spill]]  ;;  %s2851_s10 = sld [smem:[#allocation21_spill]] }
 0xee7   : > { %s2852_s26 = sld [smem:[#allocation23_spill]]  ;;  %s2853_s24 = smov %s2146_s25 }
 0xeec   : > { %p23_p10 = scmp.ge.s32.totalorder %s2850_s27, 4   ;;  %s2854_s25 = smov %s2851_s10 }
 0xeee   :  { %25 = sbr.rel (!%p23_p10) target bundleno = 13 (0xd), region = 124 }
 0xef5   :  { %1445 = vsyncpa [#allocation3], 1 }
 0xef6   :  { %1447 = vsyncpa [#allocation3 + $0x1], 1 }
 0xef7   :  { %1448 = vsyncpa [#allocation6], 1 }
 0xef8   :  { %1449 = vsyncpa [#allocation9], 1 }
 0xef9   :  { %1450 = vsyncpa [#allocation12], 1 }
 0xefa   :  { %1451 = vsyncpa [#allocation4], 1 }
 0xefb   :  { %1453 = vsyncpa [#allocation4 + $0x1], 1 }

// kernel: conformer_encoder.32
= control target key start
LH: loop header
LB: loop body
LE: loop exit
PB: predicated region body
PF: predicated region fallthrough
CT: control target
= control target key end

     0   :  { %8 = vsyncpa [#allocation3], 0  ;;  %s319_s0 = inlined_call_operand.hbm [shape: f32[16,32], index: 0, kind: input, shape index: {}]   ;;  %s320_s1 = inlined_call_operand.hbm [shape: f32[1,32], index: 1, kind: input, shape index: {}]   ;;  %s321_s2 = inlined_call_operand.hbm [shape: f32[1,32], index: 2, kind: input, shape index: {}]   ;;  %s322_s3 = inlined_call_operand.hbm [shape: f32[16,32], index: 3, kind: output, shape index: {}]  }
   0x1   :  { %9 = vsyncpa [#allocation6], 0 }
   0x2   :  { %10 = vsyncpa [#allocation4], 0  ;;  %s226_s12 = smov [#allocation5]   ;;  %s227_s14 = smov [#allocation2]  }
   0x3   :  { %s29_s13 = sshll.u32 %s226_s12, 4  ;;  %s16_s15 = sshll.u32 %s227_s14, 4  ;;  %s30_s13 = int_to_ptr.vmem [resolvable:$true] %s29_s13  ;;  %s252_s15 = int_to_ptr.vmem [resolvable:$true] %s16_s15 }
   0x4   :  { %s132_s18 = scalar_lea.hbm %s320_s1, 16 }
   0x5   :  { %p133_p0 = scmp.ne.s32.totalorder %s320_s1, %s132_s18  ;;  %p136_p1 = scmp.lt.u32.totalorder %s132_s18, %s320_s1 }
   0x7   :  { %p138_p2 = pnand %p136_p1, %p133_p0 }
   0x9   :  { %141 = shalt.err (!%p138_p2)
}
   0xa   :  { %s142_s23 = scalar_lea.vmem %s30_s13, 16  ;;  %s146_s24 = scalar_lea.vmem %s30_s13, 32 }
   0xb   :  { %p143_p3 = scmp.ne.s32.totalorder %s30_s13, %s142_s23  ;;  %p147_p4 = scmp.lt.s32.totalorder %s30_s13, %s30_s13 }
   0xc   :  { %p148_p5 = scmp.lt.s32.totalorder %s146_s24, %s142_s23 }
   0xe   :  { %p149_p6 = por %p148_p5, %p147_p4 }
  0x10   :  { %p150_p7 = pnand %p149_p6, %p143_p3 }
  0x12   :  { %153 = shalt.err (!%p150_p7)
}
  0x13   :  { %32 = dma.hbm_to_vmem [thread:$0]  %s320_s1, 16, %s30_s13, [#allocation6]  }
  0x14   :  { %s154_s29 = scalar_lea.hbm %s319_s0, 256 }
  0x15   :  { %p155_p8 = scmp.ne.s32.totalorder %s319_s0, %s154_s29  ;;  %p158_p9 = scmp.lt.u32.totalorder %s154_s29, %s319_s0 }
  0x17   :  { %p160_p10 = pnand %p158_p9, %p155_p8 }
  0x19   :  { %163 = shalt.err (!%p160_p10)
}
  0x1a   :  { %s164_s7 = scalar_lea.vmem %s252_s15, 256  ;;  %p169_p12 = scmp.lt.s32.totalorder %s252_s15, %s252_s15 }
  0x1b   :  { %p165_p11 = scmp.ne.s32.totalorder %s252_s15, %s164_s7  ;;  %p170_p13 = scmp.lt.s32.totalorder %s164_s7, %s164_s7 }
  0x1d   :  { %p171_p0 = por %p170_p13, %p169_p12 }
  0x1f   :  { %p172_p1 = pnand %p171_p0, %p165_p11 }
  0x21   :  { %175 = shalt.err (!%p172_p1)
}
  0x22   :  { %s228_s1 = smov 128   ;;  %s229_s8 = smov 8  }
  0x23   :  { %22 = dma.hbm_to_vmem [thread:$0]  %s319_s0, 256, %s252_s15, [#allocation3], %s228_s1, %s228_s1, %s229_s8  }
  0x24   :  { %s230_s11 = smov [#allocation7]   ;;  %s176_s16 = scalar_lea.hbm %s321_s2, 16 }
  0x25   :  { %s39_s12 = sshll.u32 %s230_s11, 4  ;;  %p177_p2 = scmp.ne.s32.totalorder %s321_s2, %s176_s16  ;;  %s40_s12 = int_to_ptr.vmem [resolvable:$true] %s39_s12 }
  0x26   :  { %p180_p3 = scmp.lt.u32.totalorder %s176_s16, %s321_s2 }
  0x28   :  { %p182_p4 = pnand %p180_p3, %p177_p2 }
  0x2a   :  { %185 = shalt.err (!%p182_p4)
}
  0x2b   :  { %s186_s21 = scalar_lea.vmem %s40_s12, 16  ;;  %s190_s0 = scalar_lea.vmem %s40_s12, 32 }
  0x2c   :  { %p187_p5 = scmp.ne.s32.totalorder %s40_s12, %s186_s21  ;;  %p191_p6 = scmp.lt.s32.totalorder %s40_s12, %s40_s12 }
  0x2d   :  { %p192_p7 = scmp.lt.s32.totalorder %s190_s0, %s186_s21 }
  0x2f   :  { %p193_p8 = por %p192_p7, %p191_p6 }
  0x31   :  { %p194_p9 = pnand %p193_p8, %p187_p5 }
  0x33   :  { %197 = shalt.err (!%p194_p9)
}
  0x34   :  { %42 = dma.hbm_to_vmem [thread:$0]  %s321_s2, 16, %s40_s12, [#allocation6]  }
  0x35   :  { %220 = dma.done.wait [#allocation3], 256  }
  0x36   :  { %221 = vsyncadd [#allocation3], 4294967040 }
  0x37   :  { %222 = dma.done.wait [#allocation6], 32  }
  0x38   :  { %223 = vsyncadd [#allocation6], 4294967264  ;;  %vm54_vm0 = vcmask 261120   ;;  %v52_v0 = vld [vmem:[#allocation2] sm:$0xff]  ;;  %v53_v1 = vld [vmem:[#allocation2 + $0x8] sm:$0xff]  ;;  %s231_s2 = smov [#allocation8]  }
  0x39   :  { %v55_v2 = vsel %vm54_vm0, %v52_v0, 0.0  ;;  %v58_v3 = vsel %vm54_vm0, %v53_v1, 0.0  ;;  %v120_v21 = vld [vmem:[#allocation5] ss:$0 sm:$0xff]  ;;  %v121_v23 = vld [vmem:[#allocation7] ss:$0 sm:$0xff] }
  0x3a   :  { %56 = vadd.xlane.f32.xlu0 %v55_v2  ;;  %s107_s23 = sshll.u32 %s231_s2, 4  ;;  %s108_s23 = int_to_ptr.vmem [resolvable:$true] %s107_s23 }
  0x3b   :  { %s198_s24 = scalar_lea.vmem %s108_s23, 256  ;;  %p203_p11 = scmp.lt.s32.totalorder %s108_s23, %s108_s23 }
  0x3c   :  { %p199_p10 = scmp.ne.s32.totalorder %s108_s23, %s198_s24  ;;  %p204_p12 = scmp.lt.s32.totalorder %s198_s24, %s198_s24 }
  0x3e   :  { %59 = vadd.xlane.f32.xlu0 %v58_v3  ;;  %p205_p13 = por %p204_p12, %p203_p11 }
  0x40   :  { %p206_p0 = pnand %p205_p13, %p199_p10 }
  0xc7   :  { %v57_v4 = vpop.xlane.xlu0 %56 }
  0xc8   :  { %v62_v5 = vmul.f32 0.03125, %v57_v4 }
  0xca   :  { %v64_v6 = vsub.f32 %v52_v0, %v62_v5 }
  0xcb   :  { %v60_v7 = vpop.xlane.xlu0 %59 }
  0xcc   :  { %v63_v8 = vmul.f32 0.03125, %v60_v7  ;;  %v66_v9 = vmul.f32 %v64_v6, %v64_v6 }
  0xce   :  { %v65_v10 = vsub.f32 %v53_v1, %v63_v8  ;;  %v68_v11 = vsel %vm54_vm0, %v66_v9, 0.0 }
  0xcf   :  { %69 = vadd.xlane.f32.xlu1 %v68_v11 }
  0xd0   :  { %v67_v12 = vmul.f32 %v65_v10, %v65_v10 }
  0xd2   :  { %v71_v13 = vsel %vm54_vm0, %v67_v12, 0.0 }
  0xd3   :  { %72 = vadd.xlane.f32.xlu1 %v71_v13 }
 0x15c   :  { %v70_v14 = vpop.xlane.xlu1 %69 }
 0x15d   :  { %v74_v15 = vmul.f32 0.03125, %v70_v14 }
 0x15f   :  { %v76_v16 = vadd.f32 1e-05, %v74_v15 }
 0x160   :  { %v73_v17 = vpop.xlane.xlu1 %72 }
 0x161   :  { %128 = vrsqrt.f32 %v76_v16  ;;  %v75_v18 = vmul.f32 0.03125, %v73_v17 }
 0x163   :  { %v77_v19 = vadd.f32 1e-05, %v75_v18 }
 0x165   :  { %130 = vrsqrt.f32 %v77_v19 }
 0x16b   :  { %v129_v20 = vpop.eup %128 }
 0x16c   :  { %v80_v22 = vmul.f32 %v129_v20, %v64_v6 }
 0x16e   :  { %v89_v24 = vmul.f32 %v120_v21, %v80_v22 }
 0x16f   :  { %v131_v25 = vpop.eup %130 }
 0x170   :  { %v81_v26 = vmul.f32 %v131_v25, %v65_v10  ;;  %v98_v27 = vadd.f32 %v121_v23, %v89_v24 }
 0x172   :  { %v90_v28 = vmul.f32 %v120_v21, %v81_v26  ;;  %100 = vst.msk [vmem:[#allocation8] sm:$0xff] %vm54_vm0, %v98_v27 }
 0x174   :  { %v99_v29 = vadd.f32 %v121_v23, %v90_v28 }
 0x176   :  { %101 = vst.msk [vmem:[#allocation8 + $0x8] sm:$0xff] %vm54_vm0, %v99_v29 }
 0x177   :  { %209 = shalt.err (!%p206_p0)
}
 0x178   :  { %s210_s27 = scalar_lea.hbm %s322_s3, 256 }
 0x179   :  { %p211_p1 = scmp.ne.s32.totalorder %s322_s3, %s210_s27  ;;  %p214_p2 = scmp.lt.u32.totalorder %s210_s27, %s322_s3 }
 0x17b   :  { %p216_p3 = pnand %p214_p2, %p211_p1 }
 0x17d   :  { %219 = shalt.err (!%p216_p3)
}
 0x17e   :  { %113 = dma.vmem_to_hbm [thread:$0]  %s108_s23, 256, %s322_s3, [#allocation4], %s228_s1, %s228_s1, %s229_s8  }
 0x17f   :  { %224 = dma.done.wait [#allocation4], 256  }
 0x180   :  { %225 = vsyncadd [#allocation4], 4294967040 }
 0x181   :  { %117 = vsyncpa [#allocation3], 1 }
 0x182   :  { %118 = vsyncpa [#allocation6], 1 }
 0x183   :  { %119 = vsyncpa [#allocation4], 1 }

// kernel: conformer_encoder.30
= control target key start
LH: loop header
LB: loop body
LE: loop exit
PB: predicated region body
PF: predicated region fallthrough
CT: control target
= control target key end

     0   :  { %9 = vsyncpa [#allocation4], 0  ;;  %s463_s0 = inlined_call_operand.hbm [shape: bf16[16,32], index: 0, kind: input, shape index: {}]   ;;  %s464_s1 = inlined_call_operand.hbm [shape: bf16[32,32], index: 1, kind: input, shape index: {}]   ;;  %s465_s2 = inlined_call_operand.hbm [shape: f32[1,32], index: 2, kind: input, shape index: {}]   ;;  %s466_s3 = inlined_call_operand.hbm [shape: f32[16,32], index: 3, kind: input, shape index: {}]   ;;  %s467_s4 = inlined_call_operand.hbm [shape: f32[16,32], index: 4, kind: output, shape index: {}]  }
   0x1   :  { %10 = vsyncpa [#allocation7], 0 }
   0x2   :  { %11 = vsyncpa [#allocation10], 0 }
   0x3   :  { %12 = vsyncpa [#allocation5], 0  ;;  %s340_s15 = smov [#allocation6]   ;;  %s341_s17 = smov [#allocation3]  }
   0x4   :  { %s30_s16 = sshll.u32 %s340_s15, 4  ;;  %s18_s18 = sshll.u32 %s341_s17, 4  ;;  %s31_s16 = int_to_ptr.vmem [resolvable:$true] %s30_s16  ;;  %s376_s18 = int_to_ptr.vmem [resolvable:$true] %s18_s18 }
   0x5   :  { %s222_s21 = scalar_lea.hbm %s464_s1, 256 }
   0x6   :  { %p223_p0 = scmp.ne.s32.totalorder %s464_s1, %s222_s21  ;;  %p226_p1 = scmp.lt.u32.totalorder %s222_s21, %s464_s1 }
   0x8   :  { %p228_p2 = pnand %p226_p1, %p223_p0 }
   0xa   :  { %231 = shalt.err (!%p228_p2)
}
   0xb   :  { %s232_s26 = scalar_lea.vmem %s31_s16, 256  ;;  %p237_p4 = scmp.lt.s32.totalorder %s31_s16, %s31_s16 }
   0xc   :  { %p233_p3 = scmp.ne.s32.totalorder %s31_s16, %s232_s26  ;;  %p238_p5 = scmp.lt.s32.totalorder %s232_s26, %s232_s26 }
   0xe   :  { %p239_p6 = por %p238_p5, %p237_p4 }
  0x10   :  { %p240_p7 = pnand %p239_p6, %p233_p3 }
  0x12   :  { %243 = shalt.err (!%p240_p7)
}
  0x13   :  { %s342_s27 = smov 64   ;;  %s343_s28 = smov 4  }
  0x14   :  { %36 = dma.hbm_to_vmem [thread:$0]  %s464_s1, 256, %s31_s16, [#allocation7], %s342_s27, %s342_s27, %s343_s28  }
  0x15   :  { %s244_s7 = scalar_lea.hbm %s463_s0, 128 }
  0x16   :  { %p245_p8 = scmp.ne.s32.totalorder %s463_s0, %s244_s7  ;;  %p248_p9 = scmp.lt.u32.totalorder %s244_s7, %s463_s0 }
  0x18   :  { %p250_p10 = pnand %p248_p9, %p245_p8 }
  0x1a   :  { %253 = shalt.err (!%p250_p10)
}
  0x1b   :  { %s254_s12 = scalar_lea.vmem %s376_s18, 128  ;;  %p259_p12 = scmp.lt.s32.totalorder %s376_s18, %s376_s18 }
  0x1c   :  { %p255_p11 = scmp.ne.s32.totalorder %s376_s18, %s254_s12  ;;  %p260_p13 = scmp.lt.s32.totalorder %s254_s12, %s254_s12 }
  0x1e   :  { %p261_p0 = por %p260_p13, %p259_p12 }
  0x20   :  { %p262_p1 = pnand %p261_p0, %p255_p11 }
  0x22   :  { %265 = shalt.err (!%p262_p1)
}
  0x23   :  { %24 = dma.hbm_to_vmem [thread:$0]  %s463_s0, 128, %s376_s18, [#allocation4], %s342_s27, %s342_s27, %s343_s28  }
  0x24   :  { %s344_s14 = smov [#allocation8]   ;;  %s345_s16 = smov [#allocation9]  }
  0x25   :  { %s43_s15 = sshll.u32 %s344_s14, 4  ;;  %s52_s17 = sshll.u32 %s345_s16, 4  ;;  %s44_s15 = int_to_ptr.vmem [resolvable:$true] %s43_s15  ;;  %s407_s17 = int_to_ptr.vmem [resolvable:$true] %s52_s17 }
  0x26   :  { %s266_s21 = scalar_lea.hbm %s465_s2, 16 }
  0x27   :  { %p267_p2 = scmp.ne.s32.totalorder %s465_s2, %s266_s21  ;;  %p270_p3 = scmp.lt.u32.totalorder %s266_s21, %s465_s2 }
  0x29   :  { %p272_p4 = pnand %p270_p3, %p267_p2 }
  0x2b   :  { %275 = shalt.err (!%p272_p4)
}
  0x2c   :  { %s276_s0 = scalar_lea.vmem %s44_s15, 16  ;;  %s280_s18 = scalar_lea.vmem %s44_s15, 32 }
  0x2d   :  { %p277_p5 = scmp.ne.s32.totalorder %s44_s15, %s276_s0  ;;  %p281_p6 = scmp.lt.s32.totalorder %s44_s15, %s44_s15 }
  0x2e   :  { %p282_p7 = scmp.lt.s32.totalorder %s280_s18, %s276_s0 }
  0x30   :  { %p283_p8 = por %p282_p7, %p281_p6 }
  0x32   :  { %p284_p9 = pnand %p283_p8, %p277_p5 }
  0x34   :  { %287 = shalt.err (!%p284_p9)
}
  0x35   :  { %46 = dma.hbm_to_vmem [thread:$0]  %s465_s2, 16, %s44_s15, [#allocation7]  }
  0x36   :  { %s288_s30 = scalar_lea.hbm %s466_s3, 256 }
  0x37   :  { %p289_p10 = scmp.ne.s32.totalorder %s466_s3, %s288_s30  ;;  %p292_p11 = scmp.lt.u32.totalorder %s288_s30, %s466_s3 }
  0x39   :  { %p294_p12 = pnand %p292_p11, %p289_p10 }
  0x3b   :  { %297 = shalt.err (!%p294_p12)
}
  0x3c   :  { %s298_s9 = scalar_lea.vmem %s407_s17, 256  ;;  %p303_p0 = scmp.lt.s32.totalorder %s407_s17, %s407_s17 }
  0x3d   :  { %p299_p13 = scmp.ne.s32.totalorder %s407_s17, %s298_s9  ;;  %p304_p1 = scmp.lt.s32.totalorder %s298_s9, %s298_s9 }
  0x3f   :  { %p305_p2 = por %p304_p1, %p303_p0 }
  0x41   :  { %p306_p3 = pnand %p305_p2, %p299_p13 }
  0x43   :  { %309 = shalt.err (!%p306_p3)
}
  0x44   :  { %s346_s2 = smov 128   ;;  %s347_s10 = smov 8  }
  0x45   :  { %58 = dma.hbm_to_vmem [thread:$0]  %s466_s3, 256, %s407_s17, [#allocation10], %s346_s2, %s346_s2, %s347_s10  }
  0x46   :  { %332 = dma.done.wait [#allocation4], 128  }
  0x47   :  { %333 = vsyncadd [#allocation4], 4294967168 }
  0x48   :  { %334 = dma.done.wait [#allocation7], 272  }
  0x49   :  { %335 = vsyncadd [#allocation7], 4294967024 }
  0x4a   :  { %336 = dma.done.wait [#allocation10], 256  }
  0x4b   :  { %337 = vsyncadd [#allocation10], 4294967040  ;;  %vm76_vm0 = vcmask 261120   ;;  %v348_v0 = vmov 0.0   ;;  %vm349_vm1 = vmmov 0   ;;  %v219_v1 = vld [vmem:[#allocation6] sm:$0xff]  }
  0x4c   :  { %200 = vmatprep.subr.bf16.mxu0 %v348_v0  ;;  %204 = vmatprep.mubr.msk.bf16.mxu0 %vm349_vm1, %v348_v0  ;;  %77 = vst.msk [vmem:[#allocation2] sm:$0xff] %vm76_vm0, %v348_v0  ;;  %78 = vst.msk [vmem:[#allocation2 + $0x8] sm:$0xff] %vm76_vm0, %v348_v0  ;;  %v220_v2 = vld [vmem:[#allocation6 + $0x8] sm:$0xff]   ;;  %v221_v3 = vld [vmem:[#allocation3] sm:$0xff]   ;;  %s350_s3 = smov [#allocation11]  }
  0x4d   :  { %201 = vmatpush3.bf16.msra.mxu0 %v219_v1  ;;  %v196_v12 = vld [vmem:[#allocation8] ss:$0 sm:$0xff]  ;;  %v167_v14 = vld [vmem:[#allocation9] sm:$0xff]  ;;  %v168_v17 = vld [vmem:[#allocation9 + $0x8] sm:$0xff]  ;;  %s178_s1 = sshll.u32 %s350_s3, 4  ;;  %s179_s1 = int_to_ptr.vmem [resolvable:$true] %s178_s1 }
  0x4e   :  { %202 = vmatprep.subr.bf16.mxu0 %v348_v0  ;;  %s310_s13 = scalar_lea.vmem %s179_s1, 256  ;;  %p315_p5 = scmp.lt.s32.totalorder %s179_s1, %s179_s1 }
  0x4f   :  { %p311_p4 = scmp.ne.s32.totalorder %s179_s1, %s310_s13  ;;  %p316_p6 = scmp.lt.s32.totalorder %s310_s13, %s310_s13 }
  0x51   :  { %203 = vmatpush3.bf16.msra.mxu0 %v220_v2  ;;  %p317_p7 = por %p316_p6, %p315_p5 }
  0x53   :  { %v79_v4 = vld [vmem:[#allocation2] sm:$0xff]  ;;  %v80_v6 = vld [vmem:[#allocation2 + $0x8] sm:$0xff]  ;;  %p318_p8 = pnand %p317_p7, %p311_p4 }
  0x54   :  { %205 = vmatmul.mubr.msk.bf16.vlgmr.msra.gmra.mrb[0].mxu0 %vm76_vm0, %v221_v3 }
 0x127   :  { %v142_v5 = vpop.f32.mrb[0].mxu0 }
 0x128   :  { %v149_v7 = vadd.f32 %v142_v5, %v79_v4  ;;  %v206_v8 = vpop.f32.mrb[1].mxu0 }
 0x129   :  { %v145_v9 = vpop.f32.mrb[2].mxu0 }
 0x12a   :  { %151 = vst.msk [vmem:[#allocation2] sm:$0xff] %vm76_vm0, %v149_v7  ;;  %v150_v10 = vadd.f32 %v145_v9, %v80_v6  ;;  %v207_v11 = vpop.f32.mrb[3].mxu0 }
 0x12c   :  { %152 = vst.msk [vmem:[#allocation2 + $0x8] sm:$0xff] %vm76_vm0, %v150_v10 }
 0x131   :  { %v156_v13 = vld [vmem:[#allocation2] sm:$0xff] }
 0x132   :  { %v165_v15 = vadd.f32 %v196_v12, %v156_v13 }
 0x133   :  { %v157_v16 = vld [vmem:[#allocation2 + $0x8] sm:$0xff] }
 0x134   :  { %v166_v18 = vadd.f32 %v196_v12, %v157_v16  ;;  %v169_v19 = vadd.f32 %v167_v14, %v165_v15 }
 0x136   :  { %v170_v20 = vadd.f32 %v168_v17, %v166_v18  ;;  %171 = vst.msk [vmem:[#allocation11] sm:$0xff] %vm76_vm0, %v169_v19 }
 0x138   :  { %172 = vst.msk [vmem:[#allocation11 + $0x8] sm:$0xff] %vm76_vm0, %v170_v20 }
 0x139   :  { %321 = shalt.err (!%p318_p8)
}
 0x13a   :  { %s322_s16 = scalar_lea.hbm %s467_s4, 256 }
 0x13b   :  { %p323_p9 = scmp.ne.s32.totalorder %s467_s4, %s322_s16  ;;  %p326_p10 = scmp.lt.u32.totalorder %s322_s16, %s467_s4 }
 0x13d   :  { %p328_p11 = pnand %p326_p10, %p323_p9 }
 0x13f   :  { %331 = shalt.err (!%p328_p11)
}
 0x140   :  { %184 = dma.vmem_to_hbm [thread:$0]  %s179_s1, 256, %s467_s4, [#allocation5], %s346_s2, %s346_s2, %s347_s10  }
 0x141   :  { %338 = dma.done.wait [#allocation5], 256  }
 0x142   :  { %339 = vsyncadd [#allocation5], 4294967040 }
 0x143   :  { %188 = vsyncpa [#allocation4], 1 }
 0x144   :  { %189 = vsyncpa [#allocation7], 1 }
 0x145   :  { %190 = vsyncpa [#allocation10], 1 }
 0x146   :  { %191 = vsyncpa [#allocation5], 1 }

</bundles_post_ra>
